<compile_context>
chip_gen: v6e
topology: v6e:2x2x1
jax: 0.10.0
libtpu: 0.0.40
codegen_flags: <defaults>
</compile_context>

<pallas_src>
import jax
import jax.numpy as jnp
from jax.experimental import pallas as pl
from jax.experimental.pallas import tpu as pltpu


# ----------------------------------------------------------------------------
# Fused ResNet-UNet kernel: one grid step per B_blk images, all in VMEM.
# ----------------------------------------------------------------------------
def _make_kernel(B_blk, H, W, emb_p, n_out):
    HW = H * W
    Ho, Wo = H // 2, W // 2
    Lf = B_blk * HW           # full-res flattened length  (lane dim)
    Lh = B_blk * Ho * Wo      # half-res flattened length  (lane dim)

    def kernel(x_ref, mfull_ref, mhalf_ref, dmat_ref, umat_ref,
               ws_ref, bs_ref, w1a_ref, b1a_ref, w1b_ref, b1b_ref,
               wd_ref, bd_ref, w2a_ref, b2a_ref, w2b_ref, b2b_ref,
               wu_ref, bu_ref, wf_ref, bf_ref, wh_ref, bh_ref,
               out_ref, im_ref):

        def conv3x3(xs, w_ref, b_ref, w_img, length, mask_ref, residual=None):
            """3x3 'same' conv, channel-major.

            xs: list of (cin_i, length) f32 activations (channel-concat input).
            Stages a (9*cin_tot, length) bf16 im2col tile in VMEM using lane
            rolls + per-tap boundary masks (zero padding at image borders;
            the masks also kill cross-image bleed of the roll), then issues a
            single MXU matmul with K = 9*cin_tot.  Returns
            relu(W @ im2col + b [+ residual]) as (cout, length) f32.
            """
            cin_tot = sum(x.shape[0] for x in xs)
            for t in range(9):
                di, dj = t // 3, t % 3
                delta = (di - 1) * w_img + (dj - 1)     # tap offset, flattened
                shift = (-delta) % length               # jnp.roll convention
                m = mask_ref[pl.ds(t, 1), :]            # (1, length) f32
                row = t * cin_tot
                for x in xs:
                    ci = x.shape[0]
                    rolled = x if shift == 0 else pltpu.roll(x, shift, axis=1)
                    tap = rolled if (di == 1 and dj == 1) else rolled * m
                    im_ref[pl.ds(row, ci), pl.ds(0, length)] = (
                        tap.astype(jnp.bfloat16))
                    row += ci
            acc = jnp.dot(w_ref[...],
                          im_ref[pl.ds(0, 9 * cin_tot), pl.ds(0, length)],
                          preferred_element_type=jnp.float32)
            acc = acc + b_ref[...]                      # bias (cout, 1) f32
            if residual is not None:
                acc = acc + residual                    # residual add in f32
            return jnp.maximum(acc, 0.0)

        bf16 = jnp.bfloat16
        # first-layer output (gathered + mask-gated outside), channel-major
        x_cm = x_ref[0].astype(jnp.float32)             # (emb_p, Lf)

        # ---- encoder ----
        e = conv3x3([x_cm], ws_ref, bs_ref, W, Lf, mfull_ref)        # (16, Lf)
        r = conv3x3([e], w1a_ref, b1a_ref, W, Lf, mfull_ref)
        e1 = conv3x3([r], w1b_ref, b1b_ref, W, Lf, mfull_ref,
                     residual=e)                                     # resblock 1
        f = conv3x3([e1], wd_ref, bd_ref, W, Lf, mfull_ref)          # (32, Lf)
        # stride-2 subsample as a one-hot MXU matmul (K = Lf)
        e2 = jnp.dot(f.astype(bf16), dmat_ref[...],
                     preferred_element_type=jnp.float32)             # (32, Lh)
        r2 = conv3x3([e2], w2a_ref, b2a_ref, Wo, Lh, mhalf_ref)
        e2b = conv3x3([r2], w2b_ref, b2b_ref, Wo, Lh, mhalf_ref,
                      residual=e2)                                   # resblock 2

        # ---- decoder ----
        # nearest-neighbour 2x upsample as a one-hot MXU matmul (K = Lh)
        up = jnp.dot(e2b.astype(bf16), umat_ref[...],
                     preferred_element_type=jnp.float32)             # (32, Lf)
        d1 = conv3x3([up], wu_ref, bu_ref, W, Lf, mfull_ref)         # (16, Lf)
        # fuse(concat([d1, e1])) as ONE K=9*32 matmul (per-tap interleave)
        d = conv3x3([d1, e1], wf_ref, bf_ref, W, Lf, mfull_ref)      # (16, Lf)

        # ---- merged cls + box heads: (n_out, 16) x (16, Lf), lane-dense ----
        head = jnp.dot(wh_ref[...], d.astype(bf16),
                       preferred_element_type=jnp.float32) + bh_ref[...]
        for b in range(B_blk):                                       # static
            out_ref[b, :, :] = head[:, b * HW:(b + 1) * HW]

    return kernel


def _full_spec(shape):
    nd = len(shape)
    return pl.BlockSpec(shape, lambda n, _nd=nd: (0,) * _nd)


def _largest_divisor_leq(n, cap):
    for d in range(min(n, cap), 0, -1):
        if n % d == 0:
            return d
    return 1


# ----------------------------------------------------------------------------
# Parameters (deterministic stand-in for torch.load('weights.pth') + backbone)
# ----------------------------------------------------------------------------
def _conv_param(key, cout, cin, k=3):
    wkey, bkey = jax.random.split(key)
    fan_in = k * k * cin
    w = jax.random.normal(wkey, (cout, k, k, cin), jnp.float32) / jnp.sqrt(
        jnp.float32(fan_in))
    b = jax.random.normal(bkey, (cout,), jnp.float32) * 0.01
    return w, b


def _head_param(key, cout, cin):
    wkey, bkey = jax.random.split(key)
    w = jax.random.normal(wkey, (cout, cin), jnp.float32) / jnp.sqrt(
        jnp.float32(cin))
    b = jax.random.normal(bkey, (cout,), jnp.float32) * 0.01
    return w, b


def init_params(key, vocab, emb, num_classes):
    keys = jax.random.split(key, 11)
    p = {}
    # Deterministic stand-in for torch.load('weights.pth').
    p["maskconv_w"] = jax.random.normal(keys[0], (vocab, emb), jnp.float32) * 0.1
    p["stem"] = _conv_param(keys[1], 16, emb)
    p["res1_a"] = _conv_param(keys[2], 16, 16)
    p["res1_b"] = _conv_param(keys[3], 16, 16)
    p["down"] = _conv_param(keys[4], 32, 16)
    p["res2_a"] = _conv_param(keys[5], 32, 32)
    p["res2_b"] = _conv_param(keys[6], 32, 32)
    p["up"] = _conv_param(keys[7], 16, 32)
    p["fuse"] = _conv_param(keys[8], 16, 32)       # cin = [d1(16), e1(16)]
    p["cls_head"] = _head_param(keys[9], num_classes, 16)
    p["box_head"] = _head_param(keys[10], 4, 16)
    return p


# ----------------------------------------------------------------------------
# Forward
# ----------------------------------------------------------------------------
def resnet_unet_fakeconv_forward(indice, mask, params, batch_block=8):
    N, H, W = indice.shape
    emb_tab = params["maskconv_w"]
    emb = emb_tab.shape[1]
    num_classes = params["cls_head"][0].shape[0]
    n_out = num_classes + 4
    Ho, Wo = H // 2, W // 2
    HW = H * W

    B_blk = _largest_divisor_leq(N, batch_block)   # images per grid step
    nb = N // B_blk
    Lf = B_blk * HW
    Lh = B_blk * Ho * Wo
    emb_p = ((emb + 15) // 16) * 16                # pad channels to sublane tile

    # ---- MaskConv (first_layer): fake-conv table lookup gated by mask ----
    # TODO(synk): the data-dependent embedding gather has no clean Pallas
    # equivalent; it stays in XLA (fuses with the mask multiply) and feeds the kernel.
    gathered = emb_tab[indice.reshape(-1)].reshape(N, HW, emb)
    x = (gathered * mask.reshape(N, HW, 1)).astype(jnp.bfloat16)
    if emb_p > emb:
        x = jnp.pad(x, ((0, 0), (0, 0), (0, emb_p - emb)))
    # channel-major, lane-dense blocks: (nb, emb_p, B_blk*H*W)
    x = x.reshape(nb, B_blk, HW, emb_p).transpose(0, 3, 1, 2).reshape(nb, emb_p, Lf)

    # ---- per-tap boundary masks for the roll-based im2col (f32, tiny) ----
    def tap_masks(h, w, length):
        p = jnp.arange(length)
        wp = p % w
        hp = (p // w) % h
        rows = []
        for t in range(9):
            di, dj = t // 3, t % 3
            hv, wv = hp + (di - 1), wp + (dj - 1)
            rows.append((hv >= 0) & (hv < h) & (wv >= 0) & (wv < w))
        return jnp.stack(rows).astype(jnp.float32)            # (9, length)

    mfull = tap_masks(H, W, Lf)
    mhalf = tap_masks(Ho, Wo, Lh)

    # ---- one-hot resampling matrices (block-diagonal over the batch block) ----
    # TODO(synk): O(HW^2); fine at 16x16 — swap for stride-2 im2col taps +
    # broadcast upsample if spatial dims ever grow (VMEM hazard on v7x).
    q = jnp.arange(Lh)
    bq, rq = q // (Ho * Wo), q % (Ho * Wo)
    src_dn = bq * HW + (2 * (rq // Wo)) * W + 2 * (rq % Wo)
    dmat = (jnp.arange(Lf)[:, None] == src_dn[None, :]).astype(jnp.bfloat16)
    p = jnp.arange(Lf)
    bp, rp = p // HW, p % HW
    src_up = bp * (Ho * Wo) + ((rp // W) // 2) * Wo + (rp % W) // 2
    umat = (q[:, None] == src_up[None, :]).astype(jnp.bfloat16)

    # ---- pack conv weights -> (cout, 9*cin) bf16 (tap-major), bias (cout,1) ----
    def conv_wb(name, pad_cin_to=None):
        w, b = params[name]
        cout, _, _, cin = w.shape
        if pad_cin_to is not None and pad_cin_to > cin:
            w = jnp.pad(w, ((0, 0), (0, 0), (0, 0), (0, pad_cin_to - cin)))
            cin = pad_cin_to
        return (w.reshape(cout, 9 * cin).astype(jnp.bfloat16),
                b.reshape(cout, 1).astype(jnp.float32))

    ws, bs = conv_wb("stem", pad_cin_to=emb_p)
    w1a, b1a = conv_wb("res1_a")
    w1b, b1b = conv_wb("res1_b")
    wd, bd = conv_wb("down")
    w2a, b2a = conv_wb("res2_a")
    w2b, b2b = conv_wb("res2_b")
    wu, bu = conv_wb("up")
    wf, bfz = conv_wb("fuse")
    # merged cls + box 1x1 heads -> one (n_out, 16) matmul
    wh = jnp.concatenate([params["cls_head"][0], params["box_head"][0]],
                         axis=0).astype(jnp.bfloat16)
    bh = jnp.concatenate([params["cls_head"][1], params["box_head"][1]]
                         ).reshape(n_out, 1).astype(jnp.float32)

    inputs = [x, mfull, mhalf, dmat, umat,
              ws, bs, w1a, b1a, w1b, b1b, wd, bd,
              w2a, b2a, w2b, b2b, wu, bu, wf, bfz, wh, bh]
    in_specs = [pl.BlockSpec((1, emb_p, Lf), lambda n: (n, 0, 0))]
    in_specs += [_full_spec(a.shape) for a in inputs[1:]]

    kernel = _make_kernel(B_blk, H, W, emb_p, n_out)
    out = pl.pallas_call(
        kernel,
        out_shape=jax.ShapeDtypeStruct((N, n_out, HW), jnp.float32),
        grid=(nb,),
        in_specs=in_specs,
        out_specs=pl.BlockSpec((B_blk, n_out, HW), lambda n: (n, 0, 0)),
        scratch_shapes=[
            pltpu.VMEM((9 * 32, Lf), jnp.bfloat16),   # im2col staging tile
        ],
        compiler_params=pltpu.CompilerParams(
            dimension_semantics=("parallel",),
            vmem_limit_bytes=32 * 1024 * 1024),
    )(*inputs)

    # Output is already channel-major (NCHW after reshape) — no transposes.
    out = out.reshape(N, n_out, H, W)
    cls_preds = out[:, :num_classes]
    box_preds = out[:, num_classes:]
    return cls_preds, box_preds


# ----------------------------------------------------------------------------
if __name__ == "__main__":
    key = jax.random.PRNGKey(0)
    k_idx, k_mask, k_param = jax.random.split(key, 3)

    N, H, W = 2, 16, 16
    VOCAB, EMB, NUM_CLASSES = 32, 8, 3

    indice = jax.random.randint(k_idx, (N, H, W), 0, VOCAB, dtype=jnp.int32)
    mask = (jax.random.uniform(k_mask, (N, 1, H, W)) > 0.3).astype(jnp.float32)

    params = init_params(k_param, vocab=VOCAB, emb=EMB, num_classes=NUM_CLASSES)

    fwd = jax.jit(resnet_unet_fakeconv_forward, static_argnames=("batch_block",))
    cls_preds, box_preds = fwd(indice, mask, params)
    jax.block_until_ready((cls_preds, box_preds))

    assert cls_preds.shape == (N, NUM_CLASSES, H, W)
    assert box_preds.shape == (N, 4, H, W)

    # Mirrors the reference module's `print('Sum:', torch.sum(cls_preds))`.
    print("Sum:", float(jnp.sum(cls_preds)))
    print("KERNEL_OK")
</pallas_src>

<mosaic_0001>
module attributes {stable_mosaic.version = 11 : i64} {
  func.func @kernel(%arg0: i32, %arg1: memref<1x16x512xbf16, #tpu.memory_space<vmem>>, %arg2: memref<9x512xf32, #tpu.memory_space<vmem>>, %arg3: memref<9x128xf32, #tpu.memory_space<vmem>>, %arg4: memref<512x128xbf16, #tpu.memory_space<vmem>>, %arg5: memref<128x512xbf16, #tpu.memory_space<vmem>>, %arg6: memref<16x144xbf16, #tpu.memory_space<vmem>>, %arg7: memref<16x1xf32, #tpu.memory_space<vmem>>, %arg8: memref<16x144xbf16, #tpu.memory_space<vmem>>, %arg9: memref<16x1xf32, #tpu.memory_space<vmem>>, %arg10: memref<16x144xbf16, #tpu.memory_space<vmem>>, %arg11: memref<16x1xf32, #tpu.memory_space<vmem>>, %arg12: memref<32x144xbf16, #tpu.memory_space<vmem>>, %arg13: memref<32x1xf32, #tpu.memory_space<vmem>>, %arg14: memref<32x288xbf16, #tpu.memory_space<vmem>>, %arg15: memref<32x1xf32, #tpu.memory_space<vmem>>, %arg16: memref<32x288xbf16, #tpu.memory_space<vmem>>, %arg17: memref<32x1xf32, #tpu.memory_space<vmem>>, %arg18: memref<16x288xbf16, #tpu.memory_space<vmem>>, %arg19: memref<16x1xf32, #tpu.memory_space<vmem>>, %arg20: memref<16x288xbf16, #tpu.memory_space<vmem>>, %arg21: memref<16x1xf32, #tpu.memory_space<vmem>>, %arg22: memref<7x16xbf16, #tpu.memory_space<vmem>>, %arg23: memref<7x1xf32, #tpu.memory_space<vmem>>, %arg24: memref<2x7x256xf32, #tpu.memory_space<vmem>>, %arg25: memref<288x512xbf16, #tpu.memory_space<vmem>>) attributes {dimension_semantics = [#tpu.dimension_semantics<parallel>], iteration_bounds = array<i64: 1>, scalar_prefetch = 0 : i64, scratch_operands = 1 : i64, tpu.core_type = #tpu.core_type<tc>, window_params = [{transform_indices = @transform_0, window_bounds = array<i64: 1, 16, 512>}, {pipeline_mode = #tpu.pipeline_mode<synchronous>, transform_indices = @transform_1, window_bounds = array<i64: 9, 512>}, {pipeline_mode = #tpu.pipeline_mode<synchronous>, transform_indices = @transform_2, window_bounds = array<i64: 9, 128>}, {pipeline_mode = #tpu.pipeline_mode<synchronous>, transform_indices = @transform_3, window_bounds = array<i64: 512, 128>}, {pipeline_mode = #tpu.pipeline_mode<synchronous>, transform_indices = @transform_4, window_bounds = array<i64: 128, 512>}, {pipeline_mode = #tpu.pipeline_mode<synchronous>, transform_indices = @transform_5, window_bounds = array<i64: 16, 144>}, {pipeline_mode = #tpu.pipeline_mode<synchronous>, transform_indices = @transform_6, window_bounds = array<i64: 16, 1>}, {pipeline_mode = #tpu.pipeline_mode<synchronous>, transform_indices = @transform_7, window_bounds = array<i64: 16, 144>}, {pipeline_mode = #tpu.pipeline_mode<synchronous>, transform_indices = @transform_8, window_bounds = array<i64: 16, 1>}, {pipeline_mode = #tpu.pipeline_mode<synchronous>, transform_indices = @transform_9, window_bounds = array<i64: 16, 144>}, {pipeline_mode = #tpu.pipeline_mode<synchronous>, transform_indices = @transform_10, window_bounds = array<i64: 16, 1>}, {pipeline_mode = #tpu.pipeline_mode<synchronous>, transform_indices = @transform_11, window_bounds = array<i64: 32, 144>}, {pipeline_mode = #tpu.pipeline_mode<synchronous>, transform_indices = @transform_12, window_bounds = array<i64: 32, 1>}, {pipeline_mode = #tpu.pipeline_mode<synchronous>, transform_indices = @transform_13, window_bounds = array<i64: 32, 288>}, {pipeline_mode = #tpu.pipeline_mode<synchronous>, transform_indices = @transform_14, window_bounds = array<i64: 32, 1>}, {pipeline_mode = #tpu.pipeline_mode<synchronous>, transform_indices = @transform_15, window_bounds = array<i64: 32, 288>}, {pipeline_mode = #tpu.pipeline_mode<synchronous>, transform_indices = @transform_16, window_bounds = array<i64: 32, 1>}, {pipeline_mode = #tpu.pipeline_mode<synchronous>, transform_indices = @transform_17, window_bounds = array<i64: 16, 288>}, {pipeline_mode = #tpu.pipeline_mode<synchronous>, transform_indices = @transform_18, window_bounds = array<i64: 16, 1>}, {pipeline_mode = #tpu.pipeline_mode<synchronous>, transform_indices = @transform_19, window_bounds = array<i64: 16, 288>}, {pipeline_mode = #tpu.pipeline_mode<synchronous>, transform_indices = @transform_20, window_bounds = array<i64: 16, 1>}, {pipeline_mode = #tpu.pipeline_mode<synchronous>, transform_indices = @transform_21, window_bounds = array<i64: 7, 16>}, {pipeline_mode = #tpu.pipeline_mode<synchronous>, transform_indices = @transform_22, window_bounds = array<i64: 7, 1>}, {transform_indices = @transform_23, window_bounds = array<i64: 2, 7, 256>}]} {
    %c0 = arith.constant 0 : index
    %c0_0 = arith.constant 0 : index
    %c0_1 = arith.constant 0 : index
    %0 = vector.load %arg1[%c0, %c0_0, %c0_1] : memref<1x16x512xbf16, #tpu.memory_space<vmem>>, vector<1x16x512xbf16>
    %1 = vector.shape_cast %0 : vector<1x16x512xbf16> to vector<16x512xbf16>
    %2 = arith.extf %1 : vector<16x512xbf16> to vector<16x512xf32>
    %c0_2 = arith.constant 0 : index
    %c0_3 = arith.constant 0 : index
    %3 = vector.load %arg2[%c0_2, %c0_3] : memref<9x512xf32, #tpu.memory_space<vmem>>, vector<1x512xf32>
    %c17_i32 = arith.constant 17 : i32
    %4 = tpu.dynamic_rotate %2 by %c17_i32 dim 1 : vector<16x512xf32>, i32 -> vector<16x512xf32>
    %5 = vector.broadcast %3 : vector<1x512xf32> to vector<16x512xf32>
    %6 = arith.mulf %4, %5 : vector<16x512xf32>
    %7 = arith.truncf %6 : vector<16x512xf32> to vector<16x512xbf16>
    %c0_4 = arith.constant 0 : index
    %c0_5 = arith.constant 0 : index
    %8 = vector.load %arg25[%c0_4, %c0_5] : memref<288x512xbf16, #tpu.memory_space<vmem>>, vector<16x512xbf16>
    tpu.vector_store %arg25[%c0_4, %c0_5], %7 {strides = array<i32>} : memref<288x512xbf16, #tpu.memory_space<vmem>>, vector<16x512xbf16>,
    %c1 = arith.constant 1 : index
    %c0_6 = arith.constant 0 : index
    %9 = vector.load %arg2[%c1, %c0_6] : memref<9x512xf32, #tpu.memory_space<vmem>>, vector<1x512xf32>
    %c16_i32 = arith.constant 16 : i32
    %10 = tpu.dynamic_rotate %2 by %c16_i32 dim 1 : vector<16x512xf32>, i32 -> vector<16x512xf32>
    %11 = vector.broadcast %9 : vector<1x512xf32> to vector<16x512xf32>
    %12 = arith.mulf %10, %11 : vector<16x512xf32>
    %13 = arith.truncf %12 : vector<16x512xf32> to vector<16x512xbf16>
    %c16 = arith.constant 16 : index
    %c0_7 = arith.constant 0 : index
    %14 = vector.load %arg25[%c16, %c0_7] : memref<288x512xbf16, #tpu.memory_space<vmem>>, vector<16x512xbf16>
    tpu.vector_store %arg25[%c16, %c0_7], %13 {strides = array<i32>} : memref<288x512xbf16, #tpu.memory_space<vmem>>, vector<16x512xbf16>,
    %c2 = arith.constant 2 : index
    %c0_8 = arith.constant 0 : index
    %15 = vector.load %arg2[%c2, %c0_8] : memref<9x512xf32, #tpu.memory_space<vmem>>, vector<1x512xf32>
    %c15_i32 = arith.constant 15 : i32
    %16 = tpu.dynamic_rotate %2 by %c15_i32 dim 1 : vector<16x512xf32>, i32 -> vector<16x512xf32>
    %17 = vector.broadcast %15 : vector<1x512xf32> to vector<16x512xf32>
    %18 = arith.mulf %16, %17 : vector<16x512xf32>
    %19 = arith.truncf %18 : vector<16x512xf32> to vector<16x512xbf16>
    %c32 = arith.constant 32 : index
    %c0_9 = arith.constant 0 : index
    %20 = vector.load %arg25[%c32, %c0_9] : memref<288x512xbf16, #tpu.memory_space<vmem>>, vector<16x512xbf16>
    tpu.vector_store %arg25[%c32, %c0_9], %19 {strides = array<i32>} : memref<288x512xbf16, #tpu.memory_space<vmem>>, vector<16x512xbf16>,
    %c3 = arith.constant 3 : index
    %c0_10 = arith.constant 0 : index
    %21 = vector.load %arg2[%c3, %c0_10] : memref<9x512xf32, #tpu.memory_space<vmem>>, vector<1x512xf32>
    %c1_i32 = arith.constant 1 : i32
    %22 = tpu.dynamic_rotate %2 by %c1_i32 dim 1 : vector<16x512xf32>, i32 -> vector<16x512xf32>
    %23 = vector.broadcast %21 : vector<1x512xf32> to vector<16x512xf32>
    %24 = arith.mulf %22, %23 : vector<16x512xf32>
    %25 = arith.truncf %24 : vector<16x512xf32> to vector<16x512xbf16>
    %c48 = arith.constant 48 : index
    %c0_11 = arith.constant 0 : index
    %26 = vector.load %arg25[%c48, %c0_11] : memref<288x512xbf16, #tpu.memory_space<vmem>>, vector<16x512xbf16>
    tpu.vector_store %arg25[%c48, %c0_11], %25 {strides = array<i32>} : memref<288x512xbf16, #tpu.memory_space<vmem>>, vector<16x512xbf16>,
    %27 = arith.truncf %2 : vector<16x512xf32> to vector<16x512xbf16>
    %c64 = arith.constant 64 : index
    %c0_12 = arith.constant 0 : index
    %28 = vector.load %arg25[%c64, %c0_12] : memref<288x512xbf16, #tpu.memory_space<vmem>>, vector<16x512xbf16>
    tpu.vector_store %arg25[%c64, %c0_12], %27 {strides = array<i32>} : memref<288x512xbf16, #tpu.memory_space<vmem>>, vector<16x512xbf16>,
    %c5 = arith.constant 5 : index
    %c0_13 = arith.constant 0 : index
    %29 = vector.load %arg2[%c5, %c0_13] : memref<9x512xf32, #tpu.memory_space<vmem>>, vector<1x512xf32>
    %c511_i32 = arith.constant 511 : i32
    %30 = tpu.dynamic_rotate %2 by %c511_i32 dim 1 : vector<16x512xf32>, i32 -> vector<16x512xf32>
    %31 = vector.broadcast %29 : vector<1x512xf32> to vector<16x512xf32>
    %32 = arith.mulf %30, %31 : vector<16x512xf32>
    %33 = arith.truncf %32 : vector<16x512xf32> to vector<16x512xbf16>
    %c80 = arith.constant 80 : index
    %c0_14 = arith.constant 0 : index
    %34 = vector.load %arg25[%c80, %c0_14] : memref<288x512xbf16, #tpu.memory_space<vmem>>, vector<16x512xbf16>
    tpu.vector_store %arg25[%c80, %c0_14], %33 {strides = array<i32>} : memref<288x512xbf16, #tpu.memory_space<vmem>>, vector<16x512xbf16>,
    %c6 = arith.constant 6 : index
    %c0_15 = arith.constant 0 : index
    %35 = vector.load %arg2[%c6, %c0_15] : memref<9x512xf32, #tpu.memory_space<vmem>>, vector<1x512xf32>
    %c497_i32 = arith.constant 497 : i32
    %36 = tpu.dynamic_rotate %2 by %c497_i32 dim 1 : vector<16x512xf32>, i32 -> vector<16x512xf32>
    %37 = vector.broadcast %35 : vector<1x512xf32> to vector<16x512xf32>
    %38 = arith.mulf %36, %37 : vector<16x512xf32>
    %39 = arith.truncf %38 : vector<16x512xf32> to vector<16x512xbf16>
    %c96 = arith.constant 96 : index
    %c0_16 = arith.constant 0 : index
    %40 = vector.load %arg25[%c96, %c0_16] : memref<288x512xbf16, #tpu.memory_space<vmem>>, vector<16x512xbf16>
    tpu.vector_store %arg25[%c96, %c0_16], %39 {strides = array<i32>} : memref<288x512xbf16, #tpu.memory_space<vmem>>, vector<16x512xbf16>,
    %c7 = arith.constant 7 : index
    %c0_17 = arith.constant 0 : index
    %41 = vector.load %arg2[%c7, %c0_17] : memref<9x512xf32, #tpu.memory_space<vmem>>, vector<1x512xf32>
    %c496_i32 = arith.constant 496 : i32
    %42 = tpu.dynamic_rotate %2 by %c496_i32 dim 1 : vector<16x512xf32>, i32 -> vector<16x512xf32>
    %43 = vector.broadcast %41 : vector<1x512xf32> to vector<16x512xf32>
    %44 = arith.mulf %42, %43 : vector<16x512xf32>
    %45 = arith.truncf %44 : vector<16x512xf32> to vector<16x512xbf16>
    %c112 = arith.constant 112 : index
    %c0_18 = arith.constant 0 : index
    %46 = vector.load %arg25[%c112, %c0_18] : memref<288x512xbf16, #tpu.memory_space<vmem>>, vector<16x512xbf16>
    tpu.vector_store %arg25[%c112, %c0_18], %45 {strides = array<i32>} : memref<288x512xbf16, #tpu.memory_space<vmem>>, vector<16x512xbf16>,
    %c8 = arith.constant 8 : index
    %c0_19 = arith.constant 0 : index
    %47 = vector.load %arg2[%c8, %c0_19] : memref<9x512xf32, #tpu.memory_space<vmem>>, vector<1x512xf32>
    %c495_i32 = arith.constant 495 : i32
    %48 = tpu.dynamic_rotate %2 by %c495_i32 dim 1 : vector<16x512xf32>, i32 -> vector<16x512xf32>
    %49 = vector.broadcast %47 : vector<1x512xf32> to vector<16x512xf32>
    %50 = arith.mulf %48, %49 : vector<16x512xf32>
    %51 = arith.truncf %50 : vector<16x512xf32> to vector<16x512xbf16>
    %c128 = arith.constant 128 : index
    %c0_20 = arith.constant 0 : index
    %52 = vector.load %arg25[%c128, %c0_20] : memref<288x512xbf16, #tpu.memory_space<vmem>>, vector<16x512xbf16>
    tpu.vector_store %arg25[%c128, %c0_20], %51 {strides = array<i32>} : memref<288x512xbf16, #tpu.memory_space<vmem>>, vector<16x512xbf16>,
    %c0_21 = arith.constant 0 : index
    %c0_22 = arith.constant 0 : index
    %53 = vector.load %arg6[%c0_21, %c0_22] : memref<16x144xbf16, #tpu.memory_space<vmem>>, vector<16x144xbf16>
    %c0_23 = arith.constant 0 : index
    %c0_24 = arith.constant 0 : index
    %54 = vector.load %arg25[%c0_23, %c0_24] : memref<288x512xbf16, #tpu.memory_space<vmem>>, vector<144x512xbf16>
    %cst = arith.constant dense<0.000000e+00> : vector<16x512xf32>
    %55 = tpu.matmul %53, %54, %cst {dimension_numbers = #tpu.dot_dimension_numbers<[1], [0], [0], [1], [0, 0, 1, 1], [], []>} : vector<16x144xbf16>, vector<144x512xbf16>, vector<16x512xf32> -> vector<16x512xf32>
    %c0_25 = arith.constant 0 : index
    %c0_26 = arith.constant 0 : index
    %56 = vector.load %arg7[%c0_25, %c0_26] : memref<16x1xf32, #tpu.memory_space<vmem>>, vector<16x1xf32>
    %57 = vector.broadcast %56 : vector<16x1xf32> to vector<16x512xf32>
    %58 = arith.addf %55, %57 : vector<16x512xf32>
    %cst_27 = arith.constant 0.000000e+00 : f32
    %59 = vector.broadcast %cst_27 : f32 to vector<16x512xf32>
    %60 = arith.maximumf %58, %59 : vector<16x512xf32>
    %c0_28 = arith.constant 0 : index
    %c0_29 = arith.constant 0 : index
    %61 = vector.load %arg2[%c0_28, %c0_29] : memref<9x512xf32, #tpu.memory_space<vmem>>, vector<1x512xf32>
    %c17_i32_30 = arith.constant 17 : i32
    %62 = tpu.dynamic_rotate %60 by %c17_i32_30 dim 1 : vector<16x512xf32>, i32 -> vector<16x512xf32>
    %63 = vector.broadcast %61 : vector<1x512xf32> to vector<16x512xf32>
    %64 = arith.mulf %62, %63 : vector<16x512xf32>
    %65 = arith.truncf %64 : vector<16x512xf32> to vector<16x512xbf16>
    %c0_31 = arith.constant 0 : index
    %c0_32 = arith.constant 0 : index
    %66 = vector.load %arg25[%c0_31, %c0_32] : memref<288x512xbf16, #tpu.memory_space<vmem>>, vector<16x512xbf16>
    tpu.vector_store %arg25[%c0_31, %c0_32], %65 {strides = array<i32>} : memref<288x512xbf16, #tpu.memory_space<vmem>>, vector<16x512xbf16>,
    %c1_33 = arith.constant 1 : index
    %c0_34 = arith.constant 0 : index
    %67 = vector.load %arg2[%c1_33, %c0_34] : memref<9x512xf32, #tpu.memory_space<vmem>>, vector<1x512xf32>
    %c16_i32_35 = arith.constant 16 : i32
    %68 = tpu.dynamic_rotate %60 by %c16_i32_35 dim 1 : vector<16x512xf32>, i32 -> vector<16x512xf32>
    %69 = vector.broadcast %67 : vector<1x512xf32> to vector<16x512xf32>
    %70 = arith.mulf %68, %69 : vector<16x512xf32>
    %71 = arith.truncf %70 : vector<16x512xf32> to vector<16x512xbf16>
    %c16_36 = arith.constant 16 : index
    %c0_37 = arith.constant 0 : index
    %72 = vector.load %arg25[%c16_36, %c0_37] : memref<288x512xbf16, #tpu.memory_space<vmem>>, vector<16x512xbf16>
    tpu.vector_store %arg25[%c16_36, %c0_37], %71 {strides = array<i32>} : memref<288x512xbf16, #tpu.memory_space<vmem>>, vector<16x512xbf16>,
    %c2_38 = arith.constant 2 : index
    %c0_39 = arith.constant 0 : index
    %73 = vector.load %arg2[%c2_38, %c0_39] : memref<9x512xf32, #tpu.memory_space<vmem>>, vector<1x512xf32>
    %c15_i32_40 = arith.constant 15 : i32
    %74 = tpu.dynamic_rotate %60 by %c15_i32_40 dim 1 : vector<16x512xf32>, i32 -> vector<16x512xf32>
    %75 = vector.broadcast %73 : vector<1x512xf32> to vector<16x512xf32>
    %76 = arith.mulf %74, %75 : vector<16x512xf32>
    %77 = arith.truncf %76 : vector<16x512xf32> to vector<16x512xbf16>
    %c32_41 = arith.constant 32 : index
    %c0_42 = arith.constant 0 : index
    %78 = vector.load %arg25[%c32_41, %c0_42] : memref<288x512xbf16, #tpu.memory_space<vmem>>, vector<16x512xbf16>
    tpu.vector_store %arg25[%c32_41, %c0_42], %77 {strides = array<i32>} : memref<288x512xbf16, #tpu.memory_space<vmem>>, vector<16x512xbf16>,
    %c3_43 = arith.constant 3 : index
    %c0_44 = arith.constant 0 : index
    %79 = vector.load %arg2[%c3_43, %c0_44] : memref<9x512xf32, #tpu.memory_space<vmem>>, vector<1x512xf32>
    %c1_i32_45 = arith.constant 1 : i32
    %80 = tpu.dynamic_rotate %60 by %c1_i32_45 dim 1 : vector<16x512xf32>, i32 -> vector<16x512xf32>
    %81 = vector.broadcast %79 : vector<1x512xf32> to vector<16x512xf32>
    %82 = arith.mulf %80, %81 : vector<16x512xf32>
    %83 = arith.truncf %82 : vector<16x512xf32> to vector<16x512xbf16>
    %c48_46 = arith.constant 48 : index
    %c0_47 = arith.constant 0 : index
    %84 = vector.load %arg25[%c48_46, %c0_47] : memref<288x512xbf16, #tpu.memory_space<vmem>>, vector<16x512xbf16>
    tpu.vector_store %arg25[%c48_46, %c0_47], %83 {strides = array<i32>} : memref<288x512xbf16, #tpu.memory_space<vmem>>, vector<16x512xbf16>,
    %85 = arith.truncf %60 : vector<16x512xf32> to vector<16x512xbf16>
    %c64_48 = arith.constant 64 : index
    %c0_49 = arith.constant 0 : index
    %86 = vector.load %arg25[%c64_48, %c0_49] : memref<288x512xbf16, #tpu.memory_space<vmem>>, vector<16x512xbf16>
    tpu.vector_store %arg25[%c64_48, %c0_49], %85 {strides = array<i32>} : memref<288x512xbf16, #tpu.memory_space<vmem>>, vector<16x512xbf16>,
    %c5_50 = arith.constant 5 : index
    %c0_51 = arith.constant 0 : index
    %87 = vector.load %arg2[%c5_50, %c0_51] : memref<9x512xf32, #tpu.memory_space<vmem>>, vector<1x512xf32>
    %c511_i32_52 = arith.constant 511 : i32
    %88 = tpu.dynamic_rotate %60 by %c511_i32_52 dim 1 : vector<16x512xf32>, i32 -> vector<16x512xf32>
    %89 = vector.broadcast %87 : vector<1x512xf32> to vector<16x512xf32>
    %90 = arith.mulf %88, %89 : vector<16x512xf32>
    %91 = arith.truncf %90 : vector<16x512xf32> to vector<16x512xbf16>
    %c80_53 = arith.constant 80 : index
    %c0_54 = arith.constant 0 : index
    %92 = vector.load %arg25[%c80_53, %c0_54] : memref<288x512xbf16, #tpu.memory_space<vmem>>, vector<16x512xbf16>
    tpu.vector_store %arg25[%c80_53, %c0_54], %91 {strides = array<i32>} : memref<288x512xbf16, #tpu.memory_space<vmem>>, vector<16x512xbf16>,
    %c6_55 = arith.constant 6 : index
    %c0_56 = arith.constant 0 : index
    %93 = vector.load %arg2[%c6_55, %c0_56] : memref<9x512xf32, #tpu.memory_space<vmem>>, vector<1x512xf32>
    %c497_i32_57 = arith.constant 497 : i32
    %94 = tpu.dynamic_rotate %60 by %c497_i32_57 dim 1 : vector<16x512xf32>, i32 -> vector<16x512xf32>
    %95 = vector.broadcast %93 : vector<1x512xf32> to vector<16x512xf32>
    %96 = arith.mulf %94, %95 : vector<16x512xf32>
    %97 = arith.truncf %96 : vector<16x512xf32> to vector<16x512xbf16>
    %c96_58 = arith.constant 96 : index
    %c0_59 = arith.constant 0 : index
    %98 = vector.load %arg25[%c96_58, %c0_59] : memref<288x512xbf16, #tpu.memory_space<vmem>>, vector<16x512xbf16>
    tpu.vector_store %arg25[%c96_58, %c0_59], %97 {strides = array<i32>} : memref<288x512xbf16, #tpu.memory_space<vmem>>, vector<16x512xbf16>,
    %c7_60 = arith.constant 7 : index
    %c0_61 = arith.constant 0 : index
    %99 = vector.load %arg2[%c7_60, %c0_61] : memref<9x512xf32, #tpu.memory_space<vmem>>, vector<1x512xf32>
    %c496_i32_62 = arith.constant 496 : i32
    %100 = tpu.dynamic_rotate %60 by %c496_i32_62 dim 1 : vector<16x512xf32>, i32 -> vector<16x512xf32>
    %101 = vector.broadcast %99 : vector<1x512xf32> to vector<16x512xf32>
    %102 = arith.mulf %100, %101 : vector<16x512xf32>
    %103 = arith.truncf %102 : vector<16x512xf32> to vector<16x512xbf16>
    %c112_63 = arith.constant 112 : index
    %c0_64 = arith.constant 0 : index
    %104 = vector.load %arg25[%c112_63, %c0_64] : memref<288x512xbf16, #tpu.memory_space<vmem>>, vector<16x512xbf16>
    tpu.vector_store %arg25[%c112_63, %c0_64], %103 {strides = array<i32>} : memref<288x512xbf16, #tpu.memory_space<vmem>>, vector<16x512xbf16>,
    %c8_65 = arith.constant 8 : index
    %c0_66 = arith.constant 0 : index
    %105 = vector.load %arg2[%c8_65, %c0_66] : memref<9x512xf32, #tpu.memory_space<vmem>>, vector<1x512xf32>
    %c495_i32_67 = arith.constant 495 : i32
    %106 = tpu.dynamic_rotate %60 by %c495_i32_67 dim 1 : vector<16x512xf32>, i32 -> vector<16x512xf32>
    %107 = vector.broadcast %105 : vector<1x512xf32> to vector<16x512xf32>
    %108 = arith.mulf %106, %107 : vector<16x512xf32>
    %109 = arith.truncf %108 : vector<16x512xf32> to vector<16x512xbf16>
    %c128_68 = arith.constant 128 : index
    %c0_69 = arith.constant 0 : index
    %110 = vector.load %arg25[%c128_68, %c0_69] : memref<288x512xbf16, #tpu.memory_space<vmem>>, vector<16x512xbf16>
    tpu.vector_store %arg25[%c128_68, %c0_69], %109 {strides = array<i32>} : memref<288x512xbf16, #tpu.memory_space<vmem>>, vector<16x512xbf16>,
    %c0_70 = arith.constant 0 : index
    %c0_71 = arith.constant 0 : index
    %111 = vector.load %arg8[%c0_70, %c0_71] : memref<16x144xbf16, #tpu.memory_space<vmem>>, vector<16x144xbf16>
    %c0_72 = arith.constant 0 : index
    %c0_73 = arith.constant 0 : index
    %112 = vector.load %arg25[%c0_72, %c0_73] : memref<288x512xbf16, #tpu.memory_space<vmem>>, vector<144x512xbf16>
    %cst_74 = arith.constant dense<0.000000e+00> : vector<16x512xf32>
    %113 = tpu.matmul %111, %112, %cst_74 {dimension_numbers = #tpu.dot_dimension_numbers<[1], [0], [0], [1], [0, 0, 1, 1], [], []>} : vector<16x144xbf16>, vector<144x512xbf16>, vector<16x512xf32> -> vector<16x512xf32>
    %c0_75 = arith.constant 0 : index
    %c0_76 = arith.constant 0 : index
    %114 = vector.load %arg9[%c0_75, %c0_76] : memref<16x1xf32, #tpu.memory_space<vmem>>, vector<16x1xf32>
    %115 = vector.broadcast %114 : vector<16x1xf32> to vector<16x512xf32>
    %116 = arith.addf %113, %115 : vector<16x512xf32>
    %cst_77 = arith.constant 0.000000e+00 : f32
    %117 = vector.broadcast %cst_77 : f32 to vector<16x512xf32>
    %118 = arith.maximumf %116, %117 : vector<16x512xf32>
    %c0_78 = arith.constant 0 : index
    %c0_79 = arith.constant 0 : index
    %119 = vector.load %arg2[%c0_78, %c0_79] : memref<9x512xf32, #tpu.memory_space<vmem>>, vector<1x512xf32>
    %c17_i32_80 = arith.constant 17 : i32
    %120 = tpu.dynamic_rotate %118 by %c17_i32_80 dim 1 : vector<16x512xf32>, i32 -> vector<16x512xf32>
    %121 = vector.broadcast %119 : vector<1x512xf32> to vector<16x512xf32>
    %122 = arith.mulf %120, %121 : vector<16x512xf32>
    %123 = arith.truncf %122 : vector<16x512xf32> to vector<16x512xbf16>
    %c0_81 = arith.constant 0 : index
    %c0_82 = arith.constant 0 : index
    %124 = vector.load %arg25[%c0_81, %c0_82] : memref<288x512xbf16, #tpu.memory_space<vmem>>, vector<16x512xbf16>
    tpu.vector_store %arg25[%c0_81, %c0_82], %123 {strides = array<i32>} : memref<288x512xbf16, #tpu.memory_space<vmem>>, vector<16x512xbf16>,
    %c1_83 = arith.constant 1 : index
    %c0_84 = arith.constant 0 : index
    %125 = vector.load %arg2[%c1_83, %c0_84] : memref<9x512xf32, #tpu.memory_space<vmem>>, vector<1x512xf32>
    %c16_i32_85 = arith.constant 16 : i32
    %126 = tpu.dynamic_rotate %118 by %c16_i32_85 dim 1 : vector<16x512xf32>, i32 -> vector<16x512xf32>
    %127 = vector.broadcast %125 : vector<1x512xf32> to vector<16x512xf32>
    %128 = arith.mulf %126, %127 : vector<16x512xf32>
    %129 = arith.truncf %128 : vector<16x512xf32> to vector<16x512xbf16>
    %c16_86 = arith.constant 16 : index
    %c0_87 = arith.constant 0 : index
    %130 = vector.load %arg25[%c16_86, %c0_87] : memref<288x512xbf16, #tpu.memory_space<vmem>>, vector<16x512xbf16>
    tpu.vector_store %arg25[%c16_86, %c0_87], %129 {strides = array<i32>} : memref<288x512xbf16, #tpu.memory_space<vmem>>, vector<16x512xbf16>,
    %c2_88 = arith.constant 2 : index
    %c0_89 = arith.constant 0 : index
    %131 = vector.load %arg2[%c2_88, %c0_89] : memref<9x512xf32, #tpu.memory_space<vmem>>, vector<1x512xf32>
    %c15_i32_90 = arith.constant 15 : i32
    %132 = tpu.dynamic_rotate %118 by %c15_i32_90 dim 1 : vector<16x512xf32>, i32 -> vector<16x512xf32>
    %133 = vector.broadcast %131 : vector<1x512xf32> to vector<16x512xf32>
    %134 = arith.mulf %132, %133 : vector<16x512xf32>
    %135 = arith.truncf %134 : vector<16x512xf32> to vector<16x512xbf16>
    %c32_91 = arith.constant 32 : index
    %c0_92 = arith.constant 0 : index
    %136 = vector.load %arg25[%c32_91, %c0_92] : memref<288x512xbf16, #tpu.memory_space<vmem>>, vector<16x512xbf16>
    tpu.vector_store %arg25[%c32_91, %c0_92], %135 {strides = array<i32>} : memref<288x512xbf16, #tpu.memory_space<vmem>>, vector<16x512xbf16>,
    %c3_93 = arith.constant 3 : index
    %c0_94 = arith.constant 0 : index
    %137 = vector.load %arg2[%c3_93, %c0_94] : memref<9x512xf32, #tpu.memory_space<vmem>>, vector<1x512xf32>
    %c1_i32_95 = arith.constant 1 : i32
    %138 = tpu.dynamic_rotate %118 by %c1_i32_95 dim 1 : vector<16x512xf32>, i32 -> vector<16x512xf32>
    %139 = vector.broadcast %137 : vector<1x512xf32> to vector<16x512xf32>
    %140 = arith.mulf %138, %139 : vector<16x512xf32>
    %141 = arith.truncf %140 : vector<16x512xf32> to vector<16x512xbf16>
    %c48_96 = arith.constant 48 : index
    %c0_97 = arith.constant 0 : index
    %142 = vector.load %arg25[%c48_96, %c0_97] : memref<288x512xbf16, #tpu.memory_space<vmem>>, vector<16x512xbf16>
    tpu.vector_store %arg25[%c48_96, %c0_97], %141 {strides = array<i32>} : memref<288x512xbf16, #tpu.memory_space<vmem>>, vector<16x512xbf16>,
    %143 = arith.truncf %118 : vector<16x512xf32> to vector<16x512xbf16>
    %c64_98 = arith.constant 64 : index
    %c0_99 = arith.constant 0 : index
    %144 = vector.load %arg25[%c64_98, %c0_99] : memref<288x512xbf16, #tpu.memory_space<vmem>>, vector<16x512xbf16>
    tpu.vector_store %arg25[%c64_98, %c0_99], %143 {strides = array<i32>} : memref<288x512xbf16, #tpu.memory_space<vmem>>, vector<16x512xbf16>,
    %c5_100 = arith.constant 5 : index
    %c0_101 = arith.constant 0 : index
    %145 = vector.load %arg2[%c5_100, %c0_101] : memref<9x512xf32, #tpu.memory_space<vmem>>, vector<1x512xf32>
    %c511_i32_102 = arith.constant 511 : i32
    %146 = tpu.dynamic_rotate %118 by %c511_i32_102 dim 1 : vector<16x512xf32>, i32 -> vector<16x512xf32>
    %147 = vector.broadcast %145 : vector<1x512xf32> to vector<16x512xf32>
    %148 = arith.mulf %146, %147 : vector<16x512xf32>
    %149 = arith.truncf %148 : vector<16x512xf32> to vector<16x512xbf16>
    %c80_103 = arith.constant 80 : index
    %c0_104 = arith.constant 0 : index
    %150 = vector.load %arg25[%c80_103, %c0_104] : memref<288x512xbf16, #tpu.memory_space<vmem>>, vector<16x512xbf16>
    tpu.vector_store %arg25[%c80_103, %c0_104], %149 {strides = array<i32>} : memref<288x512xbf16, #tpu.memory_space<vmem>>, vector<16x512xbf16>,
    %c6_105 = arith.constant 6 : index
    %c0_106 = arith.constant 0 : index
    %151 = vector.load %arg2[%c6_105, %c0_106] : memref<9x512xf32, #tpu.memory_space<vmem>>, vector<1x512xf32>
    %c497_i32_107 = arith.constant 497 : i32
    %152 = tpu.dynamic_rotate %118 by %c497_i32_107 dim 1 : vector<16x512xf32>, i32 -> vector<16x512xf32>
    %153 = vector.broadcast %151 : vector<1x512xf32> to vector<16x512xf32>
    %154 = arith.mulf %152, %153 : vector<16x512xf32>
    %155 = arith.truncf %154 : vector<16x512xf32> to vector<16x512xbf16>
    %c96_108 = arith.constant 96 : index
    %c0_109 = arith.constant 0 : index
    %156 = vector.load %arg25[%c96_108, %c0_109] : memref<288x512xbf16, #tpu.memory_space<vmem>>, vector<16x512xbf16>
    tpu.vector_store %arg25[%c96_108, %c0_109], %155 {strides = array<i32>} : memref<288x512xbf16, #tpu.memory_space<vmem>>, vector<16x512xbf16>,
    %c7_110 = arith.constant 7 : index
    %c0_111 = arith.constant 0 : index
    %157 = vector.load %arg2[%c7_110, %c0_111] : memref<9x512xf32, #tpu.memory_space<vmem>>, vector<1x512xf32>
    %c496_i32_112 = arith.constant 496 : i32
    %158 = tpu.dynamic_rotate %118 by %c496_i32_112 dim 1 : vector<16x512xf32>, i32 -> vector<16x512xf32>
    %159 = vector.broadcast %157 : vector<1x512xf32> to vector<16x512xf32>
    %160 = arith.mulf %158, %159 : vector<16x512xf32>
    %161 = arith.truncf %160 : vector<16x512xf32> to vector<16x512xbf16>
    %c112_113 = arith.constant 112 : index
    %c0_114 = arith.constant 0 : index
    %162 = vector.load %arg25[%c112_113, %c0_114] : memref<288x512xbf16, #tpu.memory_space<vmem>>, vector<16x512xbf16>
    tpu.vector_store %arg25[%c112_113, %c0_114], %161 {strides = array<i32>} : memref<288x512xbf16, #tpu.memory_space<vmem>>, vector<16x512xbf16>,
    %c8_115 = arith.constant 8 : index
    %c0_116 = arith.constant 0 : index
    %163 = vector.load %arg2[%c8_115, %c0_116] : memref<9x512xf32, #tpu.memory_space<vmem>>, vector<1x512xf32>
    %c495_i32_117 = arith.constant 495 : i32
    %164 = tpu.dynamic_rotate %118 by %c495_i32_117 dim 1 : vector<16x512xf32>, i32 -> vector<16x512xf32>
    %165 = vector.broadcast %163 : vector<1x512xf32> to vector<16x512xf32>
    %166 = arith.mulf %164, %165 : vector<16x512xf32>
    %167 = arith.truncf %166 : vector<16x512xf32> to vector<16x512xbf16>
    %c128_118 = arith.constant 128 : index
    %c0_119 = arith.constant 0 : index
    %168 = vector.load %arg25[%c128_118, %c0_119] : memref<288x512xbf16, #tpu.memory_space<vmem>>, vector<16x512xbf16>
    tpu.vector_store %arg25[%c128_118, %c0_119], %167 {strides = array<i32>} : memref<288x512xbf16, #tpu.memory_space<vmem>>, vector<16x512xbf16>,
    %c0_120 = arith.constant 0 : index
    %c0_121 = arith.constant 0 : index
    %169 = vector.load %arg10[%c0_120, %c0_121] : memref<16x144xbf16, #tpu.memory_space<vmem>>, vector<16x144xbf16>
    %c0_122 = arith.constant 0 : index
    %c0_123 = arith.constant 0 : index
    %170 = vector.load %arg25[%c0_122, %c0_123] : memref<288x512xbf16, #tpu.memory_space<vmem>>, vector<144x512xbf16>
    %cst_124 = arith.constant dense<0.000000e+00> : vector<16x512xf32>
    %171 = tpu.matmul %169, %170, %cst_124 {dimension_numbers = #tpu.dot_dimension_numbers<[1], [0], [0], [1], [0, 0, 1, 1], [], []>} : vector<16x144xbf16>, vector<144x512xbf16>, vector<16x512xf32> -> vector<16x512xf32>
    %c0_125 = arith.constant 0 : index
    %c0_126 = arith.constant 0 : index
    %172 = vector.load %arg11[%c0_125, %c0_126] : memref<16x1xf32, #tpu.memory_space<vmem>>, vector<16x1xf32>
    %173 = vector.broadcast %172 : vector<16x1xf32> to vector<16x512xf32>
    %174 = arith.addf %171, %173 : vector<16x512xf32>
    %175 = arith.addf %174, %60 : vector<16x512xf32>
    %cst_127 = arith.constant 0.000000e+00 : f32
    %176 = vector.broadcast %cst_127 : f32 to vector<16x512xf32>
    %177 = arith.maximumf %175, %176 : vector<16x512xf32>
    %c0_128 = arith.constant 0 : index
    %c0_129 = arith.constant 0 : index
    %178 = vector.load %arg2[%c0_128, %c0_129] : memref<9x512xf32, #tpu.memory_space<vmem>>, vector<1x512xf32>
    %c17_i32_130 = arith.constant 17 : i32
    %179 = tpu.dynamic_rotate %177 by %c17_i32_130 dim 1 : vector<16x512xf32>, i32 -> vector<16x512xf32>
    %180 = vector.broadcast %178 : vector<1x512xf32> to vector<16x512xf32>
    %181 = arith.mulf %179, %180 : vector<16x512xf32>
    %182 = arith.truncf %181 : vector<16x512xf32> to vector<16x512xbf16>
    %c0_131 = arith.constant 0 : index
    %c0_132 = arith.constant 0 : index
    %183 = vector.load %arg25[%c0_131, %c0_132] : memref<288x512xbf16, #tpu.memory_space<vmem>>, vector<16x512xbf16>
    tpu.vector_store %arg25[%c0_131, %c0_132], %182 {strides = array<i32>} : memref<288x512xbf16, #tpu.memory_space<vmem>>, vector<16x512xbf16>,
    %c1_133 = arith.constant 1 : index
    %c0_134 = arith.constant 0 : index
    %184 = vector.load %arg2[%c1_133, %c0_134] : memref<9x512xf32, #tpu.memory_space<vmem>>, vector<1x512xf32>
    %c16_i32_135 = arith.constant 16 : i32
    %185 = tpu.dynamic_rotate %177 by %c16_i32_135 dim 1 : vector<16x512xf32>, i32 -> vector<16x512xf32>
    %186 = vector.broadcast %184 : vector<1x512xf32> to vector<16x512xf32>
    %187 = arith.mulf %185, %186 : vector<16x512xf32>
    %188 = arith.truncf %187 : vector<16x512xf32> to vector<16x512xbf16>
    %c16_136 = arith.constant 16 : index
    %c0_137 = arith.constant 0 : index
    %189 = vector.load %arg25[%c16_136, %c0_137] : memref<288x512xbf16, #tpu.memory_space<vmem>>, vector<16x512xbf16>
    tpu.vector_store %arg25[%c16_136, %c0_137], %188 {strides = array<i32>} : memref<288x512xbf16, #tpu.memory_space<vmem>>, vector<16x512xbf16>,
    %c2_138 = arith.constant 2 : index
    %c0_139 = arith.constant 0 : index
    %190 = vector.load %arg2[%c2_138, %c0_139] : memref<9x512xf32, #tpu.memory_space<vmem>>, vector<1x512xf32>
    %c15_i32_140 = arith.constant 15 : i32
    %191 = tpu.dynamic_rotate %177 by %c15_i32_140 dim 1 : vector<16x512xf32>, i32 -> vector<16x512xf32>
    %192 = vector.broadcast %190 : vector<1x512xf32> to vector<16x512xf32>
    %193 = arith.mulf %191, %192 : vector<16x512xf32>
    %194 = arith.truncf %193 : vector<16x512xf32> to vector<16x512xbf16>
    %c32_141 = arith.constant 32 : index
    %c0_142 = arith.constant 0 : index
    %195 = vector.load %arg25[%c32_141, %c0_142] : memref<288x512xbf16, #tpu.memory_space<vmem>>, vector<16x512xbf16>
    tpu.vector_store %arg25[%c32_141, %c0_142], %194 {strides = array<i32>} : memref<288x512xbf16, #tpu.memory_space<vmem>>, vector<16x512xbf16>,
    %c3_143 = arith.constant 3 : index
    %c0_144 = arith.constant 0 : index
    %196 = vector.load %arg2[%c3_143, %c0_144] : memref<9x512xf32, #tpu.memory_space<vmem>>, vector<1x512xf32>
    %c1_i32_145 = arith.constant 1 : i32
    %197 = tpu.dynamic_rotate %177 by %c1_i32_145 dim 1 : vector<16x512xf32>, i32 -> vector<16x512xf32>
    %198 = vector.broadcast %196 : vector<1x512xf32> to vector<16x512xf32>
    %199 = arith.mulf %197, %198 : vector<16x512xf32>
    %200 = arith.truncf %199 : vector<16x512xf32> to vector<16x512xbf16>
    %c48_146 = arith.constant 48 : index
    %c0_147 = arith.constant 0 : index
    %201 = vector.load %arg25[%c48_146, %c0_147] : memref<288x512xbf16, #tpu.memory_space<vmem>>, vector<16x512xbf16>
    tpu.vector_store %arg25[%c48_146, %c0_147], %200 {strides = array<i32>} : memref<288x512xbf16, #tpu.memory_space<vmem>>, vector<16x512xbf16>,
    %202 = arith.truncf %177 : vector<16x512xf32> to vector<16x512xbf16>
    %c64_148 = arith.constant 64 : index
    %c0_149 = arith.constant 0 : index
    %203 = vector.load %arg25[%c64_148, %c0_149] : memref<288x512xbf16, #tpu.memory_space<vmem>>, vector<16x512xbf16>
    tpu.vector_store %arg25[%c64_148, %c0_149], %202 {strides = array<i32>} : memref<288x512xbf16, #tpu.memory_space<vmem>>, vector<16x512xbf16>,
    %c5_150 = arith.constant 5 : index
    %c0_151 = arith.constant 0 : index
    %204 = vector.load %arg2[%c5_150, %c0_151] : memref<9x512xf32, #tpu.memory_space<vmem>>, vector<1x512xf32>
    %c511_i32_152 = arith.constant 511 : i32
    %205 = tpu.dynamic_rotate %177 by %c511_i32_152 dim 1 : vector<16x512xf32>, i32 -> vector<16x512xf32>
    %206 = vector.broadcast %204 : vector<1x512xf32> to vector<16x512xf32>
    %207 = arith.mulf %205, %206 : vector<16x512xf32>
    %208 = arith.truncf %207 : vector<16x512xf32> to vector<16x512xbf16>
    %c80_153 = arith.constant 80 : index
    %c0_154 = arith.constant 0 : index
    %209 = vector.load %arg25[%c80_153, %c0_154] : memref<288x512xbf16, #tpu.memory_space<vmem>>, vector<16x512xbf16>
    tpu.vector_store %arg25[%c80_153, %c0_154], %208 {strides = array<i32>} : memref<288x512xbf16, #tpu.memory_space<vmem>>, vector<16x512xbf16>,
    %c6_155 = arith.constant 6 : index
    %c0_156 = arith.constant 0 : index
    %210 = vector.load %arg2[%c6_155, %c0_156] : memref<9x512xf32, #tpu.memory_space<vmem>>, vector<1x512xf32>
    %c497_i32_157 = arith.constant 497 : i32
    %211 = tpu.dynamic_rotate %177 by %c497_i32_157 dim 1 : vector<16x512xf32>, i32 -> vector<16x512xf32>
    %212 = vector.broadcast %210 : vector<1x512xf32> to vector<16x512xf32>
    %213 = arith.mulf %211, %212 : vector<16x512xf32>
    %214 = arith.truncf %213 : vector<16x512xf32> to vector<16x512xbf16>
    %c96_158 = arith.constant 96 : index
    %c0_159 = arith.constant 0 : index
    %215 = vector.load %arg25[%c96_158, %c0_159] : memref<288x512xbf16, #tpu.memory_space<vmem>>, vector<16x512xbf16>
    tpu.vector_store %arg25[%c96_158, %c0_159], %214 {strides = array<i32>} : memref<288x512xbf16, #tpu.memory_space<vmem>>, vector<16x512xbf16>,
    %c7_160 = arith.constant 7 : index
    %c0_161 = arith.constant 0 : index
    %216 = vector.load %arg2[%c7_160, %c0_161] : memref<9x512xf32, #tpu.memory_space<vmem>>, vector<1x512xf32>
    %c496_i32_162 = arith.constant 496 : i32
    %217 = tpu.dynamic_rotate %177 by %c496_i32_162 dim 1 : vector<16x512xf32>, i32 -> vector<16x512xf32>
    %218 = vector.broadcast %216 : vector<1x512xf32> to vector<16x512xf32>
    %219 = arith.mulf %217, %218 : vector<16x512xf32>
    %220 = arith.truncf %219 : vector<16x512xf32> to vector<16x512xbf16>
    %c112_163 = arith.constant 112 : index
    %c0_164 = arith.constant 0 : index
    %221 = vector.load %arg25[%c112_163, %c0_164] : memref<288x512xbf16, #tpu.memory_space<vmem>>, vector<16x512xbf16>
    tpu.vector_store %arg25[%c112_163, %c0_164], %220 {strides = array<i32>} : memref<288x512xbf16, #tpu.memory_space<vmem>>, vector<16x512xbf16>,
    %c8_165 = arith.constant 8 : index
    %c0_166 = arith.constant 0 : index
    %222 = vector.load %arg2[%c8_165, %c0_166] : memref<9x512xf32, #tpu.memory_space<vmem>>, vector<1x512xf32>
    %c495_i32_167 = arith.constant 495 : i32
    %223 = tpu.dynamic_rotate %177 by %c495_i32_167 dim 1 : vector<16x512xf32>, i32 -> vector<16x512xf32>
    %224 = vector.broadcast %222 : vector<1x512xf32> to vector<16x512xf32>
    %225 = arith.mulf %223, %224 : vector<16x512xf32>
    %226 = arith.truncf %225 : vector<16x512xf32> to vector<16x512xbf16>
    %c128_168 = arith.constant 128 : index
    %c0_169 = arith.constant 0 : index
    %227 = vector.load %arg25[%c128_168, %c0_169] : memref<288x512xbf16, #tpu.memory_space<vmem>>, vector<16x512xbf16>
    tpu.vector_store %arg25[%c128_168, %c0_169], %226 {strides = array<i32>} : memref<288x512xbf16, #tpu.memory_space<vmem>>, vector<16x512xbf16>,
    %c0_170 = arith.constant 0 : index
    %c0_171 = arith.constant 0 : index
    %228 = vector.load %arg12[%c0_170, %c0_171] : memref<32x144xbf16, #tpu.memory_space<vmem>>, vector<32x144xbf16>
    %c0_172 = arith.constant 0 : index
    %c0_173 = arith.constant 0 : index
    %229 = vector.load %arg25[%c0_172, %c0_173] : memref<288x512xbf16, #tpu.memory_space<vmem>>, vector<144x512xbf16>
    %cst_174 = arith.constant dense<0.000000e+00> : vector<32x512xf32>
    %230 = tpu.matmul %228, %229, %cst_174 {dimension_numbers = #tpu.dot_dimension_numbers<[1], [0], [0], [1], [0, 0, 1, 1], [], []>} : vector<32x144xbf16>, vector<144x512xbf16>, vector<32x512xf32> -> vector<32x512xf32>
    %c0_175 = arith.constant 0 : index
    %c0_176 = arith.constant 0 : index
    %231 = vector.load %arg13[%c0_175, %c0_176] : memref<32x1xf32, #tpu.memory_space<vmem>>, vector<32x1xf32>
    %232 = vector.broadcast %231 : vector<32x1xf32> to vector<32x512xf32>
    %233 = arith.addf %230, %232 : vector<32x512xf32>
    %cst_177 = arith.constant 0.000000e+00 : f32
    %234 = vector.broadcast %cst_177 : f32 to vector<32x512xf32>
    %235 = arith.maximumf %233, %234 : vector<32x512xf32>
    %236 = arith.truncf %235 : vector<32x512xf32> to vector<32x512xbf16>
    %c0_178 = arith.constant 0 : index
    %c0_179 = arith.constant 0 : index
    %237 = vector.load %arg4[%c0_178, %c0_179] : memref<512x128xbf16, #tpu.memory_space<vmem>>, vector<512x128xbf16>
    %cst_180 = arith.constant dense<0.000000e+00> : vector<32x128xf32>
    %238 = tpu.matmul %236, %237, %cst_180 {dimension_numbers = #tpu.dot_dimension_numbers<[1], [0], [0], [1], [0, 0, 1, 1], [], []>} : vector<32x512xbf16>, vector<512x128xbf16>, vector<32x128xf32> -> vector<32x128xf32>
    %c0_181 = arith.constant 0 : index
    %c0_182 = arith.constant 0 : index
    %239 = vector.load %arg3[%c0_181, %c0_182] : memref<9x128xf32, #tpu.memory_space<vmem>>, vector<1x128xf32>
    %c9_i32 = arith.constant 9 : i32
    %240 = tpu.dynamic_rotate %238 by %c9_i32 dim 1 : vector<32x128xf32>, i32 -> vector<32x128xf32>
    %241 = vector.broadcast %239 : vector<1x128xf32> to vector<32x128xf32>
    %242 = arith.mulf %240, %241 : vector<32x128xf32>
    %243 = arith.truncf %242 : vector<32x128xf32> to vector<32x128xbf16>
    %c0_183 = arith.constant 0 : index
    %c0_184 = arith.constant 0 : index
    %244 = vector.load %arg25[%c0_183, %c0_184] : memref<288x512xbf16, #tpu.memory_space<vmem>>, vector<32x128xbf16>
    tpu.vector_store %arg25[%c0_183, %c0_184], %243 {strides = array<i32>} : memref<288x512xbf16, #tpu.memory_space<vmem>>, vector<32x128xbf16>,
    %c1_185 = arith.constant 1 : index
    %c0_186 = arith.constant 0 : index
    %245 = vector.load %arg3[%c1_185, %c0_186] : memref<9x128xf32, #tpu.memory_space<vmem>>, vector<1x128xf32>
    %c8_i32 = arith.constant 8 : i32
    %246 = tpu.dynamic_rotate %238 by %c8_i32 dim 1 : vector<32x128xf32>, i32 -> vector<32x128xf32>
    %247 = vector.broadcast %245 : vector<1x128xf32> to vector<32x128xf32>
    %248 = arith.mulf %246, %247 : vector<32x128xf32>
    %249 = arith.truncf %248 : vector<32x128xf32> to vector<32x128xbf16>
    %c32_187 = arith.constant 32 : index
    %c0_188 = arith.constant 0 : index
    %250 = vector.load %arg25[%c32_187, %c0_188] : memref<288x512xbf16, #tpu.memory_space<vmem>>, vector<32x128xbf16>
    tpu.vector_store %arg25[%c32_187, %c0_188], %249 {strides = array<i32>} : memref<288x512xbf16, #tpu.memory_space<vmem>>, vector<32x128xbf16>,
    %c2_189 = arith.constant 2 : index
    %c0_190 = arith.constant 0 : index
    %251 = vector.load %arg3[%c2_189, %c0_190] : memref<9x128xf32, #tpu.memory_space<vmem>>, vector<1x128xf32>
    %c7_i32 = arith.constant 7 : i32
    %252 = tpu.dynamic_rotate %238 by %c7_i32 dim 1 : vector<32x128xf32>, i32 -> vector<32x128xf32>
    %253 = vector.broadcast %251 : vector<1x128xf32> to vector<32x128xf32>
    %254 = arith.mulf %252, %253 : vector<32x128xf32>
    %255 = arith.truncf %254 : vector<32x128xf32> to vector<32x128xbf16>
    %c64_191 = arith.constant 64 : index
    %c0_192 = arith.constant 0 : index
    %256 = vector.load %arg25[%c64_191, %c0_192] : memref<288x512xbf16, #tpu.memory_space<vmem>>, vector<32x128xbf16>
    tpu.vector_store %arg25[%c64_191, %c0_192], %255 {strides = array<i32>} : memref<288x512xbf16, #tpu.memory_space<vmem>>, vector<32x128xbf16>,
    %c3_193 = arith.constant 3 : index
    %c0_194 = arith.constant 0 : index
    %257 = vector.load %arg3[%c3_193, %c0_194] : memref<9x128xf32, #tpu.memory_space<vmem>>, vector<1x128xf32>
    %c1_i32_195 = arith.constant 1 : i32
    %258 = tpu.dynamic_rotate %238 by %c1_i32_195 dim 1 : vector<32x128xf32>, i32 -> vector<32x128xf32>
    %259 = vector.broadcast %257 : vector<1x128xf32> to vector<32x128xf32>
    %260 = arith.mulf %258, %259 : vector<32x128xf32>
    %261 = arith.truncf %260 : vector<32x128xf32> to vector<32x128xbf16>
    %c96_196 = arith.constant 96 : index
    %c0_197 = arith.constant 0 : index
    %262 = vector.load %arg25[%c96_196, %c0_197] : memref<288x512xbf16, #tpu.memory_space<vmem>>, vector<32x128xbf16>
    tpu.vector_store %arg25[%c96_196, %c0_197], %261 {strides = array<i32>} : memref<288x512xbf16, #tpu.memory_space<vmem>>, vector<32x128xbf16>,
    %263 = arith.truncf %238 : vector<32x128xf32> to vector<32x128xbf16>
    %c128_198 = arith.constant 128 : index
    %c0_199 = arith.constant 0 : index
    %264 = vector.load %arg25[%c128_198, %c0_199] : memref<288x512xbf16, #tpu.memory_space<vmem>>, vector<32x128xbf16>
    tpu.vector_store %arg25[%c128_198, %c0_199], %263 {strides = array<i32>} : memref<288x512xbf16, #tpu.memory_space<vmem>>, vector<32x128xbf16>,
    %c5_200 = arith.constant 5 : index
    %c0_201 = arith.constant 0 : index
    %265 = vector.load %arg3[%c5_200, %c0_201] : memref<9x128xf32, #tpu.memory_space<vmem>>, vector<1x128xf32>
    %c127_i32 = arith.constant 127 : i32
    %266 = tpu.dynamic_rotate %238 by %c127_i32 dim 1 : vector<32x128xf32>, i32 -> vector<32x128xf32>
    %267 = vector.broadcast %265 : vector<1x128xf32> to vector<32x128xf32>
    %268 = arith.mulf %266, %267 : vector<32x128xf32>
    %269 = arith.truncf %268 : vector<32x128xf32> to vector<32x128xbf16>
    %c160 = arith.constant 160 : index
    %c0_202 = arith.constant 0 : index
    %270 = vector.load %arg25[%c160, %c0_202] : memref<288x512xbf16, #tpu.memory_space<vmem>>, vector<32x128xbf16>
    tpu.vector_store %arg25[%c160, %c0_202], %269 {strides = array<i32>} : memref<288x512xbf16, #tpu.memory_space<vmem>>, vector<32x128xbf16>,
    %c6_203 = arith.constant 6 : index
    %c0_204 = arith.constant 0 : index
    %271 = vector.load %arg3[%c6_203, %c0_204] : memref<9x128xf32, #tpu.memory_space<vmem>>, vector<1x128xf32>
    %c121_i32 = arith.constant 121 : i32
    %272 = tpu.dynamic_rotate %238 by %c121_i32 dim 1 : vector<32x128xf32>, i32 -> vector<32x128xf32>
    %273 = vector.broadcast %271 : vector<1x128xf32> to vector<32x128xf32>
    %274 = arith.mulf %272, %273 : vector<32x128xf32>
    %275 = arith.truncf %274 : vector<32x128xf32> to vector<32x128xbf16>
    %c192 = arith.constant 192 : index
    %c0_205 = arith.constant 0 : index
    %276 = vector.load %arg25[%c192, %c0_205] : memref<288x512xbf16, #tpu.memory_space<vmem>>, vector<32x128xbf16>
    tpu.vector_store %arg25[%c192, %c0_205], %275 {strides = array<i32>} : memref<288x512xbf16, #tpu.memory_space<vmem>>, vector<32x128xbf16>,
    %c7_206 = arith.constant 7 : index
    %c0_207 = arith.constant 0 : index
    %277 = vector.load %arg3[%c7_206, %c0_207] : memref<9x128xf32, #tpu.memory_space<vmem>>, vector<1x128xf32>
    %c120_i32 = arith.constant 120 : i32
    %278 = tpu.dynamic_rotate %238 by %c120_i32 dim 1 : vector<32x128xf32>, i32 -> vector<32x128xf32>
    %279 = vector.broadcast %277 : vector<1x128xf32> to vector<32x128xf32>
    %280 = arith.mulf %278, %279 : vector<32x128xf32>
    %281 = arith.truncf %280 : vector<32x128xf32> to vector<32x128xbf16>
    %c224 = arith.constant 224 : index
    %c0_208 = arith.constant 0 : index
    %282 = vector.load %arg25[%c224, %c0_208] : memref<288x512xbf16, #tpu.memory_space<vmem>>, vector<32x128xbf16>
    tpu.vector_store %arg25[%c224, %c0_208], %281 {strides = array<i32>} : memref<288x512xbf16, #tpu.memory_space<vmem>>, vector<32x128xbf16>,
    %c8_209 = arith.constant 8 : index
    %c0_210 = arith.constant 0 : index
    %283 = vector.load %arg3[%c8_209, %c0_210] : memref<9x128xf32, #tpu.memory_space<vmem>>, vector<1x128xf32>
    %c119_i32 = arith.constant 119 : i32
    %284 = tpu.dynamic_rotate %238 by %c119_i32 dim 1 : vector<32x128xf32>, i32 -> vector<32x128xf32>
    %285 = vector.broadcast %283 : vector<1x128xf32> to vector<32x128xf32>
    %286 = arith.mulf %284, %285 : vector<32x128xf32>
    %287 = arith.truncf %286 : vector<32x128xf32> to vector<32x128xbf16>
    %c256 = arith.constant 256 : index
    %c0_211 = arith.constant 0 : index
    %288 = vector.load %arg25[%c256, %c0_211] : memref<288x512xbf16, #tpu.memory_space<vmem>>, vector<32x128xbf16>
    tpu.vector_store %arg25[%c256, %c0_211], %287 {strides = array<i32>} : memref<288x512xbf16, #tpu.memory_space<vmem>>, vector<32x128xbf16>,
    %c0_212 = arith.constant 0 : index
    %c0_213 = arith.constant 0 : index
    %289 = vector.load %arg14[%c0_212, %c0_213] : memref<32x288xbf16, #tpu.memory_space<vmem>>, vector<32x288xbf16>
    %c0_214 = arith.constant 0 : index
    %c0_215 = arith.constant 0 : index
    %290 = vector.load %arg25[%c0_214, %c0_215] : memref<288x512xbf16, #tpu.memory_space<vmem>>, vector<288x128xbf16>
    %cst_216 = arith.constant dense<0.000000e+00> : vector<32x128xf32>
    %291 = tpu.matmul %289, %290, %cst_216 {dimension_numbers = #tpu.dot_dimension_numbers<[1], [0], [0], [1], [0, 0, 1, 1], [], []>} : vector<32x288xbf16>, vector<288x128xbf16>, vector<32x128xf32> -> vector<32x128xf32>
    %c0_217 = arith.constant 0 : index
    %c0_218 = arith.constant 0 : index
    %292 = vector.load %arg15[%c0_217, %c0_218] : memref<32x1xf32, #tpu.memory_space<vmem>>, vector<32x1xf32>
    %293 = vector.broadcast %292 : vector<32x1xf32> to vector<32x128xf32>
    %294 = arith.addf %291, %293 : vector<32x128xf32>
    %cst_219 = arith.constant 0.000000e+00 : f32
    %295 = vector.broadcast %cst_219 : f32 to vector<32x128xf32>
    %296 = arith.maximumf %294, %295 : vector<32x128xf32>
    %c0_220 = arith.constant 0 : index
    %c0_221 = arith.constant 0 : index
    %297 = vector.load %arg3[%c0_220, %c0_221] : memref<9x128xf32, #tpu.memory_space<vmem>>, vector<1x128xf32>
    %c9_i32_222 = arith.constant 9 : i32
    %298 = tpu.dynamic_rotate %296 by %c9_i32_222 dim 1 : vector<32x128xf32>, i32 -> vector<32x128xf32>
    %299 = vector.broadcast %297 : vector<1x128xf32> to vector<32x128xf32>
    %300 = arith.mulf %298, %299 : vector<32x128xf32>
    %301 = arith.truncf %300 : vector<32x128xf32> to vector<32x128xbf16>
    %c0_223 = arith.constant 0 : index
    %c0_224 = arith.constant 0 : index
    %302 = vector.load %arg25[%c0_223, %c0_224] : memref<288x512xbf16, #tpu.memory_space<vmem>>, vector<32x128xbf16>
    tpu.vector_store %arg25[%c0_223, %c0_224], %301 {strides = array<i32>} : memref<288x512xbf16, #tpu.memory_space<vmem>>, vector<32x128xbf16>,
    %c1_225 = arith.constant 1 : index
    %c0_226 = arith.constant 0 : index
    %303 = vector.load %arg3[%c1_225, %c0_226] : memref<9x128xf32, #tpu.memory_space<vmem>>, vector<1x128xf32>
    %c8_i32_227 = arith.constant 8 : i32
    %304 = tpu.dynamic_rotate %296 by %c8_i32_227 dim 1 : vector<32x128xf32>, i32 -> vector<32x128xf32>
    %305 = vector.broadcast %303 : vector<1x128xf32> to vector<32x128xf32>
    %306 = arith.mulf %304, %305 : vector<32x128xf32>
    %307 = arith.truncf %306 : vector<32x128xf32> to vector<32x128xbf16>
    %c32_228 = arith.constant 32 : index
    %c0_229 = arith.constant 0 : index
    %308 = vector.load %arg25[%c32_228, %c0_229] : memref<288x512xbf16, #tpu.memory_space<vmem>>, vector<32x128xbf16>
    tpu.vector_store %arg25[%c32_228, %c0_229], %307 {strides = array<i32>} : memref<288x512xbf16, #tpu.memory_space<vmem>>, vector<32x128xbf16>,
    %c2_230 = arith.constant 2 : index
    %c0_231 = arith.constant 0 : index
    %309 = vector.load %arg3[%c2_230, %c0_231] : memref<9x128xf32, #tpu.memory_space<vmem>>, vector<1x128xf32>
    %c7_i32_232 = arith.constant 7 : i32
    %310 = tpu.dynamic_rotate %296 by %c7_i32_232 dim 1 : vector<32x128xf32>, i32 -> vector<32x128xf32>
    %311 = vector.broadcast %309 : vector<1x128xf32> to vector<32x128xf32>
    %312 = arith.mulf %310, %311 : vector<32x128xf32>
    %313 = arith.truncf %312 : vector<32x128xf32> to vector<32x128xbf16>
    %c64_233 = arith.constant 64 : index
    %c0_234 = arith.constant 0 : index
    %314 = vector.load %arg25[%c64_233, %c0_234] : memref<288x512xbf16, #tpu.memory_space<vmem>>, vector<32x128xbf16>
    tpu.vector_store %arg25[%c64_233, %c0_234], %313 {strides = array<i32>} : memref<288x512xbf16, #tpu.memory_space<vmem>>, vector<32x128xbf16>,
    %c3_235 = arith.constant 3 : index
    %c0_236 = arith.constant 0 : index
    %315 = vector.load %arg3[%c3_235, %c0_236] : memref<9x128xf32, #tpu.memory_space<vmem>>, vector<1x128xf32>
    %c1_i32_237 = arith.constant 1 : i32
    %316 = tpu.dynamic_rotate %296 by %c1_i32_237 dim 1 : vector<32x128xf32>, i32 -> vector<32x128xf32>
    %317 = vector.broadcast %315 : vector<1x128xf32> to vector<32x128xf32>
    %318 = arith.mulf %316, %317 : vector<32x128xf32>
    %319 = arith.truncf %318 : vector<32x128xf32> to vector<32x128xbf16>
    %c96_238 = arith.constant 96 : index
    %c0_239 = arith.constant 0 : index
    %320 = vector.load %arg25[%c96_238, %c0_239] : memref<288x512xbf16, #tpu.memory_space<vmem>>, vector<32x128xbf16>
    tpu.vector_store %arg25[%c96_238, %c0_239], %319 {strides = array<i32>} : memref<288x512xbf16, #tpu.memory_space<vmem>>, vector<32x128xbf16>,
    %321 = arith.truncf %296 : vector<32x128xf32> to vector<32x128xbf16>
    %c128_240 = arith.constant 128 : index
    %c0_241 = arith.constant 0 : index
    %322 = vector.load %arg25[%c128_240, %c0_241] : memref<288x512xbf16, #tpu.memory_space<vmem>>, vector<32x128xbf16>
    tpu.vector_store %arg25[%c128_240, %c0_241], %321 {strides = array<i32>} : memref<288x512xbf16, #tpu.memory_space<vmem>>, vector<32x128xbf16>,
    %c5_242 = arith.constant 5 : index
    %c0_243 = arith.constant 0 : index
    %323 = vector.load %arg3[%c5_242, %c0_243] : memref<9x128xf32, #tpu.memory_space<vmem>>, vector<1x128xf32>
    %c127_i32_244 = arith.constant 127 : i32
    %324 = tpu.dynamic_rotate %296 by %c127_i32_244 dim 1 : vector<32x128xf32>, i32 -> vector<32x128xf32>
    %325 = vector.broadcast %323 : vector<1x128xf32> to vector<32x128xf32>
    %326 = arith.mulf %324, %325 : vector<32x128xf32>
    %327 = arith.truncf %326 : vector<32x128xf32> to vector<32x128xbf16>
    %c160_245 = arith.constant 160 : index
    %c0_246 = arith.constant 0 : index
    %328 = vector.load %arg25[%c160_245, %c0_246] : memref<288x512xbf16, #tpu.memory_space<vmem>>, vector<32x128xbf16>
    tpu.vector_store %arg25[%c160_245, %c0_246], %327 {strides = array<i32>} : memref<288x512xbf16, #tpu.memory_space<vmem>>, vector<32x128xbf16>,
    %c6_247 = arith.constant 6 : index
    %c0_248 = arith.constant 0 : index
    %329 = vector.load %arg3[%c6_247, %c0_248] : memref<9x128xf32, #tpu.memory_space<vmem>>, vector<1x128xf32>
    %c121_i32_249 = arith.constant 121 : i32
    %330 = tpu.dynamic_rotate %296 by %c121_i32_249 dim 1 : vector<32x128xf32>, i32 -> vector<32x128xf32>
    %331 = vector.broadcast %329 : vector<1x128xf32> to vector<32x128xf32>
    %332 = arith.mulf %330, %331 : vector<32x128xf32>
    %333 = arith.truncf %332 : vector<32x128xf32> to vector<32x128xbf16>
    %c192_250 = arith.constant 192 : index
    %c0_251 = arith.constant 0 : index
    %334 = vector.load %arg25[%c192_250, %c0_251] : memref<288x512xbf16, #tpu.memory_space<vmem>>, vector<32x128xbf16>
    tpu.vector_store %arg25[%c192_250, %c0_251], %333 {strides = array<i32>} : memref<288x512xbf16, #tpu.memory_space<vmem>>, vector<32x128xbf16>,
    %c7_252 = arith.constant 7 : index
    %c0_253 = arith.constant 0 : index
    %335 = vector.load %arg3[%c7_252, %c0_253] : memref<9x128xf32, #tpu.memory_space<vmem>>, vector<1x128xf32>
    %c120_i32_254 = arith.constant 120 : i32
    %336 = tpu.dynamic_rotate %296 by %c120_i32_254 dim 1 : vector<32x128xf32>, i32 -> vector<32x128xf32>
    %337 = vector.broadcast %335 : vector<1x128xf32> to vector<32x128xf32>
    %338 = arith.mulf %336, %337 : vector<32x128xf32>
    %339 = arith.truncf %338 : vector<32x128xf32> to vector<32x128xbf16>
    %c224_255 = arith.constant 224 : index
    %c0_256 = arith.constant 0 : index
    %340 = vector.load %arg25[%c224_255, %c0_256] : memref<288x512xbf16, #tpu.memory_space<vmem>>, vector<32x128xbf16>
    tpu.vector_store %arg25[%c224_255, %c0_256], %339 {strides = array<i32>} : memref<288x512xbf16, #tpu.memory_space<vmem>>, vector<32x128xbf16>,
    %c8_257 = arith.constant 8 : index
    %c0_258 = arith.constant 0 : index
    %341 = vector.load %arg3[%c8_257, %c0_258] : memref<9x128xf32, #tpu.memory_space<vmem>>, vector<1x128xf32>
    %c119_i32_259 = arith.constant 119 : i32
    %342 = tpu.dynamic_rotate %296 by %c119_i32_259 dim 1 : vector<32x128xf32>, i32 -> vector<32x128xf32>
    %343 = vector.broadcast %341 : vector<1x128xf32> to vector<32x128xf32>
    %344 = arith.mulf %342, %343 : vector<32x128xf32>
    %345 = arith.truncf %344 : vector<32x128xf32> to vector<32x128xbf16>
    %c256_260 = arith.constant 256 : index
    %c0_261 = arith.constant 0 : index
    %346 = vector.load %arg25[%c256_260, %c0_261] : memref<288x512xbf16, #tpu.memory_space<vmem>>, vector<32x128xbf16>
    tpu.vector_store %arg25[%c256_260, %c0_261], %345 {strides = array<i32>} : memref<288x512xbf16, #tpu.memory_space<vmem>>, vector<32x128xbf16>,
    %c0_262 = arith.constant 0 : index
    %c0_263 = arith.constant 0 : index
    %347 = vector.load %arg16[%c0_262, %c0_263] : memref<32x288xbf16, #tpu.memory_space<vmem>>, vector<32x288xbf16>
    %c0_264 = arith.constant 0 : index
    %c0_265 = arith.constant 0 : index
    %348 = vector.load %arg25[%c0_264, %c0_265] : memref<288x512xbf16, #tpu.memory_space<vmem>>, vector<288x128xbf16>
    %cst_266 = arith.constant dense<0.000000e+00> : vector<32x128xf32>
    %349 = tpu.matmul %347, %348, %cst_266 {dimension_numbers = #tpu.dot_dimension_numbers<[1], [0], [0], [1], [0, 0, 1, 1], [], []>} : vector<32x288xbf16>, vector<288x128xbf16>, vector<32x128xf32> -> vector<32x128xf32>
    %c0_267 = arith.constant 0 : index
    %c0_268 = arith.constant 0 : index
    %350 = vector.load %arg17[%c0_267, %c0_268] : memref<32x1xf32, #tpu.memory_space<vmem>>, vector<32x1xf32>
    %351 = vector.broadcast %350 : vector<32x1xf32> to vector<32x128xf32>
    %352 = arith.addf %349, %351 : vector<32x128xf32>
    %353 = arith.addf %352, %238 : vector<32x128xf32>
    %cst_269 = arith.constant 0.000000e+00 : f32
    %354 = vector.broadcast %cst_269 : f32 to vector<32x128xf32>
    %355 = arith.maximumf %353, %354 : vector<32x128xf32>
    %356 = arith.truncf %355 : vector<32x128xf32> to vector<32x128xbf16>
    %c0_270 = arith.constant 0 : index
    %c0_271 = arith.constant 0 : index
    %357 = vector.load %arg5[%c0_270, %c0_271] : memref<128x512xbf16, #tpu.memory_space<vmem>>, vector<128x512xbf16>
    %cst_272 = arith.constant dense<0.000000e+00> : vector<32x512xf32>
    %358 = tpu.matmul %356, %357, %cst_272 {dimension_numbers = #tpu.dot_dimension_numbers<[1], [0], [0], [1], [0, 0, 1, 1], [], []>} : vector<32x128xbf16>, vector<128x512xbf16>, vector<32x512xf32> -> vector<32x512xf32>
    %c0_273 = arith.constant 0 : index
    %c0_274 = arith.constant 0 : index
    %359 = vector.load %arg2[%c0_273, %c0_274] : memref<9x512xf32, #tpu.memory_space<vmem>>, vector<1x512xf32>
    %c17_i32_275 = arith.constant 17 : i32
    %360 = tpu.dynamic_rotate %358 by %c17_i32_275 dim 1 : vector<32x512xf32>, i32 -> vector<32x512xf32>
    %361 = vector.broadcast %359 : vector<1x512xf32> to vector<32x512xf32>
    %362 = arith.mulf %360, %361 : vector<32x512xf32>
    %363 = arith.truncf %362 : vector<32x512xf32> to vector<32x512xbf16>
    %c0_276 = arith.constant 0 : index
    %c0_277 = arith.constant 0 : index
    %364 = vector.load %arg25[%c0_276, %c0_277] : memref<288x512xbf16, #tpu.memory_space<vmem>>, vector<32x512xbf16>
    tpu.vector_store %arg25[%c0_276, %c0_277], %363 {strides = array<i32>} : memref<288x512xbf16, #tpu.memory_space<vmem>>, vector<32x512xbf16>,
    %c1_278 = arith.constant 1 : index
    %c0_279 = arith.constant 0 : index
    %365 = vector.load %arg2[%c1_278, %c0_279] : memref<9x512xf32, #tpu.memory_space<vmem>>, vector<1x512xf32>
    %c16_i32_280 = arith.constant 16 : i32
    %366 = tpu.dynamic_rotate %358 by %c16_i32_280 dim 1 : vector<32x512xf32>, i32 -> vector<32x512xf32>
    %367 = vector.broadcast %365 : vector<1x512xf32> to vector<32x512xf32>
    %368 = arith.mulf %366, %367 : vector<32x512xf32>
    %369 = arith.truncf %368 : vector<32x512xf32> to vector<32x512xbf16>
    %c32_281 = arith.constant 32 : index
    %c0_282 = arith.constant 0 : index
    %370 = vector.load %arg25[%c32_281, %c0_282] : memref<288x512xbf16, #tpu.memory_space<vmem>>, vector<32x512xbf16>
    tpu.vector_store %arg25[%c32_281, %c0_282], %369 {strides = array<i32>} : memref<288x512xbf16, #tpu.memory_space<vmem>>, vector<32x512xbf16>,
    %c2_283 = arith.constant 2 : index
    %c0_284 = arith.constant 0 : index
    %371 = vector.load %arg2[%c2_283, %c0_284] : memref<9x512xf32, #tpu.memory_space<vmem>>, vector<1x512xf32>
    %c15_i32_285 = arith.constant 15 : i32
    %372 = tpu.dynamic_rotate %358 by %c15_i32_285 dim 1 : vector<32x512xf32>, i32 -> vector<32x512xf32>
    %373 = vector.broadcast %371 : vector<1x512xf32> to vector<32x512xf32>
    %374 = arith.mulf %372, %373 : vector<32x512xf32>
    %375 = arith.truncf %374 : vector<32x512xf32> to vector<32x512xbf16>
    %c64_286 = arith.constant 64 : index
    %c0_287 = arith.constant 0 : index
    %376 = vector.load %arg25[%c64_286, %c0_287] : memref<288x512xbf16, #tpu.memory_space<vmem>>, vector<32x512xbf16>
    tpu.vector_store %arg25[%c64_286, %c0_287], %375 {strides = array<i32>} : memref<288x512xbf16, #tpu.memory_space<vmem>>, vector<32x512xbf16>,
    %c3_288 = arith.constant 3 : index
    %c0_289 = arith.constant 0 : index
    %377 = vector.load %arg2[%c3_288, %c0_289] : memref<9x512xf32, #tpu.memory_space<vmem>>, vector<1x512xf32>
    %c1_i32_290 = arith.constant 1 : i32
    %378 = tpu.dynamic_rotate %358 by %c1_i32_290 dim 1 : vector<32x512xf32>, i32 -> vector<32x512xf32>
    %379 = vector.broadcast %377 : vector<1x512xf32> to vector<32x512xf32>
    %380 = arith.mulf %378, %379 : vector<32x512xf32>
    %381 = arith.truncf %380 : vector<32x512xf32> to vector<32x512xbf16>
    %c96_291 = arith.constant 96 : index
    %c0_292 = arith.constant 0 : index
    %382 = vector.load %arg25[%c96_291, %c0_292] : memref<288x512xbf16, #tpu.memory_space<vmem>>, vector<32x512xbf16>
    tpu.vector_store %arg25[%c96_291, %c0_292], %381 {strides = array<i32>} : memref<288x512xbf16, #tpu.memory_space<vmem>>, vector<32x512xbf16>,
    %383 = arith.truncf %358 : vector<32x512xf32> to vector<32x512xbf16>
    %c128_293 = arith.constant 128 : index
    %c0_294 = arith.constant 0 : index
    %384 = vector.load %arg25[%c128_293, %c0_294] : memref<288x512xbf16, #tpu.memory_space<vmem>>, vector<32x512xbf16>
    tpu.vector_store %arg25[%c128_293, %c0_294], %383 {strides = array<i32>} : memref<288x512xbf16, #tpu.memory_space<vmem>>, vector<32x512xbf16>,
    %c5_295 = arith.constant 5 : index
    %c0_296 = arith.constant 0 : index
    %385 = vector.load %arg2[%c5_295, %c0_296] : memref<9x512xf32, #tpu.memory_space<vmem>>, vector<1x512xf32>
    %c511_i32_297 = arith.constant 511 : i32
    %386 = tpu.dynamic_rotate %358 by %c511_i32_297 dim 1 : vector<32x512xf32>, i32 -> vector<32x512xf32>
    %387 = vector.broadcast %385 : vector<1x512xf32> to vector<32x512xf32>
    %388 = arith.mulf %386, %387 : vector<32x512xf32>
    %389 = arith.truncf %388 : vector<32x512xf32> to vector<32x512xbf16>
    %c160_298 = arith.constant 160 : index
    %c0_299 = arith.constant 0 : index
    %390 = vector.load %arg25[%c160_298, %c0_299] : memref<288x512xbf16, #tpu.memory_space<vmem>>, vector<32x512xbf16>
    tpu.vector_store %arg25[%c160_298, %c0_299], %389 {strides = array<i32>} : memref<288x512xbf16, #tpu.memory_space<vmem>>, vector<32x512xbf16>,
    %c6_300 = arith.constant 6 : index
    %c0_301 = arith.constant 0 : index
    %391 = vector.load %arg2[%c6_300, %c0_301] : memref<9x512xf32, #tpu.memory_space<vmem>>, vector<1x512xf32>
    %c497_i32_302 = arith.constant 497 : i32
    %392 = tpu.dynamic_rotate %358 by %c497_i32_302 dim 1 : vector<32x512xf32>, i32 -> vector<32x512xf32>
    %393 = vector.broadcast %391 : vector<1x512xf32> to vector<32x512xf32>
    %394 = arith.mulf %392, %393 : vector<32x512xf32>
    %395 = arith.truncf %394 : vector<32x512xf32> to vector<32x512xbf16>
    %c192_303 = arith.constant 192 : index
    %c0_304 = arith.constant 0 : index
    %396 = vector.load %arg25[%c192_303, %c0_304] : memref<288x512xbf16, #tpu.memory_space<vmem>>, vector<32x512xbf16>
    tpu.vector_store %arg25[%c192_303, %c0_304], %395 {strides = array<i32>} : memref<288x512xbf16, #tpu.memory_space<vmem>>, vector<32x512xbf16>,
    %c7_305 = arith.constant 7 : index
    %c0_306 = arith.constant 0 : index
    %397 = vector.load %arg2[%c7_305, %c0_306] : memref<9x512xf32, #tpu.memory_space<vmem>>, vector<1x512xf32>
    %c496_i32_307 = arith.constant 496 : i32
    %398 = tpu.dynamic_rotate %358 by %c496_i32_307 dim 1 : vector<32x512xf32>, i32 -> vector<32x512xf32>
    %399 = vector.broadcast %397 : vector<1x512xf32> to vector<32x512xf32>
    %400 = arith.mulf %398, %399 : vector<32x512xf32>
    %401 = arith.truncf %400 : vector<32x512xf32> to vector<32x512xbf16>
    %c224_308 = arith.constant 224 : index
    %c0_309 = arith.constant 0 : index
    %402 = vector.load %arg25[%c224_308, %c0_309] : memref<288x512xbf16, #tpu.memory_space<vmem>>, vector<32x512xbf16>
    tpu.vector_store %arg25[%c224_308, %c0_309], %401 {strides = array<i32>} : memref<288x512xbf16, #tpu.memory_space<vmem>>, vector<32x512xbf16>,
    %c8_310 = arith.constant 8 : index
    %c0_311 = arith.constant 0 : index
    %403 = vector.load %arg2[%c8_310, %c0_311] : memref<9x512xf32, #tpu.memory_space<vmem>>, vector<1x512xf32>
    %c495_i32_312 = arith.constant 495 : i32
    %404 = tpu.dynamic_rotate %358 by %c495_i32_312 dim 1 : vector<32x512xf32>, i32 -> vector<32x512xf32>
    %405 = vector.broadcast %403 : vector<1x512xf32> to vector<32x512xf32>
    %406 = arith.mulf %404, %405 : vector<32x512xf32>
    %407 = arith.truncf %406 : vector<32x512xf32> to vector<32x512xbf16>
    %c256_313 = arith.constant 256 : index
    %c0_314 = arith.constant 0 : index
    %408 = vector.load %arg25[%c256_313, %c0_314] : memref<288x512xbf16, #tpu.memory_space<vmem>>, vector<32x512xbf16>
    tpu.vector_store %arg25[%c256_313, %c0_314], %407 {strides = array<i32>} : memref<288x512xbf16, #tpu.memory_space<vmem>>, vector<32x512xbf16>,
    %c0_315 = arith.constant 0 : index
    %c0_316 = arith.constant 0 : index
    %409 = vector.load %arg18[%c0_315, %c0_316] : memref<16x288xbf16, #tpu.memory_space<vmem>>, vector<16x288xbf16>
    %c0_317 = arith.constant 0 : index
    %c0_318 = arith.constant 0 : index
    %410 = vector.load %arg25[%c0_317, %c0_318] : memref<288x512xbf16, #tpu.memory_space<vmem>>, vector<288x512xbf16>
    %cst_319 = arith.constant dense<0.000000e+00> : vector<16x512xf32>
    %411 = tpu.matmul %409, %410, %cst_319 {dimension_numbers = #tpu.dot_dimension_numbers<[1], [0], [0], [1], [0, 0, 1, 1], [], []>} : vector<16x288xbf16>, vector<288x512xbf16>, vector<16x512xf32> -> vector<16x512xf32>
    %c0_320 = arith.constant 0 : index
    %c0_321 = arith.constant 0 : index
    %412 = vector.load %arg19[%c0_320, %c0_321] : memref<16x1xf32, #tpu.memory_space<vmem>>, vector<16x1xf32>
    %413 = vector.broadcast %412 : vector<16x1xf32> to vector<16x512xf32>
    %414 = arith.addf %411, %413 : vector<16x512xf32>
    %cst_322 = arith.constant 0.000000e+00 : f32
    %415 = vector.broadcast %cst_322 : f32 to vector<16x512xf32>
    %416 = arith.maximumf %414, %415 : vector<16x512xf32>
    %c0_323 = arith.constant 0 : index
    %c0_324 = arith.constant 0 : index
    %417 = vector.load %arg2[%c0_323, %c0_324] : memref<9x512xf32, #tpu.memory_space<vmem>>, vector<1x512xf32>
    %c17_i32_325 = arith.constant 17 : i32
    %418 = tpu.dynamic_rotate %416 by %c17_i32_325 dim 1 : vector<16x512xf32>, i32 -> vector<16x512xf32>
    %419 = vector.broadcast %417 : vector<1x512xf32> to vector<16x512xf32>
    %420 = arith.mulf %418, %419 : vector<16x512xf32>
    %421 = arith.truncf %420 : vector<16x512xf32> to vector<16x512xbf16>
    %c0_326 = arith.constant 0 : index
    %c0_327 = arith.constant 0 : index
    %422 = vector.load %arg25[%c0_326, %c0_327] : memref<288x512xbf16, #tpu.memory_space<vmem>>, vector<16x512xbf16>
    tpu.vector_store %arg25[%c0_326, %c0_327], %421 {strides = array<i32>} : memref<288x512xbf16, #tpu.memory_space<vmem>>, vector<16x512xbf16>,
    %c17_i32_328 = arith.constant 17 : i32
    %423 = tpu.dynamic_rotate %177 by %c17_i32_328 dim 1 : vector<16x512xf32>, i32 -> vector<16x512xf32>
    %424 = vector.broadcast %417 : vector<1x512xf32> to vector<16x512xf32>
    %425 = arith.mulf %423, %424 : vector<16x512xf32>
    %426 = arith.truncf %425 : vector<16x512xf32> to vector<16x512xbf16>
    %c16_329 = arith.constant 16 : index
    %c0_330 = arith.constant 0 : index
    %427 = vector.load %arg25[%c16_329, %c0_330] : memref<288x512xbf16, #tpu.memory_space<vmem>>, vector<16x512xbf16>
    tpu.vector_store %arg25[%c16_329, %c0_330], %426 {strides = array<i32>} : memref<288x512xbf16, #tpu.memory_space<vmem>>, vector<16x512xbf16>,
    %c1_331 = arith.constant 1 : index
    %c0_332 = arith.constant 0 : index
    %428 = vector.load %arg2[%c1_331, %c0_332] : memref<9x512xf32, #tpu.memory_space<vmem>>, vector<1x512xf32>
    %c16_i32_333 = arith.constant 16 : i32
    %429 = tpu.dynamic_rotate %416 by %c16_i32_333 dim 1 : vector<16x512xf32>, i32 -> vector<16x512xf32>
    %430 = vector.broadcast %428 : vector<1x512xf32> to vector<16x512xf32>
    %431 = arith.mulf %429, %430 : vector<16x512xf32>
    %432 = arith.truncf %431 : vector<16x512xf32> to vector<16x512xbf16>
    %c32_334 = arith.constant 32 : index
    %c0_335 = arith.constant 0 : index
    %433 = vector.load %arg25[%c32_334, %c0_335] : memref<288x512xbf16, #tpu.memory_space<vmem>>, vector<16x512xbf16>
    tpu.vector_store %arg25[%c32_334, %c0_335], %432 {strides = array<i32>} : memref<288x512xbf16, #tpu.memory_space<vmem>>, vector<16x512xbf16>,
    %c16_i32_336 = arith.constant 16 : i32
    %434 = tpu.dynamic_rotate %177 by %c16_i32_336 dim 1 : vector<16x512xf32>, i32 -> vector<16x512xf32>
    %435 = vector.broadcast %428 : vector<1x512xf32> to vector<16x512xf32>
    %436 = arith.mulf %434, %435 : vector<16x512xf32>
    %437 = arith.truncf %436 : vector<16x512xf32> to vector<16x512xbf16>
    %c48_337 = arith.constant 48 : index
    %c0_338 = arith.constant 0 : index
    %438 = vector.load %arg25[%c48_337, %c0_338] : memref<288x512xbf16, #tpu.memory_space<vmem>>, vector<16x512xbf16>
    tpu.vector_store %arg25[%c48_337, %c0_338], %437 {strides = array<i32>} : memref<288x512xbf16, #tpu.memory_space<vmem>>, vector<16x512xbf16>,
    %c2_339 = arith.constant 2 : index
    %c0_340 = arith.constant 0 : index
    %439 = vector.load %arg2[%c2_339, %c0_340] : memref<9x512xf32, #tpu.memory_space<vmem>>, vector<1x512xf32>
    %c15_i32_341 = arith.constant 15 : i32
    %440 = tpu.dynamic_rotate %416 by %c15_i32_341 dim 1 : vector<16x512xf32>, i32 -> vector<16x512xf32>
    %441 = vector.broadcast %439 : vector<1x512xf32> to vector<16x512xf32>
    %442 = arith.mulf %440, %441 : vector<16x512xf32>
    %443 = arith.truncf %442 : vector<16x512xf32> to vector<16x512xbf16>
    %c64_342 = arith.constant 64 : index
    %c0_343 = arith.constant 0 : index
    %444 = vector.load %arg25[%c64_342, %c0_343] : memref<288x512xbf16, #tpu.memory_space<vmem>>, vector<16x512xbf16>
    tpu.vector_store %arg25[%c64_342, %c0_343], %443 {strides = array<i32>} : memref<288x512xbf16, #tpu.memory_space<vmem>>, vector<16x512xbf16>,
    %c15_i32_344 = arith.constant 15 : i32
    %445 = tpu.dynamic_rotate %177 by %c15_i32_344 dim 1 : vector<16x512xf32>, i32 -> vector<16x512xf32>
    %446 = vector.broadcast %439 : vector<1x512xf32> to vector<16x512xf32>
    %447 = arith.mulf %445, %446 : vector<16x512xf32>
    %448 = arith.truncf %447 : vector<16x512xf32> to vector<16x512xbf16>
    %c80_345 = arith.constant 80 : index
    %c0_346 = arith.constant 0 : index
    %449 = vector.load %arg25[%c80_345, %c0_346] : memref<288x512xbf16, #tpu.memory_space<vmem>>, vector<16x512xbf16>
    tpu.vector_store %arg25[%c80_345, %c0_346], %448 {strides = array<i32>} : memref<288x512xbf16, #tpu.memory_space<vmem>>, vector<16x512xbf16>,
    %c3_347 = arith.constant 3 : index
    %c0_348 = arith.constant 0 : index
    %450 = vector.load %arg2[%c3_347, %c0_348] : memref<9x512xf32, #tpu.memory_space<vmem>>, vector<1x512xf32>
    %c1_i32_349 = arith.constant 1 : i32
    %451 = tpu.dynamic_rotate %416 by %c1_i32_349 dim 1 : vector<16x512xf32>, i32 -> vector<16x512xf32>
    %452 = vector.broadcast %450 : vector<1x512xf32> to vector<16x512xf32>
    %453 = arith.mulf %451, %452 : vector<16x512xf32>
    %454 = arith.truncf %453 : vector<16x512xf32> to vector<16x512xbf16>
    %c96_350 = arith.constant 96 : index
    %c0_351 = arith.constant 0 : index
    %455 = vector.load %arg25[%c96_350, %c0_351] : memref<288x512xbf16, #tpu.memory_space<vmem>>, vector<16x512xbf16>
    tpu.vector_store %arg25[%c96_350, %c0_351], %454 {strides = array<i32>} : memref<288x512xbf16, #tpu.memory_space<vmem>>, vector<16x512xbf16>,
    %c1_i32_352 = arith.constant 1 : i32
    %456 = tpu.dynamic_rotate %177 by %c1_i32_352 dim 1 : vector<16x512xf32>, i32 -> vector<16x512xf32>
    %457 = vector.broadcast %450 : vector<1x512xf32> to vector<16x512xf32>
    %458 = arith.mulf %456, %457 : vector<16x512xf32>
    %459 = arith.truncf %458 : vector<16x512xf32> to vector<16x512xbf16>
    %c112_353 = arith.constant 112 : index
    %c0_354 = arith.constant 0 : index
    %460 = vector.load %arg25[%c112_353, %c0_354] : memref<288x512xbf16, #tpu.memory_space<vmem>>, vector<16x512xbf16>
    tpu.vector_store %arg25[%c112_353, %c0_354], %459 {strides = array<i32>} : memref<288x512xbf16, #tpu.memory_space<vmem>>, vector<16x512xbf16>,
    %461 = arith.truncf %416 : vector<16x512xf32> to vector<16x512xbf16>
    %c128_355 = arith.constant 128 : index
    %c0_356 = arith.constant 0 : index
    %462 = vector.load %arg25[%c128_355, %c0_356] : memref<288x512xbf16, #tpu.memory_space<vmem>>, vector<16x512xbf16>
    tpu.vector_store %arg25[%c128_355, %c0_356], %461 {strides = array<i32>} : memref<288x512xbf16, #tpu.memory_space<vmem>>, vector<16x512xbf16>,
    %463 = arith.truncf %177 : vector<16x512xf32> to vector<16x512xbf16>
    %c144 = arith.constant 144 : index
    %c0_357 = arith.constant 0 : index
    %464 = vector.load %arg25[%c144, %c0_357] : memref<288x512xbf16, #tpu.memory_space<vmem>>, vector<16x512xbf16>
    tpu.vector_store %arg25[%c144, %c0_357], %463 {strides = array<i32>} : memref<288x512xbf16, #tpu.memory_space<vmem>>, vector<16x512xbf16>,
    %c5_358 = arith.constant 5 : index
    %c0_359 = arith.constant 0 : index
    %465 = vector.load %arg2[%c5_358, %c0_359] : memref<9x512xf32, #tpu.memory_space<vmem>>, vector<1x512xf32>
    %c511_i32_360 = arith.constant 511 : i32
    %466 = tpu.dynamic_rotate %416 by %c511_i32_360 dim 1 : vector<16x512xf32>, i32 -> vector<16x512xf32>
    %467 = vector.broadcast %465 : vector<1x512xf32> to vector<16x512xf32>
    %468 = arith.mulf %466, %467 : vector<16x512xf32>
    %469 = arith.truncf %468 : vector<16x512xf32> to vector<16x512xbf16>
    %c160_361 = arith.constant 160 : index
    %c0_362 = arith.constant 0 : index
    %470 = vector.load %arg25[%c160_361, %c0_362] : memref<288x512xbf16, #tpu.memory_space<vmem>>, vector<16x512xbf16>
    tpu.vector_store %arg25[%c160_361, %c0_362], %469 {strides = array<i32>} : memref<288x512xbf16, #tpu.memory_space<vmem>>, vector<16x512xbf16>,
    %c511_i32_363 = arith.constant 511 : i32
    %471 = tpu.dynamic_rotate %177 by %c511_i32_363 dim 1 : vector<16x512xf32>, i32 -> vector<16x512xf32>
    %472 = vector.broadcast %465 : vector<1x512xf32> to vector<16x512xf32>
    %473 = arith.mulf %471, %472 : vector<16x512xf32>
    %474 = arith.truncf %473 : vector<16x512xf32> to vector<16x512xbf16>
    %c176 = arith.constant 176 : index
    %c0_364 = arith.constant 0 : index
    %475 = vector.load %arg25[%c176, %c0_364] : memref<288x512xbf16, #tpu.memory_space<vmem>>, vector<16x512xbf16>
    tpu.vector_store %arg25[%c176, %c0_364], %474 {strides = array<i32>} : memref<288x512xbf16, #tpu.memory_space<vmem>>, vector<16x512xbf16>,
    %c6_365 = arith.constant 6 : index
    %c0_366 = arith.constant 0 : index
    %476 = vector.load %arg2[%c6_365, %c0_366] : memref<9x512xf32, #tpu.memory_space<vmem>>, vector<1x512xf32>
    %c497_i32_367 = arith.constant 497 : i32
    %477 = tpu.dynamic_rotate %416 by %c497_i32_367 dim 1 : vector<16x512xf32>, i32 -> vector<16x512xf32>
    %478 = vector.broadcast %476 : vector<1x512xf32> to vector<16x512xf32>
    %479 = arith.mulf %477, %478 : vector<16x512xf32>
    %480 = arith.truncf %479 : vector<16x512xf32> to vector<16x512xbf16>
    %c192_368 = arith.constant 192 : index
    %c0_369 = arith.constant 0 : index
    %481 = vector.load %arg25[%c192_368, %c0_369] : memref<288x512xbf16, #tpu.memory_space<vmem>>, vector<16x512xbf16>
    tpu.vector_store %arg25[%c192_368, %c0_369], %480 {strides = array<i32>} : memref<288x512xbf16, #tpu.memory_space<vmem>>, vector<16x512xbf16>,
    %c497_i32_370 = arith.constant 497 : i32
    %482 = tpu.dynamic_rotate %177 by %c497_i32_370 dim 1 : vector<16x512xf32>, i32 -> vector<16x512xf32>
    %483 = vector.broadcast %476 : vector<1x512xf32> to vector<16x512xf32>
    %484 = arith.mulf %482, %483 : vector<16x512xf32>
    %485 = arith.truncf %484 : vector<16x512xf32> to vector<16x512xbf16>
    %c208 = arith.constant 208 : index
    %c0_371 = arith.constant 0 : index
    %486 = vector.load %arg25[%c208, %c0_371] : memref<288x512xbf16, #tpu.memory_space<vmem>>, vector<16x512xbf16>
    tpu.vector_store %arg25[%c208, %c0_371], %485 {strides = array<i32>} : memref<288x512xbf16, #tpu.memory_space<vmem>>, vector<16x512xbf16>,
    %c7_372 = arith.constant 7 : index
    %c0_373 = arith.constant 0 : index
    %487 = vector.load %arg2[%c7_372, %c0_373] : memref<9x512xf32, #tpu.memory_space<vmem>>, vector<1x512xf32>
    %c496_i32_374 = arith.constant 496 : i32
    %488 = tpu.dynamic_rotate %416 by %c496_i32_374 dim 1 : vector<16x512xf32>, i32 -> vector<16x512xf32>
    %489 = vector.broadcast %487 : vector<1x512xf32> to vector<16x512xf32>
    %490 = arith.mulf %488, %489 : vector<16x512xf32>
    %491 = arith.truncf %490 : vector<16x512xf32> to vector<16x512xbf16>
    %c224_375 = arith.constant 224 : index
    %c0_376 = arith.constant 0 : index
    %492 = vector.load %arg25[%c224_375, %c0_376] : memref<288x512xbf16, #tpu.memory_space<vmem>>, vector<16x512xbf16>
    tpu.vector_store %arg25[%c224_375, %c0_376], %491 {strides = array<i32>} : memref<288x512xbf16, #tpu.memory_space<vmem>>, vector<16x512xbf16>,
    %c496_i32_377 = arith.constant 496 : i32
    %493 = tpu.dynamic_rotate %177 by %c496_i32_377 dim 1 : vector<16x512xf32>, i32 -> vector<16x512xf32>
    %494 = vector.broadcast %487 : vector<1x512xf32> to vector<16x512xf32>
    %495 = arith.mulf %493, %494 : vector<16x512xf32>
    %496 = arith.truncf %495 : vector<16x512xf32> to vector<16x512xbf16>
    %c240 = arith.constant 240 : index
    %c0_378 = arith.constant 0 : index
    %497 = vector.load %arg25[%c240, %c0_378] : memref<288x512xbf16, #tpu.memory_space<vmem>>, vector<16x512xbf16>
    tpu.vector_store %arg25[%c240, %c0_378], %496 {strides = array<i32>} : memref<288x512xbf16, #tpu.memory_space<vmem>>, vector<16x512xbf16>,
    %c8_379 = arith.constant 8 : index
    %c0_380 = arith.constant 0 : index
    %498 = vector.load %arg2[%c8_379, %c0_380] : memref<9x512xf32, #tpu.memory_space<vmem>>, vector<1x512xf32>
    %c495_i32_381 = arith.constant 495 : i32
    %499 = tpu.dynamic_rotate %416 by %c495_i32_381 dim 1 : vector<16x512xf32>, i32 -> vector<16x512xf32>
    %500 = vector.broadcast %498 : vector<1x512xf32> to vector<16x512xf32>
    %501 = arith.mulf %499, %500 : vector<16x512xf32>
    %502 = arith.truncf %501 : vector<16x512xf32> to vector<16x512xbf16>
    %c256_382 = arith.constant 256 : index
    %c0_383 = arith.constant 0 : index
    %503 = vector.load %arg25[%c256_382, %c0_383] : memref<288x512xbf16, #tpu.memory_space<vmem>>, vector<16x512xbf16>
    tpu.vector_store %arg25[%c256_382, %c0_383], %502 {strides = array<i32>} : memref<288x512xbf16, #tpu.memory_space<vmem>>, vector<16x512xbf16>,
    %c495_i32_384 = arith.constant 495 : i32
    %504 = tpu.dynamic_rotate %177 by %c495_i32_384 dim 1 : vector<16x512xf32>, i32 -> vector<16x512xf32>
    %505 = vector.broadcast %498 : vector<1x512xf32> to vector<16x512xf32>
    %506 = arith.mulf %504, %505 : vector<16x512xf32>
    %507 = arith.truncf %506 : vector<16x512xf32> to vector<16x512xbf16>
    %c272 = arith.constant 272 : index
    %c0_385 = arith.constant 0 : index
    %508 = vector.load %arg25[%c272, %c0_385] : memref<288x512xbf16, #tpu.memory_space<vmem>>, vector<16x512xbf16>
    tpu.vector_store %arg25[%c272, %c0_385], %507 {strides = array<i32>} : memref<288x512xbf16, #tpu.memory_space<vmem>>, vector<16x512xbf16>,
    %c0_386 = arith.constant 0 : index
    %c0_387 = arith.constant 0 : index
    %509 = vector.load %arg20[%c0_386, %c0_387] : memref<16x288xbf16, #tpu.memory_space<vmem>>, vector<16x288xbf16>
    %c0_388 = arith.constant 0 : index
    %c0_389 = arith.constant 0 : index
    %510 = vector.load %arg25[%c0_388, %c0_389] : memref<288x512xbf16, #tpu.memory_space<vmem>>, vector<288x512xbf16>
    %cst_390 = arith.constant dense<0.000000e+00> : vector<16x512xf32>
    %511 = tpu.matmul %509, %510, %cst_390 {dimension_numbers = #tpu.dot_dimension_numbers<[1], [0], [0], [1], [0, 0, 1, 1], [], []>} : vector<16x288xbf16>, vector<288x512xbf16>, vector<16x512xf32> -> vector<16x512xf32>
    %c0_391 = arith.constant 0 : index
    %c0_392 = arith.constant 0 : index
    %512 = vector.load %arg21[%c0_391, %c0_392] : memref<16x1xf32, #tpu.memory_space<vmem>>, vector<16x1xf32>
    %513 = vector.broadcast %512 : vector<16x1xf32> to vector<16x512xf32>
    %514 = arith.addf %511, %513 : vector<16x512xf32>
    %cst_393 = arith.constant 0.000000e+00 : f32
    %515 = vector.broadcast %cst_393 : f32 to vector<16x512xf32>
    %516 = arith.maximumf %514, %515 : vector<16x512xf32>
    %c0_394 = arith.constant 0 : index
    %c0_395 = arith.constant 0 : index
    %517 = vector.load %arg22[%c0_394, %c0_395] : memref<7x16xbf16, #tpu.memory_space<vmem>>, vector<7x16xbf16>
    %518 = arith.truncf %516 : vector<16x512xf32> to vector<16x512xbf16>
    %cst_396 = arith.constant dense<0.000000e+00> : vector<7x512xf32>
    %519 = tpu.matmul %517, %518, %cst_396 {dimension_numbers = #tpu.dot_dimension_numbers<[1], [0], [0], [1], [0, 0, 1, 1], [], []>} : vector<7x16xbf16>, vector<16x512xbf16>, vector<7x512xf32> -> vector<7x512xf32>
    %c0_397 = arith.constant 0 : index
    %c0_398 = arith.constant 0 : index
    %520 = vector.load %arg23[%c0_397, %c0_398] : memref<7x1xf32, #tpu.memory_space<vmem>>, vector<7x1xf32>
    %521 = vector.broadcast %520 : vector<7x1xf32> to vector<7x512xf32>
    %522 = arith.addf %519, %521 : vector<7x512xf32>
    %523 = vector.extract_strided_slice %522 {offsets = [0, 0], sizes = [7, 256], strides = [1, 1]} : vector<7x512xf32> to vector<7x256xf32>
    %c0_399 = arith.constant 0 : index
    %c0_400 = arith.constant 0 : index
    %c0_401 = arith.constant 0 : index
    %524 = vector.load %arg24[%c0_399, %c0_400, %c0_401] : memref<2x7x256xf32, #tpu.memory_space<vmem>>, vector<1x7x256xf32>
    %525 = vector.shape_cast %524 : vector<1x7x256xf32> to vector<7x256xf32>
    %526 = vector.shape_cast %523 : vector<7x256xf32> to vector<1x7x256xf32>
    tpu.vector_store %arg24[%c0_399, %c0_400, %c0_401], %526 {strides = array<i32>} : memref<2x7x256xf32, #tpu.memory_space<vmem>>, vector<1x7x256xf32>,
    %527 = vector.extract_strided_slice %522 {offsets = [0, 256], sizes = [7, 256], strides = [1, 1]} : vector<7x512xf32> to vector<7x256xf32>
    %c1_402 = arith.constant 1 : index
    %c0_403 = arith.constant 0 : index
    %c0_404 = arith.constant 0 : index
    %528 = vector.load %arg24[%c1_402, %c0_403, %c0_404] : memref<2x7x256xf32, #tpu.memory_space<vmem>>, vector<1x7x256xf32>
    %529 = vector.shape_cast %528 : vector<1x7x256xf32> to vector<7x256xf32>
    %530 = vector.shape_cast %527 : vector<7x256xf32> to vector<1x7x256xf32>
    tpu.vector_store %arg24[%c1_402, %c0_403, %c0_404], %530 {strides = array<i32>} : memref<2x7x256xf32, #tpu.memory_space<vmem>>, vector<1x7x256xf32>,
    return
  }
  func.func @transform_0(%arg0: i32) -> (i32, i32, i32) {
    %c0_i32 = arith.constant 0 : i32
    %c0_i32_0 = arith.constant 0 : i32
    %c0_i32_1 = arith.constant 0 : i32
    return %arg0, %c0_i32, %c0_i32_0 : i32, i32, i32
  }
  func.func @transform_1(%arg0: i32) -> (i32, i32) {
    %c0_i32 = arith.constant 0 : i32
    %c0_i32_0 = arith.constant 0 : i32
    %c0_i32_1 = arith.constant 0 : i32
    return %c0_i32, %c0_i32_0 : i32, i32
  }
  func.func @transform_2(%arg0: i32) -> (i32, i32) {
    %c0_i32 = arith.constant 0 : i32
    %c0_i32_0 = arith.constant 0 : i32
    %c0_i32_1 = arith.constant 0 : i32
    return %c0_i32, %c0_i32_0 : i32, i32
  }
  func.func @transform_3(%arg0: i32) -> (i32, i32) {
    %c0_i32 = arith.constant 0 : i32
    %c0_i32_0 = arith.constant 0 : i32
    %c0_i32_1 = arith.constant 0 : i32
    return %c0_i32, %c0_i32_0 : i32, i32
  }
  func.func @transform_4(%arg0: i32) -> (i32, i32) {
    %c0_i32 = arith.constant 0 : i32
    %c0_i32_0 = arith.constant 0 : i32
    %c0_i32_1 = arith.constant 0 : i32
    return %c0_i32, %c0_i32_0 : i32, i32
  }
  func.func @transform_5(%arg0: i32) -> (i32, i32) {
    %c0_i32 = arith.constant 0 : i32
    %c0_i32_0 = arith.constant 0 : i32
    %c0_i32_1 = arith.constant 0 : i32
    return %c0_i32, %c0_i32_0 : i32, i32
  }
  func.func @transform_6(%arg0: i32) -> (i32, i32) {
    %c0_i32 = arith.constant 0 : i32
    %c0_i32_0 = arith.constant 0 : i32
    %c0_i32_1 = arith.constant 0 : i32
    return %c0_i32, %c0_i32_0 : i32, i32
  }
  func.func @transform_7(%arg0: i32) -> (i32, i32) {
    %c0_i32 = arith.constant 0 : i32
    %c0_i32_0 = arith.constant 0 : i32
    %c0_i32_1 = arith.constant 0 : i32
    return %c0_i32, %c0_i32_0 : i32, i32
  }
  func.func @transform_8(%arg0: i32) -> (i32, i32) {
    %c0_i32 = arith.constant 0 : i32
    %c0_i32_0 = arith.constant 0 : i32
    %c0_i32_1 = arith.constant 0 : i32
    return %c0_i32, %c0_i32_0 : i32, i32
  }
  func.func @transform_9(%arg0: i32) -> (i32, i32) {
    %c0_i32 = arith.constant 0 : i32
    %c0_i32_0 = arith.constant 0 : i32
    %c0_i32_1 = arith.constant 0 : i32
    return %c0_i32, %c0_i32_0 : i32, i32
  }
  func.func @transform_10(%arg0: i32) -> (i32, i32) {
    %c0_i32 = arith.constant 0 : i32
    %c0_i32_0 = arith.constant 0 : i32
    %c0_i32_1 = arith.constant 0 : i32
    return %c0_i32, %c0_i32_0 : i32, i32
  }
  func.func @transform_11(%arg0: i32) -> (i32, i32) {
    %c0_i32 = arith.constant 0 : i32
    %c0_i32_0 = arith.constant 0 : i32
    %c0_i32_1 = arith.constant 0 : i32
    return %c0_i32, %c0_i32_0 : i32, i32
  }
  func.func @transform_12(%arg0: i32) -> (i32, i32) {
    %c0_i32 = arith.constant 0 : i32
    %c0_i32_0 = arith.constant 0 : i32
    %c0_i32_1 = arith.constant 0 : i32
    return %c0_i32, %c0_i32_0 : i32, i32
  }
  func.func @transform_13(%arg0: i32) -> (i32, i32) {
    %c0_i32 = arith.constant 0 : i32
    %c0_i32_0 = arith.constant 0 : i32
    %c0_i32_1 = arith.constant 0 : i32
    return %c0_i32, %c0_i32_0 : i32, i32
  }
  func.func @transform_14(%arg0: i32) -> (i32, i32) {
    %c0_i32 = arith.constant 0 : i32
    %c0_i32_0 = arith.constant 0 : i32
    %c0_i32_1 = arith.constant 0 : i32
    return %c0_i32, %c0_i32_0 : i32, i32
  }
  func.func @transform_15(%arg0: i32) -> (i32, i32) {
    %c0_i32 = arith.constant 0 : i32
    %c0_i32_0 = arith.constant 0 : i32
    %c0_i32_1 = arith.constant 0 : i32
    return %c0_i32, %c0_i32_0 : i32, i32
  }
  func.func @transform_16(%arg0: i32) -> (i32, i32) {
    %c0_i32 = arith.constant 0 : i32
    %c0_i32_0 = arith.constant 0 : i32
    %c0_i32_1 = arith.constant 0 : i32
    return %c0_i32, %c0_i32_0 : i32, i32
  }
  func.func @transform_17(%arg0: i32) -> (i32, i32) {
    %c0_i32 = arith.constant 0 : i32
    %c0_i32_0 = arith.constant 0 : i32
    %c0_i32_1 = arith.constant 0 : i32
    return %c0_i32, %c0_i32_0 : i32, i32
  }
  func.func @transform_18(%arg0: i32) -> (i32, i32) {
    %c0_i32 = arith.constant 0 : i32
    %c0_i32_0 = arith.constant 0 : i32
    %c0_i32_1 = arith.constant 0 : i32
    return %c0_i32, %c0_i32_0 : i32, i32
  }
  func.func @transform_19(%arg0: i32) -> (i32, i32) {
    %c0_i32 = arith.constant 0 : i32
    %c0_i32_0 = arith.constant 0 : i32
    %c0_i32_1 = arith.constant 0 : i32
    return %c0_i32, %c0_i32_0 : i32, i32
  }
  func.func @transform_20(%arg0: i32) -> (i32, i32) {
    %c0_i32 = arith.constant 0 : i32
    %c0_i32_0 = arith.constant 0 : i32
    %c0_i32_1 = arith.constant 0 : i32
    return %c0_i32, %c0_i32_0 : i32, i32
  }
  func.func @transform_21(%arg0: i32) -> (i32, i32) {
    %c0_i32 = arith.constant 0 : i32
    %c0_i32_0 = arith.constant 0 : i32
    %c0_i32_1 = arith.constant 0 : i32
    return %c0_i32, %c0_i32_0 : i32, i32
  }
  func.func @transform_22(%arg0: i32) -> (i32, i32) {
    %c0_i32 = arith.constant 0 : i32
    %c0_i32_0 = arith.constant 0 : i32
    %c0_i32_1 = arith.constant 0 : i32
    return %c0_i32, %c0_i32_0 : i32, i32
  }
  func.func @transform_23(%arg0: i32) -> (i32, i32, i32) {
    %c0_i32 = arith.constant 0 : i32
    %c0_i32_0 = arith.constant 0 : i32
    %c0_i32_1 = arith.constant 0 : i32
    return %arg0, %c0_i32, %c0_i32_0 : i32, i32, i32
  }
}

</mosaic_0001>

<bundles_post_ra>
// kernel: mul.19
= control target key start
LH: loop header
LB: loop body
LE: loop exit
PB: predicated region body
PF: predicated region fallthrough
CT: control target
= control target key end

     0   :  { %s8_s6 = smov 3  ;;  %s11_s7 = smov 12  ;;  %vm13_vm0 = vcmask 1043458   ;;  %vm3_vm1 = vcmask 130048   ;;  %vm17_vm2 = vcmask 1048448   ;;  %vm31_vm3 = vcmask 917248   ;;  %s216_s0 = inlined_call_operand.vmem [shape: f32[2,1,16,16], index: 0, kind: input, shape index: {}]   ;;  %s217_s1 = inlined_call_operand.vmem [shape: f32[2,256], index: 1, kind: output, shape index: {}]  }
   0x1   :  { %v119_v0 = vld [vmem:[%s216_s0 + $0x7] ss:$16 sm:%s8_s6]   ;;  %v120_v1 = vld [vmem:[%s216_s0 - $0x11] ss:$16 sm:%s11_s7]   ;;  %s36_s12 = smov 3  ;;  %s39_s15 = smov 12 }
   0x2   :  { %v14_v2 = vsel %vm13_vm0, %v120_v1, %v119_v0  ;;  %v123_v3 = vld [vmem:[%s216_s0 + $0x5] ss:$16 sm:%s36_s12]   ;;  %s141_s16 = smov 112   ;;  %v124_v4 = vld [vmem:[%s216_s0 - $0x13] ss:$16 sm:%s39_s15]   ;;  %s22_s19 = smov 3 }
   0x3   :  { %15 = vrot.lane.b32.xlu0 %v14_v2, %s141_s16  ;;  %s25_s20 = smov 12  ;;  %v42_v5 = vsel %vm13_vm0, %v124_v4, %v123_v3  ;;  %v121_v6 = vld [vmem:[%s216_s0 + $0x6] ss:$16 sm:%s22_s19]   ;;  %s50_s25 = smov 3  ;;  %vm45_vm4 = vcmask 786048   ;;  %vm59_vm5 = vcmask 654848  }
   0x4   :  { %v122_v7 = vld [vmem:[%s216_s0 - $0x12] ss:$16 sm:%s25_s20]   ;;  %s142_s26 = smov 80   ;;  %v125_v9 = vld [vmem:[%s216_s0 + $0x4] ss:$16 sm:%s50_s25]   ;;  %s53_s29 = smov 12 }
   0x5   :  { %43 = vrot.lane.b32.xlu1 %v42_v5, %s142_s26  ;;  %v28_v8 = vsel %vm13_vm0, %v122_v7, %v121_v6  ;;  %v126_v10 = vld [vmem:[%s216_s0 - $0x14] ss:$16 sm:%s53_s29]   ;;  %s64_s3 = smov 3  ;;  %s67_s4 = smov 12  ;;  %vm73_vm6 = vcmask 523648   ;;  %vm87_vm7 = vcmask 392448  }
   0x6   :  { %s143_s5 = smov 96   ;;  %v56_v11 = vsel %vm13_vm0, %v126_v10, %v125_v9  ;;  %v127_v12 = vld [vmem:[%s216_s0 + $0x3] ss:$16 sm:%s64_s3]   ;;  %s78_s8 = smov 3  ;;  %v128_v13 = vld [vmem:[%s216_s0 - $0x15] ss:$16 sm:%s67_s4]  }
   0x7   :  { %29 = vrot.lane.b32.xlu0 %v28_v8, %s143_s5  ;;  %v129_v14 = vld [vmem:[%s216_s0 + $0x2] ss:$16 sm:%s78_s8]   ;;  %s81_s13 = smov 12  ;;  %s144_s14 = smov 64   ;;  %v70_v15 = vsel %vm13_vm0, %v128_v13, %v127_v12  ;;  %vm101_vm8 = vcmask 261248  }
   0x8   :  { %v130_v16 = vld [vmem:[%s216_s0 - $0x16] ss:$16 sm:%s81_s13]   ;;  %s92_s17 = smov 3  ;;  %s95_s18 = smov 12 }
   0x9   :  { %57 = vrot.lane.b32.xlu1 %v56_v11, %s144_s14  ;;  %v84_v17 = vsel %vm13_vm0, %v130_v16, %v129_v14  ;;  %v131_v18 = vld [vmem:[%s216_s0 + $0x1] ss:$16 sm:%s92_s17]   ;;  %s145_s23 = smov 48   ;;  %v2_v20 = vld [vmem:[%s216_s0] ss:$8 sm:$0xf]  }
   0xa   :  { %v132_v19 = vld [vmem:[%s216_s0 - $0x17] ss:$16 sm:%s95_s18]   ;;  %4 = vst.msk [vmem:[#allocation0] ss:$8 sm:$0x3] %vm3_vm1, %v2_v20   ;;  %s146_s0 = smov 32  }
   0xb   :  { %71 = vrot.lane.b32.xlu0 %v70_v15, %s145_s23  ;;  %v98_v21 = vsel %vm13_vm0, %v132_v19, %v131_v18  ;;  %6 = vst.msk [vmem:[#allocation0 - $0xf] ss:$8 sm:$0xc] %vm3_vm1, %v2_v20   ;;  %s147_s26 = smov 16  }
   0xd   :  { %85 = vrot.lane.b32.xlu1 %v84_v17, %s146_s0 }
   0xf   :  { %99 = vrot.lane.b32.xlu0 %v98_v21, %s147_s26 }
  0x75   :  { %v16_v22 = vpop.permute.xlu0 %15  }
  0x76   :  { %18 = vst.msk [vmem:[#allocation0] sm:$0x3] %vm17_vm2, %v16_v22   ;;  %20 = vst.msk [vmem:[#allocation0 + $0x6] sm:$0xc] %vm17_vm2, %v16_v22  }
  0x77   :  { %v44_v23 = vpop.permute.xlu1 %43  }
  0x79   :  { %v30_v24 = vpop.permute.xlu0 %29  }
  0x7a   :  { %32 = vst.msk [vmem:[#allocation0] sm:$0x3] %vm31_vm3, %v30_v24   ;;  %34 = vst.msk [vmem:[#allocation0 + $0x6] sm:$0xc] %vm31_vm3, %v30_v24  }
  0x7b   :  { %46 = vst.msk [vmem:[#allocation0] sm:$0x3] %vm45_vm4, %v44_v23   ;;  %48 = vst.msk [vmem:[#allocation0 + $0x6] sm:$0xc] %vm45_vm4, %v44_v23   ;;  %v58_v25 = vpop.permute.xlu1 %57  }
  0x7c   :  { %60 = vst.msk [vmem:[#allocation0] sm:$0x3] %vm59_vm5, %v58_v25   ;;  %62 = vst.msk [vmem:[#allocation0 + $0x6] sm:$0xc] %vm59_vm5, %v58_v25  }
  0x7d   :  { %v72_v26 = vpop.permute.xlu0 %71  }
  0x7e   :  { %74 = vst.msk [vmem:[#allocation0] sm:$0x3] %vm73_vm6, %v72_v26   ;;  %76 = vst.msk [vmem:[#allocation0 + $0x6] sm:$0xc] %vm73_vm6, %v72_v26  }
  0x7f   :  { %v86_v27 = vpop.permute.xlu1 %85  }
  0x80   :  { %88 = vst.msk [vmem:[#allocation0] sm:$0x3] %vm87_vm7, %v86_v27   ;;  %90 = vst.msk [vmem:[#allocation0 + $0x6] sm:$0xc] %vm87_vm7, %v86_v27  }
  0x81   :  { %v100_v28 = vpop.permute.xlu0 %99  }
  0x82   :  { %102 = vst.msk [vmem:[#allocation0] sm:$0x3] %vm101_vm8, %v100_v28   ;;  %104 = vst.msk [vmem:[#allocation0 + $0x6] sm:$0xc] %vm101_vm8, %v100_v28  }
  0x89   :  { %v109_v29 = vld [vmem:[#allocation0] sm:$0x3]  ;;  %v114_v30 = vld [vmem:[#allocation0 + $0x8] sm:$0x3] }
  0x8a   :  { %112 = vst [vmem:[%s217_s1] sm:$0x3] %v109_v29  ;;  %133 = vst [vmem:[%s217_s1 + $0x2] sm:$0x3] %v114_v30 }

// kernel: resnet_unet_fakeconv_forward.1
= control target key start
LH: loop header
LB: loop body
LE: loop exit
PB: predicated region body
PF: predicated region fallthrough
CT: control target
= control target key end

     0   :  { %s16971_s27 = smov 112   ;;  %s16954_s28 = smov 127   ;;  %vm1003_vm0 = vcmask 130048   ;;  %v16939_v23 = vmov 0   ;;  %v104_v24 = vlaneseq  ;;  %vm5107_vm9 = vcmask 261120   ;;  %s16905_s0 = inlined_call_operand.vmem [shape: bf16[1,16,512], index: 0, kind: input, shape index: {}]   ;;  %s16906_s5 = inlined_call_operand.vmem [shape: bf16[16,144], index: 5, kind: input, shape index: {}]   ;;  %s16907_s6 = inlined_call_operand.vmem [shape: f32[16,1], index: 6, kind: input, shape index: {}]   ;;  %s16908_s1 = inlined_call_operand.vmem [shape: f32[9,512], index: 1, kind: input, shape index: {}]   ;;  %s16909_s8 = inlined_call_operand.vmem [shape: f32[16,1], index: 8, kind: input, shape index: {}]   ;;  %s16910_s7 = inlined_call_operand.vmem [shape: bf16[16,144], index: 7, kind: input, shape index: {}]   ;;  %s16911_s10 = inlined_call_operand.vmem [shape: f32[16,1], index: 10, kind: input, shape index: {}]   ;;  %s16912_s9 = inlined_call_operand.vmem [shape: bf16[16,144], index: 9, kind: input, shape index: {}]   ;;  %s16913_s12 = inlined_call_operand.vmem [shape: f32[32,1], index: 12, kind: input, shape index: {}]   ;;  %s16914_s11 = inlined_call_operand.vmem [shape: bf16[32,144], index: 11, kind: input, shape index: {}]   ;;  %s16915_s3 = inlined_call_operand.vmem [shape: bf16[512,128], index: 3, kind: input, shape index: {}]   ;;  %s16916_s13 = inlined_call_operand.vmem [shape: bf16[32,288], index: 13, kind: input, shape index: {}]   ;;  %s16917_s14 = inlined_call_operand.vmem [shape: f32[32,1], index: 14, kind: input, shape index: {}]   ;;  %s16918_s2 = inlined_call_operand.vmem [shape: f32[9,128], index: 2, kind: input, shape index: {}]   ;;  %s16919_s16 = inlined_call_operand.vmem [shape: f32[32,1], index: 16, kind: input, shape index: {}]   ;;  %s16920_s15 = inlined_call_operand.vmem [shape: bf16[32,288], index: 15, kind: input, shape index: {}]   ;;  %s16921_s4 = inlined_call_operand.vmem [shape: bf16[128,512], index: 4, kind: input, shape index: {}]   ;;  %s16922_s17 = inlined_call_operand.vmem [shape: bf16[16,288], index: 17, kind: input, shape index: {}]   ;;  %s16923_s18 = inlined_call_operand.vmem [shape: f32[16,1], index: 18, kind: input, shape index: {}]   ;;  %s16924_s19 = inlined_call_operand.vmem [shape: bf16[16,288], index: 19, kind: input, shape index: {}]   ;;  %s16925_s20 = inlined_call_operand.vmem [shape: f32[16,1], index: 20, kind: input, shape index: {}]   ;;  %s16926_s22 = inlined_call_operand.vmem [shape: f32[7,1], index: 22, kind: input, shape index: {}]   ;;  %s16927_s21 = inlined_call_operand.vmem [shape: bf16[7,16], index: 21, kind: input, shape index: {}]   ;;  %s16928_s23 = inlined_call_operand.vmem [shape: f32[2,7,256], index: 23, kind: output, shape index: {}]  }
   0x1   :  { %17209 = sst [smem:[#allocation129_spill]] %s16905_s0  ;;  %s16952_s29 = smov 1   ;;  %11226 = vset.pattern.permute.xlu0 %v16939_v23  ;;  %11227 = vset.pattern.permute.xlu1 %v16939_v23 }
   0x2   :  { %17210 = sst [smem:[#allocation130_spill]] %s16906_s5  ;;  %s16943_s0 = smov 16   ;;  %v117_v25 = vshrl.u32 %v104_v24, 7  ;;  %v11894_v26 = vand.u32 127, %v104_v24 }
   0x3   :  { %17211 = sst [smem:[#allocation131_spill]] %s16907_s6  ;;  %s16973_s30 = smov 111  }
   0x4   :  { %17212 = sst [smem:[#allocation132_spill]] %s16908_s1  ;;  %s16945_s1 = smov 15   ;;  %v11896_v27 = vsub.s32 2, %v117_v25  ;;  %v11898_v28 = vsub.s32 3, %v117_v25  ;;  %v11903_v30 = vsub.s32 0, %v117_v25  ;;  %v11905_v31 = vsub.s32 1, %v117_v25 }
   0x5   :  { %17213 = sst [smem:[#allocation133_spill]] %s16909_s8  ;;  %s16937_s8 = smov 17   ;;  %vm614_vm1 = vcmp.lt.s32.totalorder %v11894_v26, 112  ;;  %vm530_vm2 = vcmp.lt.s32.totalorder %v11894_v26, 113  ;;  %vm446_vm3 = vcmp.lt.s32.totalorder %v11894_v26, 127  ;;  %vm358_vm4 = vcmp.lt.s32.totalorder %v11894_v26, 1 }
   0x6   :  { %17214 = sst [smem:[#allocation134_spill]] %s16910_s7  ;;  %17220 = vst [vmem:[#allocation3_spill] sm:$0xff] %v11896_v27  ;;  %17221 = vst [vmem:[#allocation4_spill] sm:$0xff] %v11898_v28  ;;  %vm274_vm5 = vcmp.lt.s32.totalorder %v11894_v26, 15  ;;  %vm190_vm6 = vcmp.lt.s32.totalorder %v11894_v26, 16  ;;  %vm106_vm7 = vcmp.lt.s32.totalorder %v11894_v26, 17 }
   0x7   :  { %17215 = sst [smem:[#allocation135_spill]] %s16911_s10  ;;  %17223 = vst [vmem:[#allocation5_spill] sm:$0xff] %v11903_v30  ;;  %17224 = vst [vmem:[#allocation6_spill] sm:$0xff] %v11905_v31  ;;  %vm698_vm8 = vcmp.lt.s32.totalorder %v11894_v26, 111  ;;  %s17093_s26 = smov 9  }
   0x8   :  { %17216 = sst [smem:[#allocation136_spill]] %s16912_s9  ;;  %s16969_s9 = smov 113  }
   0x9   :  { %s17217_s24 = sld [smem:[#allocation129_spill]] }
   0xa   :  { %s17218_s7 = sld [smem:[#allocation130_spill]] }
   0xb   :  { %s17219_s6 = sld [smem:[#allocation131_spill]] }
   0xc   :  { %s17222_s5 = sld [smem:[#allocation132_spill]] }
   0xd   :  { %s17239_s10 = sld [smem:[#allocation134_spill]] }
   0xe   :  { %s17254_s25 = sld [smem:[#allocation136_spill]] }
   0xf   :  { %v11816_v0 = vld [vmem:[%s17217_s24 + $0x8] sm:$0xff]  ;;  %v11821_v1 = vld [vmem:[%s17217_s24 + $0x18] sm:$0xff]  ;;  %v11826_v2 = vld [vmem:[%s17217_s24] sm:$0xff] }
  0x10   :  { %v81_v3 = vunpack.c.l.bf16 %v11816_v0  ;;  %v85_v4 = vunpack.c.l.bf16 %v11821_v1  ;;  %v11833_v5 = vld [vmem:[%s17217_s24 + $0x10] sm:$0xff]  ;;  %v79_v6 = vunpack.c.l.bf16 %v11826_v2  ;;  %v82_v7 = vunpack.c.h.bf16 %v11816_v0  ;;  %v11234_v20 = vld [vmem:[%s17218_s7 + $0x4] ss:$8 sps:$4 sm:$0xff]  }
  0x11   :  { %v83_v8 = vunpack.c.l.bf16 %v11833_v5  ;;  %v86_v9 = vunpack.c.h.bf16 %v11821_v1  ;;  %v80_v10 = vunpack.c.h.bf16 %v11826_v2  ;;  %v84_v11 = vunpack.c.h.bf16 %v11833_v5  ;;  %9792 = vmatprep.mubr.msk.bf16.mxu0 %vm1003_vm0, %v11234_v20  ;;  %9793 = vmatprep.mubr.msk.bf16.mxu1 %vm1003_vm0, %v11234_v20  ;;  %v802_v21 = vld [vmem:[%s17219_s6] sm:$0xff]  ;;  %v803_v22 = vld [vmem:[%s17219_s6 + $0x8] sm:$0xff] }
  0x12   :  { %v11076_v12 = vpack.i.bf16 %v85_v4, %v81_v3  ;;  %v9744_v29 = vld [vmem:[%s17222_s5 + $0x7] ss:$8 sm:$0xf]  ;;  %v9739_v32 = vld [vmem:[%s17222_s5 + $0x6] ss:$8 sm:$0xf] }
  0x13   :  { %v11066_v13 = vpack.i.bf16 %v83_v8, %v79_v6  ;;  %v11081_v14 = vpack.i.bf16 %v86_v9, %v82_v7  ;;  %v11071_v15 = vpack.i.bf16 %v84_v11, %v80_v10  ;;  %v9734_v33 = vld [vmem:[%s17222_s5 + $0x5] ss:$8 sm:$0xf]  ;;  %v635_v34 = vrot.slane %v9744_v29, %v11896_v27  ;;  %v9729_v38 = vld [vmem:[%s17222_s5 + $0x3] ss:$8 sm:$0xf] }
  0x14   :  { %11077 = vrot.lane.b32.xlu1 %v11076_v12, %s16971_s27  ;;  %v639_v35 = vrot.slane %v9744_v29, %v11898_v28  ;;  %v11917_v36 = vrot.slane %v9744_v29, %v11903_v30  ;;  %v11920_v37 = vrot.slane %v9739_v32, %v11903_v30  ;;  %v631_v39 = vrot.slane %v9744_v29, %v11905_v31  ;;  %v9724_v43 = vld [vmem:[%s17222_s5 + $0x2] ss:$8 sm:$0xf]  ;;  %v9719_v48 = vld [vmem:[%s17222_s5 + $0x1] ss:$8 sm:$0xf] }
  0x15   :  { %11067 = vrot.lane.b32.xlu0 %v11066_v13, %s16971_s27  ;;  %v11927_v40 = vrot.slane %v9739_v32, %v11898_v28  ;;  %v11930_v41 = vrot.slane %v9739_v32, %v11905_v31  ;;  %v11933_v42 = vrot.slane %v9739_v32, %v11896_v27  ;;  %v11939_v44 = vrot.slane %v9734_v33, %v11903_v30  ;;  %v87_v54 = vld [vmem:[%s17222_s5] ss:$8 sm:$0xf] }
  0x16   :  { %v11942_v45 = vrot.slane %v9734_v33, %v11898_v28  ;;  %v11945_v46 = vrot.slane %v9734_v33, %v11905_v31  ;;  %v11948_v47 = vrot.slane %v9734_v33, %v11896_v27  ;;  %v11954_v50 = vrot.slane %v9729_v38, %v11905_v31  ;;  %v9749_v60 = vld [vmem:[%s17222_s5 + $0x20] ss:$8 sm:$0xf] }
  0x17   :  { %v11957_v51 = vrot.slane %v9729_v38, %v11903_v30  ;;  %v11960_v52 = vrot.slane %v9729_v38, %v11896_v27  ;;  %v11963_v53 = vrot.slane %v9729_v38, %v11898_v28  ;;  %v11969_v56 = vrot.slane %v9724_v43, %v11905_v31 }
  0x18   :  { %11082 = vrot.lane.b32.xlu1 %v11081_v14, %s16971_s27  ;;  %v11972_v57 = vrot.slane %v9724_v43, %v11903_v30  ;;  %v11975_v58 = vrot.slane %v9724_v43, %v11896_v27  ;;  %v11978_v59 = vrot.slane %v9724_v43, %v11898_v28  ;;  %v11984_v61 = vrot.slane %v9719_v48, %v11905_v31 }
  0x19   :  { %11072 = vrot.lane.b32.xlu0 %v11071_v15, %s16971_s27  ;;  %v11987_v62 = vrot.slane %v9719_v48, %v11903_v30  ;;  %v11990_v63 = vrot.slane %v9719_v48, %v11896_v27  ;;  %v11993_v3 = vrot.slane %v9719_v48, %v11898_v28  ;;  %v11997_v7 = vrot.slane %v87_v54, %v11905_v31 }
  0x1a   :  { %v12000_v8 = vrot.slane %v87_v54, %v11903_v30  ;;  %v12003_v10 = vrot.slane %v87_v54, %v11896_v27  ;;  %v12006_v11 = vrot.slane %v87_v54, %v11898_v28  ;;  %v12015_v29 = vrot.slane %v9749_v60, %v11905_v31 }
  0x1b   :  { %v12018_v32 = vrot.slane %v9749_v60, %v11896_v27 }
  0x1c   :  { %11092 = vrot.lane.b32.xlu1 %v11071_v15, %s16969_s9 }
  0x1d   :  { %11087 = vrot.lane.b32.xlu0 %v11066_v13, %s16969_s9 }
  0x20   :  { %11102 = vrot.lane.b32.xlu1 %v11081_v14, %s16969_s9 }
  0x21   :  { %11097 = vrot.lane.b32.xlu0 %v11076_v12, %s16969_s9 }
  0x24   :  { %11112 = vrot.lane.b32.xlu1 %v11071_v15, %s16954_s28 }
  0x25   :  { %11107 = vrot.lane.b32.xlu0 %v11066_v13, %s16954_s28 }
  0x28   :  { %11122 = vrot.lane.b32.xlu1 %v11081_v14, %s16954_s28 }
  0x29   :  { %11117 = vrot.lane.b32.xlu0 %v11076_v12, %s16954_s28 }
  0x2c   :  { %11132 = vrot.lane.b32.xlu1 %v11071_v15, %s16952_s29 }
  0x2d   :  { %11127 = vrot.lane.b32.xlu0 %v11066_v13, %s16952_s29 }
  0x30   :  { %11142 = vrot.lane.b32.xlu1 %v11081_v14, %s16952_s29 }
  0x31   :  { %11137 = vrot.lane.b32.xlu0 %v11076_v12, %s16952_s29 }
  0x34   :  { %11152 = vrot.lane.b32.xlu1 %v11071_v15, %s16945_s1 }
  0x35   :  { %11147 = vrot.lane.b32.xlu0 %v11066_v13, %s16945_s1 }
  0x38   :  { %11162 = vrot.lane.b32.xlu1 %v11081_v14, %s16945_s1 }
  0x39   :  { %11157 = vrot.lane.b32.xlu0 %v11076_v12, %s16945_s1 }
  0x3c   :  { %11172 = vrot.lane.b32.xlu1 %v11071_v15, %s16943_s0 }
  0x3d   :  { %11167 = vrot.lane.b32.xlu0 %v11066_v13, %s16943_s0 }
  0x40   :  { %11182 = vrot.lane.b32.xlu1 %v11081_v14, %s16943_s0 }
  0x41   :  { %11177 = vrot.lane.b32.xlu0 %v11076_v12, %s16943_s0 }
  0x44   :  { %11192 = vrot.lane.b32.xlu1 %v11071_v15, %s16937_s8 }
  0x45   :  { %11187 = vrot.lane.b32.xlu0 %v11066_v13, %s16937_s8 }
  0x48   :  { %11202 = vrot.lane.b32.xlu1 %v11081_v14, %s16937_s8 }
  0x49   :  { %11197 = vrot.lane.b32.xlu0 %v11076_v12, %s16937_s8  ;;  %s17238_s8 = sld [smem:[#allocation133_spill]] }
  0x4c   :  { %11212 = vrot.lane.b32.xlu1 %v11071_v15, %s16973_s30 }
  0x4d   :  { %11207 = vrot.lane.b32.xlu0 %v11066_v13, %s16973_s30  ;;  %v12012_v13 = vrot.slane %v9749_v60, %v11898_v28 }
  0x50   :  { %11222 = vrot.lane.b32.xlu1 %v11081_v14, %s16973_s30 }
  0x51   :  { %11217 = vrot.lane.b32.xlu0 %v11076_v12, %s16973_s30  ;;  %v12009_v12 = vrot.slane %v9749_v60, %v11903_v30 }
  0x54   :  { %811 = vperm.xlu1 %11227, %v803_v22  }
  0x55   :  { %806 = vperm.xlu0 %11226, %v802_v21  }
  0x86   :  { %v11078_v49 = vpop.permute.xlu1 %11077 }
  0x87   :  { %v11068_v55 = vpop.permute.xlu0 %11067  ;;  %v11080_v4 = vunpack.i.h.bf16 %v11078_v49  ;;  %v11079_v6 = vunpack.i.l.bf16 %v11078_v49 }
  0x88   :  { %v11070_v14 = vunpack.i.h.bf16 %v11068_v55  ;;  %v11069_v15 = vunpack.i.l.bf16 %v11068_v55 }
  0x8a   :  { %v11083_v9 = vpop.permute.xlu1 %11082 }
  0x8b   :  { %v11085_v20 = vunpack.i.h.bf16 %v11083_v9  ;;  %v11084_v21 = vunpack.i.l.bf16 %v11083_v9  ;;  %v11073_v22 = vpop.permute.xlu0 %11072 }
  0x8c   :  { %v11075_v24 = vunpack.i.h.bf16 %v11073_v22  ;;  %v11074_v25 = vunpack.i.l.bf16 %v11073_v22 }
  0x8d   :  { %v615_v33 = vsel %vm614_vm1, %v11079_v6, %v11084_v21  ;;  %v616_v38 = vsel %vm614_vm1, %v11080_v4, %v11085_v20  ;;  %v621_v43 = vsel %vm614_vm1, %v11084_v21, %v11069_v15  ;;  %v622_v48 = vsel %vm614_vm1, %v11085_v20, %v11070_v14 }
  0x8e   :  { %v646_v49 = vmul.f32 %v635_v34, %v615_v33  ;;  %v647_v54 = vmul.f32 %v639_v35, %v621_v43  ;;  %v650_v55 = vmul.f32 %v635_v34, %v616_v38  ;;  %v651_v9 = vmul.f32 %v639_v35, %v622_v48  ;;  %v11093_v22 = vpop.permute.xlu1 %11092 }
  0x8f   :  { %v618_v60 = vsel %vm614_vm1, %v11075_v24, %v11080_v4  ;;  %v617_v23 = vsel %vm614_vm1, %v11074_v25, %v11079_v6  ;;  %v619_v19 = vsel %vm614_vm1, %v11069_v15, %v11074_v25  ;;  %v620_v21 = vsel %vm614_vm1, %v11070_v14, %v11075_v24  ;;  %v11088_v18 = vpop.permute.xlu0 %11087 }
  0x90   :  { %v649_v17 = vmul.f32 %v631_v39, %v618_v60  ;;  %v644_v20 = vmul.f32 %v11917_v36, %v619_v19  ;;  %v645_v34 = vmul.f32 %v631_v39, %v617_v23  ;;  %v648_v35 = vmul.f32 %v11917_v36, %v620_v21 }
  0x91   :  { %v11095_v33 = vunpack.i.h.bf16 %v11093_v22  ;;  %v11094_v4 = vunpack.i.l.bf16 %v11093_v22  ;;  %v11090_v38 = vunpack.i.h.bf16 %v11088_v18  ;;  %v11089_v43 = vunpack.i.l.bf16 %v11088_v18 }
  0x92   :  { %v11103_v6 = vpop.permute.xlu1 %11102  ;;  %v11434_v48 = vpack.c.bf16 %v651_v9, %v647_v54  ;;  %v11435_v16 = vpack.c.bf16 %v650_v55, %v646_v49 }
  0x93   :  { %v11105_v15 = vunpack.i.h.bf16 %v11103_v6  ;;  %v11104_v25 = vunpack.i.l.bf16 %v11103_v6  ;;  %v11098_v28 = vpop.permute.xlu0 %11097  ;;  %v536_v14 = vsel %vm530_vm2, %v11090_v38, %v11095_v33  ;;  %v535_v19 = vsel %vm530_vm2, %v11089_v43, %v11094_v4 }
  0x94   :  { %v11100_v24 = vunpack.i.h.bf16 %v11098_v28  ;;  %v11099_v23 = vunpack.i.l.bf16 %v11098_v28  ;;  %1050 = vmatprep.subr.bf16.mxu1 %v11434_v48  ;;  %v12044_v36 = vmul.f32 %v11920_v37, %v536_v14  ;;  %v12047_v18 = vmul.f32 %v11920_v37, %v535_v19 }
  0x95   :  { %v537_v39 = vsel %vm530_vm2, %v11104_v25, %v11089_v43  ;;  %v538_v49 = vsel %vm530_vm2, %v11105_v15, %v11090_v38  ;;  %1051 = vmatpush1.bf16.msra.mxu1 %v11435_v16  ;;  %v11436_v19 = vpack.c.bf16 %v649_v17, %v645_v34 }
  0x96   :  { %v563_v54 = vmul.f32 %v11927_v40, %v537_v39  ;;  %v567_v55 = vmul.f32 %v11927_v40, %v538_v49  ;;  %v532_v28 = vsel %vm530_vm2, %v11100_v24, %v11105_v15  ;;  %v534_v9 = vsel %vm530_vm2, %v11095_v33, %v11100_v24  ;;  %v11113_v22 = vpop.permute.xlu1 %11112 }
  0x97   :  { %v565_v37 = vmul.f32 %v11930_v41, %v534_v9  ;;  %v566_v60 = vmul.f32 %v11933_v42, %v532_v28  ;;  %v531_v21 = vsel %vm530_vm2, %v11099_v23, %v11104_v25  ;;  %v533_v16 = vsel %vm530_vm2, %v11094_v4, %v11099_v23  ;;  %v11108_v38 = vpop.permute.xlu0 %11107  ;;  %1007 = vmatprep.subr.bf16.mxu0 %v11436_v19 }
  0x98   :  { %v561_v40 = vmul.f32 %v11930_v41, %v533_v16  ;;  %v562_v43 = vmul.f32 %v11933_v42, %v531_v21  ;;  %v11115_v6 = vunpack.i.h.bf16 %v11113_v22  ;;  %v11114_v48 = vunpack.i.l.bf16 %v11113_v22 }
  0x99   :  { %v11110_v33 = vunpack.i.h.bf16 %v11108_v38  ;;  %v11109_v15 = vunpack.i.l.bf16 %v11108_v38  ;;  %v11437_v24 = vpack.c.bf16 %v648_v35, %v644_v20  ;;  %v11439_v35 = vpack.c.bf16 %v567_v55, %v563_v54 }
  0x9a   :  { %v11123_v14 = vpop.permute.xlu1 %11122  ;;  %v11438_v34 = vpack.c.bf16 %v565_v37, %v561_v40 }
  0x9b   :  { %v452_v25 = vsel %vm446_vm3, %v11110_v33, %v11115_v6  ;;  %v451_v4 = vsel %vm446_vm3, %v11109_v15, %v11114_v48  ;;  %v11125_v23 = vunpack.i.h.bf16 %v11123_v14  ;;  %v11124_v39 = vunpack.i.l.bf16 %v11123_v14  ;;  %v11118_v41 = vpop.permute.xlu0 %11117  ;;  %1008 = vmatpush1.bf16.msra.mxu0 %v11437_v24  ;;  %1052 = vmatprep.subr.bf16.mxu1 %v11439_v35 }
  0x9c   :  { %v12073_v42 = vmul.f32 %v11939_v44, %v452_v25  ;;  %v12076_v49 = vmul.f32 %v11939_v44, %v451_v4  ;;  %v11120_v28 = vunpack.i.h.bf16 %v11118_v41  ;;  %v11119_v9 = vunpack.i.l.bf16 %v11118_v41  ;;  %1009 = vmatprep.subr.bf16.mxu0 %v11438_v34 }
  0x9d   :  { %v453_v17 = vsel %vm446_vm3, %v11124_v39, %v11109_v15  ;;  %v454_v20 = vsel %vm446_vm3, %v11125_v23, %v11110_v33  ;;  %v11440_v4 = vpack.c.bf16 %v12044_v36, %v12047_v18 }
  0x9e   :  { %v479_v22 = vmul.f32 %v11942_v45, %v453_v17  ;;  %v483_v21 = vmul.f32 %v11942_v45, %v454_v20  ;;  %v448_v44 = vsel %vm446_vm3, %v11120_v28, %v11125_v23  ;;  %v450_v16 = vsel %vm446_vm3, %v11115_v6, %v11120_v28  ;;  %v11133_v38 = vpop.permute.xlu1 %11132 }
  0x9f   :  { %v481_v14 = vmul.f32 %v11945_v46, %v450_v16  ;;  %v482_v15 = vmul.f32 %v11948_v47, %v448_v44  ;;  %v447_v33 = vsel %vm446_vm3, %v11119_v9, %v11124_v39  ;;  %v449_v54 = vsel %vm446_vm3, %v11114_v48, %v11119_v9  ;;  %v11128_v55 = vpop.permute.xlu0 %11127  ;;  %1010 = vmatpush1.bf16.msra.mxu0 %v11440_v4 }
  0xa0   :  { %v477_v45 = vmul.f32 %v11945_v46, %v449_v54  ;;  %v478_v37 = vmul.f32 %v11948_v47, %v447_v33  ;;  %v11135_v40 = vunpack.i.h.bf16 %v11133_v38  ;;  %v11134_v19 = vunpack.i.l.bf16 %v11133_v38 }
  0xa1   :  { %v11130_v6 = vunpack.i.h.bf16 %v11128_v55  ;;  %v11129_v24 = vunpack.i.l.bf16 %v11128_v55  ;;  %v11441_v23 = vpack.c.bf16 %v566_v60, %v562_v43  ;;  %v11443_v43 = vpack.c.bf16 %v483_v21, %v479_v22 }
  0xa2   :  { %v11143_v25 = vpop.permute.xlu1 %11142  ;;  %v11442_v60 = vpack.c.bf16 %v481_v14, %v477_v45  ;;  %v11445_v4 = vpack.c.bf16 %v482_v15, %v478_v37  ;;  %v17225_v37 = vcombine.high %v11826_v2, %v11833_v5 }
  0xa3   :  { %v364_v48 = vsel %vm358_vm4, %v11130_v6, %v11135_v40  ;;  %v363_v46 = vsel %vm358_vm4, %v11129_v24, %v11134_v19  ;;  %v11145_v39 = vunpack.i.h.bf16 %v11143_v25  ;;  %v11144_v47 = vunpack.i.l.bf16 %v11143_v25  ;;  %v11138_v41 = vpop.permute.xlu0 %11137  ;;  %1053 = vmatpush1.bf16.msra.mxu1 %v11441_v23 }
  0xa4   :  { %v12104_v28 = vmul.f32 %v11954_v50, %v364_v48  ;;  %v12107_v9 = vmul.f32 %v11954_v50, %v363_v46  ;;  %v11140_v17 = vunpack.i.h.bf16 %v11138_v41  ;;  %v11139_v20 = vunpack.i.l.bf16 %v11138_v41  ;;  %1011 = vmatprep.subr.bf16.mxu0 %v11442_v60  ;;  %1054 = vmatprep.subr.bf16.mxu1 %v11443_v43 }
  0xa5   :  { %v365_v36 = vsel %vm358_vm4, %v11144_v47, %v11129_v24  ;;  %v366_v18 = vsel %vm358_vm4, %v11145_v39, %v11130_v6  ;;  %v11444_v25 = vpack.c.bf16 %v12073_v42, %v12076_v49 }
  0xa6   :  { %v12114_v34 = vmul.f32 %v11957_v51, %v365_v36  ;;  %v12117_v35 = vmul.f32 %v11957_v51, %v366_v18  ;;  %v360_v50 = vsel %vm358_vm4, %v11140_v17, %v11145_v39  ;;  %v362_v44 = vsel %vm358_vm4, %v11135_v40, %v11140_v17  ;;  %v11153_v16 = vpop.permute.xlu1 %11152 }
  0xa7   :  { %v12124_v38 = vmul.f32 %v11960_v52, %v362_v44  ;;  %v12127_v33 = vmul.f32 %v11963_v53, %v360_v50  ;;  %v359_v22 = vsel %vm358_vm4, %v11139_v20, %v11144_v47  ;;  %v361_v51 = vsel %vm358_vm4, %v11134_v19, %v11139_v20  ;;  %v11148_v21 = vpop.permute.xlu0 %11147  ;;  %1012 = vmatpush1.bf16.msra.mxu0 %v11444_v25 }
  0xa8   :  { %v12134_v14 = vmul.f32 %v11960_v52, %v361_v51  ;;  %v391_v54 = vmul.f32 %v11963_v53, %v359_v22  ;;  %v11155_v55 = vunpack.i.h.bf16 %v11153_v16  ;;  %v11154_v45 = vunpack.i.l.bf16 %v11153_v16  ;;  %1055 = vmatpush1.bf16.msra.mxu1 %v11445_v4  ;;  %1013 = vmatprep.subr.bf16.mxu0 %v17225_v37 }
  0xa9   :  { %v11150_v40 = vunpack.i.h.bf16 %v11148_v21  ;;  %v11149_v6 = vunpack.i.l.bf16 %v11148_v21  ;;  %v11446_v52 = vpack.c.bf16 %v12104_v28, %v12107_v9  ;;  %v17226_v28 = vcombine.high %v11816_v0, %v11821_v1 }
  0xaa   :  { %v11163_v24 = vpop.permute.xlu1 %11162  ;;  %v17227_v22 = vcombine.low %v11826_v2, %v11833_v5  ;;  %v11449_v4 = vpack.c.bf16 %v12124_v38, %v12134_v14 }
  0xab   :  { %v280_v19 = vsel %vm274_vm5, %v11150_v40, %v11155_v55  ;;  %v11165_v23 = vunpack.i.h.bf16 %v11163_v24  ;;  %v11164_v48 = vunpack.i.l.bf16 %v11163_v24  ;;  %v11158_v46 = vpop.permute.xlu0 %11157  ;;  %v279_v39 = vsel %vm274_vm5, %v11149_v6, %v11154_v45  ;;  %1056 = vmatprep.subr.bf16.mxu1 %v17226_v28 }
  0xac   :  { %v309_v53 = vmul.f32 %v11969_v56, %v280_v19  ;;  %v11160_v47 = vunpack.i.h.bf16 %v11158_v46  ;;  %v11159_v41 = vunpack.i.l.bf16 %v11158_v46  ;;  %v305_v42 = vmul.f32 %v11969_v56, %v279_v39  ;;  %1014 = vmatpush1.bf16.msra.mxu0 %v17227_v22 }
  0xad   :  { %v281_v49 = vsel %vm274_vm5, %v11164_v48, %v11149_v6  ;;  %v282_v15 = vsel %vm274_vm5, %v11165_v23, %v11150_v40  ;;  %v17228_v40 = vcombine.low %v11816_v0, %v11821_v1  ;;  %1015 = vmatprep.subr.bf16.mxu0 %v11446_v52 }
  0xae   :  { %v12159_v9 = vmul.f32 %v11972_v57, %v281_v49  ;;  %v12162_v56 = vmul.f32 %v11972_v57, %v282_v15  ;;  %v276_v17 = vsel %vm274_vm5, %v11160_v47, %v11165_v23  ;;  %v278_v20 = vsel %vm274_vm5, %v11155_v55, %v11160_v47  ;;  %v11173_v36 = vpop.permute.xlu1 %11172 }
  0xaf   :  { %v12169_v18 = vmul.f32 %v11975_v58, %v278_v20  ;;  %v12172_v60 = vmul.f32 %v11978_v59, %v276_v17  ;;  %v275_v43 = vsel %vm274_vm5, %v11159_v41, %v11164_v48  ;;  %v277_v57 = vsel %vm274_vm5, %v11154_v45, %v11159_v41  ;;  %v11168_v50 = vpop.permute.xlu0 %11167  ;;  %1057 = vmatpush1.bf16.msra.mxu1 %v17228_v40 }
  0xb0   :  { %v12179_v44 = vmul.f32 %v11975_v58, %v277_v57  ;;  %v307_v16 = vmul.f32 %v11978_v59, %v275_v43  ;;  %v11175_v51 = vunpack.i.h.bf16 %v11173_v36  ;;  %v11174_v21 = vunpack.i.l.bf16 %v11173_v36 }
  0xb1   :  { %v11170_v55 = vunpack.i.h.bf16 %v11168_v50  ;;  %v11169_v45 = vunpack.i.l.bf16 %v11168_v50  ;;  %v11447_v58 = vpack.c.bf16 %v12127_v33, %v391_v54  ;;  %v11448_v59 = vpack.c.bf16 %v12117_v35, %v12114_v34 }
  0xb2   :  { %v11183_v6 = vpop.permute.xlu1 %11182  ;;  %v11450_v54 = vpack.c.bf16 %v309_v53, %v305_v42  ;;  %v11451_v20 = vpack.c.bf16 %v12172_v60, %v307_v16  ;;  %v11452_v36 = vpack.c.bf16 %v12162_v56, %v12159_v9 }
  0xb3   :  { %v196_v2 = vsel %vm190_vm6, %v11170_v55, %v11175_v51  ;;  %v11185_v5 = vunpack.i.h.bf16 %v11183_v6  ;;  %v11184_v24 = vunpack.i.l.bf16 %v11183_v6  ;;  %v11178_v25 = vpop.permute.xlu0 %11177  ;;  %v195_v1 = vsel %vm190_vm6, %v11169_v45, %v11174_v21  ;;  %1058 = vmatprep.subr.bf16.mxu1 %v11447_v58  ;;  %1016 = vmatpush1.bf16.msra.mxu0 %v11448_v59 }
  0xb4   :  { %v225_v0 = vmul.f32 %v11984_v61, %v196_v2  ;;  %v11180_v19 = vunpack.i.h.bf16 %v11178_v25  ;;  %v11179_v23 = vunpack.i.l.bf16 %v11178_v25  ;;  %v221_v34 = vmul.f32 %v11984_v61, %v195_v1  ;;  %1059 = vmatpush1.bf16.msra.mxu1 %v11449_v4  ;;  %1017 = vmatprep.subr.bf16.mxu0 %v11450_v54 }
  0xb5   :  { %v197_v35 = vsel %vm190_vm6, %v11184_v24, %v11169_v45  ;;  %v198_v33 = vsel %vm190_vm6, %v11185_v5, %v11170_v55  ;;  %1060 = vmatprep.subr.bf16.mxu1 %v11451_v20 }
  0xb6   :  { %v12205_v38 = vmul.f32 %v11987_v62, %v197_v35  ;;  %v12208_v14 = vmul.f32 %v11987_v62, %v198_v33  ;;  %v192_v48 = vsel %vm190_vm6, %v11180_v19, %v11185_v5  ;;  %v194_v61 = vsel %vm190_vm6, %v11175_v51, %v11180_v19  ;;  %v11193_v46 = vpop.permute.xlu1 %11192 }
  0xb7   :  { %v12215_v52 = vmul.f32 %v11990_v63, %v194_v61  ;;  %v227_v39 = vmul.f32 %v11993_v3, %v192_v48  ;;  %v191_v53 = vsel %vm190_vm6, %v11179_v23, %v11184_v24  ;;  %v193_v47 = vsel %vm190_vm6, %v11174_v21, %v11179_v23  ;;  %v11188_v62 = vpop.permute.xlu0 %11187  ;;  %1018 = vmatpush1.bf16.msra.mxu0 %v11452_v36 }
  0xb8   :  { %v222_v41 = vmul.f32 %v11990_v63, %v193_v47  ;;  %v223_v42 = vmul.f32 %v11993_v3, %v191_v53  ;;  %v11195_v49 = vunpack.i.h.bf16 %v11193_v46  ;;  %v11194_v15 = vunpack.i.l.bf16 %v11193_v46 }
  0xb9   :  { %v11190_v37 = vunpack.i.h.bf16 %v11188_v62  ;;  %v11189_v28 = vunpack.i.l.bf16 %v11188_v62  ;;  %v11453_v3 = vpack.c.bf16 %v12169_v18, %v12179_v44  ;;  %v11454_v16 = vpack.c.bf16 %v225_v0, %v221_v34 }
  0xba   :  { %v11203_v17 = vpop.permute.xlu1 %11202  ;;  %v11455_v23 = vpack.c.bf16 %v227_v39, %v223_v42  ;;  %v11456_v34 = vpack.c.bf16 %v12208_v14, %v12205_v38  ;;  %v11457_v61 = vpack.c.bf16 %v12215_v52, %v222_v41 }
  0xbb   :  { %v112_v43 = vsel %vm106_vm7, %v11190_v37, %v11195_v49  ;;  %v11205_v57 = vunpack.i.h.bf16 %v11203_v17  ;;  %v11204_v50 = vunpack.i.l.bf16 %v11203_v17  ;;  %v11198_v63 = vpop.permute.xlu0 %11197  ;;  %v111_v51 = vsel %vm106_vm7, %v11189_v28, %v11194_v15  ;;  %1061 = vmatpush1.bf16.msra.mxu1 %v11453_v3  ;;  %1019 = vmatprep.subr.bf16.mxu0 %v11454_v16  ;;  %v11232_v3 = vld [vmem:[%s17218_s7] ss:$8 sps:$4 sm:$0xff]   ;;  %s17233_s7 = smov 17  }
  0xbc   :  { %v141_v22 = vmul.f32 %v11997_v7, %v112_v43  ;;  %v11200_v21 = vunpack.i.h.bf16 %v11198_v63  ;;  %v11199_v55 = vunpack.i.l.bf16 %v11198_v63  ;;  %v137_v9 = vmul.f32 %v11997_v7, %v111_v51  ;;  %1062 = vmatprep.subr.bf16.mxu1 %v11455_v23  ;;  %1020 = vmatpush1.bf16.msra.mxu0 %v11456_v34 }
  0xbd   :  { %v113_v56 = vsel %vm106_vm7, %v11204_v50, %v11189_v28  ;;  %v114_v60 = vsel %vm106_vm7, %v11205_v57, %v11190_v37 }
  0xbe   :  { %v136_v18 = vmul.f32 %v12000_v8, %v113_v56  ;;  %v140_v44 = vmul.f32 %v12000_v8, %v114_v60  ;;  %v108_v40 = vsel %vm106_vm7, %v11200_v21, %v11205_v57  ;;  %v110_v45 = vsel %vm106_vm7, %v11195_v49, %v11200_v21  ;;  %v11213_v6 = vpop.permute.xlu1 %11212 }
  0xbf   :  { %v142_v7 = vmul.f32 %v12003_v10, %v110_v45  ;;  %v143_v58 = vmul.f32 %v12006_v11, %v108_v40  ;;  %v107_v59 = vsel %vm106_vm7, %v11199_v55, %v11204_v50  ;;  %v109_v2 = vsel %vm106_vm7, %v11194_v15, %v11199_v55  ;;  %v11208_v5 = vpop.permute.xlu0 %11207  ;;  %1063 = vmatpush1.bf16.msra.mxu1 %v11457_v61 }
  0xc0   :  { %v138_v8 = vmul.f32 %v12003_v10, %v109_v2  ;;  %v139_v24 = vmul.f32 %v12006_v11, %v107_v59  ;;  %v11215_v25 = vunpack.i.h.bf16 %v11213_v6  ;;  %v11214_v4 = vunpack.i.l.bf16 %v11213_v6 }
  0xc1   :  { %v11210_v0 = vunpack.i.h.bf16 %v11208_v5  ;;  %v11209_v1 = vunpack.i.l.bf16 %v11208_v5  ;;  %v11458_v47 = vpack.c.bf16 %v141_v22, %v137_v9  ;;  %v11460_v20 = vpack.c.bf16 %v140_v44, %v136_v18 }
  0xc2   :  { %v11223_v19 = vpop.permute.xlu1 %11222  ;;  %v11459_v17 = vpack.c.bf16 %v143_v58, %v139_v24  ;;  %v11461_v36 = vpack.c.bf16 %v142_v7, %v138_v8 }
  0xc3   :  { %v704_v35 = vsel %vm698_vm8, %v11210_v0, %v11215_v25  ;;  %v11225_v33 = vunpack.i.h.bf16 %v11223_v19  ;;  %v11224_v54 = vunpack.i.l.bf16 %v11223_v19  ;;  %v11218_v48 = vpop.permute.xlu0 %11217  ;;  %v703_v11 = vsel %vm698_vm8, %v11209_v1, %v11214_v4  ;;  %1021 = vmatprep.subr.bf16.mxu0 %v11458_v47 }
  0xc4   :  { %v732_v10 = vmul.f32 %v12009_v12, %v704_v35  ;;  %v11220_v46 = vunpack.i.h.bf16 %v11218_v48  ;;  %v11219_v53 = vunpack.i.l.bf16 %v11218_v48  ;;  %v728_v39 = vmul.f32 %v12009_v12, %v703_v11  ;;  %1064 = vmatprep.subr.bf16.mxu1 %v11459_v17  ;;  %1022 = vmatpush1.bf16.msra.mxu0 %v11460_v20  ;;  %v1824_v11 = vld [vmem:[%s17238_s8 + $0x8] sm:$0xff] }
  0xc5   :  { %v705_v38 = vsel %vm698_vm8, %v11224_v54, %v11209_v1  ;;  %v706_v14 = vsel %vm698_vm8, %v11225_v33, %v11210_v0  ;;  %1065 = vmatpush1.bf16.msra.mxu1 %v11461_v36 }
  0xc6   :  { %v731_v52 = vmul.f32 %v12012_v13, %v705_v38  ;;  %v735_v62 = vmul.f32 %v12012_v13, %v706_v14  ;;  %v700_v41 = vsel %vm698_vm8, %v11220_v46, %v11225_v33  ;;  %v702_v42 = vsel %vm698_vm8, %v11215_v25, %v11220_v46 }
  0xc7   :  { %v733_v12 = vmul.f32 %v12015_v29, %v702_v42  ;;  %v734_v49 = vmul.f32 %v12018_v32, %v700_v41  ;;  %v699_v15 = vsel %vm698_vm8, %v11219_v53, %v11224_v54  ;;  %v701_v37 = vsel %vm698_vm8, %v11214_v4, %v11219_v53  ;;  %v1823_v54 = vld [vmem:[%s17238_s8] sm:$0xff]  ;;  %s17252_s8 = smov 16  }
  0xc8   :  { %v729_v28 = vmul.f32 %v12015_v29, %v701_v37  ;;  %v730_v13 = vmul.f32 %v12018_v32, %v699_v15  ;;  %v11463_v57 = vpack.c.bf16 %v735_v62, %v731_v52  ;;  %v11464_v50 = vpack.c.bf16 %v732_v10, %v728_v39  ;;  %v11235_v10 = vld [vmem:[%s17239_s10 + $0x4] ss:$8 sps:$4 sm:$0xff]  }
  0xca   :  { %v11462_v43 = vpack.c.bf16 %v733_v12, %v729_v28  ;;  %v11465_v63 = vpack.c.bf16 %v734_v49, %v730_v13  ;;  %1080 = vmatprep.subr.bf16.mxu1 %v11463_v57 }
  0xcc   :  { %1037 = vmatprep.subr.bf16.mxu0 %v11462_v43  ;;  %1081 = vmatpush2.bf16.msra.mxu1 %v11465_v63 }
  0xcd   :  { %1038 = vmatpush2.bf16.msra.mxu0 %v11464_v50 }
  0xcf   :  { %1083 = vmatmul.mubr.bf16.vlgmr.msra.gmra.mxu1 %v11232_v3  ;;  %v812_v55 = vpop.permute.xlu1 %811 }
  0xd0   :  { %1040 = vmatmul.mubr.bf16.vlgmr.msra.gmra.mxu0 %v11232_v3  ;;  %v807_v29 = vpop.permute.xlu0 %806  ;;  %9876 = vmatprep.mubr.msk.bf16.mxu1 %vm1003_vm0, %v11235_v10 }
  0xd1   :  { %9875 = vmatprep.mubr.msk.bf16.mxu0 %vm1003_vm0, %v11235_v10 }
 0x18f   :  { %v1084_v22 = vpop.f32.mrf.mxu1 }
 0x190   :  { %v1041_v32 = vpop.f32.mrf.mxu0  ;;  %v1085_v21 = vadd.f32 %v1084_v22, %v807_v29 }
 0x191   :  { %v1042_v51 = vadd.f32 %v1041_v32, %v807_v29  ;;  %v1086_v56 = vpop.f32.mrf.mxu1 }
 0x192   :  { %v1043_v9 = vpop.f32.mrf.mxu0  ;;  %v12286_v44 = vmax.f32 %v1085_v21, 0.0  ;;  %v1087_v5 = vadd.f32 %v1086_v56, %v807_v29 }
 0x193   :  { %v12284_v60 = vmax.f32 %v1042_v51, 0.0  ;;  %v1088_v18 = vpop.f32.mrf.mxu1  ;;  %v1044_v58 = vadd.f32 %v1043_v9, %v807_v29  ;;  %v9827_v29 = vld [vmem:[%s17222_s5 + $0x7] ss:$8 sm:$0xf] }
 0x194   :  { %v1045_v16 = vpop.f32.mrf.mxu0  ;;  %17230 = vst [vmem:[#allocation8_spill] sm:$0xff] %v12286_v44  ;;  %v1089_v6 = vadd.f32 %v1088_v18, %v812_v55  ;;  %v12360_v25 = vmax.f32 %v1087_v5, 0.0  ;;  %v1650_v22 = vrot.slane %v9827_v29, %v11903_v30  ;;  %v1654_v51 = vrot.slane %v9827_v29, %v11905_v31  ;;  %v9822_v5 = vld [vmem:[%s17222_s5 + $0x6] ss:$8 sm:$0xf] }
 0x195   :  { %17229 = vst [vmem:[#allocation7_spill] sm:$0xff] %v12284_v60  ;;  %v1046_v40 = vadd.f32 %v1045_v16, %v812_v55  ;;  %1622 = vrot.lane.b32.xlu1 %v12284_v60, %s16971_s27  ;;  %v12354_v2 = vmax.f32 %v1044_v58, 0.0  ;;  %v1090_v24 = vpop.f32.mrf.mxu1 }
 0x196   :  { %v12296_v7 = vmax.f32 %v1089_v6, 0.0  ;;  %v1047_v59 = vpop.f32.mrf.mxu0  ;;  %17235 = vst [vmem:[#allocation12_spill] sm:$0xff] %v12360_v25  ;;  %v1091_v0 = vadd.f32 %v1090_v24, %v812_v55  ;;  %v17245_v6 = vld [vmem:[#allocation4_spill] sm:$0xff] }
 0x197   :  { %v12290_v45 = vmax.f32 %v1046_v40, 0.0  ;;  %17234 = vst [vmem:[#allocation11_spill] sm:$0xff] %v12354_v2  ;;  %v1048_v8 = vadd.f32 %v1047_v59, %v812_v55  ;;  %v1658_v40 = vrot.slane %v9827_v29, %v11896_v27  ;;  %v1662_v58 = vrot.slane %v9827_v29, %v17245_v6 }
 0x198   :  { %17232 = vst [vmem:[#allocation10_spill] sm:$0xff] %v12296_v7  ;;  %v12368_v1 = vmax.f32 %v1091_v0, 0.0  ;;  %v1568_v29 = vrot.slane %v9822_v5, %v11903_v30 }
 0x199   :  { %17231 = vst [vmem:[#allocation9_spill] sm:$0xff] %v12290_v45  ;;  %1624 = vrot.lane.b32.xlu0 %v12290_v45, %s16971_s27  ;;  %1630 = vrot.lane.b32.xlu1 %v12286_v44, %s16971_s27  ;;  %v12362_v4 = vmax.f32 %v1048_v8, 0.0 }
 0x19a   :  { %17237 = vst [vmem:[#allocation14_spill] sm:$0xff] %v12368_v1 }
 0x19b   :  { %17236 = vst [vmem:[#allocation13_spill] sm:$0xff] %v12362_v4 }
 0x19d   :  { %1632 = vrot.lane.b32.xlu0 %v12296_v7, %s16971_s27  ;;  %1540 = vrot.lane.b32.xlu1 %v12284_v60, %s16969_s9 }
 0x1a1   :  { %1542 = vrot.lane.b32.xlu0 %v12290_v45, %s16969_s9  ;;  %1548 = vrot.lane.b32.xlu1 %v12286_v44, %s16969_s9 }
 0x1a5   :  { %1550 = vrot.lane.b32.xlu0 %v12296_v7, %s16969_s9  ;;  %1458 = vrot.lane.b32.xlu1 %v12284_v60, %s16954_s28 }
 0x1a9   :  { %1460 = vrot.lane.b32.xlu0 %v12290_v45, %s16954_s28  ;;  %1466 = vrot.lane.b32.xlu1 %v12286_v44, %s16954_s28 }
 0x1ad   :  { %1468 = vrot.lane.b32.xlu0 %v12296_v7, %s16954_s28  ;;  %1348 = vrot.lane.b32.xlu1 %v12284_v60, %s16952_s29 }
 0x1b1   :  { %1350 = vrot.lane.b32.xlu0 %v12290_v45, %s16952_s29  ;;  %1356 = vrot.lane.b32.xlu1 %v12286_v44, %s16952_s29 }
 0x1b5   :  { %1358 = vrot.lane.b32.xlu0 %v12296_v7, %s16952_s29  ;;  %1266 = vrot.lane.b32.xlu1 %v12284_v60, %s16945_s1 }
 0x1b9   :  { %1268 = vrot.lane.b32.xlu0 %v12290_v45, %s16945_s1  ;;  %1274 = vrot.lane.b32.xlu1 %v12286_v44, %s16945_s1 }
 0x1bd   :  { %1276 = vrot.lane.b32.xlu0 %v12296_v7, %s16945_s1  ;;  %1184 = vrot.lane.b32.xlu1 %v12284_v60, %s16943_s0 }
 0x1c1   :  { %1186 = vrot.lane.b32.xlu0 %v12290_v45, %s16943_s0  ;;  %1192 = vrot.lane.b32.xlu1 %v12286_v44, %s16943_s0 }
 0x1c5   :  { %1194 = vrot.lane.b32.xlu0 %v12296_v7, %s16943_s0  ;;  %1102 = vrot.lane.b32.xlu1 %v12284_v60, %s17233_s7 }
 0x1c9   :  { %1104 = vrot.lane.b32.xlu0 %v12290_v45, %s17233_s7  ;;  %1110 = vrot.lane.b32.xlu1 %v12286_v44, %s17233_s7 }
 0x1cd   :  { %1112 = vrot.lane.b32.xlu0 %v12296_v7, %s17233_s7  ;;  %1704 = vrot.lane.b32.xlu1 %v12284_v60, %s16973_s30 }
 0x1d1   :  { %1706 = vrot.lane.b32.xlu0 %v12290_v45, %s16973_s30  ;;  %1712 = vrot.lane.b32.xlu1 %v12286_v44, %s16973_s30 }
 0x1d5   :  { %1714 = vrot.lane.b32.xlu0 %v12296_v7, %s16973_s30  ;;  %1626 = vrot.lane.b32.xlu1 %v12354_v2, %s16971_s27 }
 0x1d9   :  { %1628 = vrot.lane.b32.xlu0 %v12362_v4, %s16971_s27  ;;  %1634 = vrot.lane.b32.xlu1 %v12360_v25, %s16971_s27 }
 0x1dd   :  { %1636 = vrot.lane.b32.xlu0 %v12368_v1, %s16971_s27  ;;  %1544 = vrot.lane.b32.xlu1 %v12354_v2, %s16969_s9 }
 0x1e1   :  { %1546 = vrot.lane.b32.xlu0 %v12362_v4, %s16969_s9  ;;  %1552 = vrot.lane.b32.xlu1 %v12360_v25, %s16969_s9 }
 0x1e5   :  { %1554 = vrot.lane.b32.xlu0 %v12368_v1, %s16969_s9  ;;  %1462 = vrot.lane.b32.xlu1 %v12354_v2, %s16954_s28 }
 0x1e9   :  { %1464 = vrot.lane.b32.xlu0 %v12362_v4, %s16954_s28  ;;  %1470 = vrot.lane.b32.xlu1 %v12360_v25, %s16954_s28 }
 0x1ed   :  { %1472 = vrot.lane.b32.xlu0 %v12368_v1, %s16954_s28  ;;  %1352 = vrot.lane.b32.xlu1 %v12354_v2, %s16952_s29 }
 0x1f1   :  { %1354 = vrot.lane.b32.xlu0 %v12362_v4, %s16952_s29  ;;  %1360 = vrot.lane.b32.xlu1 %v12360_v25, %s16952_s29 }
 0x1f5   :  { %1362 = vrot.lane.b32.xlu0 %v12368_v1, %s16952_s29  ;;  %1270 = vrot.lane.b32.xlu1 %v12354_v2, %s16945_s1 }
 0x1f9   :  { %1272 = vrot.lane.b32.xlu0 %v12362_v4, %s16945_s1  ;;  %1278 = vrot.lane.b32.xlu1 %v12360_v25, %s16945_s1 }
 0x1fd   :  { %1280 = vrot.lane.b32.xlu0 %v12368_v1, %s16945_s1  ;;  %1188 = vrot.lane.b32.xlu1 %v12354_v2, %s16943_s0  ;;  %s17253_s1 = sld [smem:[#allocation135_spill]] }
 0x201   :  { %1190 = vrot.lane.b32.xlu0 %v12362_v4, %s16943_s0  ;;  %1196 = vrot.lane.b32.xlu1 %v12360_v25, %s16943_s0 }
 0x205   :  { %1198 = vrot.lane.b32.xlu0 %v12368_v1, %s16943_s0  ;;  %1106 = vrot.lane.b32.xlu1 %v12354_v2, %s17233_s7 }
 0x207   :  { %v12414_v19 = vpop.permute.xlu1 %1622 }
 0x209   :  { %1108 = vrot.lane.b32.xlu0 %v12362_v4, %s17233_s7  ;;  %1114 = vrot.lane.b32.xlu1 %v12360_v25, %s17233_s7 }
 0x20b   :  { %v12420_v23 = vpop.permute.xlu0 %1624  ;;  %v1631_v34 = vpop.permute.xlu1 %1630 }
 0x20d   :  { %1116 = vrot.lane.b32.xlu0 %v12368_v1, %s17233_s7  ;;  %1708 = vrot.lane.b32.xlu1 %v12354_v2, %s16973_s30 }
 0x20f   :  { %v12426_v35 = vpop.permute.xlu0 %1632  ;;  %v12428_v33 = vpop.permute.xlu1 %1540 }
 0x211   :  { %1710 = vrot.lane.b32.xlu0 %v12362_v4, %s16973_s30  ;;  %1716 = vrot.lane.b32.xlu1 %v12360_v25, %s16973_s30 }
 0x213   :  { %v12437_v48 = vpop.permute.xlu0 %1542  ;;  %v12439_v61 = vpop.permute.xlu1 %1548 }
 0x215   :  { %1718 = vrot.lane.b32.xlu0 %v12368_v1, %s16973_s30  ;;  %1827 = vperm.xlu1 %11227, %v1823_v54  }
 0x217   :  { %v12451_v46 = vpop.permute.xlu0 %1550  ;;  %v12453_v53 = vpop.permute.xlu1 %1458 }
 0x219   :  { %1832 = vperm.xlu0 %11226, %v1824_v11  }
 0x21b   :  { %v12455_v39 = vpop.permute.xlu0 %1460  ;;  %v12457_v38 = vpop.permute.xlu1 %1466 }
 0x21f   :  { %v12459_v14 = vpop.permute.xlu0 %1468  ;;  %v12461_v47 = vpop.permute.xlu1 %1348 }
 0x223   :  { %v12463_v52 = vpop.permute.xlu0 %1350  ;;  %v12465_v62 = vpop.permute.xlu1 %1356 }
 0x227   :  { %v12467_v41 = vpop.permute.xlu0 %1358  ;;  %v12469_v42 = vpop.permute.xlu1 %1266 }
 0x22b   :  { %v12471_v12 = vpop.permute.xlu0 %1268  ;;  %v12473_v49 = vpop.permute.xlu1 %1274 }
 0x22f   :  { %v12475_v15 = vpop.permute.xlu0 %1276  ;;  %v12477_v37 = vpop.permute.xlu1 %1184 }
 0x233   :  { %v12479_v28 = vpop.permute.xlu0 %1186  ;;  %v12481_v13 = vpop.permute.xlu1 %1192 }
 0x237   :  { %v12483_v17 = vpop.permute.xlu0 %1194  ;;  %v12485_v20 = vpop.permute.xlu1 %1102 }
 0x23b   :  { %v12487_v36 = vpop.permute.xlu0 %1104  ;;  %v12489_v43 = vpop.permute.xlu1 %1110 }
 0x23c   :  { %17240 = vst [vmem:[#allocation15_spill] sm:$0xff] %v12487_v36 }
 0x23f   :  { %v12491_v57 = vpop.permute.xlu0 %1112  ;;  %v12493_v50 = vpop.permute.xlu1 %1704 }
 0x240   :  { %17241 = vst [vmem:[#allocation16_spill] sm:$0xff] %v12493_v50 }
 0x243   :  { %v12495_v63 = vpop.permute.xlu0 %1706  ;;  %v12497_v3 = vpop.permute.xlu1 %1712 }
 0x244   :  { %17242 = vst [vmem:[#allocation17_spill] sm:$0xff] %v12495_v63  ;;  %17243 = vst [vmem:[#allocation18_spill] sm:$0xff] %v12497_v3 }
 0x247   :  { %v12502_v32 = vpop.permute.xlu0 %1714  ;;  %v1627_v21 = vpop.permute.xlu1 %1626 }
 0x248   :  { %17244 = vst [vmem:[#allocation19_spill] sm:$0xff] %v12502_v32  ;;  %v1640_v55 = vsel %vm614_vm1, %v1627_v21, %v1631_v34  ;;  %v1642_v9 = vsel %vm614_vm1, %v12414_v19, %v1627_v21  ;;  %v1572_v21 = vrot.slane %v9822_v5, %v11905_v31 }
 0x249   :  { %v1667_v56 = vmul.f32 %v1650_v22, %v1642_v9  ;;  %v1668_v16 = vmul.f32 %v1654_v51, %v1640_v55 }
 0x24b   :  { %v1629_v18 = vpop.permute.xlu0 %1628  ;;  %v1635_v59 = vpop.permute.xlu1 %1634 }
 0x24c   :  { %v1641_v8 = vsel %vm614_vm1, %v1629_v18, %v12426_v35  ;;  %v1643_v24 = vsel %vm614_vm1, %v12420_v23, %v1629_v18  ;;  %v1638_v0 = vsel %vm614_vm1, %v1631_v34, %v1635_v59  ;;  %v1644_v54 = vsel %vm614_vm1, %v1635_v59, %v12414_v19 }
 0x24d   :  { %v1671_v10 = vmul.f32 %v1650_v22, %v1643_v24  ;;  %v1672_v11 = vmul.f32 %v1654_v51, %v1641_v8  ;;  %v1669_v55 = vmul.f32 %v1658_v40, %v1638_v0  ;;  %v1670_v9 = vmul.f32 %v1662_v58, %v1644_v54 }
 0x24e   :  { %v1576_v8 = vrot.slane %v9822_v5, %v11896_v27  ;;  %v1580_v24 = vrot.slane %v9822_v5, %v17245_v6 }
 0x24f   :  { %v1637_v63 = vpop.permute.xlu0 %1636  ;;  %v1545_v32 = vpop.permute.xlu1 %1544  ;;  %v11466_v0 = vpack.c.bf16 %v1672_v11, %v1668_v16 }
 0x250   :  { %v1639_v18 = vsel %vm614_vm1, %v12426_v35, %v1637_v63  ;;  %v1645_v34 = vsel %vm614_vm1, %v1637_v63, %v12420_v23  ;;  %v1558_v19 = vsel %vm530_vm2, %v1545_v32, %v12439_v61  ;;  %v1560_v22 = vsel %vm530_vm2, %v12428_v33, %v1545_v32  ;;  %v9817_v63 = vld [vmem:[%s17222_s5 + $0x5] ss:$8 sm:$0xf] }
 0x251   :  { %v1673_v51 = vmul.f32 %v1658_v40, %v1639_v18  ;;  %v1674_v59 = vmul.f32 %v1662_v58, %v1645_v34  ;;  %v11467_v35 = vpack.c.bf16 %v1671_v10, %v1667_v56  ;;  %v1585_v54 = vmul.f32 %v1568_v29, %v1560_v22  ;;  %2027 = vmatprep.subr.bf16.mxu0 %v11466_v0 }
 0x252   :  { %v1586_v50 = vmul.f32 %v1572_v21, %v1558_v19  ;;  %v1486_v10 = vrot.slane %v9817_v63, %v11903_v30  ;;  %v1490_v11 = vrot.slane %v9817_v63, %v11905_v31 }
 0x253   :  { %v1547_v3 = vpop.permute.xlu0 %1546  ;;  %v1553_v23 = vpop.permute.xlu1 %1552  ;;  %2028 = vmatpush1.bf16.msra.mxu0 %v11467_v35  ;;  %v11468_v18 = vpack.c.bf16 %v1674_v59, %v1670_v9  ;;  %v11469_v34 = vpack.c.bf16 %v1673_v51, %v1669_v55 }
 0x254   :  { %v1559_v32 = vsel %vm530_vm2, %v1547_v3, %v12451_v46  ;;  %v1561_v40 = vsel %vm530_vm2, %v12437_v48, %v1547_v3  ;;  %v1556_v56 = vsel %vm530_vm2, %v12439_v61, %v1553_v23  ;;  %v1562_v16 = vsel %vm530_vm2, %v1553_v23, %v12428_v33 }
 0x255   :  { %v1589_v58 = vmul.f32 %v1568_v29, %v1561_v40  ;;  %v1590_v5 = vmul.f32 %v1572_v21, %v1559_v32  ;;  %v1587_v19 = vmul.f32 %v1576_v8, %v1556_v56  ;;  %v1588_v3 = vmul.f32 %v1580_v24, %v1562_v16  ;;  %2070 = vmatprep.subr.bf16.mxu1 %v11468_v18 }
 0x256   :  { %2071 = vmatpush1.bf16.msra.mxu1 %v11469_v34  ;;  %v1494_v23 = vrot.slane %v9817_v63, %v11896_v27 }
 0x257   :  { %v1555_v22 = vpop.permute.xlu0 %1554  ;;  %v1463_v36 = vpop.permute.xlu1 %1462  ;;  %v11470_v51 = vpack.c.bf16 %v1590_v5, %v1586_v50  ;;  %v11471_v59 = vpack.c.bf16 %v1589_v58, %v1585_v54 }
 0x258   :  { %v1557_v61 = vsel %vm530_vm2, %v12451_v46, %v1555_v22  ;;  %v1563_v33 = vsel %vm530_vm2, %v1555_v22, %v12437_v48  ;;  %v1476_v29 = vsel %vm446_vm3, %v1463_v36, %v12457_v38  ;;  %v1478_v21 = vsel %vm446_vm3, %v12453_v53, %v1463_v36 }
 0x259   :  { %v1591_v55 = vmul.f32 %v1576_v8, %v1557_v61  ;;  %v1592_v9 = vmul.f32 %v1580_v24, %v1563_v33  ;;  %v1503_v0 = vmul.f32 %v1486_v10, %v1478_v21  ;;  %v1504_v46 = vmul.f32 %v1490_v11, %v1476_v29  ;;  %2029 = vmatprep.subr.bf16.mxu0 %v11470_v51 }
 0x25a   :  { %v1498_v8 = vrot.slane %v9817_v63, %v17245_v6  ;;  %2030 = vmatpush1.bf16.msra.mxu0 %v11471_v59 }
 0x25b   :  { %v1465_v35 = vpop.permute.xlu0 %1464  ;;  %v1471_v48 = vpop.permute.xlu1 %1470  ;;  %v11472_v56 = vpack.c.bf16 %v1592_v9, %v1588_v3  ;;  %v11473_v16 = vpack.c.bf16 %v1591_v55, %v1587_v19 }
 0x25c   :  { %v1477_v32 = vsel %vm446_vm3, %v1465_v35, %v12459_v14  ;;  %v1479_v36 = vsel %vm446_vm3, %v12455_v39, %v1465_v35  ;;  %v1474_v54 = vsel %vm446_vm3, %v12457_v38, %v1471_v48  ;;  %v1480_v40 = vsel %vm446_vm3, %v1471_v48, %v12453_v53  ;;  %v9808_v53 = vld [vmem:[%s17222_s5 + $0x3] ss:$8 sm:$0xf] }
 0x25d   :  { %v1507_v24 = vmul.f32 %v1486_v10, %v1479_v36  ;;  %v1508_v50 = vmul.f32 %v1490_v11, %v1477_v32  ;;  %v1505_v18 = vmul.f32 %v1494_v23, %v1474_v54  ;;  %v1506_v34 = vmul.f32 %v1498_v8, %v1480_v40  ;;  %2072 = vmatprep.subr.bf16.mxu1 %v11472_v56 }
 0x25e   :  { %2073 = vmatpush1.bf16.msra.mxu1 %v11473_v16  ;;  %v1376_v33 = vrot.slane %v9808_v53, %v11903_v30  ;;  %v1380_v29 = vrot.slane %v9808_v53, %v11905_v31  ;;  %v1384_v21 = vrot.slane %v9808_v53, %v11896_v27  ;;  %v11479_v36 = vpack.c.bf16 %v12290_v45, %v12284_v60 }
 0x25f   :  { %v1473_v58 = vpop.permute.xlu0 %1472  ;;  %v1353_v5 = vpop.permute.xlu1 %1352  ;;  %v11474_v19 = vpack.c.bf16 %v1508_v50, %v1504_v46  ;;  %v11475_v3 = vpack.c.bf16 %v1507_v24, %v1503_v0 }
 0x260   :  { %v1475_v63 = vsel %vm446_vm3, %v12459_v14, %v1473_v58  ;;  %v1481_v10 = vsel %vm446_vm3, %v1473_v58, %v12455_v39  ;;  %v1388_v14 = vrot.slane %v9808_v53, %v17245_v6  ;;  %v11476_v39 = vpack.c.bf16 %v12362_v4, %v12354_v2  ;;  %v9798_v53 = vld [vmem:[%s17222_s5 + $0x1] ss:$8 sm:$0xf] }
 0x261   :  { %v1509_v38 = vmul.f32 %v1494_v23, %v1475_v63  ;;  %v1510_v11 = vmul.f32 %v1498_v8, %v1481_v10  ;;  %2031 = vmatprep.subr.bf16.mxu0 %v11474_v19  ;;  %v1366_v35 = vsel %vm358_vm4, %v1353_v5, %v12465_v62  ;;  %v1368_v23 = vsel %vm358_vm4, %v12461_v47, %v1353_v5 }
 0x262   :  { %2032 = vmatpush1.bf16.msra.mxu0 %v11475_v3  ;;  %v11480_v8 = vpack.c.bf16 %v12368_v1, %v12360_v25  ;;  %v1394_v5 = vmul.f32 %v1380_v29, %v1368_v23 }
 0x263   :  { %v1355_v22 = vpop.permute.xlu0 %1354  ;;  %v1361_v61 = vpop.permute.xlu1 %1360  ;;  %2033 = vmatprep.subr.bf16.mxu0 %v11476_v39  ;;  %v11477_v0 = vpack.c.bf16 %v1510_v11, %v1506_v34  ;;  %v11478_v46 = vpack.c.bf16 %v1509_v38, %v1505_v18  ;;  %v1395_v18 = vmul.f32 %v1384_v21, %v1366_v35 }
 0x264   :  { %v1364_v55 = vsel %vm358_vm4, %v12465_v62, %v1361_v61  ;;  %v1370_v9 = vsel %vm358_vm4, %v1361_v61, %v12461_v47  ;;  %v1367_v51 = vsel %vm358_vm4, %v1355_v22, %v12467_v41  ;;  %v1369_v59 = vsel %vm358_vm4, %v12463_v52, %v1355_v22  ;;  %v9803_v47 = vld [vmem:[%s17222_s5 + $0x2] ss:$8 sm:$0xf] }
 0x265   :  { %v1393_v24 = vmul.f32 %v1376_v33, %v1370_v9  ;;  %v1396_v50 = vmul.f32 %v1388_v14, %v1364_v55  ;;  %2074 = vmatprep.subr.bf16.mxu1 %v11477_v0  ;;  %v1398_v40 = vmul.f32 %v1380_v29, %v1369_v59  ;;  %v1399_v56 = vmul.f32 %v1384_v21, %v1367_v51 }
 0x266   :  { %2034 = vmatpush1.bf16.msra.mxu0 %v11479_v36  ;;  %2075 = vmatpush1.bf16.msra.mxu1 %v11478_v46  ;;  %v1298_v34 = vrot.slane %v9803_v47, %v11905_v31  ;;  %v1294_v38 = vrot.slane %v9803_v47, %v11903_v30  ;;  %v1306_v11 = vrot.slane %v9803_v47, %v17245_v6 }
 0x267   :  { %v1363_v48 = vpop.permute.xlu0 %1362  ;;  %v1271_v32 = vpop.permute.xlu1 %1270  ;;  %2076 = vmatprep.subr.bf16.mxu1 %v11480_v8  ;;  %v11485_v29 = vpack.c.bf16 %v1399_v56, %v1395_v18  ;;  %v1216_v51 = vrot.slane %v9798_v53, %v11905_v31 }
 0x268   :  { %v1365_v54 = vsel %vm358_vm4, %v12467_v41, %v1363_v48  ;;  %v1371_v62 = vsel %vm358_vm4, %v1363_v48, %v12463_v52  ;;  %v11481_v41 = vpack.c.bf16 %v12296_v7, %v12286_v44  ;;  %v1302_v52 = vrot.slane %v9803_v47, %v11896_v27  ;;  %v9905_v7 = vld [vmem:[%s17222_s5 + $0x6] ss:$8 sm:$0xf] }
 0x269   :  { %v1397_v16 = vmul.f32 %v1376_v33, %v1371_v62  ;;  %v1400_v58 = vmul.f32 %v1388_v14, %v1365_v54  ;;  %v11483_v14 = vpack.c.bf16 %v1398_v40, %v1394_v5  ;;  %v1284_v21 = vsel %vm274_vm5, %v1271_v32, %v12473_v49  ;;  %v1101_v5 = vld [vmem:[%s17222_s5] ss:$8 sm:$0xf] }
 0x26a   :  { %2077 = vmatpush1.bf16.msra.mxu1 %v11481_v41  ;;  %v1286_v55 = vsel %vm274_vm5, %v12469_v42, %v1271_v32  ;;  %v1313_v32 = vmul.f32 %v1302_v52, %v1284_v21  ;;  %v1212_v54 = vrot.slane %v9798_v53, %v11903_v30  ;;  %v1134_v21 = vrot.slane %v1101_v5, %v11905_v31 }
 0x26b   :  { %v1273_v63 = vpop.permute.xlu0 %1272  ;;  %v1279_v10 = vpop.permute.xlu1 %1278  ;;  %v11482_v33 = vpack.c.bf16 %v1400_v58, %v1396_v50  ;;  %v11484_v39 = vpack.c.bf16 %v1397_v16, %v1393_v24  ;;  %2035 = vmatprep.subr.bf16.mxu0 %v11483_v14  ;;  %v1220_v24 = vrot.slane %v9798_v53, %v11896_v27  ;;  %v2588_v45 = vrot.slane %v9905_v7, %v11903_v30 }
 0x26c   :  { %v1285_v19 = vsel %vm274_vm5, %v1273_v63, %v12475_v15  ;;  %v1287_v3 = vsel %vm274_vm5, %v12471_v12, %v1273_v63  ;;  %v1282_v22 = vsel %vm274_vm5, %v12473_v49, %v1279_v10  ;;  %v1288_v61 = vsel %vm274_vm5, %v1279_v10, %v12469_v42 }
 0x26d   :  { %v1311_v0 = vmul.f32 %v1294_v38, %v1288_v61  ;;  %v1314_v46 = vmul.f32 %v1306_v11, %v1282_v22  ;;  %2078 = vmatprep.subr.bf16.mxu1 %v11482_v33  ;;  %v1316_v49 = vmul.f32 %v1298_v34, %v1287_v3  ;;  %v1317_v48 = vmul.f32 %v1302_v52, %v1285_v19 }
 0x26e   :  { %v1312_v42 = vmul.f32 %v1298_v34, %v1286_v55  ;;  %2036 = vmatpush1.bf16.msra.mxu0 %v11484_v39  ;;  %2079 = vmatpush1.bf16.msra.mxu1 %v11485_v29  ;;  %v1138_v55 = vrot.slane %v1101_v5, %v11896_v27  ;;  %v2592_v44 = vrot.slane %v9905_v7, %v11905_v31 }
 0x26f   :  { %v1281_v9 = vpop.permute.xlu0 %1280  ;;  %v1189_v59 = vpop.permute.xlu1 %1188 }
 0x270   :  { %v1283_v35 = vsel %vm274_vm5, %v12475_v15, %v1281_v9  ;;  %v1289_v23 = vsel %vm274_vm5, %v1281_v9, %v12471_v12  ;;  %v1224_v15 = vrot.slane %v9798_v53, %v17245_v6  ;;  %v1202_v40 = vsel %vm190_vm6, %v1189_v59, %v12481_v13  ;;  %v9832_v53 = vld [vmem:[%s17222_s5 + $0x20] ss:$8 sm:$0xf] }
 0x271   :  { %v1315_v36 = vmul.f32 %v1294_v38, %v1289_v23  ;;  %v1318_v8 = vmul.f32 %v1306_v11, %v1283_v35  ;;  %v1204_v56 = vsel %vm190_vm6, %v12477_v37, %v1189_v59  ;;  %v11487_v41 = vpack.c.bf16 %v1316_v49, %v1312_v42  ;;  %v17246_v23 = vld [vmem:[#allocation15_spill] sm:$0xff] }
 0x272   :  { %v1130_v38 = vrot.slane %v1101_v5, %v11903_v30  ;;  %v1142_v11 = vrot.slane %v1101_v5, %v17245_v6  ;;  %v1230_v19 = vmul.f32 %v1216_v51, %v1204_v56  ;;  %v1231_v3 = vmul.f32 %v1220_v24, %v1202_v40  ;;  %v17247_v40 = vld [vmem:[#allocation18_spill] sm:$0xff] }
 0x273   :  { %v1191_v50 = vpop.permute.xlu0 %1190  ;;  %v1197_v62 = vpop.permute.xlu1 %1196  ;;  %v11486_v18 = vpack.c.bf16 %v1318_v8, %v1314_v46  ;;  %v11488_v34 = vpack.c.bf16 %v1315_v36, %v1311_v0  ;;  %2037 = vmatprep.subr.bf16.mxu0 %v11487_v41  ;;  %v1732_v9 = vrot.slane %v9832_v53, %v11903_v30 }
 0x274   :  { %v1200_v12 = vsel %vm190_vm6, %v12481_v13, %v1197_v62  ;;  %v1206_v47 = vsel %vm190_vm6, %v1197_v62, %v12477_v37  ;;  %v1203_v16 = vsel %vm190_vm6, %v1191_v50, %v12483_v17  ;;  %v1205_v58 = vsel %vm190_vm6, %v12479_v28, %v1191_v50 }
 0x275   :  { %v11489_v13 = vpack.c.bf16 %v1317_v48, %v1313_v32  ;;  %v1229_v52 = vmul.f32 %v1212_v54, %v1206_v47  ;;  %v1232_v63 = vmul.f32 %v1224_v15, %v1200_v12  ;;  %2080 = vmatprep.subr.bf16.mxu1 %v11486_v18  ;;  %v1234_v33 = vmul.f32 %v1216_v51, %v1205_v58 }
 0x276   :  { %v1235_v14 = vmul.f32 %v1220_v24, %v1203_v16  ;;  %2038 = vmatpush1.bf16.msra.mxu0 %v11488_v34  ;;  %v1740_v62 = vrot.slane %v9832_v53, %v11896_v27  ;;  %v17248_v16 = vld [vmem:[#allocation16_spill] sm:$0xff] }
 0x277   :  { %v1199_v10 = vpop.permute.xlu0 %1198  ;;  %v1107_v37 = vpop.permute.xlu1 %1106  ;;  %2081 = vmatpush1.bf16.msra.mxu1 %v11489_v13  ;;  %v11490_v8 = vpack.c.bf16 %v1234_v33, %v1230_v19 }
 0x278   :  { %v1201_v22 = vsel %vm190_vm6, %v12483_v17, %v1199_v10  ;;  %v1207_v61 = vsel %vm190_vm6, %v1199_v10, %v12479_v28  ;;  %v1120_v28 = vsel %vm106_vm7, %v1107_v37, %v12489_v43  ;;  %v1122_v51 = vsel %vm106_vm7, %v12485_v20, %v1107_v37  ;;  %v17249_v37 = vld [vmem:[#allocation19_spill] sm:$0xff] }
 0x279   :  { %v1233_v39 = vmul.f32 %v1212_v54, %v1207_v61  ;;  %v1236_v29 = vmul.f32 %v1224_v15, %v1201_v22  ;;  %v11493_v24 = vpack.c.bf16 %v1235_v14, %v1231_v3  ;;  %v1148_v50 = vmul.f32 %v1134_v21, %v1122_v51  ;;  %2039 = vmatprep.subr.bf16.mxu0 %v11490_v8  ;;  %v17250_v3 = vld [vmem:[#allocation17_spill] sm:$0xff] }
 0x27a   :  { %v1736_v15 = vrot.slane %v9832_v53, %v11905_v31 }
 0x27b   :  { %v1109_v59 = vpop.permute.xlu0 %1108  ;;  %v1115_v17 = vpop.permute.xlu1 %1114  ;;  %v11491_v42 = vpack.c.bf16 %v1236_v29, %v1232_v63  ;;  %v11492_v32 = vpack.c.bf16 %v1233_v39, %v1229_v52 }
 0x27c   :  { %v1118_v0 = vsel %vm106_vm7, %v12489_v43, %v1115_v17  ;;  %v1124_v46 = vsel %vm106_vm7, %v1115_v17, %v12485_v20  ;;  %v1121_v35 = vsel %vm106_vm7, %v1109_v59, %v12491_v57  ;;  %v1123_v49 = vsel %vm106_vm7, %v17246_v23, %v1109_v59 }
 0x27d   :  { %v1147_v48 = vmul.f32 %v1130_v38, %v1124_v46  ;;  %v1150_v36 = vmul.f32 %v1142_v11, %v1118_v0  ;;  %v1149_v43 = vmul.f32 %v1138_v55, %v1120_v28  ;;  %v1152_v5 = vmul.f32 %v1134_v21, %v1123_v49  ;;  %2082 = vmatprep.subr.bf16.mxu1 %v11491_v42 }
 0x27e   :  { %v1153_v18 = vmul.f32 %v1138_v55, %v1121_v35  ;;  %2040 = vmatpush1.bf16.msra.mxu0 %v11492_v32  ;;  %2083 = vmatpush1.bf16.msra.mxu1 %v11493_v24  ;;  %v11237_v35 = vld [vmem:[%s17239_s10] ss:$8 sps:$4 sm:$0xff]   ;;  %s17251_s10 = smov 15  }
 0x27f   :  { %v1117_v54 = vpop.permute.xlu0 %1116  ;;  %v1709_v20 = vpop.permute.xlu1 %1708  ;;  %v11494_v33 = vpack.c.bf16 %v1152_v5, %v1148_v50 }
 0x280   :  { %v1119_v12 = vsel %vm106_vm7, %v12491_v57, %v1117_v54  ;;  %v1125_v47 = vsel %vm106_vm7, %v1117_v54, %v17246_v23  ;;  %v1722_v56 = vsel %vm698_vm8, %v1709_v20, %v17247_v40  ;;  %v1724_v58 = vsel %vm698_vm8, %v17248_v16, %v1709_v20 }
 0x281   :  { %v1151_v41 = vmul.f32 %v1130_v38, %v1125_v47  ;;  %v1154_v34 = vmul.f32 %v1142_v11, %v1119_v12  ;;  %v1744_v57 = vrot.slane %v9832_v53, %v17245_v6  ;;  %v1749_v13 = vmul.f32 %v1732_v9, %v1724_v58  ;;  %2041 = vmatprep.subr.bf16.mxu0 %v11494_v33  ;;  %v2843_v33 = vld [vmem:[%s17253_s1] sm:$0xff] }
 0x282   :  { %v1750_v52 = vmul.f32 %v1736_v15, %v1722_v56  ;;  %v11496_v39 = vpack.c.bf16 %v1153_v18, %v1149_v43 }
 0x283   :  { %v1711_v63 = vpop.permute.xlu0 %1710  ;;  %v1717_v10 = vpop.permute.xlu1 %1716  ;;  %v11495_v14 = vpack.c.bf16 %v1154_v34, %v1150_v36  ;;  %v11497_v29 = vpack.c.bf16 %v1151_v41, %v1147_v48 }
 0x284   :  { %v1723_v19 = vsel %vm698_vm8, %v1711_v63, %v17249_v37  ;;  %v1725_v22 = vsel %vm698_vm8, %v17250_v3, %v1711_v63  ;;  %v1720_v38 = vsel %vm698_vm8, %v17247_v40, %v1717_v10  ;;  %v1726_v11 = vsel %vm698_vm8, %v1717_v10, %v17248_v16 }
 0x285   :  { %v1753_v53 = vmul.f32 %v1732_v9, %v1725_v22  ;;  %v1754_v61 = vmul.f32 %v1736_v15, %v1723_v19  ;;  %v1751_v21 = vmul.f32 %v1740_v62, %v1720_v38  ;;  %v1752_v55 = vmul.f32 %v1744_v57, %v1726_v11  ;;  %2084 = vmatprep.subr.bf16.mxu1 %v11495_v14  ;;  %v11238_v14 = vld [vmem:[%s17254_s25 + $0x4] ss:$8 sps:$4 sm:$0xff]  }
 0x286   :  { %2085 = vmatpush1.bf16.msra.mxu1 %v11496_v39  ;;  %2042 = vmatpush1.bf16.msra.mxu0 %v11497_v29 }
 0x287   :  { %v1719_v59 = vpop.permute.xlu0 %1718  ;;  %v11498_v0 = vpack.c.bf16 %v1754_v61, %v1750_v52  ;;  %v11499_v46 = vpack.c.bf16 %v1753_v53, %v1749_v13 }
 0x288   :  { %v1721_v17 = vsel %vm698_vm8, %v17249_v37, %v1719_v59  ;;  %v1727_v28 = vsel %vm698_vm8, %v1719_v59, %v17250_v3 }
 0x289   :  { %v1755_v51 = vmul.f32 %v1740_v62, %v1721_v17  ;;  %v1756_v9 = vmul.f32 %v1744_v57, %v1727_v28  ;;  %2057 = vmatprep.subr.bf16.mxu0 %v11498_v0 }
 0x28a   :  { %2058 = vmatpush2.bf16.msra.mxu0 %v11499_v46 }
 0x28b   :  { %v11500_v23 = vpack.c.bf16 %v1756_v9, %v1752_v55  ;;  %v11501_v49 = vpack.c.bf16 %v1755_v51, %v1751_v21  ;;  %v2844_v21 = vld [vmem:[%s17253_s1 + $0x8] sm:$0xff]  ;;  %s17288_s1 = smov 1  }
 0x28d   :  { %2100 = vmatprep.subr.bf16.mxu1 %v11500_v23  ;;  %2060 = vmatmul.mubr.bf16.vlgmr.msra.gmra.mxu0 %v11237_v35 }
 0x28e   :  { %2101 = vmatpush2.bf16.msra.mxu1 %v11501_v49  ;;  %9958 = vmatprep.mubr.msk.bf16.mxu0 %vm1003_vm0, %v11238_v14 }
 0x290   :  { %v1828_v48 = vpop.permute.xlu1 %1827 }
 0x291   :  { %2103 = vmatmul.mubr.bf16.vlgmr.msra.gmra.mxu1 %v11237_v35 }
 0x292   :  { %9959 = vmatprep.mubr.msk.bf16.mxu1 %vm1003_vm0, %v11238_v14 }
 0x294   :  { %v1833_v43 = vpop.permute.xlu0 %1832 }
 0x34d   :  { %v2061_v36 = vpop.f32.mrf.mxu0 }
 0x34e   :  { %v2062_v8 = vadd.f32 %v2061_v36, %v1828_v48 }
 0x34f   :  { %v2063_v42 = vpop.f32.mrf.mxu0 }
 0x350   :  { %v12758_v32 = vmax.f32 %v2062_v8, 0.0  ;;  %v2064_v24 = vadd.f32 %v2063_v42, %v1828_v48 }
 0x351   :  { %v2104_v50 = vpop.f32.mrf.mxu1  ;;  %v2065_v54 = vpop.f32.mrf.mxu0 }
 0x352   :  { %v2105_v15 = vadd.f32 %v2104_v50, %v1828_v48  ;;  %v2066_v20 = vadd.f32 %v2065_v54, %v1833_v43  ;;  %2642 = vrot.lane.b32.xlu1 %v12758_v32, %s16971_s27  ;;  %v12764_v56 = vmax.f32 %v2064_v24, 0.0 }
 0x353   :  { %v2106_v62 = vpop.f32.mrf.mxu1  ;;  %v2067_v47 = vpop.f32.mrf.mxu0 }
 0x354   :  { %v12762_v12 = vmax.f32 %v2105_v15, 0.0  ;;  %v2107_v40 = vadd.f32 %v2106_v62, %v1828_v48  ;;  %v12766_v16 = vmax.f32 %v2066_v20, 0.0  ;;  %v2068_v58 = vadd.f32 %v2067_v47, %v1833_v43 }
 0x355   :  { %v2108_v5 = vpop.f32.mrf.mxu1 }
 0x356   :  { %v2109_v18 = vadd.f32 %v2108_v5, %v1833_v43  ;;  %v12768_v41 = vmax.f32 %v2068_v58, 0.0  ;;  %2644 = vrot.lane.b32.xlu0 %v12766_v16, %s16971_s27  ;;  %2650 = vrot.lane.b32.xlu1 %v12762_v12, %s16971_s27  ;;  %v12774_v57 = vmax.f32 %v2107_v40, 0.0  ;;  %v9910_v58 = vld [vmem:[%s17222_s5 + $0x7] ss:$8 sm:$0xf] }
 0x357   :  { %v2110_v34 = vpop.f32.mrf.mxu1  ;;  %v2678_v37 = vrot.slane %v9910_v58, %v11896_v27  ;;  %v2682_v10 = vrot.slane %v9910_v58, %v17245_v6 }
 0x358   :  { %v12776_v13 = vmax.f32 %v2109_v18, 0.0  ;;  %v2111_v52 = vadd.f32 %v2110_v34, %v1833_v43  ;;  %v2670_v18 = vrot.slane %v9910_v58, %v11903_v30  ;;  %v2674_v34 = vrot.slane %v9910_v58, %v11905_v31 }
 0x35a   :  { %v12778_v63 = vmax.f32 %v2111_v52, 0.0  ;;  %2652 = vrot.lane.b32.xlu0 %v12776_v13, %s16971_s27  ;;  %2560 = vrot.lane.b32.xlu1 %v12758_v32, %s16969_s9 }
 0x35e   :  { %2562 = vrot.lane.b32.xlu0 %v12766_v16, %s16969_s9  ;;  %2568 = vrot.lane.b32.xlu1 %v12762_v12, %s16969_s9 }
 0x362   :  { %2570 = vrot.lane.b32.xlu0 %v12776_v13, %s16969_s9  ;;  %2478 = vrot.lane.b32.xlu1 %v12758_v32, %s16954_s28 }
 0x366   :  { %2480 = vrot.lane.b32.xlu0 %v12766_v16, %s16954_s28  ;;  %2486 = vrot.lane.b32.xlu1 %v12762_v12, %s16954_s28 }
 0x36a   :  { %2488 = vrot.lane.b32.xlu0 %v12776_v13, %s16954_s28  ;;  %2368 = vrot.lane.b32.xlu1 %v12758_v32, %s16952_s29 }
 0x36e   :  { %2370 = vrot.lane.b32.xlu0 %v12766_v16, %s16952_s29  ;;  %2376 = vrot.lane.b32.xlu1 %v12762_v12, %s16952_s29 }
 0x372   :  { %2378 = vrot.lane.b32.xlu0 %v12776_v13, %s16952_s29  ;;  %2286 = vrot.lane.b32.xlu1 %v12758_v32, %s17251_s10 }
 0x376   :  { %2288 = vrot.lane.b32.xlu0 %v12766_v16, %s17251_s10  ;;  %2294 = vrot.lane.b32.xlu1 %v12762_v12, %s17251_s10 }
 0x37a   :  { %2296 = vrot.lane.b32.xlu0 %v12776_v13, %s17251_s10  ;;  %2204 = vrot.lane.b32.xlu1 %v12758_v32, %s17252_s8 }
 0x37e   :  { %2206 = vrot.lane.b32.xlu0 %v12766_v16, %s17252_s8  ;;  %2212 = vrot.lane.b32.xlu1 %v12762_v12, %s17252_s8 }
 0x382   :  { %2214 = vrot.lane.b32.xlu0 %v12776_v13, %s17252_s8  ;;  %2122 = vrot.lane.b32.xlu1 %v12758_v32, %s17233_s7 }
 0x386   :  { %2124 = vrot.lane.b32.xlu0 %v12766_v16, %s17233_s7  ;;  %2130 = vrot.lane.b32.xlu1 %v12762_v12, %s17233_s7 }
 0x38a   :  { %2132 = vrot.lane.b32.xlu0 %v12776_v13, %s17233_s7  ;;  %2724 = vrot.lane.b32.xlu1 %v12758_v32, %s16973_s30 }
 0x38e   :  { %2726 = vrot.lane.b32.xlu0 %v12766_v16, %s16973_s30  ;;  %2732 = vrot.lane.b32.xlu1 %v12762_v12, %s16973_s30 }
 0x392   :  { %2734 = vrot.lane.b32.xlu0 %v12776_v13, %s16973_s30  ;;  %2646 = vrot.lane.b32.xlu1 %v12764_v56, %s16971_s27 }
 0x396   :  { %2648 = vrot.lane.b32.xlu0 %v12768_v41, %s16971_s27  ;;  %2654 = vrot.lane.b32.xlu1 %v12774_v57, %s16971_s27 }
 0x39a   :  { %2656 = vrot.lane.b32.xlu0 %v12778_v63, %s16971_s27  ;;  %2564 = vrot.lane.b32.xlu1 %v12764_v56, %s16969_s9 }
 0x39e   :  { %2566 = vrot.lane.b32.xlu0 %v12768_v41, %s16969_s9  ;;  %2572 = vrot.lane.b32.xlu1 %v12774_v57, %s16969_s9 }
 0x3a2   :  { %2574 = vrot.lane.b32.xlu0 %v12778_v63, %s16969_s9  ;;  %2482 = vrot.lane.b32.xlu1 %v12764_v56, %s16954_s28 }
 0x3a6   :  { %2484 = vrot.lane.b32.xlu0 %v12768_v41, %s16954_s28  ;;  %2490 = vrot.lane.b32.xlu1 %v12774_v57, %s16954_s28 }
 0x3aa   :  { %2492 = vrot.lane.b32.xlu0 %v12778_v63, %s16954_s28  ;;  %2372 = vrot.lane.b32.xlu1 %v12764_v56, %s16952_s29  ;;  %s11688_s28 = smov 121  }
 0x3ae   :  { %2374 = vrot.lane.b32.xlu0 %v12768_v41, %s16952_s29  ;;  %2380 = vrot.lane.b32.xlu1 %v12774_v57, %s16952_s29 }
 0x3b2   :  { %2382 = vrot.lane.b32.xlu0 %v12778_v63, %s16952_s29  ;;  %2290 = vrot.lane.b32.xlu1 %v12764_v56, %s17251_s10  ;;  %s11689_s29 = smov 7  }
 0x3b6   :  { %2292 = vrot.lane.b32.xlu0 %v12768_v41, %s17251_s10  ;;  %2298 = vrot.lane.b32.xlu1 %v12774_v57, %s17251_s10 }
 0x3ba   :  { %2300 = vrot.lane.b32.xlu0 %v12778_v63, %s17251_s10  ;;  %2208 = vrot.lane.b32.xlu1 %v12764_v56, %s17252_s8 }
 0x3be   :  { %2210 = vrot.lane.b32.xlu0 %v12768_v41, %s17252_s8  ;;  %2216 = vrot.lane.b32.xlu1 %v12774_v57, %s17252_s8 }
 0x3c2   :  { %2218 = vrot.lane.b32.xlu0 %v12778_v63, %s17252_s8  ;;  %2126 = vrot.lane.b32.xlu1 %v12764_v56, %s17233_s7 }
 0x3c4   :  { %v12896_v22 = vpop.permute.xlu1 %2642 }
 0x3c6   :  { %2128 = vrot.lane.b32.xlu0 %v12768_v41, %s17233_s7  ;;  %2134 = vrot.lane.b32.xlu1 %v12774_v57, %s17233_s7 }
 0x3c8   :  { %v12902_v38 = vpop.permute.xlu0 %2644  ;;  %v2651_v11 = vpop.permute.xlu1 %2650 }
 0x3ca   :  { %2136 = vrot.lane.b32.xlu0 %v12778_v63, %s17233_s7  ;;  %2728 = vrot.lane.b32.xlu1 %v12764_v56, %s16973_s30 }
 0x3cc   :  { %v12908_v53 = vpop.permute.xlu0 %2652  ;;  %v12910_v61 = vpop.permute.xlu1 %2560 }
 0x3ce   :  { %2730 = vrot.lane.b32.xlu0 %v12768_v41, %s16973_s30  ;;  %2736 = vrot.lane.b32.xlu1 %v12774_v57, %s16973_s30 }
 0x3d0   :  { %v12922_v39 = vpop.permute.xlu0 %2562  ;;  %v12924_v29 = vpop.permute.xlu1 %2568 }
 0x3d2   :  { %2738 = vrot.lane.b32.xlu0 %v12778_v63, %s16973_s30  ;;  %2847 = vperm.xlu1 %11227, %v2843_v33  }
 0x3d4   :  { %v12933_v55 = vpop.permute.xlu0 %2570  ;;  %v12935_v59 = vpop.permute.xlu1 %2478 }
 0x3d6   :  { %2852 = vperm.xlu0 %11226, %v2844_v21  }
 0x3d8   :  { %v12937_v17 = vpop.permute.xlu0 %2480  ;;  %v12939_v28 = vpop.permute.xlu1 %2486 }
 0x3dc   :  { %v12941_v51 = vpop.permute.xlu0 %2488  ;;  %v12943_v9 = vpop.permute.xlu1 %2368 }
 0x3e0   :  { %v12945_v0 = vpop.permute.xlu0 %2370  ;;  %v12947_v46 = vpop.permute.xlu1 %2376 }
 0x3e4   :  { %v12949_v35 = vpop.permute.xlu0 %2378  ;;  %v12951_v23 = vpop.permute.xlu1 %2286 }
 0x3e8   :  { %v12953_v49 = vpop.permute.xlu0 %2288  ;;  %v12955_v48 = vpop.permute.xlu1 %2294 }
 0x3ec   :  { %v12957_v36 = vpop.permute.xlu0 %2296  ;;  %v12959_v8 = vpop.permute.xlu1 %2204 }
 0x3f0   :  { %v12961_v42 = vpop.permute.xlu0 %2206  ;;  %v12963_v24 = vpop.permute.xlu1 %2212 }
 0x3f4   :  { %v12965_v50 = vpop.permute.xlu0 %2214  ;;  %v12967_v43 = vpop.permute.xlu1 %2122 }
 0x3f8   :  { %v12969_v54 = vpop.permute.xlu0 %2124  ;;  %v12971_v15 = vpop.permute.xlu1 %2130 }
 0x3f9   :  { %17255 = vst [vmem:[#allocation15_spill] sm:$0xff] %v12969_v54 }
 0x3fc   :  { %v12973_v20 = vpop.permute.xlu0 %2132  ;;  %v12975_v62 = vpop.permute.xlu1 %2724 }
 0x3fd   :  { %17256 = vst [vmem:[#allocation18_spill] sm:$0xff] %v12975_v62 }
 0x400   :  { %v12977_v47 = vpop.permute.xlu0 %2726  ;;  %v12979_v40 = vpop.permute.xlu1 %2732 }
 0x401   :  { %17257 = vst [vmem:[#allocation16_spill] sm:$0xff] %v12977_v47  ;;  %17258 = vst [vmem:[#allocation19_spill] sm:$0xff] %v12979_v40 }
 0x404   :  { %v12984_v5 = vpop.permute.xlu0 %2734  ;;  %v2647_v52 = vpop.permute.xlu1 %2646 }
 0x405   :  { %17259 = vst [vmem:[#allocation17_spill] sm:$0xff] %v12984_v5  ;;  %v2660_v33 = vsel %vm614_vm1, %v2647_v52, %v2651_v11  ;;  %v2662_v14 = vsel %vm614_vm1, %v12896_v22, %v2647_v52 }
 0x406   :  { %v2687_v21 = vmul.f32 %v2670_v18, %v2662_v14  ;;  %v2688_v3 = vmul.f32 %v2674_v34, %v2660_v33 }
 0x408   :  { %v2649_v19 = vpop.permute.xlu0 %2648  ;;  %v2655_v1 = vpop.permute.xlu1 %2654 }
 0x409   :  { %v2661_v4 = vsel %vm614_vm1, %v2649_v19, %v12908_v53  ;;  %v2663_v52 = vsel %vm614_vm1, %v12902_v38, %v2649_v19  ;;  %v2658_v33 = vsel %vm614_vm1, %v2651_v11, %v2655_v1  ;;  %v2664_v58 = vsel %vm614_vm1, %v2655_v1, %v12896_v22 }
 0x40a   :  { %v2691_v14 = vmul.f32 %v2670_v18, %v2663_v52  ;;  %v2692_v25 = vmul.f32 %v2674_v34, %v2661_v4  ;;  %v2689_v2 = vmul.f32 %v2678_v37, %v2658_v33  ;;  %v2690_v60 = vmul.f32 %v2682_v10, %v2664_v58 }
 0x40b   :  { %v2596_v34 = vrot.slane %v9905_v7, %v11896_v27  ;;  %v2600_v52 = vrot.slane %v9905_v7, %v17245_v6 }
 0x40c   :  { %v2657_v47 = vpop.permute.xlu0 %2656  ;;  %v2565_v5 = vpop.permute.xlu1 %2564  ;;  %v11506_v33 = vpack.c.bf16 %v2692_v25, %v2688_v3 }
 0x40d   :  { %v2659_v19 = vsel %vm614_vm1, %v12908_v53, %v2657_v47  ;;  %v2665_v11 = vsel %vm614_vm1, %v2657_v47, %v12902_v38  ;;  %v2578_v4 = vsel %vm530_vm2, %v2565_v5, %v12924_v29  ;;  %v2580_v1 = vsel %vm530_vm2, %v12910_v61, %v2565_v5  ;;  %v9900_v47 = vld [vmem:[%s17222_s5 + $0x5] ss:$8 sm:$0xf] }
 0x40e   :  { %v2693_v22 = vmul.f32 %v2678_v37, %v2659_v19  ;;  %v2694_v18 = vmul.f32 %v2682_v10, %v2665_v11  ;;  %v11507_v53 = vpack.c.bf16 %v2691_v14, %v2687_v21  ;;  %v2605_v58 = vmul.f32 %v2588_v45, %v2580_v1  ;;  %3047 = vmatprep.subr.bf16.mxu0 %v11506_v33 }
 0x40f   :  { %v2606_v62 = vmul.f32 %v2592_v44, %v2578_v4  ;;  %v2506_v21 = vrot.slane %v9900_v47, %v11903_v30  ;;  %v2510_v14 = vrot.slane %v9900_v47, %v11905_v31 }
 0x410   :  { %v2567_v40 = vpop.permute.xlu0 %2566  ;;  %v2573_v38 = vpop.permute.xlu1 %2572  ;;  %3048 = vmatpush1.bf16.msra.mxu0 %v11507_v53  ;;  %v11508_v19 = vpack.c.bf16 %v2694_v18, %v2690_v60  ;;  %v11509_v11 = vpack.c.bf16 %v2693_v22, %v2689_v2 }
 0x411   :  { %v2579_v5 = vsel %vm530_vm2, %v2567_v40, %v12933_v55  ;;  %v2581_v10 = vsel %vm530_vm2, %v12922_v39, %v2567_v40  ;;  %v2576_v7 = vsel %vm530_vm2, %v12924_v29, %v2573_v38  ;;  %v2582_v25 = vsel %vm530_vm2, %v2573_v38, %v12910_v61 }
 0x412   :  { %v2609_v37 = vmul.f32 %v2588_v45, %v2581_v10  ;;  %v2610_v3 = vmul.f32 %v2592_v44, %v2579_v5  ;;  %v2607_v4 = vmul.f32 %v2596_v34, %v2576_v7  ;;  %v2608_v40 = vmul.f32 %v2600_v52, %v2582_v25  ;;  %3090 = vmatprep.subr.bf16.mxu1 %v11508_v19 }
 0x413   :  { %3091 = vmatpush1.bf16.msra.mxu1 %v11509_v11  ;;  %v2514_v38 = vrot.slane %v9900_v47, %v11896_v27 }
 0x414   :  { %v2575_v1 = vpop.permute.xlu0 %2574  ;;  %v2483_v54 = vpop.permute.xlu1 %2482  ;;  %v11510_v22 = vpack.c.bf16 %v2610_v3, %v2606_v62  ;;  %v11511_v18 = vpack.c.bf16 %v2609_v37, %v2605_v58 }
 0x415   :  { %v2577_v29 = vsel %vm530_vm2, %v12933_v55, %v2575_v1  ;;  %v2583_v45 = vsel %vm530_vm2, %v2575_v1, %v12922_v39  ;;  %v2496_v44 = vsel %vm446_vm3, %v2483_v54, %v12939_v28  ;;  %v2498_v60 = vsel %vm446_vm3, %v12935_v59, %v2483_v54 }
 0x416   :  { %v2611_v2 = vmul.f32 %v2596_v34, %v2577_v29  ;;  %v2612_v61 = vmul.f32 %v2600_v52, %v2583_v45  ;;  %v2523_v33 = vmul.f32 %v2506_v21, %v2498_v60  ;;  %v2524_v55 = vmul.f32 %v2510_v14, %v2496_v44  ;;  %3049 = vmatprep.subr.bf16.mxu0 %v11510_v22 }
 0x417   :  { %v2518_v34 = vrot.slane %v9900_v47, %v17245_v6  ;;  %3050 = vmatpush1.bf16.msra.mxu0 %v11511_v18  ;;  %v17260_v18 = vpack.c.bf16 %v12768_v41, %v12764_v56  ;;  %v9886_v41 = vld [vmem:[%s17222_s5 + $0x2] ss:$8 sm:$0xf] }
 0x418   :  { %v2485_v53 = vpop.permute.xlu0 %2484  ;;  %v2491_v39 = vpop.permute.xlu1 %2490  ;;  %v11512_v7 = vpack.c.bf16 %v2612_v61, %v2608_v40  ;;  %v11513_v25 = vpack.c.bf16 %v2611_v2, %v2607_v4 }
 0x419   :  { %v2497_v5 = vsel %vm446_vm3, %v2485_v53, %v12941_v51  ;;  %v2499_v54 = vsel %vm446_vm3, %v12937_v17, %v2485_v53  ;;  %v2494_v58 = vsel %vm446_vm3, %v12939_v28, %v2491_v39  ;;  %v2500_v10 = vsel %vm446_vm3, %v2491_v39, %v12935_v59  ;;  %v9891_v59 = vld [vmem:[%s17222_s5 + $0x3] ss:$8 sm:$0xf] }
 0x41a   :  { %v2527_v52 = vmul.f32 %v2506_v21, %v2499_v54  ;;  %v2528_v62 = vmul.f32 %v2510_v14, %v2497_v5  ;;  %v2525_v19 = vmul.f32 %v2514_v38, %v2494_v58  ;;  %v2526_v11 = vmul.f32 %v2518_v34, %v2500_v10  ;;  %3092 = vmatprep.subr.bf16.mxu1 %v11512_v7 }
 0x41b   :  { %3093 = vmatpush1.bf16.msra.mxu1 %v11513_v25  ;;  %v2396_v45 = vrot.slane %v9891_v59, %v11903_v30  ;;  %v2400_v44 = vrot.slane %v9891_v59, %v11905_v31  ;;  %v17261_v10 = vpack.c.bf16 %v12766_v16, %v12758_v32  ;;  %v9881_v32 = vld [vmem:[%s17222_s5 + $0x1] ss:$8 sm:$0xf] }
 0x41c   :  { %v2493_v37 = vpop.permute.xlu0 %2492  ;;  %v2373_v3 = vpop.permute.xlu1 %2372  ;;  %v11514_v4 = vpack.c.bf16 %v2528_v62, %v2524_v55  ;;  %v11515_v40 = vpack.c.bf16 %v2527_v52, %v2523_v33 }
 0x41d   :  { %v2495_v47 = vsel %vm446_vm3, %v12941_v51, %v2493_v37  ;;  %v2501_v21 = vsel %vm446_vm3, %v2493_v37, %v12937_v17  ;;  %v2408_v51 = vrot.slane %v9891_v59, %v17245_v6  ;;  %v2404_v17 = vrot.slane %v9891_v59, %v11896_v27 }
 0x41e   :  { %v2529_v28 = vmul.f32 %v2514_v38, %v2495_v47  ;;  %v2530_v14 = vmul.f32 %v2518_v34, %v2501_v21  ;;  %3051 = vmatprep.subr.bf16.mxu0 %v11514_v4  ;;  %v2386_v53 = vsel %vm358_vm4, %v2373_v3, %v12947_v46  ;;  %v2388_v38 = vsel %vm358_vm4, %v12943_v9, %v2373_v3 }
 0x41f   :  { %3052 = vmatpush1.bf16.msra.mxu0 %v11515_v40  ;;  %v2414_v7 = vmul.f32 %v2400_v44, %v2388_v38  ;;  %v2415_v25 = vmul.f32 %v2404_v17, %v2386_v53  ;;  %v2326_v47 = vrot.slane %v9886_v41, %v17245_v6  ;;  %v2232_v53 = vrot.slane %v9881_v32, %v11903_v30 }
 0x420   :  { %v2375_v1 = vpop.permute.xlu0 %2374  ;;  %v2381_v29 = vpop.permute.xlu1 %2380  ;;  %3053 = vmatprep.subr.bf16.mxu0 %v17260_v18  ;;  %v11516_v33 = vpack.c.bf16 %v2530_v14, %v2526_v11  ;;  %v11517_v55 = vpack.c.bf16 %v2529_v28, %v2525_v19  ;;  %v17262_v19 = vpack.c.bf16 %v12778_v63, %v12774_v57  ;;  %v2314_v11 = vrot.slane %v9886_v41, %v11903_v30 }
 0x421   :  { %v2384_v60 = vsel %vm358_vm4, %v12947_v46, %v2381_v29  ;;  %v2390_v2 = vsel %vm358_vm4, %v2381_v29, %v12943_v9  ;;  %v2387_v61 = vsel %vm358_vm4, %v2375_v1, %v12949_v35  ;;  %v2389_v22 = vsel %vm358_vm4, %v12945_v0, %v2375_v1 }
 0x422   :  { %v2413_v54 = vmul.f32 %v2396_v45, %v2390_v2  ;;  %v2416_v34 = vmul.f32 %v2408_v51, %v2384_v60  ;;  %3094 = vmatprep.subr.bf16.mxu1 %v11516_v33  ;;  %v2418_v46 = vmul.f32 %v2400_v44, %v2389_v22  ;;  %v2419_v62 = vmul.f32 %v2404_v17, %v2387_v61 }
 0x423   :  { %3054 = vmatpush1.bf16.msra.mxu0 %v17261_v10  ;;  %3095 = vmatpush1.bf16.msra.mxu1 %v11517_v55  ;;  %v17263_v28 = vpack.c.bf16 %v12776_v13, %v12762_v12  ;;  %v2240_v33 = vrot.slane %v9881_v32, %v11896_v27 }
 0x424   :  { %v2383_v39 = vpop.permute.xlu0 %2382  ;;  %v2291_v5 = vpop.permute.xlu1 %2290  ;;  %3096 = vmatprep.subr.bf16.mxu1 %v17262_v19  ;;  %v11519_v59 = vpack.c.bf16 %v2418_v46, %v2414_v7  ;;  %v11521_v40 = vpack.c.bf16 %v2419_v62, %v2415_v25 }
 0x425   :  { %v2385_v52 = vsel %vm358_vm4, %v12949_v35, %v2383_v39  ;;  %v2391_v56 = vsel %vm358_vm4, %v2383_v39, %v12945_v0  ;;  %v2318_v35 = vrot.slane %v9886_v41, %v11905_v31  ;;  %v2322_v0 = vrot.slane %v9886_v41, %v11896_v27 }
 0x426   :  { %v2417_v9 = vmul.f32 %v2396_v45, %v2391_v56  ;;  %v2420_v58 = vmul.f32 %v2408_v51, %v2385_v52  ;;  %v2304_v1 = vsel %vm274_vm5, %v2291_v5, %v12955_v48  ;;  %v2306_v29 = vsel %vm274_vm5, %v12951_v23, %v2291_v5  ;;  %3055 = vmatprep.subr.bf16.mxu0 %v11519_v59  ;;  %v2121_v56 = vld [vmem:[%s17222_s5] ss:$8 sm:$0xf] }
 0x427   :  { %3097 = vmatpush1.bf16.msra.mxu1 %v17263_v28  ;;  %v2236_v51 = vrot.slane %v9881_v32, %v11905_v31  ;;  %v2333_v18 = vmul.f32 %v2322_v0, %v2304_v1  ;;  %v2150_v7 = vrot.slane %v2121_v56, %v11903_v30  ;;  %v2162_v25 = vrot.slane %v2121_v56, %v17245_v6  ;;  %v17264_v1 = vld [vmem:[#allocation15_spill] sm:$0xff] }
 0x428   :  { %v2293_v37 = vpop.permute.xlu0 %2292  ;;  %v2299_v3 = vpop.permute.xlu1 %2298  ;;  %v11518_v14 = vpack.c.bf16 %v2420_v58, %v2416_v34  ;;  %v11520_v4 = vpack.c.bf16 %v2417_v9, %v2413_v54 }
 0x429   :  { %v2305_v16 = vsel %vm274_vm5, %v2293_v37, %v12957_v36  ;;  %v2307_v21 = vsel %vm274_vm5, %v12953_v49, %v2293_v37  ;;  %v2302_v57 = vsel %vm274_vm5, %v12955_v48, %v2299_v3  ;;  %v2308_v63 = vsel %vm274_vm5, %v2299_v3, %v12951_v23 }
 0x42a   :  { %v2331_v17 = vmul.f32 %v2314_v11, %v2308_v63  ;;  %v2334_v60 = vmul.f32 %v2326_v47, %v2302_v57  ;;  %3098 = vmatprep.subr.bf16.mxu1 %v11518_v14  ;;  %v2336_v48 = vmul.f32 %v2318_v35, %v2307_v21  ;;  %v2337_v2 = vmul.f32 %v2322_v0, %v2305_v16 }
 0x42b   :  { %v2332_v23 = vmul.f32 %v2318_v35, %v2306_v29  ;;  %3056 = vmatpush1.bf16.msra.mxu0 %v11520_v4  ;;  %3099 = vmatpush1.bf16.msra.mxu1 %v11521_v40  ;;  %v9915_v35 = vld [vmem:[%s17222_s5 + $0x20] ss:$8 sm:$0xf]  ;;  %v2154_v21 = vrot.slane %v2121_v56, %v11905_v31  ;;  %v2158_v57 = vrot.slane %v2121_v56, %v11896_v27 }
 0x42c   :  { %v2301_v45 = vpop.permute.xlu0 %2300  ;;  %v2209_v44 = vpop.permute.xlu1 %2208  ;;  %v2752_v63 = vrot.slane %v9915_v35, %v11903_v30  ;;  %v17267_v56 = vld [vmem:[#allocation17_spill] sm:$0xff] }
 0x42d   :  { %v2303_v12 = vsel %vm274_vm5, %v12957_v36, %v2301_v45  ;;  %v2309_v13 = vsel %vm274_vm5, %v2301_v45, %v12953_v49  ;;  %v2244_v36 = vrot.slane %v9881_v32, %v17245_v6  ;;  %v2222_v5 = vsel %vm190_vm6, %v2209_v44, %v12963_v24 }
 0x42e   :  { %v2335_v61 = vmul.f32 %v2314_v11, %v2309_v13  ;;  %v2338_v22 = vmul.f32 %v2326_v47, %v2303_v12  ;;  %v2224_v54 = vsel %vm190_vm6, %v12959_v8, %v2209_v44  ;;  %v11523_v46 = vpack.c.bf16 %v2336_v48, %v2332_v23 }
 0x42f   :  { %v2250_v0 = vmul.f32 %v2236_v51, %v2224_v54  ;;  %v2251_v37 = vmul.f32 %v2240_v33, %v2222_v5 }
 0x430   :  { %v2211_v55 = vpop.permute.xlu0 %2210  ;;  %v2217_v38 = vpop.permute.xlu1 %2216  ;;  %v11522_v41 = vpack.c.bf16 %v2338_v22, %v2334_v60  ;;  %v11524_v62 = vpack.c.bf16 %v2335_v61, %v2331_v17  ;;  %3057 = vmatprep.subr.bf16.mxu0 %v11523_v46  ;;  %v2760_v61 = vrot.slane %v9915_v35, %v11896_v27  ;;  %v17268_v46 = vld [vmem:[#allocation16_spill] sm:$0xff] }
 0x431   :  { %v2220_v49 = vsel %vm190_vm6, %v12963_v24, %v2217_v38  ;;  %v2226_v39 = vsel %vm190_vm6, %v2217_v38, %v12959_v8  ;;  %v2223_v34 = vsel %vm190_vm6, %v2211_v55, %v12965_v50  ;;  %v2225_v52 = vsel %vm190_vm6, %v12961_v42, %v2211_v55  ;;  %v17266_v55 = vld [vmem:[#allocation18_spill] sm:$0xff] }
 0x432   :  { %v11525_v24 = vpack.c.bf16 %v2337_v2, %v2333_v18  ;;  %v2249_v9 = vmul.f32 %v2232_v53, %v2226_v39  ;;  %v2252_v58 = vmul.f32 %v2244_v36, %v2220_v49  ;;  %3100 = vmatprep.subr.bf16.mxu1 %v11522_v41  ;;  %v2254_v11 = vmul.f32 %v2236_v51, %v2225_v52  ;;  %v17265_v18 = vld [vmem:[#allocation19_spill] sm:$0xff] }
 0x433   :  { %v2255_v47 = vmul.f32 %v2240_v33, %v2223_v34  ;;  %3058 = vmatpush1.bf16.msra.mxu0 %v11524_v62  ;;  %v2756_v2 = vrot.slane %v9915_v35, %v11905_v31 }
 0x434   :  { %v2219_v10 = vpop.permute.xlu0 %2218  ;;  %v2127_v8 = vpop.permute.xlu1 %2126  ;;  %3101 = vmatpush1.bf16.msra.mxu1 %v11525_v24  ;;  %v11526_v44 = vpack.c.bf16 %v2254_v11, %v2250_v0 }
 0x435   :  { %v2221_v3 = vsel %vm190_vm6, %v12965_v50, %v2219_v10  ;;  %v2227_v19 = vsel %vm190_vm6, %v2219_v10, %v12961_v42  ;;  %v2140_v42 = vsel %vm106_vm7, %v2127_v8, %v12971_v15  ;;  %v2142_v14 = vsel %vm106_vm7, %v12967_v43, %v2127_v8 }
 0x436   :  { %v2253_v32 = vmul.f32 %v2232_v53, %v2227_v19  ;;  %v2256_v16 = vmul.f32 %v2244_v36, %v2221_v3  ;;  %v11529_v12 = vpack.c.bf16 %v2255_v47, %v2251_v37  ;;  %v2168_v13 = vmul.f32 %v2154_v21, %v2142_v14  ;;  %3059 = vmatprep.subr.bf16.mxu0 %v11526_v44 }
 0x438   :  { %v2129_v28 = vpop.permute.xlu0 %2128  ;;  %v2135_v50 = vpop.permute.xlu1 %2134  ;;  %v11527_v17 = vpack.c.bf16 %v2256_v16, %v2252_v58  ;;  %v11528_v60 = vpack.c.bf16 %v2253_v32, %v2249_v9 }
 0x439   :  { %v2138_v59 = vsel %vm106_vm7, %v12971_v15, %v2135_v50  ;;  %v2144_v4 = vsel %vm106_vm7, %v2135_v50, %v12967_v43  ;;  %v2141_v40 = vsel %vm106_vm7, %v2129_v28, %v12973_v20  ;;  %v2143_v29 = vsel %vm106_vm7, %v17264_v1, %v2129_v28 }
 0x43a   :  { %v2167_v45 = vmul.f32 %v2150_v7, %v2144_v4  ;;  %v2170_v51 = vmul.f32 %v2162_v25, %v2138_v59  ;;  %v2169_v15 = vmul.f32 %v2158_v57, %v2140_v42  ;;  %v2172_v36 = vmul.f32 %v2154_v21, %v2143_v29  ;;  %3102 = vmatprep.subr.bf16.mxu1 %v11527_v17  ;;  %v17269_v4 = vld [vmem:[#allocation7_spill] sm:$0xff] }
 0x43b   :  { %v2173_v38 = vmul.f32 %v2158_v57, %v2141_v40  ;;  %3060 = vmatpush1.bf16.msra.mxu0 %v11528_v60  ;;  %3103 = vmatpush1.bf16.msra.mxu1 %v11529_v12  ;;  %v11240_v57 = vld [vmem:[%s17254_s25] ss:$8 sps:$4 sm:$0xff]   ;;  %s17287_s25 = smov 127  }
 0x43c   :  { %v2137_v48 = vpop.permute.xlu0 %2136  ;;  %v2729_v43 = vpop.permute.xlu1 %2728  ;;  %v11530_v8 = vpack.c.bf16 %v2172_v36, %v2168_v13  ;;  %v17271_v60 = vld [vmem:[#allocation11_spill] sm:$0xff]  ;;  %v17276_v36 = vld [vmem:[#allocation12_spill] sm:$0xff] }
 0x43d   :  { %v2139_v22 = vsel %vm106_vm7, %v12973_v20, %v2137_v48  ;;  %v2145_v23 = vsel %vm106_vm7, %v2137_v48, %v17264_v1  ;;  %v2742_v33 = vsel %vm698_vm8, %v2729_v43, %v17265_v18  ;;  %v2744_v53 = vsel %vm698_vm8, %v17266_v55, %v2729_v43  ;;  %v17272_v48 = vld [vmem:[#allocation8_spill] sm:$0xff] }
 0x43e   :  { %v2171_v49 = vmul.f32 %v2150_v7, %v2145_v23  ;;  %v2174_v39 = vmul.f32 %v2162_v25, %v2139_v22  ;;  %v2764_v20 = vrot.slane %v9915_v35, %v17245_v6  ;;  %v2769_v5 = vmul.f32 %v2752_v63, %v2744_v53  ;;  %3061 = vmatprep.subr.bf16.mxu0 %v11530_v8  ;;  %v17274_v23 = vld [vmem:[#allocation9_spill] sm:$0xff] }
 0x43f   :  { %v2770_v54 = vmul.f32 %v2756_v2, %v2742_v33  ;;  %v11532_v25 = vpack.c.bf16 %v2173_v38, %v2169_v15 }
 0x440   :  { %v2731_v34 = vpop.permute.xlu0 %2730  ;;  %v2737_v52 = vpop.permute.xlu1 %2736  ;;  %v11531_v7 = vpack.c.bf16 %v2174_v39, %v2170_v51  ;;  %v11533_v35 = vpack.c.bf16 %v2171_v49, %v2167_v45 }
 0x441   :  { %v2743_v41 = vsel %vm698_vm8, %v2731_v34, %v17267_v56  ;;  %v2745_v62 = vsel %vm698_vm8, %v17268_v46, %v2731_v34  ;;  %v2740_v24 = vsel %vm698_vm8, %v17265_v18, %v2737_v52  ;;  %v2746_v9 = vsel %vm698_vm8, %v2737_v52, %v17266_v55 }
 0x442   :  { %v2773_v58 = vmul.f32 %v2752_v63, %v2745_v62  ;;  %v2774_v10 = vmul.f32 %v2756_v2, %v2743_v41  ;;  %v2771_v0 = vmul.f32 %v2760_v61, %v2740_v24  ;;  %v2772_v37 = vmul.f32 %v2764_v20, %v2746_v9  ;;  %3104 = vmatprep.subr.bf16.mxu1 %v11531_v7  ;;  %v17284_v9 = vld [vmem:[#allocation14_spill] sm:$0xff] }
 0x443   :  { %3105 = vmatpush1.bf16.msra.mxu1 %v11532_v25  ;;  %3062 = vmatpush1.bf16.msra.mxu0 %v11533_v35 }
 0x444   :  { %v2739_v3 = vpop.permute.xlu0 %2738  ;;  %v11534_v16 = vpack.c.bf16 %v2774_v10, %v2770_v54  ;;  %v11535_v21 = vpack.c.bf16 %v2773_v58, %v2769_v5  ;;  %v17279_v5 = vld [vmem:[#allocation13_spill] sm:$0xff] }
 0x445   :  { %v2741_v19 = vsel %vm698_vm8, %v17267_v56, %v2739_v3  ;;  %v2747_v11 = vsel %vm698_vm8, %v2739_v3, %v17268_v46  ;;  %v17281_v56 = vld [vmem:[#allocation10_spill] sm:$0xff] }
 0x446   :  { %v2775_v47 = vmul.f32 %v2760_v61, %v2741_v19  ;;  %v2776_v32 = vmul.f32 %v2764_v20, %v2747_v11  ;;  %3077 = vmatprep.subr.bf16.mxu0 %v11534_v16 }
 0x447   :  { %3078 = vmatpush2.bf16.msra.mxu0 %v11535_v21 }
 0x448   :  { %v11536_v63 = vpack.c.bf16 %v2776_v32, %v2772_v37  ;;  %v11537_v28 = vpack.c.bf16 %v2775_v47, %v2771_v0  ;;  %v3873_v32 = vld [vmem:[%s16913_s12] sm:$0xff] }
 0x44a   :  { %3120 = vmatprep.subr.bf16.mxu1 %v11536_v63  ;;  %3080 = vmatmul.mubr.bf16.vlgmr.msra.gmra.mxu0 %v11240_v57  ;;  %v3875_v63 = vld [vmem:[%s16913_s12 + $0x10] sm:$0xff] }
 0x44b   :  { %3121 = vmatpush2.bf16.msra.mxu1 %v11537_v28 }
 0x44d   :  { %v2848_v50 = vpop.permute.xlu1 %2847 }
 0x44e   :  { %3123 = vmatmul.mubr.bf16.vlgmr.msra.gmra.mxu1 %v11240_v57  ;;  %v3874_v57 = vld [vmem:[%s16913_s12 + $0x8] sm:$0xff] }
 0x451   :  { %v2853_v45 = vpop.permute.xlu0 %2852 }
 0x50a   :  { %v3081_v42 = vpop.f32.mrf.mxu0 }
 0x50b   :  { %v3082_v14 = vadd.f32 %v3081_v42, %v2848_v50  ;;  %v3876_v42 = vld [vmem:[%s16913_s12 + $0x18] sm:$0xff]  ;;  %s17095_s12 = smov 8  }
 0x50c   :  { %v3083_v59 = vpop.f32.mrf.mxu0 }
 0x50d   :  { %v3133_v40 = vadd.f32 %v3082_v14, %v17269_v4  ;;  %v3084_v1 = vadd.f32 %v3083_v59, %v2848_v50  ;;  %v11241_v4 = vld [vmem:[%s16914_s11 + $0x4] ss:$8 sps:$4 sm:$0xff]  }
 0x50e   :  { %v3124_v29 = vpop.f32.mrf.mxu1  ;;  %v3085_v51 = vpop.f32.mrf.mxu0  ;;  %10043 = vmatprep.mubr.msk.bf16.mxu0 %vm1003_vm0, %v11241_v4  ;;  %10045 = vmatprep.mubr.msk.bf16.mxu1 %vm1003_vm0, %v11241_v4 }
 0x50f   :  { %v3125_v44 = vadd.f32 %v3124_v29, %v2848_v50  ;;  %v13245_v17 = vmax.f32 %v3133_v40, 0.0  ;;  %v3134_v12 = vadd.f32 %v3084_v1, %v17271_v60  ;;  %v3086_v13 = vadd.f32 %v3085_v51, %v2853_v45 }
 0x510   :  { %v3126_v15 = vpop.f32.mrf.mxu1  ;;  %v3087_v43 = vpop.f32.mrf.mxu0 }
 0x511   :  { %17270 = vst [vmem:[#allocation15_spill] sm:$0xff] %v13245_v17  ;;  %v3135_v2 = vadd.f32 %v3125_v44, %v17272_v48  ;;  %v3127_v61 = vadd.f32 %v3126_v15, %v2848_v50  ;;  %v13249_v22 = vmax.f32 %v3134_v12, 0.0  ;;  %v3137_v18 = vadd.f32 %v3086_v13, %v17274_v23  ;;  %3670 = vrot.lane.b32.xlu1 %v13245_v17, %s16971_s27 }
 0x512   :  { %v3088_v33 = vadd.f32 %v3087_v43, %v2853_v45  ;;  %v3128_v55 = vpop.f32.mrf.mxu1  ;;  %v9993_v43 = vld [vmem:[%s17222_s5 + $0x7] ss:$8 sm:$0xf] }
 0x513   :  { %17273 = vst [vmem:[#allocation19_spill] sm:$0xff] %v13249_v22  ;;  %v13254_v53 = vmax.f32 %v3135_v2, 0.0  ;;  %v3136_v38 = vadd.f32 %v3127_v61, %v17276_v36  ;;  %v3129_v49 = vadd.f32 %v3128_v55, %v2853_v45  ;;  %v13259_v39 = vpack.c.bf16 %v13249_v22, %v13245_v17  ;;  %v10464_v61 = vld [vmem:[%s17222_s5 + $0x7] ss:$8 sm:$0xf] }
 0x514   :  { %v13261_v20 = vmax.f32 %v3137_v18, 0.0  ;;  %v3138_v54 = vadd.f32 %v3088_v33, %v17279_v5  ;;  %v3130_v34 = vpop.f32.mrf.mxu1  ;;  %v9988_v33 = vld [vmem:[%s17222_s5 + $0x6] ss:$8 sm:$0xf] }
 0x515   :  { %17275 = vst [vmem:[#allocation18_spill] sm:$0xff] %v13254_v53  ;;  %17277 = vst [vmem:[#allocation17_spill] sm:$0xff] %v13259_v39  ;;  %v13264_v52 = vmax.f32 %v3136_v38, 0.0  ;;  %v3139_v41 = vadd.f32 %v3129_v49, %v17281_v56  ;;  %v3131_v46 = vadd.f32 %v3130_v34, %v2853_v45  ;;  %3678 = vrot.lane.b32.xlu1 %v13254_v53, %s16971_s27  ;;  %v10455_v55 = vld [vmem:[%s17222_s5 + $0x6] ss:$8 sm:$0xf] }
 0x516   :  { %17278 = vst [vmem:[#allocation16_spill] sm:$0xff] %v13261_v20  ;;  %3501 = vst [vmem:[#allocation2 + $0x1e0] sm:$0xff] %v13259_v39  ;;  %v13268_v62 = vmax.f32 %v3138_v54, 0.0  ;;  %3672 = vrot.lane.b32.xlu0 %v13261_v20, %s16971_s27  ;;  %v9983_v36 = vld [vmem:[%s17222_s5 + $0x5] ss:$8 sm:$0xf]  ;;  %v13497_v38 = vrot.slane %v9993_v43, %v11903_v30  ;;  %v13541_v4 = vrot.slane %v9988_v33, %v11905_v31 }
 0x517   :  { %17280 = vst [vmem:[#allocation7_spill] sm:$0xff] %v13264_v52  ;;  %v13274_v24 = vmax.f32 %v3139_v41, 0.0  ;;  %v3140_v58 = vadd.f32 %v3131_v46, %v17284_v9  ;;  %v10684_v10 = vpack.c.bf16 %v13264_v52, %v13254_v53  ;;  %v10446_v49 = vld [vmem:[%s17222_s5 + $0x5] ss:$8 sm:$0xf]  ;;  %v13511_v41 = vrot.slane %v9993_v43, %v11905_v31 }
 0x518   :  { %17282 = vst [vmem:[#allocation11_spill] sm:$0xff] %v13268_v62  ;;  %v13281_v8 = vpack.c.bf16 %v13268_v62, %v13261_v20  ;;  %v13514_v46 = vrot.slane %v10464_v61, %v11903_v30  ;;  %v13517_v9 = vrot.slane %v10464_v61, %v11905_v31  ;;  %v13544_v0 = vrot.slane %v10455_v55, %v11903_v30 }
 0x519   :  { %17283 = vst [vmem:[#allocation8_spill] sm:$0xff] %v13274_v24  ;;  %v13283_v7 = vmax.f32 %v3140_v58, 0.0  ;;  %8489 = vst [vmem:[#allocation2 + $0x1f8] sm:$0xff] %v10684_v10  ;;  %3588 = vrot.lane.b32.xlu1 %v13245_v17, %s16969_s9  ;;  %v13520_v58 = vrot.slane %v9993_v43, %v11896_v27  ;;  %v9974_v10 = vld [vmem:[%s17222_s5 + $0x3] ss:$8 sm:$0xf]  ;;  %v13550_v35 = vrot.slane %v9988_v33, %v11896_v27 }
 0x51a   :  { %17285 = vst [vmem:[#allocation9_spill] sm:$0xff] %v13281_v8  ;;  %3503 = vst [vmem:[#allocation2 + $0x160] sm:$0xff] %v13281_v8  ;;  %3680 = vrot.lane.b32.xlu0 %v13274_v24, %s16971_s27  ;;  %v13556_v54 = vrot.slane %v9988_v33, %v17245_v6  ;;  %v13559_v5 = vrot.slane %v10455_v55, %v11896_v27  ;;  %v13562_v8 = vrot.slane %v10455_v55, %v17245_v6 }
 0x51b   :  { %17286 = vst [vmem:[#allocation12_spill] sm:$0xff] %v13283_v7  ;;  %v10686_v25 = vpack.c.bf16 %v13283_v7, %v13274_v24  ;;  %17300 = vst [vmem:[#allocation28_spill] sm:$0xff] %v13514_v46  ;;  %v13565_v39 = vrot.slane %v9983_v36, %v11903_v30 }
 0x51c   :  { %17301 = vst [vmem:[#allocation29_spill] sm:$0xff] %v13517_v9  ;;  %17304 = vst [vmem:[#allocation32_spill] sm:$0xff] %v13544_v0 }
 0x51d   :  { %8491 = vst [vmem:[#allocation2 + $0x1c8] sm:$0xff] %v10686_v25  ;;  %3596 = vrot.lane.b32.xlu1 %v13254_v53, %s16969_s9  ;;  %v13526_v25 = vrot.slane %v9993_v43, %v17245_v6  ;;  %v13547_v43 = vrot.slane %v10455_v55, %v11905_v31  ;;  %17306 = vst [vmem:[#allocation34_spill] sm:$0xff] %v13559_v5  ;;  %v13581_v55 = vrot.slane %v10446_v49, %v11905_v31 }
 0x51e   :  { %3590 = vrot.lane.b32.xlu0 %v13261_v20, %s16969_s9  ;;  %17307 = vst [vmem:[#allocation35_spill] sm:$0xff] %v13562_v8 }
 0x51f   :  { %17305 = vst [vmem:[#allocation33_spill] sm:$0xff] %v13547_v43  ;;  %17311 = vst [vmem:[#allocation39_spill] sm:$0xff] %v13581_v55 }
 0x521   :  { %3506 = vrot.lane.b32.xlu1 %v13245_v17, %s17287_s25 }
 0x522   :  { %3598 = vrot.lane.b32.xlu0 %v13274_v24, %s16969_s9 }
 0x525   :  { %3514 = vrot.lane.b32.xlu1 %v13254_v53, %s17287_s25 }
 0x526   :  { %3508 = vrot.lane.b32.xlu0 %v13261_v20, %s17287_s25 }
 0x529   :  { %3396 = vrot.lane.b32.xlu1 %v13245_v17, %s17288_s1 }
 0x52a   :  { %3516 = vrot.lane.b32.xlu0 %v13274_v24, %s17287_s25 }
 0x52d   :  { %3404 = vrot.lane.b32.xlu1 %v13254_v53, %s17288_s1 }
 0x52e   :  { %3398 = vrot.lane.b32.xlu0 %v13261_v20, %s17288_s1 }
 0x531   :  { %3314 = vrot.lane.b32.xlu1 %v13245_v17, %s17251_s10 }
 0x532   :  { %3406 = vrot.lane.b32.xlu0 %v13274_v24, %s17288_s1 }
 0x535   :  { %3322 = vrot.lane.b32.xlu1 %v13254_v53, %s17251_s10 }
 0x536   :  { %3316 = vrot.lane.b32.xlu0 %v13261_v20, %s17251_s10 }
 0x539   :  { %3232 = vrot.lane.b32.xlu1 %v13245_v17, %s17252_s8 }
 0x53a   :  { %3324 = vrot.lane.b32.xlu0 %v13274_v24, %s17251_s10 }
 0x53d   :  { %3240 = vrot.lane.b32.xlu1 %v13254_v53, %s17252_s8 }
 0x53e   :  { %3234 = vrot.lane.b32.xlu0 %v13261_v20, %s17252_s8 }
 0x541   :  { %3150 = vrot.lane.b32.xlu1 %v13245_v17, %s17233_s7 }
 0x542   :  { %3242 = vrot.lane.b32.xlu0 %v13274_v24, %s17252_s8 }
 0x545   :  { %3158 = vrot.lane.b32.xlu1 %v13254_v53, %s17233_s7 }
 0x546   :  { %3152 = vrot.lane.b32.xlu0 %v13261_v20, %s17233_s7 }
 0x549   :  { %3752 = vrot.lane.b32.xlu1 %v13245_v17, %s16973_s30 }
 0x54a   :  { %3160 = vrot.lane.b32.xlu0 %v13274_v24, %s17233_s7 }
 0x54d   :  { %3760 = vrot.lane.b32.xlu1 %v13254_v53, %s16973_s30  ;;  %v13578_v53 = vrot.slane %v10446_v49, %v11903_v30 }
 0x54e   :  { %3754 = vrot.lane.b32.xlu0 %v13261_v20, %s16973_s30 }
 0x54f   :  { %17310 = vst [vmem:[#allocation38_spill] sm:$0xff] %v13578_v53 }
 0x551   :  { %3674 = vrot.lane.b32.xlu1 %v13249_v22, %s16971_s27 }
 0x552   :  { %3762 = vrot.lane.b32.xlu0 %v13274_v24, %s16973_s30  ;;  %v13584_v24 = vrot.slane %v9983_v36, %v11896_v27 }
 0x555   :  { %3682 = vrot.lane.b32.xlu1 %v13264_v52, %s16971_s27 }
 0x556   :  { %3676 = vrot.lane.b32.xlu0 %v13268_v62, %s16971_s27 }
 0x559   :  { %3592 = vrot.lane.b32.xlu1 %v13249_v22, %s16969_s9 }
 0x55a   :  { %3684 = vrot.lane.b32.xlu0 %v13283_v7, %s16971_s27  ;;  %s11692_s27 = smov 119  }
 0x55d   :  { %3600 = vrot.lane.b32.xlu1 %v13264_v52, %s16969_s9 }
 0x55e   :  { %3594 = vrot.lane.b32.xlu0 %v13268_v62, %s16969_s9 }
 0x561   :  { %3510 = vrot.lane.b32.xlu1 %v13249_v22, %s17287_s25 }
 0x562   :  { %3602 = vrot.lane.b32.xlu0 %v13283_v7, %s16969_s9  ;;  %s17458_s9 = smov 113  }
 0x565   :  { %3518 = vrot.lane.b32.xlu1 %v13264_v52, %s17287_s25 }
 0x566   :  { %3512 = vrot.lane.b32.xlu0 %v13268_v62, %s17287_s25 }
 0x569   :  { %3400 = vrot.lane.b32.xlu1 %v13249_v22, %s17288_s1 }
 0x56a   :  { %3520 = vrot.lane.b32.xlu0 %v13283_v7, %s17287_s25 }
 0x56d   :  { %3408 = vrot.lane.b32.xlu1 %v13264_v52, %s17288_s1 }
 0x56e   :  { %3402 = vrot.lane.b32.xlu0 %v13268_v62, %s17288_s1 }
 0x571   :  { %3318 = vrot.lane.b32.xlu1 %v13249_v22, %s17251_s10 }
 0x572   :  { %3410 = vrot.lane.b32.xlu0 %v13283_v7, %s17288_s1 }
 0x575   :  { %3326 = vrot.lane.b32.xlu1 %v13264_v52, %s17251_s10 }
 0x576   :  { %3320 = vrot.lane.b32.xlu0 %v13268_v62, %s17251_s10 }
 0x579   :  { %3236 = vrot.lane.b32.xlu1 %v13249_v22, %s17252_s8 }
 0x57a   :  { %3328 = vrot.lane.b32.xlu0 %v13283_v7, %s17251_s10 }
 0x57d   :  { %3244 = vrot.lane.b32.xlu1 %v13264_v52, %s17252_s8 }
 0x57e   :  { %3238 = vrot.lane.b32.xlu0 %v13268_v62, %s17252_s8 }
 0x581   :  { %3154 = vrot.lane.b32.xlu1 %v13249_v22, %s17233_s7 }
 0x582   :  { %3246 = vrot.lane.b32.xlu0 %v13283_v7, %s17252_s8 }
 0x583   :  { %v13400_v37 = vpop.permute.xlu1 %3670 }
 0x585   :  { %3162 = vrot.lane.b32.xlu1 %v13264_v52, %s17233_s7 }
 0x586   :  { %3156 = vrot.lane.b32.xlu0 %v13268_v62, %s17233_s7 }
 0x587   :  { %v13408_v19 = vpop.permute.xlu1 %3678 }
 0x588   :  { %v13406_v3 = vpop.permute.xlu0 %3672 }
 0x589   :  { %3756 = vrot.lane.b32.xlu1 %v13249_v22, %s16973_s30 }
 0x58a   :  { %3164 = vrot.lane.b32.xlu0 %v13283_v7, %s17233_s7 }
 0x58b   :  { %v13416_v47 = vpop.permute.xlu1 %3588 }
 0x58c   :  { %v13414_v11 = vpop.permute.xlu0 %3680 }
 0x58d   :  { %3764 = vrot.lane.b32.xlu1 %v13264_v52, %s16973_s30  ;;  %v9964_v52 = vld [vmem:[%s17222_s5 + $0x1] ss:$8 sm:$0xf] }
 0x58e   :  { %3758 = vrot.lane.b32.xlu0 %v13268_v62, %s16973_s30  ;;  %v10415_v62 = vld [vmem:[%s17222_s5 + $0x1] ss:$8 sm:$0xf] }
 0x58f   :  { %v13427_v21 = vpop.permute.xlu1 %3596 }
 0x590   :  { %v13425_v16 = vpop.permute.xlu0 %3590 }
 0x591   :  { %3879 = vperm.xlu1 %11227, %v3873_v32   ;;  %v13529_v32 = vrot.slane %v10464_v61, %v11896_v27 }
 0x592   :  { %3766 = vrot.lane.b32.xlu0 %v13283_v7, %s16973_s30  ;;  %v13596_v7 = vrot.slane %v10446_v49, %v17245_v6 }
 0x593   :  { %v13439_v50 = vpop.permute.xlu1 %3506  ;;  %17302 = vst [vmem:[#allocation30_spill] sm:$0xff] %v13529_v32 }
 0x594   :  { %v13437_v28 = vpop.permute.xlu0 %3598  ;;  %17313 = vst [vmem:[#allocation41_spill] sm:$0xff] %v13596_v7 }
 0x595   :  { %3889 = vperm.xlu1 %11227, %v3875_v63   ;;  %v13535_v63 = vrot.slane %v9988_v33, %v11903_v30  ;;  %v13575_v33 = vrot.slane %v9983_v36, %v11905_v31 }
 0x596   :  { %3884 = vperm.xlu0 %11226, %v3874_v57   ;;  %v13532_v57 = vrot.slane %v10464_v61, %v17245_v6  ;;  %v9969_v61 = vld [vmem:[%s17222_s5 + $0x2] ss:$8 sm:$0xf] }
 0x597   :  { %v13446_v59 = vpop.permute.xlu1 %3514  ;;  %v13623_v22 = vrot.slane %v9969_v61, %v11905_v31 }
 0x598   :  { %v13444_v14 = vpop.permute.xlu0 %3508  ;;  %17303 = vst [vmem:[#allocation31_spill] sm:$0xff] %v13532_v57 }
 0x599   :  { %17320 = vst [vmem:[#allocation48_spill] sm:$0xff] %v13623_v22  ;;  %v3149_v22 = vld [vmem:[%s17222_s5] ss:$8 sm:$0xf] }
 0x59a   :  { %3894 = vperm.xlu0 %11226, %v3876_v42   ;;  %v10433_v42 = vld [vmem:[%s17222_s5 + $0x3] ss:$8 sm:$0xf] }
 0x59b   :  { %v13455_v1 = vpop.permute.xlu1 %3396  ;;  %v13605_v17 = vrot.slane %v10433_v42, %v11905_v31  ;;  %v13608_v20 = vrot.slane %v10433_v42, %v11896_v27 }
 0x59c   :  { %v13453_v40 = vpop.permute.xlu0 %3516 }
 0x59d   :  { %17314 = vst [vmem:[#allocation42_spill] sm:$0xff] %v13605_v17  ;;  %17315 = vst [vmem:[#allocation43_spill] sm:$0xff] %v13608_v20 }
 0x59f   :  { %v13459_v45 = vpop.permute.xlu1 %3404 }
 0x5a0   :  { %v13457_v29 = vpop.permute.xlu0 %3398 }
 0x5a3   :  { %v13463_v44 = vpop.permute.xlu1 %3314 }
 0x5a4   :  { %v13461_v51 = vpop.permute.xlu0 %3406  ;;  %17289 = vst [vmem:[#allocation13_spill] sm:$0xff] %v13463_v44 }
 0x5a7   :  { %v13467_v12 = vpop.permute.xlu1 %3322 }
 0x5a8   :  { %v13465_v60 = vpop.permute.xlu0 %3316  ;;  %17291 = vst [vmem:[#allocation14_spill] sm:$0xff] %v13467_v12  ;;  %v13642_v12 = vrot.slane %v9969_v61, %v11903_v30 }
 0x5a9   :  { %17290 = vst [vmem:[#allocation10_spill] sm:$0xff] %v13465_v60 }
 0x5aa   :  { %17326 = vst [vmem:[#allocation54_spill] sm:$0xff] %v13642_v12  ;;  %v7988_v12 = vld [vmem:[%s17222_s5] ss:$8 sm:$0xf] }
 0x5ab   :  { %v13471_v15 = vpop.permute.xlu1 %3232 }
 0x5ac   :  { %v13469_v13 = vpop.permute.xlu0 %3324  ;;  %17293 = vst [vmem:[#allocation21_spill] sm:$0xff] %v13471_v15  ;;  %v13614_v15 = vrot.slane %v9974_v10, %v17245_v6 }
 0x5ad   :  { %17292 = vst [vmem:[#allocation20_spill] sm:$0xff] %v13469_v13 }
 0x5ae   :  { %17317 = vst [vmem:[#allocation45_spill] sm:$0xff] %v13614_v15 }
 0x5af   :  { %v13475_v2 = vpop.permute.xlu1 %3240 }
 0x5b0   :  { %v13473_v48 = vpop.permute.xlu0 %3234  ;;  %17295 = vst [vmem:[#allocation23_spill] sm:$0xff] %v13475_v2  ;;  %v13620_v2 = vrot.slane %v10433_v42, %v17245_v6 }
 0x5b1   :  { %17294 = vst [vmem:[#allocation22_spill] sm:$0xff] %v13473_v48  ;;  %v13599_v48 = vrot.slane %v9974_v10, %v11905_v31 }
 0x5b2   :  { %17319 = vst [vmem:[#allocation47_spill] sm:$0xff] %v13620_v2  ;;  %v13727_v2 = vrot.slane %v7988_v12, %v17245_v6 }
 0x5b3   :  { %v13485_v18 = vpop.permute.xlu1 %3150 }
 0x5b4   :  { %v13483_v23 = vpop.permute.xlu0 %3242  ;;  %17297 = vst [vmem:[#allocation25_spill] sm:$0xff] %v13485_v18  ;;  %17348 = vst [vmem:[#allocation76_spill] sm:$0xff] %v13727_v2 }
 0x5b5   :  { %17296 = vst [vmem:[#allocation24_spill] sm:$0xff] %v13483_v23  ;;  %v13602_v23 = vrot.slane %v9974_v10, %v11896_v27 }
 0x5b7   :  { %v13508_v56 = vpop.permute.xlu1 %3158 }
 0x5b8   :  { %v13506_v34 = vpop.permute.xlu0 %3152  ;;  %17299 = vst [vmem:[#allocation27_spill] sm:$0xff] %v13508_v56 }
 0x5b9   :  { %17298 = vst [vmem:[#allocation26_spill] sm:$0xff] %v13506_v34  ;;  %v10424_v34 = vld [vmem:[%s17222_s5 + $0x2] ss:$8 sm:$0xf] }
 0x5ba   :  { %v13636_v44 = vrot.slane %v10424_v34, %v11905_v31 }
 0x5bb   :  { %v13572_v56 = vpop.permute.xlu1 %3752 }
 0x5bc   :  { %v13570_v18 = vpop.permute.xlu0 %3160  ;;  %17309 = vst [vmem:[#allocation37_spill] sm:$0xff] %v13572_v56  ;;  %v13593_v56 = vrot.slane %v10446_v49, %v11896_v27  ;;  %v13617_v49 = vrot.slane %v10433_v42, %v11903_v30  ;;  %17324 = vst [vmem:[#allocation52_spill] sm:$0xff] %v13636_v44  ;;  %v13639_v42 = vrot.slane %v10424_v34, %v11896_v27 }
 0x5bd   :  { %17308 = vst [vmem:[#allocation36_spill] sm:$0xff] %v13570_v18  ;;  %v13590_v18 = vrot.slane %v9983_v36, %v17245_v6  ;;  %v13611_v36 = vrot.slane %v9974_v10, %v11903_v30  ;;  %v13633_v10 = vrot.slane %v9969_v61, %v11896_v27  ;;  %v13657_v44 = vrot.slane %v9964_v52, %v11905_v31 }
 0x5be   :  { %17312 = vst [vmem:[#allocation40_spill] sm:$0xff] %v13593_v56  ;;  %17318 = vst [vmem:[#allocation46_spill] sm:$0xff] %v13617_v49  ;;  %v13666_v49 = vrot.slane %v10415_v62, %v11905_v31 }
 0x5bf   :  { %17316 = vst [vmem:[#allocation44_spill] sm:$0xff] %v13611_v36  ;;  %v13630_v13 = vpop.permute.xlu1 %3760  ;;  %17323 = vst [vmem:[#allocation51_spill] sm:$0xff] %v13633_v10  ;;  %v13654_v10 = vrot.slane %v10424_v34, %v17245_v6 }
 0x5c0   :  { %v13628_v60 = vpop.permute.xlu0 %3754  ;;  %17322 = vst [vmem:[#allocation50_spill] sm:$0xff] %v13630_v13  ;;  %17325 = vst [vmem:[#allocation53_spill] sm:$0xff] %v13639_v42  ;;  %v13651_v13 = vrot.slane %v10424_v34, %v11903_v30  ;;  %v13663_v42 = vrot.slane %v9964_v52, %v11896_v27  ;;  %v13675_v34 = vrot.slane %v9964_v52, %v17245_v6 }
 0x5c1   :  { %17321 = vst [vmem:[#allocation49_spill] sm:$0xff] %v13628_v60  ;;  %v13648_v60 = vrot.slane %v9969_v61, %v17245_v6  ;;  %17329 = vst [vmem:[#allocation57_spill] sm:$0xff] %v13654_v10  ;;  %v13669_v61 = vrot.slane %v10415_v62, %v11896_v27  ;;  %v13681_v10 = vrot.slane %v10415_v62, %v17245_v6 }
 0x5c2   :  { %17328 = vst [vmem:[#allocation56_spill] sm:$0xff] %v13651_v13  ;;  %17330 = vst [vmem:[#allocation58_spill] sm:$0xff] %v13657_v44  ;;  %v13672_v13 = vrot.slane %v9964_v52, %v11903_v30  ;;  %v13678_v44 = vrot.slane %v10415_v62, %v11903_v30  ;;  %v13695_v52 = vrot.slane %v7988_v12, %v11896_v27  ;;  %v9998_v62 = vld [vmem:[%s17222_s5 + $0x20] ss:$8 sm:$0xf] }
 0x5c3   :  { %17327 = vst [vmem:[#allocation55_spill] sm:$0xff] %v13648_v60  ;;  %17331 = vst [vmem:[#allocation59_spill] sm:$0xff] %v13663_v42  ;;  %v13684_v42 = vrot.slane %v3149_v22, %v11905_v31 }
 0x5c4   :  { %17332 = vst [vmem:[#allocation60_spill] sm:$0xff] %v13666_v49  ;;  %17333 = vst [vmem:[#allocation61_spill] sm:$0xff] %v13669_v61  ;;  %v13686_v60 = vpop.permute.xlu0 %3762  ;;  %v3675_v49 = vpop.permute.xlu1 %3674  ;;  %v13689_v61 = vrot.slane %v3149_v22, %v11896_v27 }
 0x5c5   :  { %17334 = vst [vmem:[#allocation62_spill] sm:$0xff] %v13672_v13  ;;  %17335 = vst [vmem:[#allocation63_spill] sm:$0xff] %v13675_v34  ;;  %v13692_v13 = vrot.slane %v7988_v12, %v11905_v31 }
 0x5c6   :  { %17336 = vst [vmem:[#allocation64_spill] sm:$0xff] %v13678_v44  ;;  %17337 = vst [vmem:[#allocation65_spill] sm:$0xff] %v13681_v10  ;;  %v13698_v44 = vrot.slane %v3149_v22, %v11903_v30 }
 0x5c7   :  { %17338 = vst [vmem:[#allocation66_spill] sm:$0xff] %v13684_v42  ;;  %17339 = vst [vmem:[#allocation67_spill] sm:$0xff] %v13686_v60  ;;  %v10473_v60 = vld [vmem:[%s17222_s5 + $0x20] ss:$8 sm:$0xf]  ;;  %v3688_v42 = vsel %vm614_vm1, %v3675_v49, %v13408_v19 }
 0x5c8   :  { %17340 = vst [vmem:[#allocation68_spill] sm:$0xff] %v13689_v61  ;;  %17341 = vst [vmem:[#allocation69_spill] sm:$0xff] %v13692_v13  ;;  %v3690_v13 = vsel %vm614_vm1, %v13400_v37, %v3675_v49  ;;  %v3716_v10 = vmul.f32 %v13511_v41, %v3688_v42  ;;  %v13724_v36 = vmul.f32 %v13517_v9, %v3688_v42  ;;  %v3677_v15 = vpop.permute.xlu0 %3676  ;;  %v3683_v17 = vpop.permute.xlu1 %3682 }
 0x5c9   :  { %17342 = vst [vmem:[#allocation70_spill] sm:$0xff] %v13695_v52  ;;  %17343 = vst [vmem:[#allocation71_spill] sm:$0xff] %v13698_v44  ;;  %v13713_v52 = vrot.slane %v3149_v22, %v17245_v6  ;;  %v13716_v44 = vrot.slane %v7988_v12, %v11903_v30  ;;  %v3715_v61 = vmul.f32 %v13497_v38, %v3690_v13 }
 0x5ca   :  { %v13721_v34 = vmul.f32 %v13514_v46, %v3690_v13  ;;  %17347 = vst [vmem:[#allocation75_spill] sm:$0xff] %v13724_v36  ;;  %v13730_v49 = vrot.slane %v9998_v62, %v11903_v30  ;;  %v13733_v22 = vrot.slane %v9998_v62, %v11905_v31  ;;  %v13741_v42 = vrot.slane %v10473_v60, %v11905_v31 }
 0x5cb   :  { %17344 = vst [vmem:[#allocation72_spill] sm:$0xff] %v13713_v52  ;;  %17345 = vst [vmem:[#allocation73_spill] sm:$0xff] %v13716_v44  ;;  %v13736_v52 = vrot.slane %v10473_v60, %v11903_v30  ;;  %v10695_v44 = vpack.c.bf16 %v3716_v10, %v3715_v61  ;;  %v13744_v12 = vrot.slane %v9998_v62, %v11896_v27 }
 0x5cc   :  { %17346 = vst [vmem:[#allocation74_spill] sm:$0xff] %v13721_v34  ;;  %17349 = vst [vmem:[#allocation77_spill] sm:$0xff] %v13730_v49  ;;  %v3689_v49 = vsel %vm614_vm1, %v3677_v15, %v13414_v11  ;;  %v3691_v30 = vsel %vm614_vm1, %v13406_v3, %v3677_v15  ;;  %v3686_v13 = vsel %vm614_vm1, %v13408_v19, %v3683_v17 }
 0x5cd   :  { %17350 = vst [vmem:[#allocation78_spill] sm:$0xff] %v13736_v52  ;;  %17351 = vst [vmem:[#allocation79_spill] sm:$0xff] %v13741_v42  ;;  %v3692_v31 = vsel %vm614_vm1, %v3683_v17, %v13400_v37  ;;  %v3719_v34 = vmul.f32 %v13497_v38, %v3691_v30  ;;  %v3720_v36 = vmul.f32 %v13511_v41, %v3689_v49  ;;  %v3685_v38 = vpop.permute.xlu0 %3684 }
 0x5ce   :  { %17352 = vst [vmem:[#allocation80_spill] sm:$0xff] %v13744_v12  ;;  %3747 = vst [vmem:[#allocation2 + $0x230] sm:$0xff] %v10695_v44  ;;  %v13761_v12 = vmul.f32 %v13514_v46, %v3691_v30  ;;  %v13764_v42 = vmul.f32 %v13517_v9, %v3689_v49  ;;  %v13767_v15 = vmul.f32 %v13520_v58, %v3686_v13  ;;  %v3593_v30 = vpop.permute.xlu1 %3592 }
 0x5cf   :  { %v13770_v19 = vmul.f32 %v13526_v25, %v3692_v31  ;;  %v8812_v52 = vmul.f32 %v13529_v32, %v3686_v13  ;;  %v8813_v17 = vmul.f32 %v13532_v57, %v3692_v31  ;;  %v10697_v37 = vpack.c.bf16 %v3720_v36, %v3719_v34 }
 0x5d0   :  { %v13777_v41 = vrot.slane %v9998_v62, %v17245_v6  ;;  %v13780_v49 = vrot.slane %v10473_v60, %v11896_v27  ;;  %v3687_v46 = vsel %vm614_vm1, %v13414_v11, %v3685_v38  ;;  %v3693_v31 = vsel %vm614_vm1, %v3685_v38, %v13406_v3 }
 0x5d1   :  { %v10904_v9 = vpack.c.bf16 %v8813_v17, %v8812_v52  ;;  %v13789_v13 = vrot.slane %v10473_v60, %v17245_v6  ;;  %3749 = vst [vmem:[#allocation2 + $0x198] sm:$0xff] %v10697_v37  ;;  %v13792_v44 = vmul.f32 %v13520_v58, %v3687_v46  ;;  %v8816_v62 = vmul.f32 %v13529_v32, %v3687_v46  ;;  %v3595_v38 = vpop.permute.xlu0 %3594 }
 0x5d2   :  { %17353 = vst [vmem:[#allocation81_spill] sm:$0xff] %v13780_v49  ;;  %v8817_v27 = vmul.f32 %v13532_v57, %v3693_v31  ;;  %v3606_v52 = vsel %vm530_vm2, %v3593_v30, %v13427_v21  ;;  %v3608_v11 = vsel %vm530_vm2, %v13416_v47, %v3593_v30  ;;  %v11542_v3 = vpack.c.bf16 %v3720_v36, %v3716_v10  ;;  %v3601_v57 = vpop.permute.xlu1 %3600 }
 0x5d3   :  { %17354 = vst [vmem:[#allocation82_spill] sm:$0xff] %v13789_v13  ;;  %v11543_v17 = vpack.c.bf16 %v3719_v34, %v3715_v61  ;;  %8843 = vst [vmem:[#allocation2 + $0x118] sm:$0xff] %v10904_v9  ;;  %v13803_v60 = vmul.f32 %v13526_v25, %v3693_v31  ;;  %v13806_v37 = vmul.f32 %v13535_v63, %v3608_v11 }
 0x5d4   :  { %v10906_v58 = vpack.c.bf16 %v8817_v27, %v8816_v62  ;;  %v13809_v46 = vmul.f32 %v13541_v4, %v3606_v52  ;;  %v13812_v32 = vmul.f32 %v13544_v0, %v3608_v11  ;;  %v13815_v30 = vmul.f32 %v13547_v43, %v3606_v52  ;;  %4101 = vmatprep.subr.bf16.mxu0 %v11542_v3 }
 0x5d5   :  { %v3607_v9 = vsel %vm530_vm2, %v3595_v38, %v13437_v28  ;;  %v3609_v27 = vsel %vm530_vm2, %v13425_v16, %v3595_v38  ;;  %4102 = vmatpush1.bf16.msra.mxu0 %v11543_v17  ;;  %v3604_v62 = vsel %vm530_vm2, %v13427_v21, %v3601_v57  ;;  %v3603_v17 = vpop.permute.xlu0 %3602 }
 0x5d6   :  { %v10691_v25 = vpack.c.bf16 %v13809_v46, %v13806_v37  ;;  %v13826_v36 = vmul.f32 %v13535_v63, %v3609_v27  ;;  %v13829_v10 = vmul.f32 %v13541_v4, %v3607_v9  ;;  %v13832_v61 = vmul.f32 %v13544_v0, %v3609_v27  ;;  %8845 = vst [vmem:[#allocation2 + $0x20] sm:$0xff] %v10906_v58  ;;  %v3511_v58 = vpop.permute.xlu1 %3510 }
 0x5d7   :  { %v13837_v31 = vmul.f32 %v13547_v43, %v3607_v9  ;;  %v3610_v63 = vsel %vm530_vm2, %v3601_v57, %v13416_v47  ;;  %v13848_v52 = vmul.f32 %v13550_v35, %v3604_v62  ;;  %v8694_v3 = vmul.f32 %v13559_v5, %v3604_v62  ;;  %v17368_v43 = vld [vmem:[#allocation52_spill] sm:$0xff] }
 0x5d8   :  { %3665 = vst [vmem:[#allocation2 + $0x88] sm:$0xff] %v10691_v25  ;;  %v10693_v4 = vpack.c.bf16 %v13829_v10, %v13826_v36  ;;  %v13851_v11 = vmul.f32 %v13556_v54, %v3610_v63  ;;  %v8695_v38 = vmul.f32 %v13562_v8, %v3610_v63  ;;  %v3605_v47 = vsel %vm530_vm2, %v13437_v28, %v3603_v17 }
 0x5d9   :  { %v3611_v57 = vsel %vm530_vm2, %v3603_v17, %v13425_v16  ;;  %v13864_v9 = vmul.f32 %v13550_v35, %v3605_v47  ;;  %v8698_v27 = vmul.f32 %v13559_v5, %v3605_v47  ;;  %v3524_v63 = vsel %vm446_vm3, %v3511_v58, %v13446_v59 }
 0x5da   :  { %3667 = vst [vmem:[#allocation2 + $0x1f0] sm:$0xff] %v10693_v4  ;;  %v10896_v25 = vpack.c.bf16 %v8695_v38, %v8694_v3  ;;  %v8699_v62 = vmul.f32 %v13562_v8, %v3611_v57  ;;  %v3526_v28 = vsel %vm446_vm3, %v13439_v50, %v3511_v58  ;;  %v13875_v21 = vmul.f32 %v13556_v54, %v3611_v57  ;;  %v3513_v3 = vpop.permute.xlu0 %3512  ;;  %v3519_v17 = vpop.permute.xlu1 %3518 }
 0x5db   :  { %v13878_v16 = vmul.f32 %v13565_v39, %v3526_v28  ;;  %v13881_v35 = vmul.f32 %v13575_v33, %v3524_v63  ;;  %v13884_v4 = vmul.f32 %v13578_v53, %v3526_v28  ;;  %v13887_v47 = vmul.f32 %v13581_v55, %v3524_v63 }
 0x5dc   :  { %v10898_v38 = vpack.c.bf16 %v8699_v62, %v8698_v27  ;;  %v3525_v54 = vsel %vm446_vm3, %v3513_v3, %v13453_v40  ;;  %v3527_v58 = vsel %vm446_vm3, %v13444_v14, %v3513_v3  ;;  %8725 = vst [vmem:[#allocation2 + $0x1b0] sm:$0xff] %v10896_v25  ;;  %v3522_v25 = vsel %vm446_vm3, %v13446_v59, %v3519_v17 }
 0x5dd   :  { %17355 = vst [vmem:[#allocation83_spill] sm:$0xff] %v13884_v4  ;;  %17356 = vst [vmem:[#allocation84_spill] sm:$0xff] %v13887_v47  ;;  %v10687_v57 = vpack.c.bf16 %v13881_v35, %v13878_v16  ;;  %v13898_v28 = vmul.f32 %v13565_v39, %v3527_v58  ;;  %v13901_v27 = vmul.f32 %v13575_v33, %v3525_v54 }
 0x5de   :  { %v13904_v62 = vmul.f32 %v13578_v53, %v3527_v58  ;;  %v13909_v34 = vmul.f32 %v13581_v55, %v3525_v54  ;;  %v3528_v39 = vsel %vm446_vm3, %v3519_v17, %v13439_v50  ;;  %8727 = vst [vmem:[#allocation2 + $0xc0] sm:$0xff] %v10898_v38  ;;  %v13920_v3 = vmul.f32 %v13584_v24, %v3522_v25  ;;  %v3521_v63 = vpop.permute.xlu0 %3520  ;;  %v3401_v8 = vpop.permute.xlu1 %3400 }
 0x5df   :  { %3583 = vst [vmem:[#allocation2 + $0xd0] sm:$0xff] %v10687_v57  ;;  %v10689_v33 = vpack.c.bf16 %v13901_v27, %v13898_v28  ;;  %v13923_v58 = vmul.f32 %v13590_v18, %v3528_v39  ;;  %v8576_v54 = vmul.f32 %v13593_v56, %v3522_v25  ;;  %v8577_v50 = vmul.f32 %v13596_v7, %v3528_v39 }
 0x5e0   :  { %17357 = vst [vmem:[#allocation85_spill] sm:$0xff] %v13904_v62  ;;  %17358 = vst [vmem:[#allocation86_spill] sm:$0xff] %v13909_v34  ;;  %v3523_v17 = vsel %vm446_vm3, %v13453_v40, %v3521_v63  ;;  %v3529_v38 = vsel %vm446_vm3, %v3521_v63, %v13444_v14  ;;  %v11544_v55 = vpack.c.bf16 %v13803_v60, %v13770_v19 }
 0x5e1   :  { %3585 = vst [vmem:[#allocation2 + $0x60] sm:$0xff] %v10689_v33  ;;  %v13936_v57 = vmul.f32 %v13584_v24, %v3523_v17  ;;  %v13939_v25 = vmul.f32 %v13590_v18, %v3529_v38  ;;  %v8580_v5 = vmul.f32 %v13593_v56, %v3523_v17  ;;  %v10888_v59 = vpack.c.bf16 %v8577_v50, %v8576_v54  ;;  %v17359_v17 = vld [vmem:[#allocation42_spill] sm:$0xff]  ;;  %v17366_v56 = vld [vmem:[#allocation48_spill] sm:$0xff] }
 0x5e2   :  { %v8581_v39 = vmul.f32 %v13596_v7, %v3529_v38  ;;  %v3414_v40 = vsel %vm358_vm4, %v3401_v8, %v13459_v45  ;;  %v3416_v24 = vsel %vm358_vm4, %v13455_v1, %v3401_v8  ;;  %v3403_v18 = vpop.permute.xlu0 %3402  ;;  %v3409_v63 = vpop.permute.xlu1 %3408  ;;  %4154 = vmatprep.subr.bf16.mxu1 %v11544_v55  ;;  %v11545_v60 = vpack.c.bf16 %v13792_v44, %v13767_v15 }
 0x5e3   :  { %v13952_v14 = vmul.f32 %v13602_v23, %v3414_v40  ;;  %v13955_v54 = vmul.f32 %v13599_v48, %v3416_v24  ;;  %v8426_v19 = vmul.f32 %v13608_v20, %v3414_v40  ;;  %8607 = vst [vmem:[#allocation2 + $0x1d0] sm:$0xff] %v10888_v59  ;;  %v3415_v8 = vsel %vm358_vm4, %v3403_v18, %v13461_v51 }
 0x5e4   :  { %v10890_v33 = vpack.c.bf16 %v8581_v39, %v8580_v5  ;;  %v3417_v50 = vsel %vm358_vm4, %v13457_v29, %v3403_v18  ;;  %v11546_v5 = vpack.c.bf16 %v13829_v10, %v13809_v46  ;;  %v3412_v55 = vsel %vm358_vm4, %v13459_v45, %v3409_v63  ;;  %4155 = vmatpush1.bf16.msra.mxu1 %v11545_v60  ;;  %v17360_v45 = vld [vmem:[#allocation45_spill] sm:$0xff]  ;;  %v17361_v39 = vld [vmem:[#allocation47_spill] sm:$0xff]  ;;  %v17362_v18 = vld [vmem:[#allocation44_spill] sm:$0xff] }
 0x5e5   :  { %v13972_v38 = vmul.f32 %v17359_v17, %v3416_v24  ;;  %v13975_v15 = vmul.f32 %v13599_v48, %v3417_v50  ;;  %v13978_v44 = vmul.f32 %v13602_v23, %v3415_v8  ;;  %v13981_v59 = vmul.f32 %v17359_v17, %v3417_v50  ;;  %v17363_v50 = vld [vmem:[#allocation46_spill] sm:$0xff]  ;;  %v17379_v17 = vld [vmem:[#allocation19_spill] sm:$0xff] }
 0x5e6   :  { %8609 = vst [vmem:[#allocation2 + $0x1d8] sm:$0xff] %v10890_v33  ;;  %4103 = vmatprep.subr.bf16.mxu0 %v11546_v5  ;;  %v3418_v46 = vsel %vm358_vm4, %v3409_v63, %v13455_v1  ;;  %v13987_v10 = vmul.f32 %v17360_v45, %v3412_v55  ;;  %v8427_v40 = vmul.f32 %v17361_v39, %v3412_v55  ;;  %v3411_v24 = vpop.permute.xlu0 %3410  ;;  %v3319_v23 = vpop.permute.xlu1 %3318 }
 0x5e7   :  { %v11547_v48 = vpack.c.bf16 %v13826_v36, %v13806_v37  ;;  %v13993_v60 = vmul.f32 %v17362_v18, %v3418_v46  ;;  %v13996_v33 = vmul.f32 %v17363_v50, %v3418_v46  ;;  %v3413_v1 = vsel %vm358_vm4, %v13461_v51, %v3411_v24  ;;  %v17365_v51 = vld [vmem:[#allocation13_spill] sm:$0xff] }
 0x5e8   :  { %v3419_v63 = vsel %vm358_vm4, %v3411_v24, %v13457_v29  ;;  %v8430_v5 = vmul.f32 %v13608_v20, %v3415_v8  ;;  %v10876_v55 = vpack.c.bf16 %v8427_v40, %v8426_v19  ;;  %v14009_v36 = vmul.f32 %v17360_v45, %v3413_v1  ;;  %v17364_v40 = vld [vmem:[#allocation14_spill] sm:$0xff]  ;;  %v17378_v20 = vld [vmem:[#allocation11_spill] sm:$0xff] }
 0x5e9   :  { %4104 = vmatpush1.bf16.msra.mxu0 %v11547_v48  ;;  %v14006_v37 = vmul.f32 %v17362_v18, %v3419_v63  ;;  %v10679_v46 = vpack.c.bf16 %v13955_v54, %v13993_v60  ;;  %v14016_v7 = vmul.f32 %v17363_v50, %v3419_v63  ;;  %v8431_v29 = vmul.f32 %v17361_v39, %v3413_v1 }
 0x5ea   :  { %v11548_v8 = vpack.c.bf16 %v13875_v21, %v13851_v11  ;;  %v3332_v45 = vsel %vm274_vm5, %v3319_v23, %v17364_v40  ;;  %v3321_v48 = vpop.permute.xlu0 %3320  ;;  %v3327_v24 = vpop.permute.xlu1 %3326  ;;  %8457 = vst [vmem:[#allocation2 + $0x208] sm:$0xff] %v10876_v55  ;;  %v3334_v1 = vsel %vm274_vm5, %v17365_v51, %v3319_v23  ;;  %v17367_v21 = vld [vmem:[#allocation51_spill] sm:$0xff]  ;;  %v11549_v55 = vpack.c.bf16 %v13864_v9, %v13848_v52 }
 0x5eb   :  { %v10681_v19 = vpack.c.bf16 %v13975_v15, %v14006_v37  ;;  %3473 = vst [vmem:[#allocation2 + $0x108] sm:$0xff] %v10679_v46  ;;  %v10878_v63 = vpack.c.bf16 %v8431_v29, %v8430_v5  ;;  %v14032_v11 = vmul.f32 %v17366_v56, %v3334_v1  ;;  %v14035_v53 = vmul.f32 %v17367_v21, %v3332_v45  ;;  %v17369_v46 = vld [vmem:[#allocation20_spill] sm:$0xff]  ;;  %v17370_v29 = vld [vmem:[#allocation10_spill] sm:$0xff] }
 0x5ec   :  { %4156 = vmatprep.subr.bf16.mxu1 %v11548_v8  ;;  %v14038_v0 = vmul.f32 %v17368_v43, %v3334_v1  ;;  %v3333_v5 = vsel %vm274_vm5, %v3321_v48, %v17369_v46  ;;  %v3335_v23 = vsel %vm274_vm5, %v17370_v29, %v3321_v48  ;;  %v3330_v8 = vsel %vm274_vm5, %v17364_v40, %v3327_v24  ;;  %v17371_v1 = vld [vmem:[#allocation53_spill] sm:$0xff] }
 0x5ed   :  { %3475 = vst [vmem:[#allocation2 + $0x1b8] sm:$0xff] %v10681_v19  ;;  %v11550_v19 = vpack.c.bf16 %v13901_v27, %v13881_v35  ;;  %8459 = vst [vmem:[#allocation2 + $0x158] sm:$0xff] %v10878_v63  ;;  %v8308_v18 = vmul.f32 %v17371_v1, %v3332_v45  ;;  %4157 = vmatpush1.bf16.msra.mxu1 %v11549_v55  ;;  %v14055_v52 = vmul.f32 %v17366_v56, %v3335_v23  ;;  %v17373_v27 = vld [vmem:[#allocation55_spill] sm:$0xff]  ;;  %v17374_v45 = vld [vmem:[#allocation57_spill] sm:$0xff] }
 0x5ee   :  { %v14058_v9 = vmul.f32 %v17367_v21, %v3333_v5  ;;  %v14061_v39 = vmul.f32 %v17368_v43, %v3335_v23  ;;  %v3329_v48 = vpop.permute.xlu0 %3328  ;;  %v3237_v50 = vpop.permute.xlu1 %3236  ;;  %v3336_v35 = vsel %vm274_vm5, %v3327_v24, %v17365_v51  ;;  %v14067_v40 = vmul.f32 %v17373_v27, %v3330_v8  ;;  %v17375_v21 = vld [vmem:[#allocation54_spill] sm:$0xff]  ;;  %v17376_v23 = vld [vmem:[#allocation56_spill] sm:$0xff] }
 0x5ef   :  { %4105 = vmatprep.subr.bf16.mxu0 %v11550_v19  ;;  %v8309_v63 = vmul.f32 %v17374_v45, %v3330_v8  ;;  %v11551_v56 = vpack.c.bf16 %v13898_v28, %v13878_v16  ;;  %v14073_v55 = vmul.f32 %v17375_v21, %v3336_v35  ;;  %v14076_v43 = vmul.f32 %v17376_v23, %v3336_v35 }
 0x5f0   :  { %17372 = vst [vmem:[#allocation45_spill] sm:$0xff] %v14061_v39  ;;  %v3331_v19 = vsel %vm274_vm5, %v17369_v46, %v3329_v48  ;;  %v3337_v51 = vsel %vm274_vm5, %v3329_v48, %v17370_v29  ;;  %v8312_v24 = vmul.f32 %v17371_v1, %v3333_v5  ;;  %v17380_v6 = vpack.c.bf16 %v17378_v20, %v17379_v17  ;;  %v17383_v17 = vld [vmem:[#allocation21_spill] sm:$0xff] }
 0x5f1   :  { %17377 = vst [vmem:[#allocation44_spill] sm:$0xff] %v14076_v43  ;;  %v10868_v8 = vpack.c.bf16 %v8309_v63, %v8308_v18  ;;  %4106 = vmatpush1.bf16.msra.mxu0 %v11551_v56  ;;  %v14086_v16 = vmul.f32 %v17375_v21, %v3337_v51  ;;  %v14089_v28 = vmul.f32 %v17373_v27, %v3331_v19  ;;  %v17382_v56 = vld [vmem:[#allocation23_spill] sm:$0xff]  ;;  %v17402_v43 = vld [vmem:[#allocation18_spill] sm:$0xff] }
 0x5f2   :  { %v10675_v35 = vpack.c.bf16 %v14032_v11, %v14073_v55  ;;  %4107 = vmatprep.subr.bf16.mxu0 %v17380_v6  ;;  %v14099_v5 = vmul.f32 %v17376_v23, %v3337_v51  ;;  %v8313_v18 = vmul.f32 %v17374_v45, %v3331_v19  ;;  %v3239_v29 = vpop.permute.xlu0 %3238  ;;  %v3245_v48 = vpop.permute.xlu1 %3244  ;;  %v11552_v63 = vpack.c.bf16 %v13939_v25, %v13923_v58  ;;  %v17384_v51 = vld [vmem:[#allocation58_spill] sm:$0xff]  ;;  %v17385_v58 = vld [vmem:[#allocation59_spill] sm:$0xff]  ;;  %v17386_v45 = vld [vmem:[#allocation60_spill] sm:$0xff] }
 0x5f3   :  { %v10677_v27 = vpack.c.bf16 %v14055_v52, %v14086_v16  ;;  %v3250_v21 = vsel %vm190_vm6, %v3237_v50, %v17382_v56  ;;  %8339 = vst [vmem:[#allocation2 + $0x150] sm:$0xff] %v10868_v8  ;;  %v3252_v19 = vsel %vm190_vm6, %v17383_v17, %v3237_v50  ;;  %v17387_v8 = vld [vmem:[#allocation16_spill] sm:$0xff] }
 0x5f4   :  { %17381 = vst [vmem:[#allocation14_spill] sm:$0xff] %v14099_v5  ;;  %3391 = vst [vmem:[#allocation2 + $0xd8] sm:$0xff] %v10675_v35  ;;  %v10870_v20 = vpack.c.bf16 %v8313_v18, %v8312_v24  ;;  %4158 = vmatprep.subr.bf16.mxu1 %v11552_v63  ;;  %v14115_v46 = vmul.f32 %v17384_v51, %v3252_v19  ;;  %v14118_v25 = vmul.f32 %v17385_v58, %v3250_v21  ;;  %v17388_v35 = vld [vmem:[#allocation15_spill] sm:$0xff]  ;;  %v17390_v18 = vld [vmem:[#allocation24_spill] sm:$0xff] }
 0x5f5   :  { %3393 = vst [vmem:[#allocation2 + $0xb0] sm:$0xff] %v10677_v27  ;;  %v14121_v23 = vmul.f32 %v17386_v45, %v3252_v19  ;;  %v17389_v1 = vpack.c.bf16 %v17387_v8, %v17388_v35  ;;  %v11553_v24 = vpack.c.bf16 %v13936_v57, %v13920_v3  ;;  %v3251_v50 = vsel %vm190_vm6, %v3239_v29, %v17390_v18  ;;  %v17391_v27 = vld [vmem:[#allocation22_spill] sm:$0xff]  ;;  %v17392_v8 = vld [vmem:[#allocation61_spill] sm:$0xff] }
 0x5f6   :  { %v3253_v63 = vsel %vm190_vm6, %v17391_v27, %v3239_v29  ;;  %v3248_v19 = vsel %vm190_vm6, %v17382_v56, %v3245_v48  ;;  %v3247_v6 = vpop.permute.xlu0 %3246  ;;  %v3155_v62 = vpop.permute.xlu1 %3154  ;;  %8341 = vst [vmem:[#allocation2 + $0x138] sm:$0xff] %v10870_v20  ;;  %v14142_v3 = vmul.f32 %v17385_v58, %v3251_v50  ;;  %v3254_v29 = vsel %vm190_vm6, %v3245_v48, %v17383_v17  ;;  %v17393_v56 = vld [vmem:[#allocation63_spill] sm:$0xff]  ;;  %v17394_v20 = vld [vmem:[#allocation65_spill] sm:$0xff] }
 0x5f7   :  { %4108 = vmatpush1.bf16.msra.mxu0 %v17389_v1  ;;  %v8190_v1 = vmul.f32 %v17392_v8, %v3250_v21  ;;  %v14139_v35 = vmul.f32 %v17384_v51, %v3253_v63  ;;  %v14145_v57 = vmul.f32 %v17386_v45, %v3253_v63  ;;  %4159 = vmatpush1.bf16.msra.mxu1 %v11553_v24  ;;  %v17395_v51 = vld [vmem:[#allocation12_spill] sm:$0xff]  ;;  %v17396_v58 = vld [vmem:[#allocation7_spill] sm:$0xff]  ;;  %v17398_v63 = vld [vmem:[#allocation62_spill] sm:$0xff] }
 0x5f8   :  { %v14151_v34 = vmul.f32 %v17393_v56, %v3248_v19  ;;  %v8191_v4 = vmul.f32 %v17394_v20, %v3248_v19  ;;  %v3249_v21 = vsel %vm190_vm6, %v17390_v18, %v3247_v6  ;;  %v17397_v47 = vpack.c.bf16 %v17395_v51, %v17396_v58  ;;  %v17399_v24 = vld [vmem:[#allocation64_spill] sm:$0xff] }
 0x5f9   :  { %v14161_v45 = vmul.f32 %v17398_v63, %v3254_v29  ;;  %v14164_v5 = vmul.f32 %v17399_v24, %v3254_v29  ;;  %v3255_v48 = vsel %vm190_vm6, %v3247_v6, %v17391_v27  ;;  %v14170_v17 = vmul.f32 %v17393_v56, %v3249_v21  ;;  %v17401_v56 = vld [vmem:[#allocation8_spill] sm:$0xff] }
 0x5fa   :  { %4160 = vmatprep.subr.bf16.mxu1 %v17397_v47  ;;  %v8194_v19 = vmul.f32 %v17392_v8, %v3251_v50  ;;  %v10860_v18 = vpack.c.bf16 %v8191_v4, %v8190_v1  ;;  %v14174_v39 = vmul.f32 %v17398_v63, %v3255_v48  ;;  %v14177_v47 = vmul.f32 %v17399_v24, %v3255_v48  ;;  %v3157_v51 = vpop.permute.xlu0 %3156  ;;  %v3163_v27 = vpop.permute.xlu1 %3162  ;;  %v17404_v48 = vld [vmem:[#allocation27_spill] sm:$0xff]  ;;  %v17407_v1 = vld [vmem:[#allocation66_spill] sm:$0xff] }
 0x5fb   :  { %v10671_v29 = vpack.c.bf16 %v14115_v46, %v14161_v45  ;;  %v8195_v6 = vmul.f32 %v17394_v20, %v3249_v21  ;;  %v17403_v50 = vpack.c.bf16 %v17401_v56, %v17402_v43  ;;  %v11554_v63 = vpack.c.bf16 %v14009_v36, %v13987_v10  ;;  %v17405_v20 = vld [vmem:[#allocation25_spill] sm:$0xff]  ;;  %v17406_v56 = vld [vmem:[#allocation68_spill] sm:$0xff]  ;;  %v17408_v10 = vld [vmem:[#allocation70_spill] sm:$0xff] }
 0x5fc   :  { %17400 = vst [vmem:[#allocation13_spill] sm:$0xff] %v14177_v47  ;;  %v10673_v4 = vpack.c.bf16 %v14139_v35, %v14174_v39  ;;  %v3168_v58 = vsel %vm106_vm7, %v3155_v62, %v17404_v48  ;;  %8221 = vst [vmem:[#allocation2 + $0x110] sm:$0xff] %v10860_v18  ;;  %v3170_v43 = vsel %vm106_vm7, %v17405_v20, %v3155_v62 }
 0x5fd   :  { %4161 = vmatpush1.bf16.msra.mxu1 %v17403_v50  ;;  %3309 = vst [vmem:[#allocation2 + $0xe8] sm:$0xff] %v10671_v29  ;;  %v10862_v21 = vpack.c.bf16 %v8195_v6, %v8194_v19  ;;  %v14200_v50 = vmul.f32 %v17406_v56, %v3168_v58  ;;  %v14203_v24 = vmul.f32 %v17407_v1, %v3170_v43  ;;  %v17409_v29 = vld [vmem:[#allocation36_spill] sm:$0xff] }
 0x5fe   :  { %3311 = vst [vmem:[#allocation2 + $0x70] sm:$0xff] %v10673_v4  ;;  %4162 = vmatprep.subr.bf16.mxu1 %v11554_v63  ;;  %v8072_v36 = vmul.f32 %v17408_v10, %v3168_v58  ;;  %v11555_v8 = vpack.c.bf16 %v13975_v15, %v13955_v54  ;;  %v11556_v19 = vpack.c.bf16 %v14006_v37, %v13993_v60  ;;  %v3165_v18 = vpop.permute.xlu0 %3164  ;;  %v17410_v4 = vld [vmem:[#allocation26_spill] sm:$0xff]  ;;  %v17411_v54 = vld [vmem:[#allocation69_spill] sm:$0xff] }
 0x5ff   :  { %v11557_v62 = vpack.c.bf16 %v13978_v44, %v13952_v14  ;;  %v3169_v6 = vsel %vm106_vm7, %v3157_v51, %v17409_v29  ;;  %v3171_v63 = vsel %vm106_vm7, %v17410_v4, %v3157_v51  ;;  %v3166_v58 = vsel %vm106_vm7, %v17404_v48, %v3163_v27  ;;  %8223 = vst [vmem:[#allocation2 + $0xb8] sm:$0xff] %v10862_v21  ;;  %v17412_v21 = vld [vmem:[#allocation71_spill] sm:$0xff] }
 0x600   :  { %v14222_v15 = vmul.f32 %v17411_v54, %v3170_v43  ;;  %4109 = vmatprep.subr.bf16.mxu0 %v11555_v8  ;;  %v14225_v60 = vmul.f32 %v17407_v1, %v3171_v63  ;;  %v14228_v14 = vmul.f32 %v17406_v56, %v3169_v6  ;;  %v14231_v44 = vmul.f32 %v17411_v54, %v3171_v63  ;;  %v3757_v8 = vpop.permute.xlu1 %3756  ;;  %v17413_v43 = vld [vmem:[#allocation73_spill] sm:$0xff] }
 0x601   :  { %4110 = vmatpush1.bf16.msra.mxu0 %v11556_v19  ;;  %4163 = vmatpush1.bf16.msra.mxu1 %v11557_v62  ;;  %v8076_v37 = vmul.f32 %v17408_v10, %v3169_v6  ;;  %v3172_v51 = vsel %vm106_vm7, %v3163_v27, %v17405_v20  ;;  %v8073_v48 = vmul.f32 %v13727_v2, %v3166_v58  ;;  %v17414_v6 = vld [vmem:[#allocation72_spill] sm:$0xff] }
 0x602   :  { %v14239_v1 = vmul.f32 %v17412_v21, %v3172_v51  ;;  %v14242_v56 = vmul.f32 %v17413_v43, %v3172_v51  ;;  %v3167_v19 = vsel %vm106_vm7, %v17409_v29, %v3165_v18  ;;  %v3173_v62 = vsel %vm106_vm7, %v3165_v18, %v17410_v4  ;;  %v3759_v51 = vpop.permute.xlu0 %3758 }
 0x603   :  { %v14251_v63 = vmul.f32 %v17414_v6, %v3166_v58  ;;  %v10852_v20 = vpack.c.bf16 %v8073_v48, %v8072_v36  ;;  %v14254_v27 = vmul.f32 %v17412_v21, %v3173_v62  ;;  %v14257_v10 = vmul.f32 %v17414_v6, %v3167_v19  ;;  %v17416_v58 = vld [vmem:[#allocation50_spill] sm:$0xff] }
 0x604   :  { %v10667_v54 = vpack.c.bf16 %v14203_v24, %v14239_v1  ;;  %v14264_v47 = vmul.f32 %v17413_v43, %v3173_v62  ;;  %v8077_v18 = vmul.f32 %v13727_v2, %v3167_v19  ;;  %v11558_v4 = vpack.c.bf16 %v14089_v28, %v14067_v40  ;;  %v17417_v62 = vld [vmem:[#allocation37_spill] sm:$0xff]  ;;  %v17419_v28 = vld [vmem:[#allocation78_spill] sm:$0xff] }
 0x605   :  { %v10669_v36 = vpack.c.bf16 %v14225_v60, %v14254_v27  ;;  %v3770_v48 = vsel %vm698_vm8, %v3757_v8, %v17416_v58  ;;  %8103 = vst [vmem:[#allocation2 + $0xf0] sm:$0xff] %v10852_v20  ;;  %v3772_v19 = vsel %vm698_vm8, %v17417_v62, %v3757_v8  ;;  %v17418_v2 = vld [vmem:[#allocation77_spill] sm:$0xff]  ;;  %v17420_v20 = vld [vmem:[#allocation79_spill] sm:$0xff]  ;;  %v11560_v8 = vpack.c.bf16 %v14086_v16, %v14073_v55 }
 0x606   :  { %17415 = vst [vmem:[#allocation48_spill] sm:$0xff] %v14264_v47  ;;  %3227 = vst [vmem:[#allocation2 + $0xc8] sm:$0xff] %v10667_v54  ;;  %v10854_v6 = vpack.c.bf16 %v8077_v18, %v8076_v37  ;;  %v3798_v29 = vmul.f32 %v13733_v22, %v3770_v48  ;;  %4164 = vmatprep.subr.bf16.mxu1 %v11558_v4  ;;  %v14281_v40 = vmul.f32 %v17418_v2, %v3772_v19  ;;  %v3765_v18 = vpop.permute.xlu1 %3764  ;;  %v17421_v4 = vld [vmem:[#allocation67_spill] sm:$0xff]  ;;  %v17422_v47 = vld [vmem:[#allocation49_spill] sm:$0xff] }
 0x607   :  { %3229 = vst [vmem:[#allocation2 + $0x40] sm:$0xff] %v10669_v36  ;;  %v14284_v43 = vmul.f32 %v17419_v28, %v3772_v19  ;;  %v14287_v54 = vmul.f32 %v17420_v20, %v3770_v48  ;;  %v11559_v37 = vpack.c.bf16 %v14055_v52, %v14032_v11  ;;  %v11561_v36 = vpack.c.bf16 %v14058_v9, %v14035_v53  ;;  %v3767_v53 = vpop.permute.xlu0 %3766 }
 0x608   :  { %v3771_v21 = vsel %vm698_vm8, %v3759_v51, %v17421_v4  ;;  %v3773_v19 = vsel %vm698_vm8, %v17422_v47, %v3759_v51  ;;  %8105 = vst [vmem:[#allocation2 + $0x120] sm:$0xff] %v10854_v6  ;;  %v10699_v48 = vpack.c.bf16 %v3798_v29, %v14281_v40  ;;  %v3768_v51 = vsel %vm698_vm8, %v17416_v58, %v3765_v18 }
 0x609   :  { %4111 = vmatprep.subr.bf16.mxu0 %v11559_v37  ;;  %v3801_v52 = vmul.f32 %v17418_v2, %v3773_v19  ;;  %v3802_v55 = vmul.f32 %v13733_v22, %v3771_v21  ;;  %4165 = vmatpush1.bf16.msra.mxu1 %v11561_v36  ;;  %v14307_v9 = vmul.f32 %v17419_v28, %v3773_v19  ;;  %v17423_v22 = vld [vmem:[#allocation80_spill] sm:$0xff] }
 0x60a   :  { %4112 = vmatpush1.bf16.msra.mxu0 %v11560_v8  ;;  %v14310_v16 = vmul.f32 %v17420_v20, %v3771_v21  ;;  %3829 = vst [vmem:[#allocation2 + $0x80] sm:$0xff] %v10699_v48  ;;  %v3774_v2 = vsel %vm698_vm8, %v3765_v18, %v17417_v62  ;;  %v3799_v37 = vmul.f32 %v17423_v22, %v3768_v51 }
 0x60b   :  { %v10701_v6 = vpack.c.bf16 %v3802_v55, %v3801_v52  ;;  %v8930_v8 = vmul.f32 %v13780_v49, %v3768_v51  ;;  %v3800_v21 = vmul.f32 %v13777_v41, %v3774_v2  ;;  %v8931_v19 = vmul.f32 %v13789_v13, %v3774_v2 }
 0x60c   :  { %v3769_v58 = vsel %vm698_vm8, %v17421_v4, %v3767_v53  ;;  %v3775_v62 = vsel %vm698_vm8, %v3767_v53, %v17422_v47  ;;  %v11562_v51 = vpack.c.bf16 %v14139_v35, %v14115_v46  ;;  %v11563_v4 = vpack.c.bf16 %v14170_v17, %v14151_v34  ;;  %v11243_v17 = vld [vmem:[%s16914_s11] ss:$8 sps:$4 sm:$0xff]  }
 0x60d   :  { %3831 = vst [vmem:[#allocation2 + $0x78] sm:$0xff] %v10701_v6  ;;  %v3803_v18 = vmul.f32 %v17423_v22, %v3769_v58  ;;  %v8934_v48 = vmul.f32 %v13780_v49, %v3769_v58  ;;  %v10912_v36 = vpack.c.bf16 %v8931_v19, %v8930_v8  ;;  %v3804_v11 = vmul.f32 %v13777_v41, %v3775_v62  ;;  %v11262_v8 = vld [vmem:[%s16915_s3 + $0xe0] sm:$0xff]   ;;  %v11263_v58 = vld [vmem:[%s16915_s3 + $0x18] sm:$0xff]  }
 0x60e   :  { %v8935_v2 = vmul.f32 %v13789_v13, %v3775_v62  ;;  %4113 = vmatprep.subr.bf16.mxu0 %v11562_v51  ;;  %v11564_v6 = vpack.c.bf16 %v14174_v39, %v14161_v45  ;;  %v11565_v47 = vpack.c.bf16 %v14142_v3, %v14118_v25  ;;  %v11566_v53 = vpack.c.bf16 %v14225_v60, %v14203_v24  ;;  %v11247_v3 = vld [vmem:[%s16915_s3 + $0x78] sm:$0xff]   ;;  %v11249_v60 = vld [vmem:[%s16915_s3 + $0x70] sm:$0xff]   ;;  %v11264_v19 = vld [vmem:[%s16915_s3 + $0xa0] sm:$0xff]  }
 0x60f   :  { %v11567_v46 = vpack.c.bf16 %v14257_v10, %v14251_v63  ;;  %8961 = vst [vmem:[#allocation2 + $0x180] sm:$0xff] %v10912_v36  ;;  %4166 = vmatprep.subr.bf16.mxu1 %v11563_v4  ;;  %v11568_v41 = vpack.c.bf16 %v14254_v27, %v14239_v1  ;;  %v11569_v34 = vpack.c.bf16 %v14228_v14, %v14200_v50  ;;  %v11250_v24 = vld [vmem:[%s16915_s3 + $0xf8] sm:$0xff]   ;;  %v11254_v1 = vld [vmem:[%s16915_s3 + $0xf0] sm:$0xff]   ;;  %v11253_v27 = vld [vmem:[%s16915_s3 + $0x68] sm:$0xff]  }
 0x610   :  { %v10914_v22 = vpack.c.bf16 %v8935_v2, %v8934_v48  ;;  %4114 = vmatpush1.bf16.msra.mxu0 %v11564_v6  ;;  %4167 = vmatpush1.bf16.msra.mxu1 %v11565_v47  ;;  %v11570_v39 = vpack.c.bf16 %v3802_v55, %v3798_v29  ;;  %v11571_v45 = vpack.c.bf16 %v3804_v11, %v3800_v21  ;;  %v11244_v50 = vld [vmem:[%s16914_s11 + $0x14] ss:$8 sps:$4 sm:$0xff]   ;;  %v11258_v11 = vld [vmem:[%s16915_s3 + $0xe8] sm:$0xff]   ;;  %v11257_v55 = vld [vmem:[%s16915_s3 + $0x60] sm:$0xff]  }
 0x611   :  { %4115 = vmatprep.subr.bf16.mxu0 %v11566_v53  ;;  %4168 = vmatprep.subr.bf16.mxu1 %v11567_v46  ;;  %v11572_v25 = vpack.c.bf16 %v3801_v52, %v14281_v40  ;;  %v11573_v35 = vpack.c.bf16 %v3803_v18, %v3799_v37  ;;  %v11248_v10 = vld [vmem:[%s16915_s3 + $0x38] sm:$0xff]   ;;  %v11251_v63 = vld [vmem:[%s16915_s3 + $0x30] sm:$0xff]   ;;  %v11255_v52 = vld [vmem:[%s16915_s3 + $0x28] sm:$0xff]  }
 0x612   :  { %8963 = vst [vmem:[#allocation2 + $0xa0] sm:$0xff] %v10914_v22  ;;  %v11252_v14 = vld [vmem:[%s16915_s3 + $0xb8] sm:$0xff]   ;;  %v11256_v29 = vld [vmem:[%s16915_s3 + $0xb0] sm:$0xff]   ;;  %v11260_v37 = vld [vmem:[%s16915_s3 + $0xa8] sm:$0xff]  }
 0x613   :  { %v11246_v40 = vld [vmem:[%s16914_s11 + $0x10] ss:$8 sps:$4 sm:$0xff]   ;;  %v11259_v36 = vld [vmem:[%s16915_s3 + $0x20] sm:$0xff]   ;;  %v11269_v2 = vld [vmem:[%s16915_s3 + $0x48] sm:$0xff]  }
 0x614   :  { %4116 = vmatpush1.bf16.msra.mxu0 %v11568_v41  ;;  %4169 = vmatpush1.bf16.msra.mxu1 %v11569_v34  ;;  %v11261_v21 = vld [vmem:[%s16915_s3 + $0x58] sm:$0xff]   ;;  %v11265_v62 = vld [vmem:[%s16915_s3 + $0x50] sm:$0xff]   ;;  %v11271_v6 = vld [vmem:[%s16915_s3 + $0x8] sm:$0xff]  }
 0x615   :  { %4131 = vmatprep.subr.bf16.mxu0 %v11570_v39  ;;  %4184 = vmatprep.subr.bf16.mxu1 %v11571_v45  ;;  %v11266_v18 = vld [vmem:[%s16915_s3 + $0xd8] sm:$0xff]   ;;  %v11267_v48 = vld [vmem:[%s16915_s3 + $0x10] sm:$0xff]   ;;  %v11273_v53 = vld [vmem:[%s16915_s3 + $0x40] sm:$0xff]  }
 0x616   :  { %v11268_v51 = vld [vmem:[%s16915_s3 + $0x98] sm:$0xff]   ;;  %v11270_v4 = vld [vmem:[%s16915_s3 + $0xd0] sm:$0xff]   ;;  %v11274_v22 = vld [vmem:[%s16915_s3 + $0xc8] sm:$0xff]  }
 0x617   :  { %v11272_v47 = vld [vmem:[%s16915_s3 + $0x90] sm:$0xff]   ;;  %v11275_v46 = vld [vmem:[%s16915_s3] sm:$0xff]   ;;  %v11276_v41 = vld [vmem:[%s16915_s3 + $0x88] sm:$0xff]  }
 0x618   :  { %4132 = vmatpush2.bf16.msra.mxu0 %v11572_v25  ;;  %4185 = vmatpush2.bf16.msra.mxu1 %v11573_v35  ;;  %v11277_v34 = vld [vmem:[%s16915_s3 + $0xc0] sm:$0xff]  }
 0x619   :  { %10915 = vmatprep.subr.bf16.mxu0 %v11247_v3  ;;  %10943 = vmatprep.subr.bf16.mxu1 %v11250_v24  ;;  %v11278_v39 = vld [vmem:[%s16915_s3 + $0x80] sm:$0xff]   ;;  %v3880_v3 = vpop.permute.xlu1 %3879  ;;  %s11687_s3 = smov 120  }
 0x61a   :  { %v9039_v26 = vld [vmem:[#allocation2 + $0xa0] sm:$0xff] }
 0x61b   :  { %4134 = vmatmul.mubr.bf16.vlgmr.msra.gmra.mxu0 %v11243_v17  ;;  %4187 = vmatmul.mubr.bf16.vlgmr.msra.gmra.mxu1 %v11243_v17  ;;  %v3885_v17 = vpop.permute.xlu0 %3884 }
 0x61c   :  { %10044 = vmatprep.mubr.msk.bf16.mxu0 %vm1003_vm0, %v11244_v50  ;;  %10046 = vmatprep.mubr.msk.bf16.mxu1 %vm1003_vm0, %v11244_v50 }
 0x61d   :  { %10916 = vmatpush3.bf16.msra.mxu0 %v11248_v10  ;;  %10944 = vmatpush3.bf16.msra.mxu1 %v11252_v14 }
 0x61e   :  { %10917 = vmatprep.subr.bf16.mxu0 %v11249_v60  ;;  %10945 = vmatprep.subr.bf16.mxu1 %v11254_v1 }
 0x621   :  { %10918 = vmatpush3.bf16.msra.mxu0 %v11251_v63  ;;  %10946 = vmatpush3.bf16.msra.mxu1 %v11256_v29 }
 0x622   :  { %10919 = vmatprep.subr.bf16.mxu0 %v11253_v27  ;;  %10947 = vmatprep.subr.bf16.mxu1 %v11258_v11 }
 0x623   :  { %4144 = vmatmul.mubr.bf16.gmra.mxu0 %v11246_v40  ;;  %4197 = vmatmul.mubr.bf16.gmra.mxu1 %v11246_v40 }
 0x625   :  { %10920 = vmatpush3.bf16.msra.mxu0 %v11255_v52  ;;  %10948 = vmatpush3.bf16.msra.mxu1 %v11260_v37 }
 0x626   :  { %10921 = vmatprep.subr.bf16.mxu0 %v11257_v55  ;;  %10949 = vmatprep.subr.bf16.mxu1 %v11262_v8 }
 0x629   :  { %10922 = vmatpush3.bf16.msra.mxu0 %v11259_v36  ;;  %10950 = vmatpush3.bf16.msra.mxu1 %v11264_v19 }
 0x62a   :  { %10923 = vmatprep.subr.bf16.mxu0 %v11261_v21  ;;  %10951 = vmatprep.subr.bf16.mxu1 %v11266_v18 }
 0x62d   :  { %10924 = vmatpush3.bf16.msra.mxu0 %v11263_v58  ;;  %10952 = vmatpush3.bf16.msra.mxu1 %v11268_v51 }
 0x62e   :  { %10925 = vmatprep.subr.bf16.mxu0 %v11265_v62  ;;  %10953 = vmatprep.subr.bf16.mxu1 %v11270_v4 }
 0x631   :  { %10926 = vmatpush3.bf16.msra.mxu0 %v11267_v48  ;;  %10954 = vmatpush3.bf16.msra.mxu1 %v11272_v47 }
 0x632   :  { %10927 = vmatprep.subr.bf16.mxu0 %v11269_v2  ;;  %10955 = vmatprep.subr.bf16.mxu1 %v11274_v22  ;;  %v3890_v2 = vpop.permute.xlu1 %3889 }
 0x635   :  { %10928 = vmatpush3.bf16.msra.mxu0 %v11271_v6  ;;  %10956 = vmatpush3.bf16.msra.mxu1 %v11276_v41 }
 0x636   :  { %10929 = vmatprep.subr.bf16.mxu0 %v11273_v53  ;;  %10957 = vmatprep.subr.bf16.mxu1 %v11277_v34  ;;  %v3895_v53 = vpop.permute.xlu0 %3894 }
 0x639   :  { %10930 = vmatpush3.bf16.msra.mxu0 %v11275_v46  ;;  %10958 = vmatpush3.bf16.msra.mxu1 %v11278_v39 }
 0x6db   :  { %v4135_v45 = vpop.f32.mrf.mxu0  ;;  %v4188_v25 = vpop.f32.mrf.mxu1 }
 0x6dc   :  { %v4136_v1 = vadd.f32 %v4135_v45, %v3880_v3  ;;  %v4189_v40 = vadd.f32 %v4188_v25, %v3880_v3 }
 0x6dd   :  { %v4137_v35 = vpop.f32.mrf.mxu0  ;;  %v4190_v24 = vpop.f32.mrf.mxu1 }
 0x6de   :  { %v4138_v10 = vadd.f32 %v4137_v35, %v3880_v3  ;;  %v4191_v27 = vadd.f32 %v4190_v24, %v3880_v3  ;;  %v4207_v62 = vmax.f32 %v4136_v1, 0.0  ;;  %v4209_v4 = vmax.f32 %v4189_v40, 0.0 }
 0x6df   :  { %v4139_v50 = vpop.f32.mrf.mxu0  ;;  %v4192_v14 = vpop.f32.mrf.mxu1 }
 0x6e0   :  { %v4140_v60 = vadd.f32 %v4139_v50, %v3885_v17  ;;  %v4193_v29 = vadd.f32 %v4192_v14, %v3885_v17  ;;  %v4208_v36 = vmax.f32 %v4138_v10, 0.0  ;;  %v4210_v18 = vmax.f32 %v4191_v27, 0.0 }
 0x6e1   :  { %v4141_v63 = vpop.f32.mrf.mxu0  ;;  %v4194_v52 = vpop.f32.mrf.mxu1 }
 0x6e2   :  { %v4142_v11 = vadd.f32 %v4141_v63, %v3885_v17  ;;  %v4211_v55 = vmax.f32 %v4140_v60, 0.0  ;;  %v4195_v8 = vadd.f32 %v4194_v52, %v3885_v17  ;;  %v4213_v19 = vmax.f32 %v4193_v29, 0.0 }
 0x6e3   :  { %v4145_v37 = vpop.f32.mrf.mxu0  ;;  %v4198_v58 = vpop.f32.mrf.mxu1 }
 0x6e4   :  { %v4212_v21 = vmax.f32 %v4142_v11, 0.0  ;;  %v4214_v51 = vmax.f32 %v4195_v8, 0.0  ;;  %v4223_v22 = vpack.c.bf16 %v4211_v55, %v4207_v62  ;;  %v4225_v34 = vpack.c.bf16 %v4213_v19, %v4209_v4 }
 0x6e5   :  { %v4147_v48 = vpop.f32.mrf.mxu0  ;;  %v4200_v47 = vpop.f32.mrf.mxu1  ;;  %v4146_v35 = vadd.f32 %v4145_v37, %v3890_v2  ;;  %v4199_v50 = vadd.f32 %v4198_v58, %v3890_v2 }
 0x6e6   :  { %v4224_v6 = vpack.c.bf16 %v4212_v21, %v4208_v36  ;;  %v4226_v46 = vpack.c.bf16 %v4214_v51, %v4210_v18  ;;  %v4148_v39 = vadd.f32 %v4147_v48, %v3890_v2  ;;  %v4201_v24 = vadd.f32 %v4200_v47, %v3890_v2 }
 0x6e7   :  { %v4149_v41 = vpop.f32.mrf.mxu0  ;;  %v4202_v25 = vpop.f32.mrf.mxu1  ;;  %v4215_v40 = vmax.f32 %v4146_v35, 0.0  ;;  %v4217_v55 = vmax.f32 %v4199_v50, 0.0 }
 0x6e8   :  { %v4150_v45 = vadd.f32 %v4149_v41, %v3895_v53  ;;  %4519 = vmatprep.mubr.bf16.mxu0 %v4224_v6  ;;  %v4203_v17 = vadd.f32 %v4202_v25, %v3895_v53  ;;  %4568 = vmatprep.mubr.bf16.mxu1 %v4226_v46  ;;  %v4216_v63 = vmax.f32 %v4148_v39, 0.0  ;;  %v4218_v11 = vmax.f32 %v4201_v24, 0.0 }
 0x6e9   :  { %v4151_v3 = vpop.f32.mrf.mxu0  ;;  %4520 = vmatmul.mubr.bf16.vlgmr.msra.gmra.mxu0 %v4223_v22  ;;  %v4204_v60 = vpop.f32.mrf.mxu1  ;;  %4569 = vmatmul.mubr.bf16.vlgmr.msra.gmra.mxu1 %v4225_v34 }
 0x6ea   :  { %v4152_v10 = vadd.f32 %v4151_v3, %v3895_v53  ;;  %v4219_v14 = vmax.f32 %v4150_v45, 0.0  ;;  %v4205_v1 = vadd.f32 %v4204_v60, %v3895_v53  ;;  %v4221_v29 = vmax.f32 %v4203_v17, 0.0 }
 0x6ec   :  { %v4220_v27 = vmax.f32 %v4152_v10, 0.0  ;;  %v4222_v52 = vmax.f32 %v4205_v1, 0.0  ;;  %v4227_v37 = vpack.c.bf16 %v4219_v14, %v4215_v40  ;;  %v4229_v21 = vpack.c.bf16 %v4221_v29, %v4217_v55  ;;  %v4947_v55 = vld [vmem:[%s16917_s14 + $0x10] sm:$0xff] }
 0x6ee   :  { %v4228_v8 = vpack.c.bf16 %v4220_v27, %v4216_v63  ;;  %v4230_v36 = vpack.c.bf16 %v4222_v52, %v4218_v11  ;;  %v11295_v52 = vld [vmem:[%s16916_s13 + $0x4] ss:$12 sps:$4 sm:$0xff]  }
 0x6f0   :  { %4527 = vmatprep.mubr.bf16.mxu0 %v4228_v8  ;;  %4576 = vmatprep.mubr.bf16.mxu1 %v4230_v36  ;;  %v4948_v8 = vld [vmem:[%s16917_s14 + $0x18] sm:$0xff]  ;;  %v11299_v36 = vld [vmem:[%s16916_s13 + $0x8] ss:$12 sps:$4 sm:$0xff]  }
 0x6f1   :  { %4528 = vmatmul.mubr.bf16.gmra.mxu0 %v4227_v37  ;;  %4577 = vmatmul.mubr.bf16.gmra.mxu1 %v4229_v21  ;;  %v4945_v37 = vld [vmem:[%s16917_s14] sm:$0xff]  ;;  %v4946_v21 = vld [vmem:[%s16917_s14 + $0x8] sm:$0xff] }
 0x6f2   :  { %5146 = vmatprep.mubr.bf16.mxu0 %v11295_v52  ;;  %11039 = vmatprep.mubr.msk.bf16.mxu1 %vm5107_vm9, %v11299_v36 }
 0x7a9   :  { %v10931_v19 = vpop.f32.mrf.mxu0  ;;  %v10959_v58 = vpop.f32.mrf.mxu1 }
 0x7ab   :  { %v10932_v62 = vpop.f32.mrf.mxu0  ;;  %v10960_v18 = vpop.f32.mrf.mxu1 }
 0x7ac   :  { %v10933_v48 = vadd.f32 %v10932_v62, %v10931_v19  ;;  %v10961_v2 = vadd.f32 %v10960_v18, %v10959_v58  ;;  %v14560_v19 = vld [vmem:[%s16918_s2 + $0x7] ss:$0 sm:$0xff]  ;;  %v14566_v18 = vld [vmem:[%s16918_s2 + $0x3] ss:$0 sm:$0xff] }
 0x7ad   :  { %v10934_v51 = vpop.f32.mrf.mxu0  ;;  %v10962_v4 = vpop.f32.mrf.mxu1 }
 0x7ae   :  { %v14458_v47 = vadd.f32 %v10961_v2, %v10933_v48 }
 0x7af   :  { %v10935_v6 = vpop.f32.mrf.mxu0  ;;  %v10963_v53 = vpop.f32.mrf.mxu1 }
 0x7b0   :  { %v10936_v22 = vadd.f32 %v10935_v6, %v10934_v51  ;;  %v10964_v41 = vadd.f32 %v10963_v53, %v10962_v4  ;;  %4828 = vrot.lane.b32.xlu1 %v14458_v47, %s11687_s3  ;;  %v10719_v34 = vpack.c.bf16 %v14458_v47, %v14458_v47  ;;  %v14573_v53 = vld [vmem:[%s16918_s2 + $0x6] ss:$0 sm:$0xff] }
 0x7b1   :  { %v10937_v46 = vpop.f32.mrf.mxu0  ;;  %v10965_v39 = vpop.f32.mrf.mxu1 }
 0x7b2   :  { %v14464_v25 = vadd.f32 %v10964_v41, %v10936_v22  ;;  %4749 = vst [vmem:[#allocation2 + $0x80] sm:$0xf] %v10719_v34 }
 0x7b3   :  { %v10938_v45 = vpop.f32.mrf.mxu0  ;;  %v10966_v35 = vpop.f32.mrf.mxu1 }
 0x7b4   :  { %v10939_v3 = vadd.f32 %v10938_v45, %v10937_v46  ;;  %v10967_v17 = vadd.f32 %v10966_v35, %v10965_v39  ;;  %4830 = vrot.lane.b32.xlu0 %v14464_v25, %s11687_s3  ;;  %4697 = vrot.lane.b32.xlu1 %v14458_v47, %s17288_s1  ;;  %v10720_v50 = vpack.c.bf16 %v14464_v25, %v14464_v25  ;;  %v14580_v35 = vld [vmem:[%s16918_s2 + $0x2] ss:$0 sm:$0xff] }
 0x7b5   :  { %v10940_v24 = vpop.f32.mrf.mxu0  ;;  %v10968_v10 = vpop.f32.mrf.mxu1 }
 0x7b6   :  { %v14472_v14 = vadd.f32 %v10967_v17, %v10939_v3  ;;  %4750 = vst [vmem:[#allocation2 + $0x78] sm:$0xf] %v10720_v50 }
 0x7b7   :  { %v10941_v60 = vpop.f32.mrf.mxu0  ;;  %v10969_v1 = vpop.f32.mrf.mxu1 }
 0x7b8   :  { %v10942_v63 = vadd.f32 %v10941_v60, %v10940_v24  ;;  %v10970_v27 = vadd.f32 %v10969_v1, %v10968_v10  ;;  %4699 = vrot.lane.b32.xlu0 %v14464_v25, %s17288_s1  ;;  %4791 = vrot.lane.b32.xlu1 %v14458_v47, %s11688_s28  ;;  %v10721_v29 = vpack.c.bf16 %v14472_v14, %v14472_v14  ;;  %v14587_v1 = vld [vmem:[%s16918_s2 + $0x5] ss:$0 sm:$0xff] }
 0x7ba   :  { %v14480_v40 = vadd.f32 %v10970_v27, %v10942_v63  ;;  %4751 = vst [vmem:[#allocation2 + $0x210] sm:$0xf] %v10721_v29 }
 0x7bc   :  { %4793 = vrot.lane.b32.xlu0 %v14464_v25, %s11688_s28  ;;  %4660 = vrot.lane.b32.xlu1 %v14458_v47, %s11689_s29  ;;  %v10722_v11 = vpack.c.bf16 %v14480_v40, %v14480_v40 }
 0x7be   :  { %4752 = vst [vmem:[#allocation2 + $0xe0] sm:$0xf] %v10722_v11 }
 0x7c0   :  { %4662 = vrot.lane.b32.xlu0 %v14464_v25, %s11689_s29  ;;  %4754 = vrot.lane.b32.xlu1 %v14458_v47, %s17287_s25 }
 0x7c4   :  { %4756 = vrot.lane.b32.xlu0 %v14464_v25, %s17287_s25  ;;  %4832 = vrot.lane.b32.xlu1 %v14472_v14, %s11687_s3 }
 0x7c8   :  { %4834 = vrot.lane.b32.xlu0 %v14480_v40, %s11687_s3  ;;  %4701 = vrot.lane.b32.xlu1 %v14472_v14, %s17288_s1 }
 0x7cc   :  { %4703 = vrot.lane.b32.xlu0 %v14480_v40, %s17288_s1  ;;  %4795 = vrot.lane.b32.xlu1 %v14472_v14, %s11688_s28 }
 0x7d0   :  { %4797 = vrot.lane.b32.xlu0 %v14480_v40, %s11688_s28  ;;  %4664 = vrot.lane.b32.xlu1 %v14472_v14, %s11689_s29 }
 0x7d4   :  { %4666 = vrot.lane.b32.xlu0 %v14480_v40, %s11689_s29  ;;  %4758 = vrot.lane.b32.xlu1 %v14472_v14, %s17287_s25 }
 0x7d8   :  { %4760 = vrot.lane.b32.xlu0 %v14480_v40, %s17287_s25  ;;  %4627 = vrot.lane.b32.xlu1 %v14472_v14, %s17095_s12 }
 0x7dc   :  { %4629 = vrot.lane.b32.xlu0 %v14480_v40, %s17095_s12  ;;  %4623 = vrot.lane.b32.xlu1 %v14458_v47, %s17095_s12 }
 0x7e0   :  { %4625 = vrot.lane.b32.xlu0 %v14464_v25, %s17095_s12  ;;  %4590 = vrot.lane.b32.xlu1 %v14472_v14, %s17093_s26 }
 0x7e4   :  { %4592 = vrot.lane.b32.xlu0 %v14480_v40, %s17093_s26  ;;  %4586 = vrot.lane.b32.xlu1 %v14458_v47, %s17093_s26 }
 0x7e8   :  { %4588 = vrot.lane.b32.xlu0 %v14464_v25, %s17093_s26  ;;  %4869 = vrot.lane.b32.xlu1 %v14472_v14, %s11692_s27 }
 0x7ec   :  { %4871 = vrot.lane.b32.xlu0 %v14480_v40, %s11692_s27  ;;  %4865 = vrot.lane.b32.xlu1 %v14458_v47, %s11692_s27 }
 0x7f0   :  { %4867 = vrot.lane.b32.xlu0 %v14464_v25, %s11692_s27  ;;  %4961 = vperm.xlu1 %11227, %v4947_v55  }
 0x7f4   :  { %4966 = vperm.xlu0 %11226, %v4948_v8   ;;  %4951 = vperm.xlu1 %11227, %v4945_v37  }
 0x7f8   :  { %4956 = vperm.xlu0 %11226, %v4946_v21  }
 0x822   :  { %v4829_v58 = vpop.permute.xlu1 %4828 }
 0x823   :  { %v4840_v62 = vmul.f32 %v14560_v19, %v4829_v58 }
 0x825   :  { %v10731_v48 = vpack.c.bf16 %v4840_v62, %v4840_v62 }
 0x826   :  { %v4831_v51 = vpop.permute.xlu0 %4830  ;;  %v4698_v2 = vpop.permute.xlu1 %4697 }
 0x827   :  { %4860 = vst [vmem:[#allocation2 + $0x30] sm:$0xf] %v10731_v48  ;;  %v4841_v4 = vmul.f32 %v14560_v19, %v4831_v51  ;;  %v4709_v6 = vmul.f32 %v14566_v18, %v4698_v2 }
 0x829   :  { %v10732_v22 = vpack.c.bf16 %v4841_v4, %v4841_v4  ;;  %v10715_v46 = vpack.c.bf16 %v4709_v6, %v4709_v6 }
 0x82a   :  { %v4700_v41 = vpop.permute.xlu0 %4699  ;;  %v4792_v34 = vpop.permute.xlu1 %4791 }
 0x82b   :  { %4861 = vst [vmem:[#allocation2 + $0x128] sm:$0xf] %v10732_v22  ;;  %4729 = vst [vmem:[#allocation2 + $0x88] sm:$0xf] %v10715_v46  ;;  %v4710_v39 = vmul.f32 %v14566_v18, %v4700_v41  ;;  %v4803_v45 = vmul.f32 %v14573_v53, %v4792_v34 }
 0x82d   :  { %v10716_v3 = vpack.c.bf16 %v4710_v39, %v4710_v39  ;;  %v10727_v24 = vpack.c.bf16 %v4803_v45, %v4803_v45 }
 0x82e   :  { %v4794_v17 = vpop.permute.xlu0 %4793  ;;  %v4661_v50 = vpop.permute.xlu1 %4660 }
 0x82f   :  { %4730 = vst [vmem:[#allocation2 + $0x1f0] sm:$0xf] %v10716_v3  ;;  %4823 = vst [vmem:[#allocation2 + $0x238] sm:$0xf] %v10727_v24  ;;  %v4804_v10 = vmul.f32 %v14573_v53, %v4794_v17  ;;  %v4672_v60 = vmul.f32 %v14580_v35, %v4661_v50 }
 0x831   :  { %v10728_v63 = vpack.c.bf16 %v4804_v10, %v4804_v10  ;;  %v10711_v27 = vpack.c.bf16 %v4672_v60, %v4672_v60 }
 0x832   :  { %v4663_v29 = vpop.permute.xlu0 %4662  ;;  %v4755_v11 = vpop.permute.xlu1 %4754 }
 0x833   :  { %4824 = vst [vmem:[#allocation2 + $0x1a0] sm:$0xf] %v10728_v63  ;;  %4692 = vst [vmem:[#allocation2 + $0x1e0] sm:$0xf] %v10711_v27  ;;  %v4673_v52 = vmul.f32 %v14580_v35, %v4663_v29  ;;  %v4766_v55 = vmul.f32 %v14587_v1, %v4755_v11 }
 0x835   :  { %v10712_v8 = vpack.c.bf16 %v4673_v52, %v4673_v52  ;;  %v10723_v37 = vpack.c.bf16 %v4766_v55, %v4766_v55 }
 0x836   :  { %v4757_v36 = vpop.permute.xlu0 %4756  ;;  %v4833_v21 = vpop.permute.xlu1 %4832 }
 0x837   :  { %4693 = vst [vmem:[#allocation2 + $0x160] sm:$0xf] %v10712_v8  ;;  %4786 = vst [vmem:[#allocation2 + $0x188] sm:$0xf] %v10723_v37  ;;  %v4767_v58 = vmul.f32 %v14587_v1, %v4757_v36  ;;  %v4842_v62 = vmul.f32 %v14560_v19, %v4833_v21  ;;  %v14604_v36 = vld [vmem:[%s16918_s2 + $0x1] ss:$0 sm:$0xff] }
 0x839   :  { %v10724_v48 = vpack.c.bf16 %v4767_v58, %v4767_v58  ;;  %v10733_v51 = vpack.c.bf16 %v4842_v62, %v4842_v62 }
 0x83a   :  { %v4835_v2 = vpop.permute.xlu0 %4834  ;;  %v4702_v4 = vpop.permute.xlu1 %4701 }
 0x83b   :  { %4787 = vst [vmem:[#allocation2 + $0x1a8] sm:$0xf] %v10724_v48  ;;  %4862 = vst [vmem:[#allocation2 + $0x90] sm:$0xf] %v10733_v51  ;;  %v4843_v6 = vmul.f32 %v14560_v19, %v4835_v2  ;;  %v4711_v22 = vmul.f32 %v14566_v18, %v4702_v4 }
 0x83d   :  { %v10734_v46 = vpack.c.bf16 %v4843_v6, %v4843_v6  ;;  %v10717_v41 = vpack.c.bf16 %v4711_v22, %v4711_v22  ;;  %v11281_v6 = vld [vmem:[#allocation2 + $0x30] ss:$248 sps:$4 sm:$0xff]  }
 0x83e   :  { %v4704_v34 = vpop.permute.xlu0 %4703  ;;  %v4796_v39 = vpop.permute.xlu1 %4795 }
 0x83f   :  { %4863 = vst [vmem:[#allocation2 + $0x140] sm:$0xf] %v10734_v46  ;;  %4731 = vst [vmem:[#allocation2 + $0x230] sm:$0xf] %v10717_v41  ;;  %v4712_v45 = vmul.f32 %v14566_v18, %v4704_v34  ;;  %v4805_v3 = vmul.f32 %v14573_v53, %v4796_v39  ;;  %v11282_v41 = vld [vmem:[#allocation2 + $0x88] ss:$360 sps:$4 sm:$0xff]  }
 0x841   :  { %v10718_v24 = vpack.c.bf16 %v4712_v45, %v4712_v45  ;;  %v10729_v17 = vpack.c.bf16 %v4805_v3, %v4805_v3 }
 0x842   :  { %v4798_v50 = vpop.permute.xlu0 %4797  ;;  %v4665_v10 = vpop.permute.xlu1 %4664 }
 0x843   :  { %4732 = vst [vmem:[#allocation2 + $0x198] sm:$0xf] %v10718_v24  ;;  %4825 = vst [vmem:[#allocation2 + $0x50] sm:$0xf] %v10729_v17  ;;  %v4806_v60 = vmul.f32 %v14573_v53, %v4798_v50  ;;  %v4674_v63 = vmul.f32 %v14580_v35, %v4665_v10  ;;  %v14613_v17 = vld [vmem:[%s16918_s2] ss:$0 sm:$0xff] }
 0x845   :  { %v10730_v27 = vpack.c.bf16 %v4806_v60, %v4806_v60  ;;  %v10713_v29 = vpack.c.bf16 %v4674_v63, %v4674_v63 }
 0x846   :  { %v4667_v11 = vpop.permute.xlu0 %4666  ;;  %v4759_v52 = vpop.permute.xlu1 %4758  ;;  %v11279_v55 = vld [vmem:[#allocation2 + $0x90] ss:$176 sps:$4 sm:$0xff]  }
 0x847   :  { %4826 = vst [vmem:[#allocation2 + $0x100] sm:$0xf] %v10730_v27  ;;  %4694 = vst [vmem:[#allocation2 + $0xd0] sm:$0xf] %v10713_v29  ;;  %v4675_v8 = vmul.f32 %v14580_v35, %v4667_v11  ;;  %v4768_v37 = vmul.f32 %v14587_v1, %v4759_v52  ;;  %10971 = vmatprep.subr.bf16.mxu0 %v11279_v55  ;;  %v11285_v52 = vld [vmem:[#allocation2 + $0x238] ss:$-152 sps:$4 sm:$0xff]  }
 0x848   :  { %v4918_v55 = vld [vmem:[#allocation2 + $0x160] sm:$0xf] }
 0x849   :  { %v10714_v21 = vpack.c.bf16 %v4675_v8, %v4675_v8  ;;  %v10725_v58 = vpack.c.bf16 %v4768_v37, %v4768_v37 }
 0x84a   :  { %v4761_v62 = vpop.permute.xlu0 %4760  ;;  %v4628_v48 = vpop.permute.xlu1 %4627  ;;  %v11280_v51 = vld [vmem:[#allocation2 + $0x230] ss:$-152 sps:$4 sm:$0xff]  }
 0x84b   :  { %4695 = vst [vmem:[#allocation2 + $0x60] sm:$0xf] %v10714_v21  ;;  %4788 = vst [vmem:[#allocation2 + $0x48] sm:$0xf] %v10725_v58  ;;  %v4769_v2 = vmul.f32 %v14587_v1, %v4761_v62  ;;  %v4637_v4 = vmul.f32 %v14604_v36, %v4628_v48  ;;  %10972 = vmatpush3.bf16.msra.mxu0 %v11280_v51  ;;  %v4917_v21 = vld [vmem:[#allocation2 + $0x1e0] sm:$0xf] }
 0x84c   :  { %10973 = vmatprep.subr.bf16.mxu0 %v11281_v6  ;;  %v10133_v48 = vcombine.low %v4917_v21, %v4918_v55  ;;  %v14622_v6 = vld [vmem:[%s16918_s2 + $0x8] ss:$0 sm:$0xff] }
 0x84d   :  { %v10726_v22 = vpack.c.bf16 %v4769_v2, %v4769_v2  ;;  %v10709_v46 = vpack.c.bf16 %v4637_v4, %v4637_v4 }
 0x84e   :  { %v4630_v34 = vpop.permute.xlu0 %4629  ;;  %v4624_v39 = vpop.permute.xlu1 %4623  ;;  %v11283_v45 = vld [vmem:[#allocation2 + $0x50] ss:$176 sps:$4 sm:$0xff]  }
 0x84f   :  { %4789 = vst [vmem:[#allocation2 + $0x98] sm:$0xf] %v10726_v22  ;;  %4657 = vst [vmem:[#allocation2 + $0x108] sm:$0xf] %v10709_v46  ;;  %v4638_v3 = vmul.f32 %v14604_v36, %v4630_v34  ;;  %v4635_v24 = vmul.f32 %v14604_v36, %v4624_v39  ;;  %10974 = vmatpush3.bf16.msra.mxu0 %v11282_v41  ;;  %v4930_v22 = vld [vmem:[#allocation2 + $0x1a8] sm:$0xf] }
 0x850   :  { %10975 = vmatprep.subr.bf16.mxu0 %v11283_v45  ;;  %v4929_v34 = vld [vmem:[#allocation2 + $0x188] sm:$0xf] }
 0x851   :  { %v10710_v50 = vpack.c.bf16 %v4638_v3, %v4638_v3  ;;  %v10707_v10 = vpack.c.bf16 %v4635_v24, %v4635_v24 }
 0x852   :  { %v4626_v60 = vpop.permute.xlu0 %4625  ;;  %v4591_v63 = vpop.permute.xlu1 %4590  ;;  %v11284_v27 = vld [vmem:[#allocation2 + $0xd0] ss:$-112 sps:$4 sm:$0xff]  }
 0x853   :  { %4658 = vst [vmem:[#allocation2 + $0x1b8] sm:$0xf] %v10710_v50  ;;  %4655 = vst [vmem:[#allocation2 + $0xd8] sm:$0xf] %v10707_v10  ;;  %v4636_v29 = vmul.f32 %v14604_v36, %v4626_v60  ;;  %v4600_v11 = vmul.f32 %v14613_v17, %v4591_v63  ;;  %10976 = vmatpush3.bf16.msra.mxu0 %v11284_v27  ;;  %v10139_v10 = vcombine.low %v4929_v34, %v4930_v22  ;;  %v11293_v22 = vld [vmem:[%s16916_s13] ss:$12 sps:$4 sm:$0xff]  }
 0x854   :  { %10977 = vmatprep.subr.bf16.mxu0 %v11285_v52 }
 0x855   :  { %v10708_v8 = vpack.c.bf16 %v4636_v29, %v4636_v29  ;;  %v10705_v37 = vpack.c.bf16 %v4600_v11, %v4600_v11 }
 0x856   :  { %v4593_v58 = vpop.permute.xlu0 %4592  ;;  %v4587_v62 = vpop.permute.xlu1 %4586  ;;  %v11286_v51 = vld [vmem:[#allocation2 + $0x48] ss:$80 sps:$4 sm:$0xff]  }
 0x857   :  { %4656 = vst [vmem:[#allocation2 + $0xb0] sm:$0xf] %v10708_v8  ;;  %4620 = vst [vmem:[#allocation2 + $0xe8] sm:$0xf] %v10705_v37  ;;  %v4601_v2 = vmul.f32 %v14613_v17, %v4593_v58  ;;  %v4598_v4 = vmul.f32 %v14613_v17, %v4587_v62  ;;  %10978 = vmatpush3.bf16.msra.mxu0 %v10133_v48  ;;  %v11289_v8 = vld [vmem:[#allocation2 + $0x210] ss:$-304 sps:$4 sm:$0xff]  }
 0x858   :  { %10979 = vmatprep.subr.bf16.mxu0 %v11286_v51  ;;  %v11291_v51 = vld [vmem:[#allocation2 + $0x80] ss:$-8 sps:$4 sm:$0xff]  }
 0x859   :  { %v10706_v46 = vpack.c.bf16 %v4601_v2, %v4601_v2  ;;  %v10703_v41 = vpack.c.bf16 %v4598_v4, %v4598_v4 }
 0x85a   :  { %v4589_v39 = vpop.permute.xlu0 %4588  ;;  %v4870_v45 = vpop.permute.xlu1 %4869  ;;  %v11287_v3 = vld [vmem:[#allocation2 + $0x108] ss:$176 sps:$4 sm:$0xff]  }
 0x85b   :  { %4621 = vst [vmem:[#allocation2 + $0x70] sm:$0xf] %v10706_v46  ;;  %4618 = vst [vmem:[#allocation2 + $0xc8] sm:$0xf] %v10703_v41  ;;  %v4599_v24 = vmul.f32 %v14613_v17, %v4589_v39  ;;  %v4879_v50 = vmul.f32 %v14622_v6, %v4870_v45  ;;  %10980 = vmatpush3.bf16.msra.mxu0 %v11287_v3  ;;  %v11296_v46 = vld [vmem:[%s16916_s13 + $0x1c] ss:$12 sps:$4 sm:$0xff]  }
 0x85c   :  { %10981 = vmatprep.subr.bf16.mxu0 %v10139_v10  ;;  %v11300_v10 = vld [vmem:[%s16916_s13 + $0x20] ss:$12 sps:$4 sm:$0xff]  }
 0x85d   :  { %v10704_v60 = vpack.c.bf16 %v4599_v24, %v4599_v24  ;;  %v10737_v63 = vpack.c.bf16 %v4879_v50, %v4879_v50  ;;  %v11298_v50 = vld [vmem:[%s16916_s13 + $0x18] ss:$12 sps:$4 sm:$0xff]   ;;  %s17426_s13 = smov 8  }
 0x85e   :  { %v4872_v27 = vpop.permute.xlu0 %4871  ;;  %v4866_v29 = vpop.permute.xlu1 %4865  ;;  %v11288_v11 = vld [vmem:[#allocation2 + $0xd8] ss:$-40 sps:$4 sm:$0xff]  }
 0x85f   :  { %4619 = vst [vmem:[#allocation2 + $0x40] sm:$0xf] %v10704_v60  ;;  %4899 = vst [vmem:[#allocation2 + $0x178] sm:$0xf] %v10737_v63  ;;  %v4880_v52 = vmul.f32 %v14622_v6, %v4872_v27  ;;  %v4877_v55 = vmul.f32 %v14622_v6, %v4866_v29  ;;  %10982 = vmatpush3.bf16.msra.mxu0 %v11288_v11 }
 0x860   :  { %10983 = vmatprep.subr.bf16.mxu0 %v11289_v8 }
 0x861   :  { %v10738_v37 = vpack.c.bf16 %v4880_v52, %v4880_v52  ;;  %v10735_v21 = vpack.c.bf16 %v4877_v55, %v4877_v55 }
 0x862   :  { %v4868_v58 = vpop.permute.xlu0 %4867  ;;  %v11290_v62 = vld [vmem:[#allocation2 + $0xe8] ss:$-120 sps:$4 sm:$0xff]  }
 0x863   :  { %4900 = vst [vmem:[#allocation2 + $0x218] sm:$0xf] %v10738_v37  ;;  %4897 = vst [vmem:[#allocation2 + $0x68] sm:$0xf] %v10735_v21  ;;  %v4878_v48 = vmul.f32 %v14622_v6, %v4868_v58  ;;  %10984 = vmatpush3.bf16.msra.mxu0 %v11290_v62 }
 0x864   :  { %10985 = vmatprep.subr.bf16.mxu0 %v11291_v51 }
 0x865   :  { %v10736_v2 = vpack.c.bf16 %v4878_v48, %v4878_v48 }
 0x866   :  { %v11292_v4 = vld [vmem:[#allocation2 + $0xc8] ss:$-136 sps:$4 sm:$0xff]   ;;  %v4943_v41 = vld [vmem:[#allocation2 + $0x178] sm:$0xf] }
 0x867   :  { %4898 = vst [vmem:[#allocation2 + $0x228] sm:$0xf] %v10736_v2  ;;  %10986 = vmatpush3.bf16.msra.mxu0 %v11292_v4 }
 0x86a   :  { %v4944_v34 = vld [vmem:[#allocation2 + $0x218] sm:$0xf]  ;;  %5147 = vmatmul.mubr.bf16.vlgmr.msra.gmra.mxu0 %v11293_v22  ;;  %v4941_v45 = vld [vmem:[#allocation2 + $0x68] sm:$0xf] }
 0x86b   :  { %v10146_v39 = vcombine.low %v4943_v41, %v4944_v34  ;;  %5154 = vmatprep.mubr.bf16.mxu0 %v11296_v46  ;;  %v4962_v27 = vpop.permute.xlu1 %4961 }
 0x86d   :  { %11035 = vmatprep.subr.bf16.mxu1 %v10146_v39 }
 0x86e   :  { %11036 = vmatpush3.bf16.msra.mxu1 %v10146_v39  ;;  %v4942_v3 = vld [vmem:[#allocation2 + $0x228] sm:$0xf] }
 0x86f   :  { %v10145_v24 = vcombine.low %v4941_v45, %v4942_v3  ;;  %v4967_v52 = vpop.permute.xlu0 %4966  ;;  %v4952_v37 = vpop.permute.xlu1 %4951 }
 0x871   :  { %11037 = vmatprep.subr.bf16.mxu1 %v10145_v24 }
 0x872   :  { %11038 = vmatpush3.bf16.msra.mxu1 %v10145_v24  ;;  %5155 = vmatmul.mubr.bf16.gmra.mxu0 %v11298_v50 }
 0x873   :  { %v4957_v22 = vpop.permute.xlu0 %4956 }
 0x875   :  { %11040 = vmatmul.mubr.msk.bf16.vlgmr.msra.gmra.mxu1 %vm5107_vm9, %v11300_v10 }
 0x92a   :  { %v10987_v60 = vpop.f32.mrf.mxu0 }
 0x92c   :  { %v10988_v63 = vpop.f32.mrf.mxu0 }
 0x92d   :  { %v10989_v55 = vadd.f32 %v10988_v63, %v10987_v60 }
 0x92e   :  { %v10990_v29 = vpop.f32.mrf.mxu0 }
 0x92f   :  { %v5149_v51 = vadd.f32 %v10989_v55, %v4952_v37 }
 0x930   :  { %v10991_v11 = vpop.f32.mrf.mxu0 }
 0x931   :  { %v10992_v62 = vadd.f32 %v10991_v11, %v10990_v29 }
 0x932   :  { %v10993_v8 = vpop.f32.mrf.mxu0 }
 0x933   :  { %v5152_v50 = vadd.f32 %v10992_v62, %v4957_v22  ;;  %v5578_v62 = vld [vmem:[%s16919_s16 + $0x10] sm:$0xff] }
 0x934   :  { %v10994_v58 = vpop.f32.mrf.mxu0 }
 0x935   :  { %v11041_v21 = vpop.f32.mrf.mxu1  ;;  %v10995_v48 = vadd.f32 %v10994_v58, %v10993_v8  ;;  %v5577_v58 = vld [vmem:[%s16919_s16 + $0x8] sm:$0xff] }
 0x936   :  { %v10996_v4 = vpop.f32.mrf.mxu0 }
 0x937   :  { %v5197_v2 = vpop.f32.mrf.mxu1  ;;  %v5157_v46 = vadd.f32 %v10995_v48, %v4962_v27  ;;  %v11317_v48 = vld [vmem:[%s16920_s15 + $0x4] ss:$12 sps:$4 sm:$0xff]  }
 0x938   :  { %v5198_v41 = vadd.f32 %v5197_v2, %v5149_v51  ;;  %v10997_v39 = vpop.f32.mrf.mxu0  ;;  %5776 = vmatprep.mubr.bf16.mxu1 %v11317_v48  ;;  %v11318_v51 = vld [vmem:[%s16920_s15 + $0x8] ss:$12 sps:$4 sm:$0xff]   ;;  %v5579_v2 = vld [vmem:[%s16919_s16 + $0x18] sm:$0xff] }
 0x939   :  { %v11042_v34 = vpop.f32.mrf.mxu1  ;;  %v5206_v45 = vadd.f32 %v11041_v21, %v5157_v46  ;;  %v10998_v24 = vadd.f32 %v10997_v39, %v10996_v4  ;;  %v5576_v21 = vld [vmem:[%s16919_s16] sm:$0xff]  ;;  %11047 = vmatprep.mubr.msk.bf16.mxu0 %vm5107_vm9, %v11318_v51 }
 0x93a   :  { %v5212_v3 = vmax.f32 %v5198_v41, 0.0 }
 0x93b   :  { %v5200_v10 = vpop.f32.mrf.mxu1  ;;  %v5214_v60 = vmax.f32 %v5206_v45, 0.0  ;;  %v5160_v13 = vadd.f32 %v10998_v24, %v4967_v52  ;;  %v17425_v52 = vld [vmem:[#allocation9_spill] sm:$0xff] }
 0x93c   :  { %v10755_v63 = vpack.c.bf16 %v5212_v3, %v5212_v3  ;;  %v5201_v49 = vadd.f32 %v5200_v10, %v5152_v50  ;;  %5459 = vrot.lane.b32.xlu1 %v5212_v3, %s11687_s3 }
 0x93d   :  { %v5209_v29 = vadd.f32 %v11042_v34, %v5160_v13  ;;  %v10757_v55 = vpack.c.bf16 %v5214_v60, %v5214_v60  ;;  %v17424_v13 = vld [vmem:[#allocation17_spill] sm:$0xff] }
 0x93e   :  { %5380 = vst [vmem:[#allocation2 + $0x80] sm:$0xf] %v10755_v63  ;;  %v5213_v11 = vmax.f32 %v5201_v49, 0.0 }
 0x93f   :  { %v5215_v8 = vmax.f32 %v5209_v29, 0.0  ;;  %5382 = vst [vmem:[#allocation2 + $0x210] sm:$0xf] %v10757_v55 }
 0x940   :  { %v10756_v27 = vpack.c.bf16 %v5213_v11, %v5213_v11  ;;  %5461 = vrot.lane.b32.xlu0 %v5213_v11, %s11687_s3  ;;  %5328 = vrot.lane.b32.xlu1 %v5212_v3, %s17288_s1 }
 0x941   :  { %v10758_v37 = vpack.c.bf16 %v5215_v8, %v5215_v8 }
 0x942   :  { %5381 = vst [vmem:[#allocation2 + $0x78] sm:$0xf] %v10756_v27 }
 0x943   :  { %5383 = vst [vmem:[#allocation2 + $0xe0] sm:$0xf] %v10758_v37 }
 0x944   :  { %5330 = vrot.lane.b32.xlu0 %v5213_v11, %s17288_s1  ;;  %5422 = vrot.lane.b32.xlu1 %v5212_v3, %s11688_s28 }
 0x948   :  { %5424 = vrot.lane.b32.xlu0 %v5213_v11, %s11688_s28  ;;  %5291 = vrot.lane.b32.xlu1 %v5212_v3, %s11689_s29 }
 0x94a   :  { %v14649_v49 = vld [vmem:[#allocation2 + $0x210] ss:$-304 sps:$4 sm:$0xff]  }
 0x94b   :  { %8488 = vst [vmem:[#allocation2 + $0x210] sm:$0xff] %v17424_v13  ;;  %8490 = vst [vmem:[#allocation2 + $0xe0] sm:$0xff] %v17425_v52 }
 0x94c   :  { %5293 = vrot.lane.b32.xlu0 %v5213_v11, %s11689_s29  ;;  %5385 = vrot.lane.b32.xlu1 %v5212_v3, %s17287_s25 }
 0x950   :  { %5387 = vrot.lane.b32.xlu0 %v5213_v11, %s17287_s25  ;;  %5254 = vrot.lane.b32.xlu1 %v5212_v3, %s17426_s13 }
 0x954   :  { %5256 = vrot.lane.b32.xlu0 %v5213_v11, %s17426_s13  ;;  %5463 = vrot.lane.b32.xlu1 %v5214_v60, %s11687_s3 }
 0x958   :  { %5465 = vrot.lane.b32.xlu0 %v5215_v8, %s11687_s3  ;;  %5332 = vrot.lane.b32.xlu1 %v5214_v60, %s17288_s1  ;;  %s17427_s3 = smov 9  }
 0x95c   :  { %5334 = vrot.lane.b32.xlu0 %v5215_v8, %s17288_s1  ;;  %5426 = vrot.lane.b32.xlu1 %v5214_v60, %s11688_s28 }
 0x960   :  { %5428 = vrot.lane.b32.xlu0 %v5215_v8, %s11688_s28  ;;  %5295 = vrot.lane.b32.xlu1 %v5214_v60, %s11689_s29 }
 0x964   :  { %5297 = vrot.lane.b32.xlu0 %v5215_v8, %s11689_s29  ;;  %5389 = vrot.lane.b32.xlu1 %v5214_v60, %s17287_s25  ;;  %s17457_s29 = smov 112  }
 0x968   :  { %5391 = vrot.lane.b32.xlu0 %v5215_v8, %s17287_s25  ;;  %5258 = vrot.lane.b32.xlu1 %v5214_v60, %s17426_s13 }
 0x96c   :  { %5260 = vrot.lane.b32.xlu0 %v5215_v8, %s17426_s13  ;;  %5217 = vrot.lane.b32.xlu1 %v5212_v3, %s17427_s3 }
 0x970   :  { %5219 = vrot.lane.b32.xlu0 %v5213_v11, %s17427_s3  ;;  %5221 = vrot.lane.b32.xlu1 %v5214_v60, %s17427_s3 }
 0x974   :  { %5223 = vrot.lane.b32.xlu0 %v5215_v8, %s17427_s3  ;;  %5500 = vrot.lane.b32.xlu1 %v5214_v60, %s11692_s27 }
 0x978   :  { %5502 = vrot.lane.b32.xlu0 %v5215_v8, %s11692_s27  ;;  %5496 = vrot.lane.b32.xlu1 %v5212_v3, %s11692_s27 }
 0x97c   :  { %5498 = vrot.lane.b32.xlu0 %v5213_v11, %s11692_s27  ;;  %5582 = vperm.xlu1 %11227, %v5576_v21  }
 0x980   :  { %5587 = vperm.xlu0 %11226, %v5577_v58   ;;  %5592 = vperm.xlu1 %11227, %v5578_v62  }
 0x984   :  { %5597 = vperm.xlu0 %11226, %v5579_v2  }
 0x9ae   :  { %v5460_v4 = vpop.permute.xlu1 %5459 }
 0x9af   :  { %v5471_v22 = vmul.f32 %v14560_v19, %v5460_v4 }
 0x9b1   :  { %v10767_v46 = vpack.c.bf16 %v5471_v22, %v5471_v22 }
 0x9b2   :  { %v5462_v41 = vpop.permute.xlu0 %5461  ;;  %v5329_v34 = vpop.permute.xlu1 %5328 }
 0x9b3   :  { %5491 = vst [vmem:[#allocation2 + $0x30] sm:$0xf] %v10767_v46  ;;  %v5472_v39 = vmul.f32 %v14560_v19, %v5462_v41  ;;  %v5340_v45 = vmul.f32 %v14566_v18, %v5329_v34 }
 0x9b5   :  { %v10768_v3 = vpack.c.bf16 %v5472_v39, %v5472_v39  ;;  %v10751_v24 = vpack.c.bf16 %v5340_v45, %v5340_v45 }
 0x9b6   :  { %v5331_v50 = vpop.permute.xlu0 %5330  ;;  %v5423_v10 = vpop.permute.xlu1 %5422 }
 0x9b7   :  { %5492 = vst [vmem:[#allocation2 + $0x128] sm:$0xf] %v10768_v3  ;;  %5360 = vst [vmem:[#allocation2 + $0x88] sm:$0xf] %v10751_v24  ;;  %v5341_v60 = vmul.f32 %v14566_v18, %v5331_v50  ;;  %v5434_v63 = vmul.f32 %v14573_v53, %v5423_v10 }
 0x9b9   :  { %v10752_v29 = vpack.c.bf16 %v5341_v60, %v5341_v60  ;;  %v10763_v11 = vpack.c.bf16 %v5434_v63, %v5434_v63 }
 0x9ba   :  { %v5425_v55 = vpop.permute.xlu0 %5424  ;;  %v5292_v8 = vpop.permute.xlu1 %5291 }
 0x9bb   :  { %5361 = vst [vmem:[#allocation2 + $0x1f0] sm:$0xf] %v10752_v29  ;;  %5454 = vst [vmem:[#allocation2 + $0x238] sm:$0xf] %v10763_v11  ;;  %v5435_v27 = vmul.f32 %v14573_v53, %v5425_v55  ;;  %v5303_v37 = vmul.f32 %v14580_v35, %v5292_v8 }
 0x9bd   :  { %v10764_v13 = vpack.c.bf16 %v5435_v27, %v5435_v27  ;;  %v10747_v52 = vpack.c.bf16 %v5303_v37, %v5303_v37 }
 0x9be   :  { %v5294_v21 = vpop.permute.xlu0 %5293  ;;  %v5386_v58 = vpop.permute.xlu1 %5385 }
 0x9bf   :  { %5455 = vst [vmem:[#allocation2 + $0x1a0] sm:$0xf] %v10764_v13  ;;  %5323 = vst [vmem:[#allocation2 + $0x1e0] sm:$0xf] %v10747_v52  ;;  %v5304_v62 = vmul.f32 %v14580_v35, %v5294_v21  ;;  %v5397_v48 = vmul.f32 %v14587_v1, %v5386_v58 }
 0x9c1   :  { %v10748_v51 = vpack.c.bf16 %v5304_v62, %v5304_v62  ;;  %v10759_v2 = vpack.c.bf16 %v5397_v48, %v5397_v48 }
 0x9c2   :  { %v5388_v4 = vpop.permute.xlu0 %5387  ;;  %v5255_v22 = vpop.permute.xlu1 %5254 }
 0x9c3   :  { %5324 = vst [vmem:[#allocation2 + $0x160] sm:$0xf] %v10748_v51  ;;  %5417 = vst [vmem:[#allocation2 + $0x188] sm:$0xf] %v10759_v2  ;;  %v5398_v46 = vmul.f32 %v14587_v1, %v5388_v4  ;;  %v5266_v41 = vmul.f32 %v14604_v36, %v5255_v22 }
 0x9c5   :  { %v10760_v34 = vpack.c.bf16 %v5398_v46, %v5398_v46  ;;  %v10743_v39 = vpack.c.bf16 %v5266_v41, %v5266_v41 }
 0x9c6   :  { %v5257_v45 = vpop.permute.xlu0 %5256  ;;  %v5464_v3 = vpop.permute.xlu1 %5463 }
 0x9c7   :  { %5418 = vst [vmem:[#allocation2 + $0x1a8] sm:$0xf] %v10760_v34  ;;  %5286 = vst [vmem:[#allocation2 + $0xd8] sm:$0xf] %v10743_v39  ;;  %v5267_v24 = vmul.f32 %v14604_v36, %v5257_v45  ;;  %v5473_v50 = vmul.f32 %v14560_v19, %v5464_v3  ;;  %v17428_v45 = vld [vmem:[#allocation75_spill] sm:$0xff]  ;;  %v17429_v3 = vld [vmem:[#allocation74_spill] sm:$0xff] }
 0x9c9   :  { %v10744_v10 = vpack.c.bf16 %v5267_v24, %v5267_v24  ;;  %v10769_v60 = vpack.c.bf16 %v5473_v50, %v5473_v50  ;;  %v17430_v24 = vpack.c.bf16 %v17428_v45, %v17429_v3 }
 0x9ca   :  { %v5466_v63 = vpop.permute.xlu0 %5465  ;;  %v5333_v29 = vpop.permute.xlu1 %5332 }
 0x9cb   :  { %5287 = vst [vmem:[#allocation2 + $0xb0] sm:$0xf] %v10744_v10  ;;  %5493 = vst [vmem:[#allocation2 + $0x90] sm:$0xf] %v10769_v60  ;;  %v5474_v11 = vmul.f32 %v14560_v19, %v5466_v63  ;;  %v5342_v55 = vmul.f32 %v14566_v18, %v5333_v29 }
 0x9cd   :  { %v10770_v8 = vpack.c.bf16 %v5474_v11, %v5474_v11  ;;  %v10753_v27 = vpack.c.bf16 %v5342_v55, %v5342_v55  ;;  %v11303_v55 = vld [vmem:[#allocation2 + $0x30] ss:$248 sps:$4 sm:$0xff]  }
 0x9ce   :  { %v5335_v37 = vpop.permute.xlu0 %5334  ;;  %v5427_v13 = vpop.permute.xlu1 %5426 }
 0x9cf   :  { %5494 = vst [vmem:[#allocation2 + $0x140] sm:$0xf] %v10770_v8  ;;  %5362 = vst [vmem:[#allocation2 + $0x230] sm:$0xf] %v10753_v27  ;;  %v5343_v52 = vmul.f32 %v14566_v18, %v5335_v37  ;;  %v5436_v21 = vmul.f32 %v14573_v53, %v5427_v13  ;;  %v17432_v8 = vpack.c.bf16 %v13972_v38, %v13996_v33  ;;  %v11304_v37 = vld [vmem:[#allocation2 + $0x88] ss:$360 sps:$4 sm:$0xff]  }
 0x9d0   :  { %v17434_v38 = vpack.c.bf16 %v13815_v30, %v13812_v32  ;;  %v5549_v32 = vld [vmem:[#allocation2 + $0x160] sm:$0xf]  ;;  %v17436_v30 = vld [vmem:[#allocation44_spill] sm:$0xff] }
 0x9d1   :  { %v10754_v58 = vpack.c.bf16 %v5343_v52, %v5343_v52  ;;  %v10765_v62 = vpack.c.bf16 %v5436_v21, %v5436_v21 }
 0x9d2   :  { %v5429_v48 = vpop.permute.xlu0 %5428  ;;  %v5296_v51 = vpop.permute.xlu1 %5295 }
 0x9d3   :  { %5363 = vst [vmem:[#allocation2 + $0x198] sm:$0xf] %v10754_v58  ;;  %5456 = vst [vmem:[#allocation2 + $0x50] sm:$0xf] %v10765_v62  ;;  %v5437_v19 = vmul.f32 %v14573_v53, %v5429_v48  ;;  %v5305_v2 = vmul.f32 %v14580_v35, %v5296_v51  ;;  %v17431_v53 = vpack.c.bf16 %v13764_v42, %v13761_v12 }
 0x9d4   :  { %v17433_v42 = vpack.c.bf16 %v13981_v59, %v14016_v7  ;;  %v17435_v7 = vpack.c.bf16 %v13837_v31, %v13832_v61  ;;  %v17438_v61 = vld [vmem:[#allocation45_spill] sm:$0xff]  ;;  %v17439_v31 = vld [vmem:[#allocation14_spill] sm:$0xff] }
 0x9d5   :  { %v10766_v4 = vpack.c.bf16 %v5437_v19, %v5437_v19  ;;  %v10749_v22 = vpack.c.bf16 %v5305_v2, %v5305_v2  ;;  %v11307_v2 = vld [vmem:[#allocation2 + $0x238] ss:$-152 sps:$4 sm:$0xff]  }
 0x9d6   :  { %v5298_v46 = vpop.permute.xlu0 %5297  ;;  %v5390_v41 = vpop.permute.xlu1 %5389  ;;  %v11301_v34 = vld [vmem:[#allocation2 + $0x90] ss:$176 sps:$4 sm:$0xff]  }
 0x9d7   :  { %5457 = vst [vmem:[#allocation2 + $0x100] sm:$0xf] %v10766_v4  ;;  %5325 = vst [vmem:[#allocation2 + $0xd0] sm:$0xf] %v10749_v22  ;;  %v5306_v18 = vmul.f32 %v14580_v35, %v5298_v46  ;;  %v5399_v39 = vmul.f32 %v14587_v1, %v5390_v41  ;;  %11003 = vmatprep.subr.bf16.mxu1 %v11301_v34  ;;  %v17437_v4 = vpack.c.bf16 %v14038_v0, %v17436_v30  ;;  %v5548_v34 = vld [vmem:[#allocation2 + $0x1e0] sm:$0xf] }
 0x9d8   :  { %8842 = vst [vmem:[#allocation2 + $0x90] sm:$0xff] %v17430_v24  ;;  %8844 = vst [vmem:[#allocation2 + $0x140] sm:$0xff] %v17431_v53  ;;  %v17440_v22 = vpack.c.bf16 %v17438_v61, %v17439_v31  ;;  %v10203_v45 = vcombine.low %v5548_v34, %v5549_v32  ;;  %v17441_v53 = vld [vmem:[#allocation84_spill] sm:$0xff]  ;;  %v11331_v34 = vld [vmem:[%s16921_s4 + $0xc4] ss:$16 sps:$4 sm:$0xff]  }
 0x9d9   :  { %v10750_v50 = vpack.c.bf16 %v5306_v18, %v5306_v18  ;;  %v10761_v10 = vpack.c.bf16 %v5399_v39, %v5399_v39  ;;  %v11334_v30 = vld [vmem:[%s16921_s4 + $0xcc] ss:$16 sps:$4 sm:$0xff]   ;;  %v11332_v61 = vld [vmem:[%s16921_s4 + $0xc8] ss:$16 sps:$4 sm:$0xff]  }
 0x9da   :  { %v5392_v60 = vpop.permute.xlu0 %5391  ;;  %v5259_v63 = vpop.permute.xlu1 %5258  ;;  %v11302_v29 = vld [vmem:[#allocation2 + $0x230] ss:$-152 sps:$4 sm:$0xff]   ;;  %v11319_v31 = vld [vmem:[%s16920_s15 + $0x20] ss:$12 sps:$4 sm:$0xff]  }
 0x9db   :  { %5326 = vst [vmem:[#allocation2 + $0x60] sm:$0xf] %v10750_v50  ;;  %5419 = vst [vmem:[#allocation2 + $0x48] sm:$0xf] %v10761_v10  ;;  %v5400_v35 = vmul.f32 %v14587_v1, %v5392_v60  ;;  %v5268_v11 = vmul.f32 %v14604_v36, %v5259_v63  ;;  %11004 = vmatpush3.bf16.msra.mxu1 %v11302_v29  ;;  %v17442_v50 = vld [vmem:[#allocation83_spill] sm:$0xff]  ;;  %v17444_v60 = vld [vmem:[#allocation86_spill] sm:$0xff] }
 0x9dc   :  { %8456 = vst [vmem:[#allocation2 + $0x230] sm:$0xff] %v17432_v8  ;;  %8458 = vst [vmem:[#allocation2 + $0x198] sm:$0xff] %v17433_v42  ;;  %11005 = vmatprep.subr.bf16.mxu1 %v11303_v55  ;;  %v17443_v10 = vpack.c.bf16 %v17441_v53, %v17442_v50  ;;  %v17445_v63 = vld [vmem:[#allocation85_spill] sm:$0xff]  ;;  %v5560_v8 = vld [vmem:[#allocation2 + $0x188] sm:$0xf] }
 0x9dd   :  { %v10762_v12 = vpack.c.bf16 %v5400_v35, %v5400_v35  ;;  %v10745_v27 = vpack.c.bf16 %v5268_v11, %v5268_v11  ;;  %v17446_v29 = vpack.c.bf16 %v17444_v60, %v17445_v63  ;;  %v5561_v35 = vld [vmem:[#allocation2 + $0x1a8] sm:$0xf]  ;;  %v11343_v53 = vld [vmem:[%s16921_s4 + $0x84] ss:$16 sps:$4 sm:$0xff]   ;;  %v11347_v60 = vld [vmem:[%s16921_s4 + $0x60] ss:$16 sps:$4 sm:$0xff]  }
 0x9de   :  { %v5261_v13 = vpop.permute.xlu0 %5260  ;;  %v5218_v52 = vpop.permute.xlu1 %5217  ;;  %v11305_v21 = vld [vmem:[#allocation2 + $0x50] ss:$176 sps:$4 sm:$0xff]   ;;  %v11344_v50 = vld [vmem:[%s16921_s4 + $0x88] ss:$16 sps:$4 sm:$0xff]   ;;  %v11349_v63 = vld [vmem:[%s16921_s4 + $0x64] ss:$16 sps:$4 sm:$0xff]  }
 0x9df   :  { %5420 = vst [vmem:[#allocation2 + $0x98] sm:$0xf] %v10762_v12  ;;  %5288 = vst [vmem:[#allocation2 + $0x108] sm:$0xf] %v10745_v27  ;;  %v5269_v1 = vmul.f32 %v14604_v36, %v5261_v13  ;;  %v5229_v58 = vmul.f32 %v14613_v17, %v5218_v52  ;;  %11006 = vmatpush3.bf16.msra.mxu1 %v11304_v37  ;;  %v10209_v13 = vcombine.low %v5560_v8, %v5561_v35  ;;  %v11352_v35 = vld [vmem:[%s16921_s4 + $0x6c] ss:$16 sps:$4 sm:$0xff]  }
 0x9e0   :  { %8724 = vst [vmem:[#allocation2 + $0x50] sm:$0xff] %v17434_v38  ;;  %8726 = vst [vmem:[#allocation2 + $0x100] sm:$0xff] %v17435_v7  ;;  %11007 = vmatprep.subr.bf16.mxu1 %v11305_v21  ;;  %v17447_v52 = vpack.c.bf16 %v14121_v23, %v14164_v5  ;;  %v17448_v21 = vld [vmem:[#allocation13_spill] sm:$0xff]  ;;  %v11356_v8 = vld [vmem:[%s16921_s4 + $0x48] ss:$16 sps:$4 sm:$0xff]  }
 0x9e1   :  { %v10746_v59 = vpack.c.bf16 %v5269_v1, %v5269_v1  ;;  %v10739_v33 = vpack.c.bf16 %v5229_v58, %v5229_v58  ;;  %v17449_v1 = vpack.c.bf16 %v14145_v57, %v17448_v21  ;;  %v17450_v57 = vpack.c.bf16 %v14287_v54, %v14284_v43  ;;  %v11315_v43 = vld [vmem:[%s16920_s15] ss:$12 sps:$4 sm:$0xff]  }
 0x9e2   :  { %v5220_v62 = vpop.permute.xlu0 %5219  ;;  %v5222_v48 = vpop.permute.xlu1 %5221  ;;  %v11306_v51 = vld [vmem:[#allocation2 + $0xd0] ss:$-112 sps:$4 sm:$0xff]  }
 0x9e3   :  { %5289 = vst [vmem:[#allocation2 + $0x1b8] sm:$0xf] %v10746_v59  ;;  %5249 = vst [vmem:[#allocation2 + $0xc8] sm:$0xf] %v10739_v33  ;;  %v5230_v36 = vmul.f32 %v14613_v17, %v5220_v62  ;;  %v5231_v19 = vmul.f32 %v14613_v17, %v5222_v48  ;;  %11008 = vmatpush3.bf16.msra.mxu1 %v11306_v51  ;;  %v11310_v59 = vld [vmem:[#allocation2 + $0xd8] ss:$-40 sps:$4 sm:$0xff]   ;;  %v17451_v51 = vpack.c.bf16 %v14222_v15, %v14242_v56 }
 0x9e4   :  { %8338 = vst [vmem:[#allocation2 + $0xd0] sm:$0xff] %v17437_v4  ;;  %8340 = vst [vmem:[#allocation2 + $0x60] sm:$0xff] %v17440_v22  ;;  %11009 = vmatprep.subr.bf16.mxu1 %v11307_v2  ;;  %v11313_v48 = vld [vmem:[#allocation2 + $0x80] ss:$-8 sps:$4 sm:$0xff]   ;;  %v17454_v15 = vpack.c.bf16 %v14310_v16, %v14307_v9  ;;  %v11325_v16 = vld [vmem:[%s16921_s4 + $0xe4] ss:$16 sps:$4 sm:$0xff]  }
 0x9e5   :  { %v10740_v46 = vpack.c.bf16 %v5230_v36, %v5230_v36  ;;  %v10741_v41 = vpack.c.bf16 %v5231_v19, %v5231_v19  ;;  %v17452_v36 = vld [vmem:[#allocation48_spill] sm:$0xff]  ;;  %v11365_v21 = vld [vmem:[%s16921_s4] ss:$16 sps:$4 sm:$0xff]  }
 0x9e6   :  { %v5224_v18 = vpop.permute.xlu0 %5223  ;;  %v5501_v39 = vpop.permute.xlu1 %5500  ;;  %v11308_v3 = vld [vmem:[#allocation2 + $0x48] ss:$80 sps:$4 sm:$0xff]   ;;  %v17453_v19 = vpack.c.bf16 %v14231_v44, %v17452_v36  ;;  %v11340_v22 = vld [vmem:[%s16921_s4 + $0xac] ss:$16 sps:$4 sm:$0xff]  }
 0x9e7   :  { %5250 = vst [vmem:[#allocation2 + $0x40] sm:$0xf] %v10740_v46  ;;  %5251 = vst [vmem:[#allocation2 + $0xe8] sm:$0xf] %v10741_v41  ;;  %v5232_v24 = vmul.f32 %v14613_v17, %v5224_v18  ;;  %v5510_v0 = vmul.f32 %v14622_v6, %v5501_v39  ;;  %11010 = vmatpush3.bf16.msra.mxu1 %v10203_v45  ;;  %v11320_v44 = vld [vmem:[%s16920_s15 + $0x1c] ss:$12 sps:$4 sm:$0xff]  }
 0x9e8   :  { %8606 = vst [vmem:[#allocation2 + $0x48] sm:$0xff] %v17443_v10  ;;  %8608 = vst [vmem:[#allocation2 + $0x98] sm:$0xff] %v17446_v29  ;;  %11011 = vmatprep.subr.bf16.mxu1 %v11308_v3  ;;  %v11326_v56 = vld [vmem:[%s16921_s4 + $0xe8] ss:$16 sps:$4 sm:$0xff]   ;;  %v11323_v46 = vld [vmem:[%s16921_s4 + $0xe0] ss:$16 sps:$4 sm:$0xff]  }
 0x9e9   :  { %v10742_v11 = vpack.c.bf16 %v5232_v24, %v5232_v24  ;;  %v10773_v55 = vpack.c.bf16 %v5510_v0, %v5510_v0  ;;  %v11322_v41 = vld [vmem:[%s16920_s15 + $0x18] ss:$12 sps:$4 sm:$0xff]   ;;  %v11329_v39 = vld [vmem:[%s16921_s4 + $0xc0] ss:$16 sps:$4 sm:$0xff]   ;;  %v17455_v45 = vmov 0  }
 0x9ea   :  { %v5503_v42 = vpop.permute.xlu0 %5502  ;;  %v5497_v12 = vpop.permute.xlu1 %5496  ;;  %v11309_v27 = vld [vmem:[#allocation2 + $0x108] ss:$176 sps:$4 sm:$0xff]   ;;  %v11337_v3 = vld [vmem:[%s16921_s4 + $0xa4] ss:$16 sps:$4 sm:$0xff]   ;;  %v11335_v24 = vld [vmem:[%s16921_s4 + $0xa0] ss:$16 sps:$4 sm:$0xff]  }
 0x9eb   :  { %5252 = vst [vmem:[#allocation2 + $0x70] sm:$0xf] %v10742_v11  ;;  %5530 = vst [vmem:[#allocation2 + $0x178] sm:$0xf] %v10773_v55  ;;  %v5511_v17 = vmul.f32 %v14622_v6, %v5503_v42  ;;  %v5508_v37 = vmul.f32 %v14622_v6, %v5497_v12  ;;  %11012 = vmatpush3.bf16.msra.mxu1 %v11309_v27  ;;  %v11338_v18 = vld [vmem:[%s16921_s4 + $0xa8] ss:$16 sps:$4 sm:$0xff]  }
 0x9ec   :  { %8220 = vst [vmem:[#allocation2 + $0x108] sm:$0xff] %v17447_v52  ;;  %8222 = vst [vmem:[#allocation2 + $0x1b8] sm:$0xff] %v17449_v1  ;;  %11013 = vmatprep.subr.bf16.mxu1 %v10209_v13  ;;  %v11341_v0 = vld [vmem:[%s16921_s4 + $0x80] ss:$16 sps:$4 sm:$0xff]   ;;  %v11346_v10 = vld [vmem:[%s16921_s4 + $0x8c] ss:$16 sps:$4 sm:$0xff]  }
 0x9ed   :  { %v10774_v58 = vpack.c.bf16 %v5511_v17, %v5511_v17  ;;  %v10771_v38 = vpack.c.bf16 %v5508_v37, %v5508_v37  ;;  %v11350_v29 = vld [vmem:[%s16921_s4 + $0x68] ss:$16 sps:$4 sm:$0xff]   ;;  %v11353_v11 = vld [vmem:[%s16921_s4 + $0x40] ss:$16 sps:$4 sm:$0xff]   ;;  %v11355_v55 = vld [vmem:[%s16921_s4 + $0x44] ss:$16 sps:$4 sm:$0xff]  }
 0x9ee   :  { %v5499_v7 = vpop.permute.xlu0 %5498  ;;  %v11358_v42 = vld [vmem:[%s16921_s4 + $0x4c] ss:$16 sps:$4 sm:$0xff]   ;;  %v11359_v12 = vld [vmem:[%s16921_s4 + $0x20] ss:$16 sps:$4 sm:$0xff]   ;;  %v11361_v27 = vld [vmem:[%s16921_s4 + $0x24] ss:$16 sps:$4 sm:$0xff]  }
 0x9ef   :  { %5531 = vst [vmem:[#allocation2 + $0x218] sm:$0xf] %v10774_v58  ;;  %5528 = vst [vmem:[#allocation2 + $0x68] sm:$0xf] %v10771_v38  ;;  %v5509_v33 = vmul.f32 %v14622_v6, %v5499_v7  ;;  %11014 = vmatpush3.bf16.msra.mxu1 %v11310_v59  ;;  %v11328_v6 = vld [vmem:[%s16921_s4 + $0xec] ss:$16 sps:$4 sm:$0xff]  }
 0x9f0   :  { %11015 = vmatprep.subr.bf16.mxu1 %v14649_v49  ;;  %v11314_v49 = vld [vmem:[#allocation2 + $0xc8] ss:$-136 sps:$4 sm:$0xff]   ;;  %v11364_v37 = vld [vmem:[%s16921_s4 + $0x2c] ss:$16 sps:$4 sm:$0xff]   ;;  %v11367_v13 = vld [vmem:[%s16921_s4 + $0x4] ss:$16 sps:$4 sm:$0xff]  }
 0x9f1   :  { %v10772_v62 = vpack.c.bf16 %v5509_v33, %v5509_v33  ;;  %v11362_v17 = vld [vmem:[%s16921_s4 + $0x28] ss:$16 sps:$4 sm:$0xff]   ;;  %v11370_v52 = vld [vmem:[%s16921_s4 + $0xc] ss:$16 sps:$4 sm:$0xff]  }
 0x9f2   :  { %v11312_v23 = vld [vmem:[#allocation2 + $0xe8] ss:$-120 sps:$4 sm:$0xff]   ;;  %v5574_v5 = vld [vmem:[#allocation2 + $0x178] sm:$0xf] }
 0x9f3   :  { %5529 = vst [vmem:[#allocation2 + $0x228] sm:$0xf] %v10772_v62  ;;  %8960 = vst [vmem:[#allocation2 + $0x178] sm:$0xff] %v17450_v57  ;;  %11016 = vmatpush3.bf16.msra.mxu1 %v11312_v23  ;;  %v11368_v1 = vld [vmem:[%s16921_s4 + $0x8] ss:$16 sps:$4 sm:$0xff]   ;;  %s17456_s4 = smov 111  }
 0x9f4   :  { %8102 = vst [vmem:[#allocation2 + $0xe8] sm:$0xff] %v17451_v51  ;;  %8104 = vst [vmem:[#allocation2 + $0x70] sm:$0xff] %v17453_v19  ;;  %11017 = vmatprep.subr.bf16.mxu1 %v11313_v48 }
 0x9f6   :  { %v5575_v2 = vld [vmem:[#allocation2 + $0x218] sm:$0xf]  ;;  %v5572_v54 = vld [vmem:[#allocation2 + $0x68] sm:$0xf] }
 0x9f7   :  { %v10216_v32 = vcombine.low %v5574_v5, %v5575_v2  ;;  %8962 = vst [vmem:[#allocation2 + $0x218] sm:$0xff] %v17454_v15  ;;  %11018 = vmatpush3.bf16.msra.mxu1 %v11314_v49  ;;  %v5583_v33 = vpop.permute.xlu1 %5582 }
 0x9f8   :  { %6097 = vmatprep.subr.bf16.mxu1 %v11328_v6 }
 0x9f9   :  { %11043 = vmatprep.subr.bf16.mxu0 %v10216_v32 }
 0x9fa   :  { %11044 = vmatpush3.bf16.msra.mxu0 %v10216_v32  ;;  %v5573_v4 = vld [vmem:[#allocation2 + $0x228] sm:$0xf]  ;;  %5777 = vmatmul.mubr.bf16.vlgmr.msra.gmra.mxu1 %v11315_v43 }
 0x9fb   :  { %v10215_v9 = vcombine.low %v5572_v54, %v5573_v4  ;;  %5784 = vmatprep.mubr.bf16.mxu1 %v11320_v44  ;;  %6098 = vmatpush1.bf16.msra.mxu1 %v11326_v56  ;;  %v5588_v36 = vpop.permute.xlu0 %5587  ;;  %v5593_v2 = vpop.permute.xlu1 %5592 }
 0x9fc   :  { %6099 = vmatprep.subr.bf16.mxu1 %v11334_v30 }
 0x9fd   :  { %11045 = vmatprep.subr.bf16.mxu0 %v10215_v9 }
 0x9fe   :  { %11046 = vmatpush3.bf16.msra.mxu0 %v10215_v9 }
 0x9ff   :  { %6044 = vmatprep.subr.bf16.mxu0 %v11325_v16  ;;  %6100 = vmatpush1.bf16.msra.mxu1 %v11332_v61  ;;  %v5598_v61 = vpop.permute.xlu0 %5597 }
 0xa00   :  { %6101 = vmatprep.subr.bf16.mxu1 %v11340_v22 }
 0xa01   :  { %11048 = vmatmul.mubr.msk.bf16.vlgmr.msra.gmra.mxu0 %vm5107_vm9, %v11319_v31 }
 0xa02   :  { %6045 = vmatpush1.bf16.msra.mxu0 %v11323_v46  ;;  %6076 = vmatprep.mubr.bf16.mxu0 %v17455_v45 }
 0xa03   :  { %5785 = vmatmul.mubr.bf16.gmra.mxu1 %v11322_v41  ;;  %6046 = vmatprep.subr.bf16.mxu0 %v11331_v34 }
 0xa04   :  { %6102 = vmatpush1.bf16.msra.mxu1 %v11338_v18  ;;  %6129 = vmatprep.mubr.bf16.mxu1 %v17455_v45 }
 0xa05   :  { %6103 = vmatprep.subr.bf16.mxu1 %v11346_v10 }
 0xa06   :  { %6047 = vmatpush1.bf16.msra.mxu0 %v11329_v39 }
 0xa07   :  { %6048 = vmatprep.subr.bf16.mxu0 %v11337_v3 }
 0xa08   :  { %6104 = vmatpush1.bf16.msra.mxu1 %v11344_v50 }
 0xa09   :  { %6105 = vmatprep.subr.bf16.mxu1 %v11352_v35 }
 0xa0a   :  { %6049 = vmatpush1.bf16.msra.mxu0 %v11335_v24 }
 0xa0b   :  { %6050 = vmatprep.subr.bf16.mxu0 %v11343_v53 }
 0xa0c   :  { %6106 = vmatpush1.bf16.msra.mxu1 %v11350_v29 }
 0xa0d   :  { %6107 = vmatprep.subr.bf16.mxu1 %v11358_v42 }
 0xa0e   :  { %6051 = vmatpush1.bf16.msra.mxu0 %v11341_v0 }
 0xa0f   :  { %6052 = vmatprep.subr.bf16.mxu0 %v11349_v63 }
 0xa10   :  { %6108 = vmatpush1.bf16.msra.mxu1 %v11356_v8 }
 0xa11   :  { %6109 = vmatprep.subr.bf16.mxu1 %v11364_v37 }
 0xa12   :  { %6053 = vmatpush1.bf16.msra.mxu0 %v11347_v60 }
 0xa13   :  { %6054 = vmatprep.subr.bf16.mxu0 %v11355_v55 }
 0xa14   :  { %6110 = vmatpush1.bf16.msra.mxu1 %v11362_v17 }
 0xa15   :  { %6111 = vmatprep.subr.bf16.mxu1 %v11370_v52 }
 0xa16   :  { %6055 = vmatpush1.bf16.msra.mxu0 %v11353_v11 }
 0xa17   :  { %6056 = vmatprep.subr.bf16.mxu0 %v11361_v27 }
 0xa18   :  { %6112 = vmatpush1.bf16.msra.mxu1 %v11368_v1 }
 0xa1a   :  { %6057 = vmatpush1.bf16.msra.mxu0 %v11359_v12 }
 0xa1b   :  { %6058 = vmatprep.subr.bf16.mxu0 %v11367_v13 }
 0xa1e   :  { %6059 = vmatpush1.bf16.msra.mxu0 %v11365_v21 }
 0xaba   :  { %v11019_v58 = vpop.f32.mrf.mxu1 }
 0xabc   :  { %v11020_v38 = vpop.f32.mrf.mxu1 }
 0xabd   :  { %v11021_v7 = vadd.f32 %v11020_v38, %v11019_v58 }
 0xabe   :  { %v11022_v59 = vpop.f32.mrf.mxu1 }
 0xabf   :  { %v5779_v48 = vadd.f32 %v11021_v7, %v5583_v33 }
 0xac0   :  { %v11023_v23 = vpop.f32.mrf.mxu1 }
 0xac1   :  { %v11049_v62 = vpop.f32.mrf.mxu0  ;;  %v11024_v5 = vadd.f32 %v11023_v23, %v11022_v59 }
 0xac3   :  { %v5827_v57 = vpop.f32.mrf.mxu0  ;;  %v11025_v51 = vpop.f32.mrf.mxu1  ;;  %v5782_v43 = vadd.f32 %v11024_v5, %v5588_v36 }
 0xac4   :  { %v5828_v19 = vadd.f32 %v5827_v57, %v5779_v48 }
 0xac5   :  { %v11050_v6 = vpop.f32.mrf.mxu0  ;;  %v11026_v49 = vpop.f32.mrf.mxu1 }
 0xac6   :  { %v11027_v32 = vadd.f32 %v11026_v49, %v11025_v51  ;;  %v5842_v56 = vadd.f32 %v5828_v19, %v14458_v47 }
 0xac7   :  { %v5830_v15 = vpop.f32.mrf.mxu0  ;;  %v11028_v44 = vpop.f32.mrf.mxu1 }
 0xac8   :  { %v5787_v54 = vadd.f32 %v11027_v32, %v5593_v2  ;;  %v5831_v30 = vadd.f32 %v5830_v15, %v5782_v43  ;;  %v5846_v31 = vmax.f32 %v5842_v56, 0.0 }
 0xac9   :  { %v11029_v4 = vpop.f32.mrf.mxu1 }
 0xaca   :  { %v5843_v9 = vadd.f32 %v5831_v30, %v14464_v25  ;;  %v11030_v16 = vadd.f32 %v11029_v4, %v11028_v44  ;;  %v5836_v22 = vadd.f32 %v11049_v62, %v5787_v54 }
 0xacc   :  { %v5847_v46 = vmax.f32 %v5843_v9, 0.0  ;;  %v5790_v41 = vadd.f32 %v11030_v16, %v5598_v61  ;;  %v5844_v39 = vadd.f32 %v5836_v22, %v14472_v14 }
 0xace   :  { %v5850_v34 = vpack.c.bf16 %v5847_v46, %v5846_v31  ;;  %v5839_v18 = vadd.f32 %v11050_v6, %v5790_v41  ;;  %v5848_v25 = vmax.f32 %v5844_v39, 0.0 }
 0xad0   :  { %6077 = vmatmul.mubr.bf16.vlgmr.msra.gmra.mxu0 %v5850_v34  ;;  %6130 = vmatmul.mubr.bf16.vlgmr.msra.gmra.mxu1 %v5850_v34  ;;  %v5845_v3 = vadd.f32 %v5839_v18, %v14480_v40 }
 0xad1   :  { %6086 = vmatprep.mubr.bf16.mxu0 %v17455_v45  ;;  %6139 = vmatprep.mubr.bf16.mxu1 %v17455_v45 }
 0xad2   :  { %v5849_v47 = vmax.f32 %v5845_v3, 0.0 }
 0xad4   :  { %v5851_v24 = vpack.c.bf16 %v5849_v47, %v5848_v25 }
 0xad8   :  { %6087 = vmatmul.mubr.bf16.gmra.mxu0 %v5851_v24  ;;  %6140 = vmatmul.mubr.bf16.gmra.mxu1 %v5851_v24 }
 0xad9   :  { %7883 = vmatprep.mubr.bf16.mxu1 %v17455_v45 }
 0xb90   :  { %v6078_v0 = vpop.f32.mrf.mxu0  ;;  %v14896_v53 = vpop.f32.mrf.mxu1 }
 0xb91   :  { %7201 = vrot.lane.b32.xlu1 %v6078_v0, %s17456_s4 }
 0xb92   :  { %v14899_v50 = vpop.f32.mrf.mxu0  ;;  %v14901_v14 = vpop.f32.mrf.mxu1 }
 0xb93   :  { %v10807_v40 = vpack.c.bf16 %v14899_v50, %v6078_v0  ;;  %v10808_v10 = vpack.c.bf16 %v14901_v14, %v14896_v53 }
 0xb94   :  { %v6082_v60 = vpop.f32.mrf.mxu0  ;;  %v14906_v63 = vpop.f32.mrf.mxu1 }
 0xb95   :  { %6766 = vst [vmem:[#allocation2 + $0x80] sm:$0xff] %v10807_v40  ;;  %6767 = vst [vmem:[#allocation2 + $0xf8] sm:$0xff] %v10808_v10  ;;  %7217 = vrot.lane.b32.xlu1 %v14896_v53, %s17456_s4  ;;  %7203 = vrot.lane.b32.xlu0 %v6082_v60, %s17456_s4 }
 0xb96   :  { %v14911_v29 = vpop.f32.mrf.mxu0  ;;  %v14913_v35 = vpop.f32.mrf.mxu1 }
 0xb97   :  { %v10809_v11 = vpack.c.bf16 %v14911_v29, %v6082_v60  ;;  %v10810_v55 = vpack.c.bf16 %v14913_v35, %v14906_v63 }
 0xb98   :  { %v15004_v8 = vpop.f32.mrf.mxu0  ;;  %v15010_v42 = vpop.f32.mrf.mxu1 }
 0xb99   :  { %6768 = vst [vmem:[#allocation2 + $0x78] sm:$0xff] %v10809_v11  ;;  %6769 = vst [vmem:[#allocation2 + $0x1c0] sm:$0xff] %v10810_v55  ;;  %6577 = vrot.lane.b32.xlu1 %v6078_v0, %s17288_s1  ;;  %7219 = vrot.lane.b32.xlu0 %v14906_v63, %s17456_s4 }
 0xb9a   :  { %17459 = vst [vmem:[#allocation51_spill] sm:$0xff] %v15004_v8  ;;  %17460 = vst [vmem:[#allocation20_spill] sm:$0xff] %v15010_v42  ;;  %v15012_v12 = vpop.f32.mrf.mxu0  ;;  %v15020_v17 = vpop.f32.mrf.mxu1 }
 0xb9b   :  { %17461 = vst [vmem:[#allocation10_spill] sm:$0xff] %v15012_v12  ;;  %17463 = vst [vmem:[#allocation54_spill] sm:$0xff] %v15020_v17 }
 0xb9c   :  { %v15022_v37 = vpop.f32.mrf.mxu0  ;;  %v15032_v21 = vpop.f32.mrf.mxu1 }
 0xb9d   :  { %6593 = vrot.lane.b32.xlu1 %v14896_v53, %s17288_s1  ;;  %6579 = vrot.lane.b32.xlu0 %v6082_v60, %s17288_s1  ;;  %17464 = vst [vmem:[#allocation11_spill] sm:$0xff] %v15022_v37  ;;  %17467 = vst [vmem:[#allocation21_spill] sm:$0xff] %v15032_v21 }
 0xb9e   :  { %v15154_v46 = vpop.f32.mrf.mxu0  ;;  %v15172_v3 = vpop.f32.mrf.mxu1 }
 0xb9f   :  { %17480 = vst [vmem:[#allocation27_spill] sm:$0xff] %v15154_v46  ;;  %17481 = vst [vmem:[#allocation25_spill] sm:$0xff] %v15172_v3 }
 0xba1   :  { %6435 = vrot.lane.b32.xlu1 %v6078_v0, %s17251_s10  ;;  %6595 = vrot.lane.b32.xlu0 %v14906_v63, %s17288_s1 }
 0xba5   :  { %6451 = vrot.lane.b32.xlu1 %v14896_v53, %s17251_s10  ;;  %6437 = vrot.lane.b32.xlu0 %v6082_v60, %s17251_s10 }
 0xba9   :  { %6293 = vrot.lane.b32.xlu1 %v6078_v0, %s17252_s8  ;;  %6453 = vrot.lane.b32.xlu0 %v14906_v63, %s17251_s10 }
 0xbad   :  { %6309 = vrot.lane.b32.xlu1 %v14896_v53, %s17252_s8  ;;  %6295 = vrot.lane.b32.xlu0 %v6082_v60, %s17252_s8 }
 0xbb1   :  { %6151 = vrot.lane.b32.xlu1 %v6078_v0, %s17233_s7  ;;  %6311 = vrot.lane.b32.xlu0 %v14906_v63, %s17252_s8 }
 0xbb5   :  { %6167 = vrot.lane.b32.xlu1 %v14896_v53, %s17233_s7  ;;  %6153 = vrot.lane.b32.xlu0 %v6082_v60, %s17233_s7 }
 0xbb9   :  { %7059 = vrot.lane.b32.xlu1 %v6078_v0, %s17457_s29  ;;  %6169 = vrot.lane.b32.xlu0 %v14906_v63, %s17233_s7 }
 0xbbd   :  { %7075 = vrot.lane.b32.xlu1 %v14896_v53, %s17457_s29  ;;  %7061 = vrot.lane.b32.xlu0 %v6082_v60, %s17457_s29 }
 0xbc1   :  { %6917 = vrot.lane.b32.xlu1 %v6078_v0, %s17458_s9  ;;  %7077 = vrot.lane.b32.xlu0 %v14906_v63, %s17457_s29 }
 0xbc5   :  { %6933 = vrot.lane.b32.xlu1 %v14896_v53, %s17458_s9  ;;  %6919 = vrot.lane.b32.xlu0 %v6082_v60, %s17458_s9 }
 0xbc9   :  { %6775 = vrot.lane.b32.xlu1 %v6078_v0, %s17287_s25  ;;  %6935 = vrot.lane.b32.xlu0 %v14906_v63, %s17458_s9 }
 0xbcd   :  { %7209 = vrot.lane.b32.xlu1 %v14899_v50, %s17456_s4  ;;  %6777 = vrot.lane.b32.xlu0 %v6082_v60, %s17287_s25 }
 0xbd1   :  { %6585 = vrot.lane.b32.xlu1 %v14899_v50, %s17288_s1  ;;  %7211 = vrot.lane.b32.xlu0 %v14911_v29, %s17456_s4 }
 0xbd5   :  { %6601 = vrot.lane.b32.xlu1 %v14901_v14, %s17288_s1  ;;  %6587 = vrot.lane.b32.xlu0 %v14911_v29, %s17288_s1 }
 0xbd9   :  { %6443 = vrot.lane.b32.xlu1 %v14899_v50, %s17251_s10  ;;  %6603 = vrot.lane.b32.xlu0 %v14913_v35, %s17288_s1 }
 0xbdd   :  { %6459 = vrot.lane.b32.xlu1 %v14901_v14, %s17251_s10  ;;  %6445 = vrot.lane.b32.xlu0 %v14911_v29, %s17251_s10 }
 0xbe1   :  { %6301 = vrot.lane.b32.xlu1 %v14899_v50, %s17252_s8  ;;  %6461 = vrot.lane.b32.xlu0 %v14913_v35, %s17251_s10 }
 0xbe5   :  { %6317 = vrot.lane.b32.xlu1 %v14901_v14, %s17252_s8  ;;  %6303 = vrot.lane.b32.xlu0 %v14911_v29, %s17252_s8 }
 0xbe9   :  { %6159 = vrot.lane.b32.xlu1 %v14899_v50, %s17233_s7  ;;  %6319 = vrot.lane.b32.xlu0 %v14913_v35, %s17252_s8 }
 0xbed   :  { %6175 = vrot.lane.b32.xlu1 %v14901_v14, %s17233_s7  ;;  %6161 = vrot.lane.b32.xlu0 %v14911_v29, %s17233_s7 }
 0xbf1   :  { %7067 = vrot.lane.b32.xlu1 %v14899_v50, %s17457_s29  ;;  %6177 = vrot.lane.b32.xlu0 %v14913_v35, %s17233_s7 }
 0xbf5   :  { %7083 = vrot.lane.b32.xlu1 %v14901_v14, %s17457_s29  ;;  %7069 = vrot.lane.b32.xlu0 %v14911_v29, %s17457_s29 }
 0xbf9   :  { %6925 = vrot.lane.b32.xlu1 %v14899_v50, %s17458_s9  ;;  %7085 = vrot.lane.b32.xlu0 %v14913_v35, %s17457_s29 }
 0xbfd   :  { %6941 = vrot.lane.b32.xlu1 %v14901_v14, %s17458_s9  ;;  %6927 = vrot.lane.b32.xlu0 %v14911_v29, %s17458_s9 }
 0xc01   :  { %6943 = vrot.lane.b32.xlu0 %v14913_v35, %s17458_s9  ;;  %7205 = vrot.lane.b32.xlu1 %v15004_v8, %s17456_s4 }
 0xc03   :  { %v15018_v27 = vpop.permute.xlu1 %7201 }
 0xc04   :  { %17462 = vst [vmem:[#allocation55_spill] sm:$0xff] %v15018_v27 }
 0xc05   :  { %7221 = vrot.lane.b32.xlu1 %v15010_v42, %s17456_s4  ;;  %7207 = vrot.lane.b32.xlu0 %v15022_v37, %s17456_s4 }
 0xc07   :  { %v15028_v13 = vpop.permute.xlu1 %7217  ;;  %v15030_v52 = vpop.permute.xlu0 %7203 }
 0xc08   :  { %17465 = vst [vmem:[#allocation19_spill] sm:$0xff] %v15028_v13  ;;  %17466 = vst [vmem:[#allocation23_spill] sm:$0xff] %v15030_v52 }
 0xc09   :  { %6581 = vrot.lane.b32.xlu1 %v15004_v8, %s17288_s1  ;;  %7223 = vrot.lane.b32.xlu0 %v15032_v21, %s17456_s4 }
 0xc0b   :  { %v15038_v1 = vpop.permute.xlu1 %6577  ;;  %v15040_v58 = vpop.permute.xlu0 %7219 }
 0xc0c   :  { %17468 = vst [vmem:[#allocation58_spill] sm:$0xff] %v15040_v58 }
 0xc0d   :  { %6597 = vrot.lane.b32.xlu1 %v15010_v42, %s17288_s1  ;;  %6583 = vrot.lane.b32.xlu0 %v15022_v37, %s17288_s1 }
 0xc0f   :  { %v15046_v38 = vpop.permute.xlu1 %6593  ;;  %v15048_v7 = vpop.permute.xlu0 %6579 }
 0xc11   :  { %6439 = vrot.lane.b32.xlu1 %v15004_v8, %s17251_s10  ;;  %6599 = vrot.lane.b32.xlu0 %v15032_v21, %s17288_s1 }
 0xc13   :  { %v15054_v59 = vpop.permute.xlu1 %6435  ;;  %v15056_v33 = vpop.permute.xlu0 %6595 }
 0xc15   :  { %6455 = vrot.lane.b32.xlu1 %v15010_v42, %s17251_s10  ;;  %6441 = vrot.lane.b32.xlu0 %v15022_v37, %s17251_s10 }
 0xc17   :  { %v15062_v62 = vpop.permute.xlu1 %6451  ;;  %v15064_v23 = vpop.permute.xlu0 %6437 }
 0xc19   :  { %6297 = vrot.lane.b32.xlu1 %v15004_v8, %s17252_s8  ;;  %6457 = vrot.lane.b32.xlu0 %v15032_v21, %s17251_s10 }
 0xc1b   :  { %v15070_v5 = vpop.permute.xlu1 %6293  ;;  %v15072_v48 = vpop.permute.xlu0 %6453 }
 0xc1d   :  { %6313 = vrot.lane.b32.xlu1 %v15010_v42, %s17252_s8  ;;  %6299 = vrot.lane.b32.xlu0 %v15022_v37, %s17252_s8 }
 0xc1f   :  { %v15078_v57 = vpop.permute.xlu1 %6309  ;;  %v15080_v51 = vpop.permute.xlu0 %6295 }
 0xc21   :  { %6155 = vrot.lane.b32.xlu1 %v15004_v8, %s17233_s7  ;;  %6315 = vrot.lane.b32.xlu0 %v15032_v21, %s17252_s8 }
 0xc23   :  { %v15086_v36 = vpop.permute.xlu1 %6151  ;;  %v15088_v19 = vpop.permute.xlu0 %6311 }
 0xc25   :  { %6171 = vrot.lane.b32.xlu1 %v15010_v42, %s17233_s7  ;;  %6157 = vrot.lane.b32.xlu0 %v15022_v37, %s17233_s7 }
 0xc27   :  { %v15094_v6 = vpop.permute.xlu1 %6167  ;;  %v15096_v49 = vpop.permute.xlu0 %6153 }
 0xc29   :  { %7063 = vrot.lane.b32.xlu1 %v15004_v8, %s17457_s29  ;;  %6173 = vrot.lane.b32.xlu0 %v15032_v21, %s17233_s7 }
 0xc2b   :  { %v15102_v2 = vpop.permute.xlu1 %7059  ;;  %v15104_v32 = vpop.permute.xlu0 %6169 }
 0xc2c   :  { %17469 = vst [vmem:[#allocation59_spill] sm:$0xff] %v15102_v2  ;;  %17470 = vst [vmem:[#allocation16_spill] sm:$0xff] %v15104_v32  ;;  %v10312_v2 = vld [vmem:[%s17222_s5 + $0x7] ss:$8 sm:$0xf] }
 0xc2d   :  { %7079 = vrot.lane.b32.xlu1 %v15010_v42, %s17457_s29  ;;  %7065 = vrot.lane.b32.xlu0 %v15022_v37, %s17457_s29 }
 0xc2f   :  { %v15110_v43 = vpop.permute.xlu1 %7075  ;;  %v15112_v15 = vpop.permute.xlu0 %7061 }
 0xc30   :  { %17471 = vst [vmem:[#allocation15_spill] sm:$0xff] %v15110_v43  ;;  %17472 = vst [vmem:[#allocation24_spill] sm:$0xff] %v15112_v15 }
 0xc31   :  { %6921 = vrot.lane.b32.xlu1 %v15004_v8, %s17458_s9  ;;  %7081 = vrot.lane.b32.xlu0 %v15032_v21, %s17457_s29 }
 0xc33   :  { %v15118_v44 = vpop.permute.xlu1 %6917  ;;  %v15120_v56 = vpop.permute.xlu0 %7077 }
 0xc34   :  { %17473 = vst [vmem:[#allocation22_spill] sm:$0xff] %v15118_v44  ;;  %17474 = vst [vmem:[#allocation63_spill] sm:$0xff] %v15120_v56  ;;  %v17515_v56 = vld [vmem:[#allocation4_spill] sm:$0xff] }
 0xc35   :  { %6937 = vrot.lane.b32.xlu1 %v15010_v42, %s17458_s9  ;;  %6923 = vrot.lane.b32.xlu0 %v15022_v37, %s17458_s9 }
 0xc37   :  { %v15126_v54 = vpop.permute.xlu1 %6933  ;;  %v15128_v30 = vpop.permute.xlu0 %6919 }
 0xc38   :  { %17475 = vst [vmem:[#allocation12_spill] sm:$0xff] %v15126_v54  ;;  %17476 = vst [vmem:[#allocation7_spill] sm:$0xff] %v15128_v30  ;;  %v15305_v54 = vld [vmem:[%s16922_s17 + $0x4] ss:$12 sps:$4 sm:$0xff]  }
 0xc39   :  { %6779 = vrot.lane.b32.xlu1 %v15004_v8, %s17287_s25  ;;  %6939 = vrot.lane.b32.xlu0 %v15032_v21, %s17458_s9  ;;  %17504 = vst [vmem:[#allocation85_spill] sm:$0xff] %v15305_v54 }
 0xc3a   :  { %7840 = vmatprep.mubr.bf16.mxu0 %v15305_v54  ;;  %v15331_v54 = vld [vmem:[%s17222_s5 + $0x20] ss:$8 sm:$0xf] }
 0xc3b   :  { %v15134_v4 = vpop.permute.xlu1 %6775  ;;  %v15136_v9 = vpop.permute.xlu0 %6935  ;;  %17509 = vst [vmem:[#allocation89_spill] sm:$0xff] %v15331_v54 }
 0xc3c   :  { %17477 = vst [vmem:[#allocation62_spill] sm:$0xff] %v15134_v4  ;;  %17478 = vst [vmem:[#allocation8_spill] sm:$0xff] %v15136_v9 }
 0xc3d   :  { %6795 = vrot.lane.b32.xlu1 %v15010_v42, %s17287_s25  ;;  %6781 = vrot.lane.b32.xlu0 %v15022_v37, %s17287_s25 }
 0xc3f   :  { %v15142_v16 = vpop.permute.xlu1 %7209  ;;  %v15144_v61 = vpop.permute.xlu0 %6777 }
 0xc40   :  { %17479 = vst [vmem:[#allocation18_spill] sm:$0xff] %v15144_v61 }
 0xc41   :  { %7213 = vrot.lane.b32.xlu1 %v15012_v12, %s17456_s4  ;;  %6797 = vrot.lane.b32.xlu0 %v15032_v21, %s17287_s25 }
 0xc43   :  { %v15150_v31 = vpop.permute.xlu1 %6585  ;;  %v15152_v22 = vpop.permute.xlu0 %7211 }
 0xc44   :  { %v7238_v32 = vsel %vm698_vm8, %v15152_v22, %v15040_v58 }
 0xc45   :  { %6589 = vrot.lane.b32.xlu1 %v15012_v12, %s17288_s1  ;;  %7215 = vrot.lane.b32.xlu0 %v15154_v46, %s17456_s4 }
 0xc47   :  { %v15160_v41 = vpop.permute.xlu1 %6601  ;;  %v15162_v34 = vpop.permute.xlu0 %6587 }
 0xc49   :  { %6605 = vrot.lane.b32.xlu1 %v15020_v17, %s17288_s1  ;;  %6591 = vrot.lane.b32.xlu0 %v15154_v46, %s17288_s1 }
 0xc4b   :  { %v15168_v18 = vpop.permute.xlu1 %6443  ;;  %v15170_v39 = vpop.permute.xlu0 %6603 }
 0xc4d   :  { %6447 = vrot.lane.b32.xlu1 %v15012_v12, %s17251_s10  ;;  %6607 = vrot.lane.b32.xlu0 %v15172_v3, %s17288_s1 }
 0xc4f   :  { %v15178_v47 = vpop.permute.xlu1 %6459  ;;  %v15180_v25 = vpop.permute.xlu0 %6445 }
 0xc51   :  { %6463 = vrot.lane.b32.xlu1 %v15020_v17, %s17251_s10  ;;  %6449 = vrot.lane.b32.xlu0 %v15154_v46, %s17251_s10 }
 0xc53   :  { %v15186_v24 = vpop.permute.xlu1 %6301  ;;  %v15188_v0 = vpop.permute.xlu0 %6461 }
 0xc55   :  { %6305 = vrot.lane.b32.xlu1 %v15012_v12, %s17252_s8  ;;  %6465 = vrot.lane.b32.xlu0 %v15172_v3, %s17251_s10 }
 0xc57   :  { %v15194_v40 = vpop.permute.xlu1 %6317  ;;  %v15196_v10 = vpop.permute.xlu0 %6303 }
 0xc59   :  { %6321 = vrot.lane.b32.xlu1 %v15020_v17, %s17252_s8  ;;  %6307 = vrot.lane.b32.xlu0 %v15154_v46, %s17252_s8 }
 0xc5b   :  { %v15202_v60 = vpop.permute.xlu1 %6159  ;;  %v15204_v11 = vpop.permute.xlu0 %6319 }
 0xc5d   :  { %6163 = vrot.lane.b32.xlu1 %v15012_v12, %s17233_s7  ;;  %6323 = vrot.lane.b32.xlu0 %v15172_v3, %s17252_s8 }
 0xc5f   :  { %v15210_v55 = vpop.permute.xlu1 %6175  ;;  %v15212_v20 = vpop.permute.xlu0 %6161 }
 0xc61   :  { %6179 = vrot.lane.b32.xlu1 %v15020_v17, %s17233_s7  ;;  %6165 = vrot.lane.b32.xlu0 %v15154_v46, %s17233_s7 }
 0xc63   :  { %v15218_v28 = vpop.permute.xlu1 %7067  ;;  %v15220_v45 = vpop.permute.xlu0 %6177 }
 0xc64   :  { %17482 = vst [vmem:[#allocation68_spill] sm:$0xff] %v15218_v28  ;;  %17483 = vst [vmem:[#allocation66_spill] sm:$0xff] %v15220_v45  ;;  %v7241_v28 = vsel %vm698_vm8, %v15018_v27, %v15142_v16  ;;  %v10303_v27 = vld [vmem:[%s17222_s5 + $0x6] ss:$8 sm:$0xf] }
 0xc65   :  { %6783 = vrot.lane.b32.xlu1 %v14899_v50, %s17287_s25  ;;  %6181 = vrot.lane.b32.xlu0 %v15172_v3, %s17233_s7 }
 0xc67   :  { %v15226_v21 = vpop.permute.xlu1 %7083  ;;  %v15228_v42 = vpop.permute.xlu0 %7069 }
 0xc68   :  { %17484 = vst [vmem:[#allocation36_spill] sm:$0xff] %v15226_v21  ;;  %17485 = vst [vmem:[#allocation26_spill] sm:$0xff] %v15228_v42 }
 0xc69   :  { %7071 = vrot.lane.b32.xlu1 %v15012_v12, %s17457_s29  ;;  %6785 = vrot.lane.b32.xlu0 %v14911_v29, %s17287_s25 }
 0xc6b   :  { %v15234_v37 = vpop.permute.xlu1 %6925  ;;  %v15236_v8 = vpop.permute.xlu0 %7085 }
 0xc6c   :  { %17486 = vst [vmem:[#allocation71_spill] sm:$0xff] %v15234_v37  ;;  %17487 = vst [vmem:[#allocation72_spill] sm:$0xff] %v15236_v8 }
 0xc6d   :  { %7087 = vrot.lane.b32.xlu1 %v15020_v17, %s17457_s29  ;;  %7073 = vrot.lane.b32.xlu0 %v15154_v46, %s17457_s29 }
 0xc6f   :  { %v15242_v50 = vpop.permute.xlu1 %6941  ;;  %v15244_v61 = vpop.permute.xlu0 %6927 }
 0xc70   :  { %17488 = vst [vmem:[#allocation50_spill] sm:$0xff] %v15242_v50  ;;  %17489 = vst [vmem:[#allocation37_spill] sm:$0xff] %v15244_v61 }
 0xc71   :  { %6929 = vrot.lane.b32.xlu1 %v15012_v12, %s17458_s9  ;;  %7089 = vrot.lane.b32.xlu0 %v15172_v3, %s17457_s29 }
 0xc73   :  { %v15250_v29 = vpop.permute.xlu0 %6943  ;;  %v15252_v4 = vpop.permute.xlu1 %7205 }
 0xc74   :  { %17490 = vst [vmem:[#allocation77_spill] sm:$0xff] %v15250_v29  ;;  %17491 = vst [vmem:[#allocation67_spill] sm:$0xff] %v15252_v4 }
 0xc75   :  { %6945 = vrot.lane.b32.xlu1 %v15020_v17, %s17458_s9  ;;  %6931 = vrot.lane.b32.xlu0 %v15154_v46, %s17458_s9 }
 0xc77   :  { %v15258_v9 = vpop.permute.xlu1 %7221  ;;  %v15260_v30 = vpop.permute.xlu0 %7207 }
 0xc78   :  { %17492 = vst [vmem:[#allocation49_spill] sm:$0xff] %v15258_v9  ;;  %17493 = vst [vmem:[#allocation80_spill] sm:$0xff] %v15260_v30 }
 0xc79   :  { %6787 = vrot.lane.b32.xlu1 %v15012_v12, %s17287_s25  ;;  %6947 = vrot.lane.b32.xlu0 %v15172_v3, %s17458_s9 }
 0xc7b   :  { %v15266_v61 = vpop.permute.xlu1 %6581  ;;  %v15268_v29 = vpop.permute.xlu0 %7223 }
 0xc7c   :  { %17494 = vst [vmem:[#allocation17_spill] sm:$0xff] %v15266_v61  ;;  %17495 = vst [vmem:[#allocation9_spill] sm:$0xff] %v15268_v29 }
 0xc7d   :  { %6791 = vrot.lane.b32.xlu1 %v14896_v53, %s17287_s25  ;;  %6789 = vrot.lane.b32.xlu0 %v15154_v46, %s17287_s25 }
 0xc7f   :  { %v15274_v50 = vpop.permute.xlu1 %6597  ;;  %v15276_v8 = vpop.permute.xlu0 %6583 }
 0xc80   :  { %17496 = vst [vmem:[#allocation75_spill] sm:$0xff] %v15274_v50  ;;  %17497 = vst [vmem:[#allocation74_spill] sm:$0xff] %v15276_v8 }
 0xc81   :  { %6803 = vrot.lane.b32.xlu1 %v15020_v17, %s17287_s25  ;;  %6793 = vrot.lane.b32.xlu0 %v14906_v63, %s17287_s25 }
 0xc83   :  { %v15282_v12 = vpop.permute.xlu1 %6439  ;;  %v15284_v44 = vpop.permute.xlu0 %6599 }
 0xc84   :  { %17498 = vst [vmem:[#allocation44_spill] sm:$0xff] %v15282_v12  ;;  %17499 = vst [vmem:[#allocation45_spill] sm:$0xff] %v15284_v44 }
 0xc85   :  { %6799 = vrot.lane.b32.xlu1 %v14901_v14, %s17287_s25  ;;  %6805 = vrot.lane.b32.xlu0 %v15172_v3, %s17287_s25 }
 0xc87   :  { %v15290_v53 = vpop.permute.xlu1 %6455  ;;  %v15292_v46 = vpop.permute.xlu0 %6441 }
 0xc88   :  { %17500 = vst [vmem:[#allocation14_spill] sm:$0xff] %v15290_v53  ;;  %17501 = vst [vmem:[#allocation84_spill] sm:$0xff] %v15292_v46  ;;  %v17514_v53 = vld [vmem:[#allocation3_spill] sm:$0xff] }
 0xc89   :  { %7229 = vrot.lane.b32.xlu1 %v15020_v17, %s17456_s4  ;;  %6801 = vrot.lane.b32.xlu0 %v14913_v35, %s17287_s25  ;;  %v7418_v17 = vld [vmem:[%s16923_s18] sm:$0xff] }
 0xc8b   :  { %v15298_v63 = vpop.permute.xlu1 %6297  ;;  %v15300_v37 = vpop.permute.xlu0 %6457 }
 0xc8c   :  { %17502 = vst [vmem:[#allocation83_spill] sm:$0xff] %v15298_v63  ;;  %17503 = vst [vmem:[#allocation86_spill] sm:$0xff] %v15300_v37 }
 0xc8d   :  { %7225 = vrot.lane.b32.xlu1 %v14901_v14, %s17456_s4  ;;  %7231 = vrot.lane.b32.xlu0 %v15172_v3, %s17456_s4  ;;  %v7419_v3 = vld [vmem:[%s16923_s18 + $0x8] sm:$0xff] }
 0xc8f   :  { %v15315_v63 = vpop.permute.xlu1 %6313  ;;  %v15317_v37 = vpop.permute.xlu0 %6299 }
 0xc90   :  { %17505 = vst [vmem:[#allocation13_spill] sm:$0xff] %v15315_v63  ;;  %17506 = vst [vmem:[#allocation48_spill] sm:$0xff] %v15317_v37  ;;  %v17512_v37 = vld [vmem:[#allocation5_spill] sm:$0xff] }
 0xc91   :  { %7422 = vperm.xlu1 %11227, %v7418_v17   ;;  %7227 = vrot.lane.b32.xlu0 %v14913_v35, %s17456_s4  ;;  %v10277_v35 = vld [vmem:[%s17222_s5 + $0x3] ss:$8 sm:$0xf]  ;;  %v15436_v58 = vrot.slane %v10312_v2, %v17512_v37 }
 0xc92   :  { %v15358_v12 = vrot.slane %v10277_v35, %v17514_v53  ;;  %v15361_v42 = vrot.slane %v10277_v35, %v17512_v37  ;;  %v15364_v21 = vrot.slane %v10277_v35, %v17515_v56 }
 0xc93   :  { %v15321_v15 = vpop.permute.xlu1 %6155  ;;  %v15323_v14 = vpop.permute.xlu0 %6315  ;;  %17523 = vst [vmem:[#allocation98_spill] sm:$0xff] %v15436_v58 }
 0xc94   :  { %17507 = vst [vmem:[#allocation87_spill] sm:$0xff] %v15321_v15  ;;  %17508 = vst [vmem:[#allocation88_spill] sm:$0xff] %v15323_v14  ;;  %v10268_v15 = vld [vmem:[%s17222_s5 + $0x2] ss:$8 sm:$0xf] }
 0xc95   :  { %7427 = vperm.xlu0 %11226, %v7419_v3   ;;  %v15345_v3 = vrot.slane %v15331_v54, %v17512_v37  ;;  %v17513_v14 = vld [vmem:[#allocation6_spill] sm:$0xff]  ;;  %v15377_v50 = vrot.slane %v10268_v15, %v17514_v53  ;;  %v15380_v45 = vrot.slane %v10268_v15, %v17512_v37 }
 0xc96   :  { %v15349_v46 = vrot.slane %v15331_v54, %v17513_v14  ;;  %v6150_v54 = vld [vmem:[%s17222_s5] ss:$8 sm:$0xf]  ;;  %v15374_v61 = vrot.slane %v10268_v15, %v17513_v14  ;;  %v15439_v9 = vrot.slane %v10312_v2, %v17513_v14 }
 0xc97   :  { %v15333_v63 = vpop.permute.xlu1 %6171  ;;  %v15335_v17 = vpop.permute.xlu0 %6157  ;;  %v15409_v43 = vrot.slane %v6150_v54, %v17513_v14  ;;  %v15423_v4 = vrot.slane %v6150_v54, %v17512_v37 }
 0xc98   :  { %17510 = vst [vmem:[#allocation90_spill] sm:$0xff] %v15333_v63  ;;  %17511 = vst [vmem:[#allocation91_spill] sm:$0xff] %v15335_v17  ;;  %v10259_v17 = vld [vmem:[%s17222_s5 + $0x1] ss:$8 sm:$0xf]  ;;  %v15355_v63 = vrot.slane %v10277_v35, %v17513_v14  ;;  %v15383_v35 = vrot.slane %v10268_v15, %v17515_v56  ;;  %v7237_v15 = vsel %vm698_vm8, %v15142_v16, %v15028_v13 }
 0xc99   :  { %v15386_v30 = vrot.slane %v10259_v17, %v17513_v14  ;;  %v15389_v29 = vrot.slane %v10259_v17, %v17514_v53  ;;  %17518 = vst [vmem:[#allocation93_spill] sm:$0xff] %v15409_v43  ;;  %v7242_v13 = vsel %vm698_vm8, %v15030_v52, %v15152_v22  ;;  %v15426_v16 = vrot.slane %v6150_v54, %v17515_v56 }
 0xc9a   :  { %17524 = vst [vmem:[#allocation99_spill] sm:$0xff] %v15439_v9  ;;  %v15442_v22 = vrot.slane %v10312_v2, %v17514_v53  ;;  %v15448_v52 = vmul.f32 %v15345_v3, %v7241_v28  ;;  %v15466_v28 = vmul.f32 %v15345_v3, %v7242_v13  ;;  %v6618_v13 = vsel %vm358_vm4, %v15048_v7, %v15162_v34 }
 0xc9b   :  { %v15369_v8 = vpop.permute.xlu1 %7063  ;;  %v15371_v44 = vpop.permute.xlu0 %6173  ;;  %17520 = vst [vmem:[#allocation95_spill] sm:$0xff] %v15426_v16  ;;  %v15451_v16 = vmul.f32 %v15349_v46, %v7237_v15  ;;  %v15469_v15 = vmul.f32 %v15349_v46, %v7238_v32  ;;  %v15487_v32 = vrot.slane %v10303_v27, %v17513_v14  ;;  %v17559_v14 = vld [vmem:[#allocation16_spill] sm:$0xff] }
 0xc9c   :  { %17516 = vst [vmem:[#allocation5_spill] sm:$0xff] %v15369_v8  ;;  %17517 = vst [vmem:[#allocation92_spill] sm:$0xff] %v15371_v44  ;;  %v15392_v8 = vrot.slane %v10259_v17, %v17512_v37  ;;  %v15395_v44 = vrot.slane %v10259_v17, %v17515_v56  ;;  %v15412_v17 = vrot.slane %v6150_v54, %v17514_v53 }
 0xc9d   :  { %17525 = vst [vmem:[#allocation100_spill] sm:$0xff] %v15442_v22  ;;  %v15445_v54 = vrot.slane %v10312_v2, %v17515_v56  ;;  %v6617_v2 = vsel %vm358_vm4, %v15038_v1, %v15150_v31  ;;  %v6621_v22 = vsel %vm358_vm4, %v15160_v41, %v15038_v1  ;;  %17528 = vst [vmem:[#allocation103_spill] sm:$0xff] %v15487_v32 }
 0xc9e   :  { %17519 = vst [vmem:[#allocation94_spill] sm:$0xff] %v15412_v17  ;;  %v6613_v1 = vsel %vm358_vm4, %v15150_v31, %v15046_v38  ;;  %v15517_v31 = vmul.f32 %v15361_v42, %v6621_v22  ;;  %v6480_v22 = vsel %vm274_vm5, %v15188_v0, %v15064_v23 }
 0xc9f   :  { %v15431_v17 = vpop.permute.xlu1 %7079  ;;  %v15433_v43 = vpop.permute.xlu0 %7065  ;;  %17526 = vst [vmem:[#allocation101_spill] sm:$0xff] %v15445_v54  ;;  %v15472_v54 = vrot.slane %v10303_v27, %v17512_v37 }
 0xca0   :  { %17521 = vst [vmem:[#allocation96_spill] sm:$0xff] %v15431_v17  ;;  %17522 = vst [vmem:[#allocation97_spill] sm:$0xff] %v15433_v43  ;;  %v6610_v43 = vsel %vm358_vm4, %v15056_v33, %v15170_v39  ;;  %v6622_v17 = vsel %vm358_vm4, %v15170_v39, %v15048_v7  ;;  %v6614_v39 = vsel %vm358_vm4, %v15162_v34, %v15056_v33 }
 0xca1   :  { %17527 = vst [vmem:[#allocation102_spill] sm:$0xff] %v15472_v54  ;;  %v6609_v33 = vsel %vm358_vm4, %v15046_v38, %v15160_v41  ;;  %v15502_v58 = vmul.f32 %v15361_v42, %v6622_v17  ;;  %v15505_v7 = vmul.f32 %v15364_v21, %v6610_v43  ;;  %v15508_v34 = vmul.f32 %v15355_v63, %v6617_v2 }
 0xca2   :  { %v15520_v38 = vmul.f32 %v15355_v63, %v6618_v13  ;;  %v15523_v41 = vmul.f32 %v15358_v12, %v6614_v39  ;;  %v15526_v43 = vmul.f32 %v15358_v12, %v6613_v1  ;;  %v15529_v17 = vmul.f32 %v15364_v21, %v6609_v33 }
 0xca3   :  { %v15489_v9 = vpop.permute.xlu1 %6921  ;;  %v15491_v54 = vpop.permute.xlu0 %7081  ;;  %v6475_v13 = vsel %vm274_vm5, %v15054_v59, %v15168_v18  ;;  %v6468_v1 = vsel %vm274_vm5, %v15072_v48, %v15188_v0  ;;  %v6467_v33 = vsel %vm274_vm5, %v15062_v62, %v15178_v47  ;;  %v6476_v0 = vsel %vm274_vm5, %v15064_v23, %v15180_v25 }
 0xca4   :  { %17529 = vst [vmem:[#allocation104_spill] sm:$0xff] %v15489_v9  ;;  %17530 = vst [vmem:[#allocation105_spill] sm:$0xff] %v15491_v54  ;;  %v15511_v9 = vrot.slane %v10303_v27, %v17514_v53  ;;  %v15514_v54 = vrot.slane %v10303_v27, %v17515_v56  ;;  %v6471_v27 = vsel %vm274_vm5, %v15168_v18, %v15062_v62 }
 0xca5   :  { %v6479_v56 = vsel %vm274_vm5, %v15178_v47, %v15054_v59  ;;  %v6472_v18 = vsel %vm274_vm5, %v15180_v25, %v15072_v48  ;;  %v15568_v53 = vmul.f32 %v15380_v45, %v6480_v22  ;;  %v15575_v59 = vmul.f32 %v15374_v61, %v6475_v13 }
 0xca6   :  { %17531 = vst [vmem:[#allocation106_spill] sm:$0xff] %v15511_v9  ;;  %17532 = vst [vmem:[#allocation107_spill] sm:$0xff] %v15514_v54  ;;  %v15578_v47 = vmul.f32 %v15377_v50, %v6471_v27  ;;  %v15581_v48 = vmul.f32 %v15383_v35, %v6468_v1  ;;  %v15588_v25 = vmul.f32 %v15380_v45, %v6479_v56  ;;  %v17555_v54 = vld [vmem:[#allocation93_spill] sm:$0xff] }
 0xca7   :  { %v15539_v2 = vpop.permute.xlu1 %6937  ;;  %v15541_v39 = vpop.permute.xlu0 %6923  ;;  %17535 = vst [vmem:[#allocation110_spill] sm:$0xff] %v15568_v53  ;;  %v15591_v22 = vmul.f32 %v15383_v35, %v6467_v33  ;;  %v15597_v13 = vmul.f32 %v15377_v50, %v6472_v18  ;;  %v6337_v27 = vsel %vm190_vm6, %v15194_v40, %v15070_v5  ;;  %v6329_v18 = vsel %vm190_vm6, %v15186_v24, %v15078_v57  ;;  %v17563_v53 = vld [vmem:[#allocation59_spill] sm:$0xff] }
 0xca8   :  { %17533 = vst [vmem:[#allocation108_spill] sm:$0xff] %v15539_v2  ;;  %17534 = vst [vmem:[#allocation109_spill] sm:$0xff] %v15541_v39  ;;  %v15594_v39 = vmul.f32 %v15374_v61, %v6476_v0  ;;  %v6333_v0 = vsel %vm190_vm6, %v15070_v5, %v15186_v24  ;;  %v6325_v1 = vsel %vm190_vm6, %v15078_v57, %v15194_v40  ;;  %v15640_v57 = vld [vmem:[%s17222_s5 + $0x5] ss:$8 sm:$0xf] }
 0xca9   :  { %17536 = vst [vmem:[#allocation111_spill] sm:$0xff] %v15578_v47  ;;  %17537 = vst [vmem:[#allocation112_spill] sm:$0xff] %v15581_v48  ;;  %v6330_v33 = vsel %vm190_vm6, %v15196_v10, %v15088_v19  ;;  %v6334_v56 = vsel %vm190_vm6, %v15080_v51, %v15196_v10  ;;  %v6338_v5 = vsel %vm190_vm6, %v15204_v11, %v15080_v51  ;;  %v17561_v47 = vld [vmem:[#allocation15_spill] sm:$0xff] }
 0xcaa   :  { %17540 = vst [vmem:[#allocation115_spill] sm:$0xff] %v15588_v25  ;;  %17541 = vst [vmem:[#allocation116_spill] sm:$0xff] %v15591_v22  ;;  %v15643_v40 = vmul.f32 %v15392_v8, %v6337_v27  ;;  %v6326_v10 = vsel %vm190_vm6, %v15088_v19, %v15204_v11  ;;  %v15661_v27 = vmul.f32 %v15386_v30, %v6334_v56  ;;  %v17560_v25 = vld [vmem:[#allocation95_spill] sm:$0xff] }
 0xcab   :  { %v15583_v2 = vpop.permute.xlu1 %6779  ;;  %v15585_v23 = vpop.permute.xlu0 %6939  ;;  %17542 = vst [vmem:[#allocation117_spill] sm:$0xff] %v15597_v13  ;;  %17545 = vst [vmem:[#allocation120_spill] sm:$0xff] %v15640_v57  ;;  %v15667_v19 = vmul.f32 %v15392_v8, %v6338_v5  ;;  %v15671_v11 = vrot.slane %v15640_v57, %v17512_v37  ;;  %v6187_v37 = vsel %vm106_vm7, %v15202_v60, %v15094_v6 }
 0xcac   :  { %17538 = vst [vmem:[#allocation113_spill] sm:$0xff] %v15583_v2  ;;  %17539 = vst [vmem:[#allocation114_spill] sm:$0xff] %v15585_v23  ;;  %v15652_v2 = vmul.f32 %v15386_v30, %v6333_v0  ;;  %v15664_v23 = vmul.f32 %v15389_v29, %v6330_v33  ;;  %v6183_v33 = vsel %vm106_vm7, %v15094_v6, %v15210_v55  ;;  %v17556_v6 = vld [vmem:[#allocation94_spill] sm:$0xff] }
 0xcad   :  { %17546 = vst [vmem:[#allocation121_spill] sm:$0xff] %v15643_v40  ;;  %17549 = vst [vmem:[#allocation124_spill] sm:$0xff] %v15661_v27  ;;  %v6192_v5 = vsel %vm106_vm7, %v15096_v49, %v15212_v20  ;;  %v17572_v27 = vld [vmem:[#allocation17_spill] sm:$0xff] }
 0xcae   :  { %17547 = vst [vmem:[#allocation122_spill] sm:$0xff] %v15652_v2  ;;  %17550 = vst [vmem:[#allocation125_spill] sm:$0xff] %v15664_v23 }
 0xcaf   :  { %v15633_v24 = vpop.permute.xlu1 %6795  ;;  %v15635_v62 = vpop.permute.xlu0 %6781  ;;  %17551 = vst [vmem:[#allocation126_spill] sm:$0xff] %v15671_v11  ;;  %v17554_v11 = vld [vmem:[#allocation67_spill] sm:$0xff] }
 0xcb0   :  { %17543 = vst [vmem:[#allocation118_spill] sm:$0xff] %v15633_v24  ;;  %17544 = vst [vmem:[#allocation119_spill] sm:$0xff] %v15635_v62  ;;  %v15655_v62 = vmul.f32 %v15389_v29, %v6329_v18  ;;  %v15658_v24 = vmul.f32 %v15395_v44, %v6325_v1  ;;  %v6191_v18 = vsel %vm106_vm7, %v15086_v36, %v15202_v60 }
 0xcb1   :  { %v15678_v1 = vmul.f32 %v15395_v44, %v6326_v10  ;;  %v6195_v10 = vsel %vm106_vm7, %v15210_v55, %v15086_v36  ;;  %v15711_v51 = vmul.f32 %v17555_v54, %v6191_v18  ;;  %v15716_v55 = vmul.f32 %v17556_v6, %v6187_v37 }
 0xcb2   :  { %17548 = vst [vmem:[#allocation123_spill] sm:$0xff] %v15655_v62  ;;  %v15719_v57 = vmul.f32 %v15423_v4, %v6195_v10  ;;  %v15729_v18 = vmul.f32 %v17555_v54, %v6192_v5  ;;  %v17562_v10 = vld [vmem:[#allocation68_spill] sm:$0xff]  ;;  %v17574_v62 = vld [vmem:[#allocation74_spill] sm:$0xff] }
 0xcb3   :  { %v7214_v56 = vpop.permute.xlu1 %7213  ;;  %v15680_v0 = vpop.permute.xlu0 %6797  ;;  %17557 = vst [vmem:[#allocation94_spill] sm:$0xff] %v15716_v55  ;;  %v7095_v13 = vsel %vm614_vm1, %v17562_v10, %v17561_v47  ;;  %v17565_v54 = vld [vmem:[#allocation80_spill] sm:$0xff] }
 0xcb4   :  { %17552 = vst [vmem:[#allocation127_spill] sm:$0xff] %v15680_v0  ;;  %v17553_v0 = vld [vmem:[#allocation49_spill] sm:$0xff]  ;;  %v7243_v36 = vsel %vm698_vm8, %v17554_v11, %v7214_v56  ;;  %17558 = vst [vmem:[#allocation128_spill] sm:$0xff] %v15719_v57  ;;  %v17566_v57 = vld [vmem:[#allocation66_spill] sm:$0xff] }
 0xcb5   :  { %v7239_v60 = vsel %vm698_vm8, %v7214_v56, %v17553_v0  ;;  %v6188_v0 = vsel %vm106_vm7, %v15212_v20, %v17559_v14  ;;  %v15726_v56 = vmul.f32 %v17560_v25, %v6183_v33  ;;  %v7278_v9 = vmul.f32 %v15345_v3, %v7243_v36  ;;  %v17564_v33 = vld [vmem:[#allocation9_spill] sm:$0xff] }
 0xcb6   :  { %v7279_v37 = vmul.f32 %v15349_v46, %v7239_v60  ;;  %v7099_v20 = vsel %vm614_vm1, %v17563_v53, %v17562_v10  ;;  %v15748_v60 = vmul.f32 %v17556_v6, %v6188_v0  ;;  %v6184_v10 = vsel %vm106_vm7, %v17559_v14, %v17566_v57  ;;  %v17571_v14 = vld [vmem:[#allocation75_spill] sm:$0xff] }
 0xcb7   :  { %v6590_v32 = vpop.permute.xlu1 %6589  ;;  %v7216_v11 = vpop.permute.xlu0 %7215 }
 0xcb8   :  { %v7240_v5 = vsel %vm698_vm8, %v7216_v11, %v17564_v33  ;;  %v7244_v36 = vsel %vm698_vm8, %v17565_v54, %v7216_v11  ;;  %v6196_v11 = vsel %vm106_vm7, %v17566_v57, %v15096_v49 }
 0xcb9   :  { %v7282_v22 = vmul.f32 %v15345_v3, %v7244_v36  ;;  %v7283_v48 = vmul.f32 %v15349_v46, %v7240_v5  ;;  %v17567_v3 = vld [vmem:[#allocation98_spill] sm:$0xff]  ;;  %v17569_v36 = vld [vmem:[#allocation99_spill] sm:$0xff] }
 0xcba   :  { %v15767_v5 = vmul.f32 %v17567_v3, %v7099_v20  ;;  %v15770_v55 = vmul.f32 %v17569_v36, %v7095_v13  ;;  %v6615_v20 = vsel %vm358_vm4, %v6590_v32, %v17571_v14  ;;  %v6619_v13 = vsel %vm358_vm4, %v17572_v27, %v6590_v32 }
 0xcbb   :  { %v6606_v54 = vpop.permute.xlu1 %6605  ;;  %v6592_v33 = vpop.permute.xlu0 %6591  ;;  %v11588_v46 = vpack.c.bf16 %v7283_v48, %v7279_v37  ;;  %v11589_v0 = vpack.c.bf16 %v7282_v22, %v7278_v9  ;;  %v6655_v48 = vmul.f32 %v15355_v63, %v6619_v13  ;;  %v6656_v22 = vmul.f32 %v15358_v12, %v6615_v20 }
 0xcbc   :  { %17568 = vst [vmem:[#allocation16_spill] sm:$0xff] %v15767_v5  ;;  %17570 = vst [vmem:[#allocation95_spill] sm:$0xff] %v15770_v55  ;;  %v6611_v2 = vsel %vm358_vm4, %v17571_v14, %v6606_v54  ;;  %v6623_v49 = vsel %vm358_vm4, %v6606_v54, %v17572_v27  ;;  %v15787_v5 = vmul.f32 %v15423_v4, %v6196_v11  ;;  %v17573_v54 = vld [vmem:[#allocation45_spill] sm:$0xff] }
 0xcbd   :  { %v15790_v55 = vmul.f32 %v17560_v25, %v6184_v10  ;;  %v6616_v57 = vsel %vm358_vm4, %v6592_v33, %v17573_v54  ;;  %v6620_v14 = vsel %vm358_vm4, %v17574_v62, %v6592_v33  ;;  %v6654_v40 = vmul.f32 %v15361_v42, %v6623_v49  ;;  %7863 = vmatprep.subr.bf16.mxu1 %v11588_v46  ;;  %v17576_v49 = vld [vmem:[#allocation36_spill] sm:$0xff] }
 0xcbe   :  { %v6657_v32 = vmul.f32 %v15364_v21, %v6611_v2  ;;  %7864 = vmatpush1.bf16.msra.mxu1 %v11589_v0  ;;  %v6659_v33 = vmul.f32 %v15355_v63, %v6620_v14  ;;  %v6660_v10 = vmul.f32 %v15358_v12, %v6616_v57  ;;  %v17575_v46 = vpack.c.bf16 %v15469_v15, %v15451_v16  ;;  %v17577_v0 = vld [vmem:[#allocation63_spill] sm:$0xff]  ;;  %v17579_v57 = vld [vmem:[#allocation44_spill] sm:$0xff]  ;;  %v17580_v15 = vld [vmem:[#allocation14_spill] sm:$0xff] }
 0xcbf   :  { %v6448_v23 = vpop.permute.xlu1 %6447  ;;  %v6608_v9 = vpop.permute.xlu0 %6607  ;;  %v7091_v20 = vsel %vm614_vm1, %v17561_v47, %v17576_v49  ;;  %v7103_v63 = vsel %vm614_vm1, %v17576_v49, %v17563_v53  ;;  %v17581_v53 = vpack.c.bf16 %v15466_v28, %v15448_v52  ;;  %v17582_v14 = vld [vmem:[#allocation84_spill] sm:$0xff]  ;;  %v17584_v28 = vld [vmem:[#allocation86_spill] sm:$0xff] }
 0xcc0   :  { %v6612_v27 = vsel %vm358_vm4, %v17573_v54, %v6608_v9  ;;  %v6624_v37 = vsel %vm358_vm4, %v6608_v9, %v17574_v62  ;;  %7865 = vmatprep.subr.bf16.mxu1 %v17575_v46  ;;  %v6477_v16 = vsel %vm274_vm5, %v17579_v57, %v6448_v23  ;;  %v6473_v54 = vsel %vm274_vm5, %v6448_v23, %v17580_v15  ;;  %v15848_v46 = vld [vmem:[%s16922_s17 + $0x8] ss:$12 sps:$4 sm:$0xff]  }
 0xcc1   :  { %v6658_v2 = vmul.f32 %v15361_v42, %v6624_v37  ;;  %v6661_v11 = vmul.f32 %v15364_v21, %v6612_v27  ;;  %v17578_v42 = vld [vmem:[#allocation26_spill] sm:$0xff]  ;;  %v11590_v27 = vpack.c.bf16 %v6659_v33, %v6655_v48  ;;  %v17583_v49 = vld [vmem:[#allocation24_spill] sm:$0xff]  ;;  %v6513_v48 = vmul.f32 %v15374_v61, %v6477_v16 }
 0xcc2   :  { %v7096_v21 = vsel %vm614_vm1, %v17578_v42, %v17577_v0  ;;  %7866 = vmatpush1.bf16.msra.mxu1 %v17581_v53  ;;  %v7100_v52 = vsel %vm614_vm1, %v17583_v49, %v17578_v42  ;;  %v6514_v53 = vmul.f32 %v15377_v50, %v6473_v54  ;;  %v17586_v16 = vld [vmem:[#allocation100_spill] sm:$0xff] }
 0xcc3   :  { %v6464_v62 = vpop.permute.xlu1 %6463  ;;  %v6450_v12 = vpop.permute.xlu0 %6449  ;;  %v11591_v37 = vpack.c.bf16 %v6661_v11, %v6657_v32  ;;  %7808 = vmatprep.subr.bf16.mxu0 %v11590_v27 }
 0xcc4   :  { %v6469_v47 = vsel %vm274_vm5, %v17580_v15, %v6464_v62  ;;  %v6481_v13 = vsel %vm274_vm5, %v6464_v62, %v17579_v57  ;;  %v6478_v9 = vsel %vm274_vm5, %v17582_v14, %v6450_v12  ;;  %v6474_v23 = vsel %vm274_vm5, %v6450_v12, %v17584_v28 }
 0xcc5   :  { %v11592_v57 = vpack.c.bf16 %v6658_v2, %v6654_v40  ;;  %v11593_v15 = vpack.c.bf16 %v6660_v10, %v6656_v22  ;;  %v6512_v32 = vmul.f32 %v15380_v45, %v6481_v13  ;;  %v6515_v33 = vmul.f32 %v15383_v35, %v6469_v47  ;;  %7894 = vmatprep.subr.bf16.mxu1 %v11591_v37  ;;  %v17587_v13 = vld [vmem:[#allocation101_spill] sm:$0xff] }
 0xcc6   :  { %v6517_v42 = vmul.f32 %v15374_v61, %v6478_v9  ;;  %v6518_v22 = vmul.f32 %v15377_v50, %v6474_v23  ;;  %10405 = vmatmul.mubr.msk.bf16.vlgmr.msra.gmra.mxu1 %vm5107_vm9, %v15848_v46  ;;  %v17585_v61 = vpack.c.bf16 %v15520_v38, %v15508_v34  ;;  %v15877_v47 = vmul.f32 %v17586_v16, %v7091_v20  ;;  %v17590_v38 = vld [vmem:[#allocation13_spill] sm:$0xff]  ;;  %v17593_v23 = vld [vmem:[#allocation88_spill] sm:$0xff] }
 0xcc7   :  { %v6306_v62 = vpop.permute.xlu1 %6305  ;;  %v6466_v11 = vpop.permute.xlu0 %6465  ;;  %7809 = vmatpush1.bf16.msra.mxu0 %v11592_v57  ;;  %v15880_v54 = vmul.f32 %v17587_v13, %v7103_v63  ;;  %7895 = vmatpush1.bf16.msra.mxu1 %v11593_v15  ;;  %v17589_v9 = vpack.c.bf16 %v15505_v7, %v15529_v17  ;;  %v15890_v34 = vmul.f32 %v17569_v36, %v7096_v21  ;;  %v17591_v63 = vld [vmem:[#allocation83_spill] sm:$0xff]  ;;  %v17594_v15 = vld [vmem:[#allocation48_spill] sm:$0xff] }
 0xcc8   :  { %v6470_v12 = vsel %vm274_vm5, %v17584_v28, %v6466_v11  ;;  %v6482_v40 = vsel %vm274_vm5, %v6466_v11, %v17582_v14  ;;  %7810 = vmatprep.subr.bf16.mxu0 %v17585_v61  ;;  %v15883_v14 = vmul.f32 %v17567_v3, %v7100_v52  ;;  %v17592_v37 = vpack.c.bf16 %v15502_v58, %v15517_v31 }
 0xcc9   :  { %v6516_v10 = vmul.f32 %v15380_v45, %v6482_v40  ;;  %v6519_v2 = vmul.f32 %v15383_v35, %v6470_v12  ;;  %v17588_v45 = vld [vmem:[#allocation85_spill] sm:$0xff]  ;;  %7896 = vmatprep.subr.bf16.mxu1 %v17589_v9  ;;  %v11594_v52 = vpack.c.bf16 %v15729_v18, %v15711_v51  ;;  %v6331_v7 = vsel %vm190_vm6, %v6306_v62, %v17590_v38 }
 0xcca   :  { %7926 = vmatprep.mubr.bf16.mxu1 %v17588_v45  ;;  %v6335_v17 = vsel %vm190_vm6, %v17591_v63, %v6306_v62  ;;  %v11595_v21 = vpack.c.bf16 %v6517_v42, %v6513_v48  ;;  %v17595_v11 = vpack.c.bf16 %v15523_v41, %v15526_v43  ;;  %v11598_v40 = vpack.c.bf16 %v6518_v22, %v6514_v53  ;;  %v17597_v45 = vld [vmem:[#allocation12_spill] sm:$0xff] }
 0xccb   :  { %v6322_v50 = vpop.permute.xlu1 %6321  ;;  %v6308_v35 = vpop.permute.xlu0 %6307  ;;  %7811 = vmatpush1.bf16.msra.mxu0 %v17592_v37  ;;  %v11596_v28 = vpack.c.bf16 %v6519_v2, %v6515_v33  ;;  %v11597_v12 = vpack.c.bf16 %v6516_v10, %v6512_v32  ;;  %v11599_v33 = vpack.c.bf16 %v15790_v55, %v15726_v56  ;;  %v6371_v42 = vmul.f32 %v15386_v30, %v6335_v17 }
 0xccc   :  { %v6327_v20 = vsel %vm190_vm6, %v17590_v38, %v6322_v50  ;;  %v6339_v27 = vsel %vm190_vm6, %v6322_v50, %v17591_v63  ;;  %v6332_v57 = vsel %vm190_vm6, %v6308_v35, %v17593_v23  ;;  %v6336_v58 = vsel %vm190_vm6, %v17594_v15, %v6308_v35  ;;  %7897 = vmatpush1.bf16.msra.mxu1 %v17595_v11  ;;  %v17598_v35 = vld [vmem:[#allocation71_spill] sm:$0xff]  ;;  %v17600_v63 = vld [vmem:[#allocation94_spill] sm:$0xff] }
 0xccd   :  { %v6370_v61 = vmul.f32 %v15392_v8, %v6339_v27  ;;  %v6373_v62 = vmul.f32 %v15395_v44, %v6327_v20  ;;  %7812 = vmatprep.subr.bf16.mxu0 %v11595_v21  ;;  %7898 = vmatprep.subr.bf16.mxu1 %v11596_v28  ;;  %v6372_v2 = vmul.f32 %v15389_v29, %v6331_v7  ;;  %v17599_v20 = vld [vmem:[#allocation128_spill] sm:$0xff]  ;;  %v17606_v21 = vld [vmem:[#allocation90_spill] sm:$0xff] }
 0xcce   :  { %v6375_v32 = vmul.f32 %v15386_v30, %v6336_v58  ;;  %v6376_v53 = vmul.f32 %v15389_v29, %v6332_v57  ;;  %v17596_v50 = vpack.c.bf16 %v15594_v39, %v15575_v59  ;;  %v6953_v9 = vsel %vm530_vm2, %v17598_v35, %v17597_v45  ;;  %v17601_v27 = vld [vmem:[#allocation112_spill] sm:$0xff]  ;;  %v17604_v39 = vld [vmem:[#allocation22_spill] sm:$0xff]  ;;  %v17609_v58 = vld [vmem:[#allocation115_spill] sm:$0xff] }
 0xccf   :  { %v6164_v31 = vpop.permute.xlu1 %6163  ;;  %v6324_v48 = vpop.permute.xlu0 %6323  ;;  %7813 = vmatpush1.bf16.msra.mxu0 %v11597_v12  ;;  %v11600_v30 = vpack.c.bf16 %v15787_v5, %v17599_v20  ;;  %v11601_v29 = vpack.c.bf16 %v15748_v60, %v17600_v63  ;;  %v6957_v59 = vsel %vm530_vm2, %v17604_v39, %v17598_v35  ;;  %v17605_v7 = vld [vmem:[#allocation72_spill] sm:$0xff]  ;;  %v17646_v63 = vld [vmem:[#allocation109_spill] sm:$0xff] }
 0xcd0   :  { %v6328_v41 = vsel %vm190_vm6, %v17593_v23, %v6324_v48  ;;  %v6340_v43 = vsel %vm190_vm6, %v6324_v48, %v17594_v15  ;;  %7814 = vmatprep.subr.bf16.mxu0 %v17596_v50  ;;  %7899 = vmatpush1.bf16.msra.mxu1 %v11598_v40  ;;  %v7092_v17 = vsel %vm614_vm1, %v17577_v0, %v17605_v7  ;;  %v17607_v23 = vld [vmem:[#allocation87_spill] sm:$0xff]  ;;  %v17608_v15 = vld [vmem:[#allocation110_spill] sm:$0xff] }
 0xcd1   :  { %v6374_v22 = vmul.f32 %v15392_v8, %v6340_v43  ;;  %v6377_v10 = vmul.f32 %v15395_v44, %v6328_v41  ;;  %v17602_v44 = vld [vmem:[#allocation116_spill] sm:$0xff]  ;;  %v17610_v11 = vpack.c.bf16 %v17608_v15, %v17609_v58  ;;  %v6189_v12 = vsel %vm106_vm7, %v6164_v31, %v17606_v21  ;;  %v17612_v50 = vld [vmem:[#allocation91_spill] sm:$0xff] }
 0xcd2   :  { %v17603_v37 = vpack.c.bf16 %v17601_v27, %v17602_v44  ;;  %v6193_v0 = vsel %vm106_vm7, %v17607_v23, %v6164_v31  ;;  %v11602_v40 = vpack.c.bf16 %v6375_v32, %v6371_v42  ;;  %v17611_v41 = vld [vmem:[#allocation92_spill] sm:$0xff]  ;;  %v17613_v27 = vld [vmem:[#allocation117_spill] sm:$0xff]  ;;  %v17614_v44 = vld [vmem:[#allocation111_spill] sm:$0xff]  ;;  %v11605_v15 = vpack.c.bf16 %v6376_v53, %v6372_v2 }
 0xcd3   :  { %v6180_v38 = vpop.permute.xlu1 %6179  ;;  %v6166_v8 = vpop.permute.xlu0 %6165  ;;  %7815 = vmatpush1.bf16.msra.mxu0 %v17610_v11  ;;  %v11603_v48 = vpack.c.bf16 %v6377_v10, %v6373_v62  ;;  %v7104_v31 = vsel %vm614_vm1, %v17605_v7, %v17583_v49  ;;  %v17616_v10 = vld [vmem:[#allocation93_spill] sm:$0xff]  ;;  %v17620_v11 = vld [vmem:[#allocation102_spill] sm:$0xff] }
 0xcd4   :  { %7900 = vmatprep.subr.bf16.mxu1 %v17603_v37  ;;  %v6185_v28 = vsel %vm106_vm7, %v17606_v21, %v6180_v38  ;;  %v6197_v57 = vsel %vm106_vm7, %v6180_v38, %v17607_v23  ;;  %v6190_v43 = vsel %vm106_vm7, %v6166_v8, %v17611_v41  ;;  %v6194_v35 = vsel %vm106_vm7, %v17612_v50, %v6166_v8 }
 0xcd5   :  { %v17615_v37 = vpack.c.bf16 %v17613_v27, %v17614_v44  ;;  %v11604_v21 = vpack.c.bf16 %v6374_v22, %v6370_v61  ;;  %v6228_v62 = vmul.f32 %v15423_v4, %v6197_v57  ;;  %v6231_v42 = vmul.f32 %v17560_v25, %v6185_v28  ;;  %7816 = vmatprep.subr.bf16.mxu0 %v11602_v40  ;;  %v17617_v28 = vld [vmem:[#allocation124_spill] sm:$0xff]  ;;  %v17618_v57 = vld [vmem:[#allocation122_spill] sm:$0xff] }
 0xcd6   :  { %v6229_v8 = vmul.f32 %v17616_v10, %v6193_v0  ;;  %v6230_v23 = vmul.f32 %v17556_v6, %v6189_v12  ;;  %v6233_v49 = vmul.f32 %v17616_v10, %v6194_v35  ;;  %v6234_v53 = vmul.f32 %v17556_v6, %v6190_v43  ;;  %v17621_v0 = vld [vmem:[#allocation103_spill] sm:$0xff]  ;;  %v17623_v43 = vld [vmem:[#allocation96_spill] sm:$0xff]  ;;  %v17627_v27 = vld [vmem:[#allocation6_spill] sm:$0xff] }
 0xcd7   :  { %v15977_v38 = vpop.permute.xlu1 %6783  ;;  %7901 = vmatpush1.bf16.msra.mxu1 %v17615_v37  ;;  %v6182_v32 = vpop.permute.xlu0 %6181  ;;  %7817 = vmatpush1.bf16.msra.mxu0 %v11604_v21  ;;  %v17619_v58 = vpack.c.bf16 %v17617_v28, %v17618_v57  ;;  %v16004_v12 = vmul.f32 %v17620_v11, %v6957_v59  ;;  %v16007_v40 = vmul.f32 %v17621_v0, %v6953_v9  ;;  %v17624_v9 = vld [vmem:[#allocation5_spill] sm:$0xff]  ;;  %v17628_v44 = vld [vmem:[#allocation120_spill] sm:$0xff]  ;;  %v17632_v28 = vld [vmem:[#allocation123_spill] sm:$0xff] }
 0xcd8   :  { %7902 = vmatprep.subr.bf16.mxu1 %v11603_v48  ;;  %v6186_v61 = vsel %vm106_vm7, %v17611_v41, %v6182_v32  ;;  %v6198_v2 = vsel %vm106_vm7, %v6182_v32, %v17612_v50  ;;  %v16010_v48 = vmul.f32 %v17586_v16, %v7092_v17  ;;  %v17625_v50 = vld [vmem:[#allocation121_spill] sm:$0xff]  ;;  %v16031_v37 = vrot.slane %v17628_v44, %v17627_v27  ;;  %v17630_v32 = vld [vmem:[#allocation50_spill] sm:$0xff] }
 0xcd9   :  { %v6232_v22 = vmul.f32 %v15423_v4, %v6198_v2  ;;  %v6235_v7 = vmul.f32 %v17560_v25, %v6186_v61  ;;  %7818 = vmatprep.subr.bf16.mxu0 %v17619_v58  ;;  %v17622_v4 = vpack.c.bf16 %v15678_v1, %v15658_v24  ;;  %v16018_v25 = vmul.f32 %v17587_v13, %v7104_v31  ;;  %v17631_v2 = vld [vmem:[#allocation125_spill] sm:$0xff] }
 0xcda   :  { %v17626_v35 = vpack.c.bf16 %v15667_v19, %v17625_v50  ;;  %v11606_v24 = vpack.c.bf16 %v6233_v49, %v6229_v8  ;;  %v6949_v10 = vsel %vm530_vm2, %v17597_v45, %v17630_v32  ;;  %v6961_v19 = vsel %vm530_vm2, %v17630_v32, %v17604_v39  ;;  %v17636_v49 = vld [vmem:[#allocation7_spill] sm:$0xff]  ;;  %v17643_v32 = vld [vmem:[#allocation104_spill] sm:$0xff] }
 0xcdb   :  { %v7072_v41 = vpop.permute.xlu1 %7071  ;;  %7903 = vmatpush1.bf16.msra.mxu1 %v11605_v15  ;;  %v16012_v6 = vpop.permute.xlu0 %6785  ;;  %v11607_v1 = vpack.c.bf16 %v6235_v7, %v6231_v42  ;;  %v11608_v21 = vpack.c.bf16 %v6232_v22, %v6228_v62  ;;  %v17629_v15 = vld [vmem:[#allocation95_spill] sm:$0xff]  ;;  %v17633_v57 = vpack.c.bf16 %v17631_v2, %v17632_v28  ;;  %v11610_v42 = vpack.c.bf16 %v6234_v53, %v6230_v23  ;;  %v17634_v62 = vld [vmem:[#allocation16_spill] sm:$0xff]  ;;  %v17637_v53 = vld [vmem:[#allocation105_spill] sm:$0xff] }
 0xcdc   :  { %7904 = vmatprep.subr.bf16.mxu1 %v17622_v4  ;;  %v7097_v59 = vsel %vm614_vm1, %v7072_v41, %v17623_v43  ;;  %v7101_v17 = vsel %vm614_vm1, %v17624_v9, %v7072_v41  ;;  %7819 = vmatpush1.bf16.msra.mxu0 %v17626_v35  ;;  %v11609_v31 = vpack.c.bf16 %v15890_v34, %v17629_v15  ;;  %v17635_v34 = vld [vmem:[#allocation37_spill] sm:$0xff] }
 0xcdd   :  { %v11611_v8 = vpack.c.bf16 %v15883_v14, %v17634_v62  ;;  %v6958_v22 = vsel %vm530_vm2, %v17636_v49, %v17635_v34  ;;  %v7136_v45 = vmul.f32 %v17567_v3, %v7101_v17  ;;  %v7137_v7 = vmul.f32 %v17569_v36, %v7097_v59  ;;  %7820 = vmatprep.subr.bf16.mxu0 %v11606_v24  ;;  %v17638_v4 = vld [vmem:[#allocation97_spill] sm:$0xff]  ;;  %v17641_v24 = vld [vmem:[#allocation8_spill] sm:$0xff] }
 0xcdf   :  { %v7088_v61 = vpop.permute.xlu1 %7087  ;;  %7905 = vmatpush1.bf16.msra.mxu1 %v17633_v57  ;;  %v7074_v58 = vpop.permute.xlu0 %7073  ;;  %v17644_v57 = vld [vmem:[#allocation77_spill] sm:$0xff] }
 0xce0   :  { %7906 = vmatprep.subr.bf16.mxu1 %v11607_v1  ;;  %v7093_v39 = vsel %vm614_vm1, %v17623_v43, %v7088_v61  ;;  %v7105_v23 = vsel %vm614_vm1, %v7088_v61, %v17624_v9  ;;  %v7098_v41 = vsel %vm614_vm1, %v7074_v58, %v17637_v53  ;;  %v7102_v17 = vsel %vm614_vm1, %v17638_v4, %v7074_v58  ;;  %v17639_v43 = vld [vmem:[#allocation106_spill] sm:$0xff]  ;;  %v17640_v9 = vld [vmem:[#allocation107_spill] sm:$0xff] }
 0xce1   :  { %7821 = vmatpush1.bf16.msra.mxu0 %v11608_v21  ;;  %v7140_v59 = vmul.f32 %v17567_v3, %v7102_v17  ;;  %v7141_v50 = vmul.f32 %v17569_v36, %v7098_v41  ;;  %v16072_v35 = vmul.f32 %v17639_v43, %v6949_v10  ;;  %v16075_v27 = vmul.f32 %v17640_v9, %v6961_v19 }
 0xce2   :  { %7822 = vmatprep.subr.bf16.mxu0 %v11594_v52  ;;  %v6954_v1 = vsel %vm530_vm2, %v17635_v34, %v17641_v24  ;;  %v16082_v21 = vmul.f32 %v17620_v11, %v6958_v22  ;;  %v7138_v36 = vmul.f32 %v17586_v16, %v7093_v39  ;;  %v7139_v51 = vmul.f32 %v17587_v13, %v7105_v23  ;;  %v17642_v52 = vld [vmem:[#allocation108_spill] sm:$0xff] }
 0xce3   :  { %v6930_v3 = vpop.permute.xlu1 %6929  ;;  %7907 = vmatpush1.bf16.msra.mxu1 %v11610_v42  ;;  %v7090_v18 = vpop.permute.xlu0 %7089  ;;  %v11613_v2 = vpack.c.bf16 %v7140_v59, %v7136_v45  ;;  %v6991_v28 = vmul.f32 %v17621_v0, %v6954_v1  ;;  %v6950_v42 = vsel %vm530_vm2, %v17641_v24, %v17644_v57  ;;  %v6962_v34 = vsel %vm530_vm2, %v17644_v57, %v17636_v49  ;;  %v17645_v45 = vld [vmem:[#allocation114_spill] sm:$0xff]  ;;  %v17655_v57 = vld [vmem:[#allocation4_spill] sm:$0xff] }
 0xce4   :  { %7908 = vmatprep.subr.bf16.mxu1 %v11599_v33  ;;  %v6955_v15 = vsel %vm530_vm2, %v6930_v3, %v17642_v52  ;;  %v6959_v10 = vsel %vm530_vm2, %v17643_v32, %v6930_v3  ;;  %v7094_v19 = vsel %vm614_vm1, %v17637_v53, %v7090_v18  ;;  %v7106_v61 = vsel %vm614_vm1, %v7090_v18, %v17638_v4  ;;  %v17649_v18 = vld [vmem:[#allocation3_spill] sm:$0xff] }
 0xce5   :  { %7823 = vmatpush1.bf16.msra.mxu0 %v11600_v30  ;;  %v7142_v55 = vmul.f32 %v17586_v16, %v7094_v19  ;;  %v7143_v56 = vmul.f32 %v17587_v13, %v7106_v61  ;;  %v11612_v33 = vpack.c.bf16 %v7141_v50, %v7137_v7  ;;  %v11614_v16 = vpack.c.bf16 %v16018_v25, %v15880_v54  ;;  %v17652_v19 = vld [vmem:[#allocation127_spill] sm:$0xff] }
 0xce6   :  { %v6994_v13 = vmul.f32 %v17620_v11, %v6959_v10  ;;  %v6995_v20 = vmul.f32 %v17621_v0, %v6955_v15  ;;  %v16137_v39 = vmul.f32 %v17639_v43, %v6950_v42  ;;  %v6993_v23 = vmul.f32 %v17640_v9, %v6962_v34 }
 0xce7   :  { %v6946_v5 = vpop.permute.xlu1 %6945  ;;  %7909 = vmatpush1.bf16.msra.mxu1 %v11601_v29  ;;  %v6932_v30 = vpop.permute.xlu0 %6931  ;;  %7824 = vmatprep.subr.bf16.mxu0 %v11612_v33  ;;  %v11615_v7 = vpack.c.bf16 %v7143_v56, %v7139_v51  ;;  %v11616_v58 = vpack.c.bf16 %v7142_v55, %v7138_v36  ;;  %v11617_v41 = vpack.c.bf16 %v16010_v48, %v15877_v47 }
 0xce8   :  { %v6951_v22 = vsel %vm530_vm2, %v17642_v52, %v6946_v5  ;;  %v6963_v49 = vsel %vm530_vm2, %v6946_v5, %v17643_v32  ;;  %v6956_v60 = vsel %vm530_vm2, %v6932_v30, %v17645_v45  ;;  %v6960_v54 = vsel %vm530_vm2, %v17646_v63, %v6932_v30  ;;  %v17650_v32 = vld [vmem:[#allocation126_spill] sm:$0xff] }
 0xce9   :  { %7825 = vmatpush2.bf16.msra.mxu0 %v11613_v2  ;;  %v6998_v29 = vmul.f32 %v17620_v11, %v6960_v54  ;;  %v6999_v25 = vmul.f32 %v17621_v0, %v6956_v60  ;;  %v6996_v4 = vmul.f32 %v17639_v43, %v6951_v22  ;;  %v6997_v17 = vmul.f32 %v17640_v9, %v6963_v49  ;;  %v17647_v11 = vld [vmem:[#allocation118_spill] sm:$0xff] }
 0xcea   :  { %7826 = vmatprep.subr.bf16.mxu0 %v11609_v31  ;;  %7910 = vmatprep.subr.bf16.mxu1 %v11615_v7  ;;  %v17648_v31 = vld [vmem:[#allocation113_spill] sm:$0xff]  ;;  %v16163_v52 = vrot.slane %v17628_v44, %v17649_v18  ;;  %v11620_v15 = vpack.c.bf16 %v6991_v28, %v16007_v40  ;;  %v17653_v40 = vld [vmem:[#allocation119_spill] sm:$0xff]  ;;  %v17654_v28 = vld [vmem:[#allocation18_spill] sm:$0xff]  ;;  %v6839_v42 = vrot.slane %v17628_v44, %v17655_v57 }
 0xceb   :  { %v6788_v53 = vpop.permute.xlu1 %6787  ;;  %v6948_v59 = vpop.permute.xlu0 %6947  ;;  %7911 = vmatpush2.bf16.msra.mxu1 %v11616_v58  ;;  %v11618_v3 = vpack.c.bf16 %v6999_v25, %v6995_v20  ;;  %v11619_v36 = vpack.c.bf16 %v6998_v29, %v6994_v13  ;;  %v11622_v5 = vpack.c.bf16 %v16082_v21, %v16004_v12  ;;  %v11624_v30 = vpack.c.bf16 %v6993_v23, %v16075_v27 }
 0xcec   :  { %v6813_v0 = vsel %vm446_vm3, %v6788_v53, %v17647_v11  ;;  %v6817_v50 = vsel %vm446_vm3, %v17648_v31, %v6788_v53  ;;  %v6952_v24 = vsel %vm530_vm2, %v17645_v45, %v6948_v59  ;;  %v6964_v47 = vsel %vm530_vm2, %v6948_v59, %v17646_v63  ;;  %7912 = vmatprep.subr.bf16.mxu1 %v11614_v16 }
 0xced   :  { %7827 = vmatpush2.bf16.msra.mxu0 %v11611_v8  ;;  %v7000_v48 = vmul.f32 %v17639_v43, %v6952_v24  ;;  %v7001_v1 = vmul.f32 %v17640_v9, %v6964_v47  ;;  %v6852_v10 = vmul.f32 %v17650_v32, %v6817_v50  ;;  %v6853_v14 = vmul.f32 %v16031_v37, %v6813_v0  ;;  %v17651_v8 = vld [vmem:[#allocation62_spill] sm:$0xff] }
 0xcee   :  { %7828 = vmatprep.subr.bf16.mxu0 %v11618_v3  ;;  %v6815_v43 = vsel %vm446_vm3, %v17651_v8, %v15977_v38  ;;  %v11627_v54 = vpack.c.bf16 %v16137_v39, %v16072_v35  ;;  %v17657_v0 = vld [vmem:[#allocation10_spill] sm:$0xff] }
 0xcef   :  { %v6792_v51 = vpop.permute.xlu1 %6791  ;;  %v6790_v62 = vpop.permute.xlu0 %6789  ;;  %7913 = vmatpush2.bf16.msra.mxu1 %v11617_v41  ;;  %v11621_v2 = vpack.c.bf16 %v7001_v1, %v6997_v17  ;;  %v11623_v16 = vpack.c.bf16 %v7000_v48, %v6996_v4  ;;  %v6844_v22 = vmul.f32 %v17650_v32, %v6815_v43  ;;  %v17656_v4 = vld [vmem:[#allocation89_spill] sm:$0xff]  ;;  %v17661_v43 = vld [vmem:[#allocation51_spill] sm:$0xff] }
 0xcf0   :  { %v6811_v9 = vsel %vm446_vm3, %v15977_v38, %v6792_v51  ;;  %v6814_v61 = vsel %vm446_vm3, %v6790_v62, %v17652_v19  ;;  %v6818_v55 = vsel %vm446_vm3, %v17653_v40, %v6790_v62  ;;  %v6816_v38 = vsel %vm446_vm3, %v17654_v28, %v16012_v6  ;;  %v17659_v1 = vld [vmem:[#allocation49_spill] sm:$0xff] }
 0xcf1   :  { %7829 = vmatpush2.bf16.msra.mxu0 %v11619_v36  ;;  %v6856_v56 = vmul.f32 %v17650_v32, %v6818_v55  ;;  %v6857_v33 = vmul.f32 %v16031_v37, %v6814_v61  ;;  %v6845_v13 = vmul.f32 %v16031_v37, %v6811_v9  ;;  %7914 = vmatprep.subr.bf16.mxu1 %v11621_v2  ;;  %v17660_v36 = vld [vmem:[#allocation67_spill] sm:$0xff] }
 0xcf2   :  { %7830 = vmatprep.subr.bf16.mxu0 %v11620_v15  ;;  %v6848_v21 = vmul.f32 %v17650_v32, %v6816_v38  ;;  %v7261_v17 = vrot.slane %v17656_v4, %v17649_v18  ;;  %v7265_v59 = vrot.slane %v17656_v4, %v17655_v57  ;;  %v17662_v9 = vld [vmem:[#allocation11_spill] sm:$0xff]  ;;  %v17665_v38 = vld [vmem:[#allocation9_spill] sm:$0xff] }
 0xcf3   :  { %v6804_v34 = vpop.permute.xlu1 %6803  ;;  %v6794_v20 = vpop.permute.xlu0 %6793  ;;  %7915 = vmatpush2.bf16.msra.mxu1 %v11623_v16  ;;  %v11625_v27 = vpack.c.bf16 %v6857_v33, %v6853_v14  ;;  %v11626_v60 = vpack.c.bf16 %v6856_v56, %v6852_v10  ;;  %v11372_v56 = vld [vmem:[#allocation2 + $0x84] ss:$-8 sps:$4 sm:$0xff]  }
 0xcf4   :  { %v6809_v49 = vsel %vm446_vm3, %v17647_v11, %v6804_v34  ;;  %v6821_v44 = vsel %vm446_vm3, %v6804_v34, %v17648_v31  ;;  %v6812_v12 = vsel %vm446_vm3, %v16012_v6, %v6794_v20  ;;  %7916 = vmatprep.subr.bf16.mxu1 %v11624_v30  ;;  %v11629_v41 = vpack.c.bf16 %v6848_v21, %v6844_v22  ;;  %v17658_v31 = vld [vmem:[#allocation27_spill] sm:$0xff]  ;;  %v17667_v21 = vld [vmem:[#allocation58_spill] sm:$0xff] }
 0xcf5   :  { %7831 = vmatpush2.bf16.msra.mxu0 %v11622_v5  ;;  %v6849_v45 = vmul.f32 %v16031_v37, %v6812_v12  ;;  %v6854_v29 = vmul.f32 %v16163_v52, %v6809_v49  ;;  %v6855_v25 = vmul.f32 %v6839_v42, %v6821_v44  ;;  %v11630_v50 = vpack.c.bf16 %v17658_v31, %v17657_v0  ;;  %v17663_v33 = vld [vmem:[#allocation19_spill] sm:$0xff]  ;;  %v11432_v31 = vld [vmem:[#allocation2 + $0x178] sm:$0xff] }
 0xcf6   :  { %7832 = vmatprep.subr.bf16.mxu0 %v11625_v27  ;;  %v11375_v12 = vld [vmem:[%s16922_s17] ss:$12 sps:$4 sm:$0xff]  }
 0xcf7   :  { %v6800_v63 = vpop.permute.xlu1 %6799  ;;  %v6806_v7 = vpop.permute.xlu0 %6805  ;;  %7917 = vmatpush2.bf16.msra.mxu1 %v11627_v54  ;;  %v11628_v53 = vpack.c.bf16 %v6849_v45, %v6845_v13  ;;  %v17668_v27 = vld [vmem:[#allocation23_spill] sm:$0xff]  ;;  %v17670_v54 = vld [vmem:[#allocation25_spill] sm:$0xff] }
 0xcf8   :  { %v6807_v6 = vsel %vm446_vm3, %v6792_v51, %v6800_v63  ;;  %v6819_v37 = vsel %vm446_vm3, %v6800_v63, %v17651_v8  ;;  %v6810_v58 = vsel %vm446_vm3, %v17652_v19, %v6806_v7  ;;  %v6822_v35 = vsel %vm446_vm3, %v6806_v7, %v17653_v40  ;;  %v17669_v63 = vld [vmem:[#allocation54_spill] sm:$0xff] }
 0xcf9   :  { %7833 = vmatpush2.bf16.msra.mxu0 %v11626_v60  ;;  %v6858_v39 = vmul.f32 %v16163_v52, %v6810_v58  ;;  %v6859_v23 = vmul.f32 %v6839_v42, %v6822_v35  ;;  %v6846_v24 = vmul.f32 %v16163_v52, %v6807_v6  ;;  %v6847_v47 = vmul.f32 %v6839_v42, %v6819_v37  ;;  %v17671_v58 = vld [vmem:[#allocation20_spill] sm:$0xff]  ;;  %v17672_v35 = vld [vmem:[#allocation21_spill] sm:$0xff] }
 0xcfa   :  { %7834 = vmatprep.subr.bf16.mxu0 %v11628_v53  ;;  %v11633_v19 = vpack.c.bf16 %v17662_v9, %v17661_v43  ;;  %v17673_v53 = vmov 0  }
 0xcfb   :  { %v7230_v11 = vpop.permute.xlu1 %7229  ;;  %v6802_v48 = vpop.permute.xlu0 %6801  ;;  %v11631_v14 = vpack.c.bf16 %v6859_v23, %v6855_v25  ;;  %v11632_v62 = vpack.c.bf16 %v6858_v39, %v6854_v29  ;;  %v11636_v29 = vpack.c.bf16 %v17670_v54, %v17669_v63  ;;  %v11639_v39 = vpack.c.bf16 %v17672_v35, %v17671_v58  ;;  %v11378_v23 = vld [vmem:[#allocation2 + $0xfc] ss:$200 sps:$4 sm:$0xff]  }
 0xcfc   :  { %v7235_v3 = vsel %vm698_vm8, %v17659_v1, %v7230_v11  ;;  %v7247_v51 = vsel %vm698_vm8, %v7230_v11, %v17660_v36  ;;  %v6808_v18 = vsel %vm446_vm3, %v6794_v20, %v6802_v48  ;;  %v6820_v15 = vsel %vm446_vm3, %v6802_v48, %v17654_v28  ;;  %v17664_v28 = vld [vmem:[#allocation55_spill] sm:$0xff]  ;;  %v11431_v11 = vld [vmem:[#allocation2 + $0x198] sm:$0xff] }
 0xcfd   :  { %7835 = vmatpush2.bf16.msra.mxu0 %v11629_v41  ;;  %v6850_v32 = vmul.f32 %v16163_v52, %v6808_v18  ;;  %v6851_v10 = vmul.f32 %v6839_v42, %v6820_v15  ;;  %v7280_v61 = vmul.f32 %v7261_v17, %v7235_v3  ;;  %v7281_v40 = vmul.f32 %v7265_v59, %v7247_v51  ;;  %v17666_v42 = vld [vmem:[#allocation80_spill] sm:$0xff]  ;;  %v11374_v20 = vld [vmem:[#allocation2 + $0x80] ss:$-8 sps:$4 sm:$0xff]  }
 0xcfe   :  { %7836 = vmatprep.subr.bf16.mxu0 %v11630_v50  ;;  %7918 = vmatprep.subr.bf16.mxu1 %v11631_v14  ;;  %v11433_v50 = vld [vmem:[#allocation2 + $0x218] sm:$0xff] }
 0xcff   :  { %v7226_v8 = vpop.permute.xlu1 %7225  ;;  %v7232_v55 = vpop.permute.xlu0 %7231  ;;  %7919 = vmatpush2.bf16.msra.mxu1 %v11632_v62  ;;  %v11634_v13 = vpack.c.bf16 %v6851_v10, %v6847_v47  ;;  %v11635_v30 = vpack.c.bf16 %v6850_v32, %v6846_v24  ;;  %v10554_v24 = vcombine.high %v11432_v31, %v11433_v50  ;;  %v10553_v48 = vcombine.low %v11432_v31, %v11433_v50  ;;  %v11429_v50 = vld [vmem:[%s16924_s19 + $0x4] ss:$12 sps:$4 sm:$0xff]  }
 0xd00   :  { %v7233_v2 = vsel %vm698_vm8, %v17663_v33, %v7226_v8  ;;  %v7245_v52 = vsel %vm698_vm8, %v7226_v8, %v17664_v28  ;;  %v7236_v57 = vsel %vm698_vm8, %v17665_v38, %v7232_v55  ;;  %v7248_v34 = vsel %vm698_vm8, %v7232_v55, %v17666_v42 }
 0xd01   :  { %7837 = vmatpush2.bf16.msra.mxu0 %v11633_v19  ;;  %v7284_v5 = vmul.f32 %v7261_v17, %v7236_v57  ;;  %v7285_v16 = vmul.f32 %v7265_v59, %v7248_v34  ;;  %v7272_v22 = vmul.f32 %v7261_v17, %v7233_v2  ;;  %v7273_v49 = vmul.f32 %v7265_v59, %v7245_v52 }
 0xd02   :  { %7838 = vmatprep.subr.bf16.mxu0 %v11372_v56  ;;  %7920 = vmatprep.subr.bf16.mxu1 %v11634_v13 }
 0xd03   :  { %v7228_v44 = vpop.permute.xlu0 %7227  ;;  %7921 = vmatpush2.bf16.msra.mxu1 %v11635_v30  ;;  %v11637_v6 = vpack.c.bf16 %v7285_v16, %v7281_v40  ;;  %v11638_v37 = vpack.c.bf16 %v7284_v5, %v7280_v61 }
 0xd04   :  { %v7234_v45 = vsel %vm698_vm8, %v17667_v21, %v7228_v44  ;;  %v7246_v60 = vsel %vm698_vm8, %v7228_v44, %v17668_v27  ;;  %7922 = vmatprep.subr.bf16.mxu1 %v11636_v29 }
 0xd05   :  { %7839 = vmatpush2.bf16.msra.mxu0 %v11374_v20  ;;  %v7276_v25 = vmul.f32 %v7261_v17, %v7234_v45  ;;  %v7277_v7 = vmul.f32 %v7265_v59, %v7246_v60  ;;  %v11380_v17 = vld [vmem:[#allocation2 + $0xf8] ss:$200 sps:$4 sm:$0xff]   ;;  %v11430_v59 = vld [vmem:[#allocation2 + $0x230] sm:$0xff] }
 0xd06   :  { %7949 = vmatprep.subr.bf16.mxu0 %v11637_v6  ;;  %v10514_v0 = vcombine.high %v11430_v59, %v11431_v11  ;;  %v10513_v47 = vcombine.low %v11430_v59, %v11431_v11  ;;  %v9040_v11 = vld [vmem:[%s16925_s20] sm:$0xff] }
 0xd07   :  { %7923 = vmatpush2.bf16.msra.mxu1 %v11639_v39  ;;  %v11640_v41 = vpack.c.bf16 %v7277_v7, %v7273_v49  ;;  %v11641_v4 = vpack.c.bf16 %v7276_v25, %v7272_v22 }
 0xd08   :  { %7841 = vmatmul.mubr.bf16.vlgmr.msra.gmra.mxu0 %v11375_v12  ;;  %7924 = vmatprep.subr.bf16.mxu1 %v11378_v23 }
 0xd09   :  { %7950 = vmatpush1.bf16.msra.mxu0 %v11638_v37  ;;  %7969 = vmatprep.mubr.bf16.mxu0 %v17673_v53 }
 0xd0a   :  { %7951 = vmatprep.subr.bf16.mxu0 %v11640_v41 }
 0xd0b   :  { %7925 = vmatpush2.bf16.msra.mxu1 %v11380_v17 }
 0xd0c   :  { %9485 = vmatprep.subr.bf16.mxu1 %v10554_v24  ;;  %v7423_v36 = vpop.permute.xlu1 %7422  ;;  %v9041_v24 = vld [vmem:[%s16925_s20 + $0x8] sm:$0xff] }
 0xd0d   :  { %7952 = vmatpush1.bf16.msra.mxu0 %v11641_v4 }
 0xd0e   :  { %9430 = vmatprep.subr.bf16.mxu0 %v10514_v0  ;;  %7927 = vmatmul.mubr.bf16.vlgmr.msra.gmra.mxu1 %v11375_v12 }
 0xd0f   :  { %9486 = vmatpush1.bf16.msra.mxu1 %v10553_v48  ;;  %9505 = vmatprep.mubr.bf16.mxu1 %v17673_v53 }
 0xd10   :  { %10406 = vmatmul.mubr.msk.bf16.vlgmr.msra.gmra.mxu0 %vm5107_vm9, %v15848_v46  ;;  %v7428_v62 = vpop.permute.xlu0 %7427 }
 0xd11   :  { %9431 = vmatpush1.bf16.msra.mxu0 %v10513_v47  ;;  %v9615_v47 = vld [vmem:[%s16926_s22] sm:$0x7f]  ;;  %9462 = vmatprep.mubr.bf16.mxu0 %v11429_v50 }
 0xd86   :  { %v7885_v1 = vpop.f32.mrf.mxu1 }
 0xd88   :  { %v7887_v3 = vpop.f32.mrf.mxu1 }
 0xd8a   :  { %v7889_v32 = vpop.f32.mrf.mxu1 }
 0xd8c   :  { %v7891_v61 = vpop.f32.mrf.mxu1 }
 0xdc8   :  { %v7842_v51 = vpop.f32.mrf.mxu0 }
 0xdc9   :  { %v7843_v18 = vadd.f32 %v7842_v51, %v7423_v36 }
 0xdca   :  { %v7844_v15 = vpop.f32.mrf.mxu0 }
 0xdcb   :  { %v7886_v10 = vadd.f32 %v7885_v1, %v7843_v18  ;;  %v7845_v14 = vadd.f32 %v7844_v15, %v7423_v36 }
 0xdcc   :  { %v7846_v8 = vpop.f32.mrf.mxu0 }
 0xdcd   :  { %v16270_v43 = vmax.f32 %v7886_v10, 0.0  ;;  %v7888_v9 = vadd.f32 %v7887_v3, %v7845_v14  ;;  %v7847_v46 = vadd.f32 %v7846_v8, %v7428_v62 }
 0xdce   :  { %v7848_v19 = vpop.f32.mrf.mxu0  ;;  %v7928_v52 = vpop.f32.mrf.mxu1 }
 0xdcf   :  { %v16272_v40 = vmax.f32 %v7888_v9, 0.0  ;;  %v7890_v55 = vadd.f32 %v7889_v32, %v7847_v46  ;;  %v7849_v56 = vadd.f32 %v7848_v19, %v7428_v62  ;;  %8343 = vrot.lane.b32.xlu1 %v16270_v43, %s17288_s1  ;;  %v7929_v57 = vadd.f32 %v7928_v52, %v7423_v36  ;;  %v17678_v52 = vld [vmem:[#allocation78_spill] sm:$0xff] }
 0xdd0   :  { %v7971_v33 = vpop.f32.mrf.mxu0  ;;  %v7930_v5 = vpop.f32.mrf.mxu1 }
 0xdd1   :  { %v16276_v2 = vmax.f32 %v7890_v55, 0.0  ;;  %v7892_v28 = vadd.f32 %v7891_v61, %v7849_v56  ;;  %v10879_v38 = vpack.c.bf16 %v16272_v40, %v16270_v43  ;;  %v7931_v16 = vadd.f32 %v7930_v5, %v7423_v36 }
 0xdd2   :  { %v7973_v42 = vpop.f32.mrf.mxu0  ;;  %v7972_v13 = vadd.f32 %v7971_v33, %v7929_v57  ;;  %v7932_v30 = vpop.f32.mrf.mxu1  ;;  %v17679_v57 = vld [vmem:[#allocation79_spill] sm:$0xff] }
 0xdd3   :  { %v16280_v34 = vmax.f32 %v7892_v28, 0.0  ;;  %8345 = vrot.lane.b32.xlu0 %v16276_v2, %s17288_s1  ;;  %8847 = vrot.lane.b32.xlu1 %v16270_v43, %s17456_s4  ;;  %8484 = vst [vmem:[#allocation2 + $0x80] sm:$0xff] %v10879_v38  ;;  %v7933_v49 = vadd.f32 %v7932_v30, %v7428_v62  ;;  %v7974_v44 = vadd.f32 %v7973_v42, %v7931_v16 }
 0xdd4   :  { %v7975_v20 = vpop.f32.mrf.mxu0  ;;  %v7934_v12 = vpop.f32.mrf.mxu1  ;;  %v16296_v60 = vmax.f32 %v7972_v13, 0.0 }
 0xdd5   :  { %v10881_v22 = vpack.c.bf16 %v16280_v34, %v16276_v2  ;;  %v16298_v63 = vmax.f32 %v7974_v44, 0.0  ;;  %v7935_v54 = vadd.f32 %v7934_v12, %v7428_v62  ;;  %v7976_v29 = vadd.f32 %v7975_v20, %v7933_v49 }
 0xdd6   :  { %v7977_v21 = vpop.f32.mrf.mxu0  ;;  %17674 = vst [vmem:[#allocation15_spill] sm:$0xff] %v16296_v60 }
 0xdd7   :  { %8849 = vrot.lane.b32.xlu0 %v16276_v2, %s17456_s4  ;;  %8225 = vrot.lane.b32.xlu1 %v16270_v43, %s17251_s10  ;;  %8486 = vst [vmem:[#allocation2 + $0x78] sm:$0xff] %v10881_v22  ;;  %17675 = vst [vmem:[#allocation68_spill] sm:$0xff] %v16298_v63  ;;  %v7978_v25 = vadd.f32 %v7977_v21, %v7935_v54  ;;  %v10880_v7 = vpack.c.bf16 %v16298_v63, %v16296_v60  ;;  %v16306_v6 = vmax.f32 %v7976_v29, 0.0 }
 0xdd9   :  { %17676 = vst [vmem:[#allocation59_spill] sm:$0xff] %v16306_v6  ;;  %v16308_v37 = vmax.f32 %v7978_v25, 0.0  ;;  %8485 = vst [vmem:[#allocation2 + $0xf8] sm:$0xff] %v10880_v7 }
 0xddb   :  { %8227 = vrot.lane.b32.xlu0 %v16276_v2, %s17251_s10  ;;  %8107 = vrot.lane.b32.xlu1 %v16270_v43, %s17252_s8  ;;  %17677 = vst [vmem:[#allocation66_spill] sm:$0xff] %v16308_v37  ;;  %v10882_v58 = vpack.c.bf16 %v16308_v37, %v16306_v6 }
 0xddd   :  { %8487 = vst [vmem:[#allocation2 + $0x1c0] sm:$0xff] %v10882_v58  ;;  %v11383_v58 = vld [vmem:[#allocation2 + $0x20c] ss:$-176 sps:$4 sm:$0xff]  }
 0xddf   :  { %8109 = vrot.lane.b32.xlu0 %v16276_v2, %s17252_s8  ;;  %7989 = vrot.lane.b32.xlu1 %v16270_v43, %s17233_s7 }
 0xde3   :  { %7991 = vrot.lane.b32.xlu0 %v16276_v2, %s17233_s7  ;;  %8729 = vrot.lane.b32.xlu1 %v16270_v43, %s17457_s29 }
 0xde7   :  { %8731 = vrot.lane.b32.xlu0 %v16276_v2, %s17457_s29  ;;  %8347 = vrot.lane.b32.xlu1 %v16272_v40, %s17288_s1 }
 0xdeb   :  { %8349 = vrot.lane.b32.xlu0 %v16280_v34, %s17288_s1  ;;  %8851 = vrot.lane.b32.xlu1 %v16272_v40, %s17456_s4 }
 0xdef   :  { %8853 = vrot.lane.b32.xlu0 %v16280_v34, %s17456_s4  ;;  %8229 = vrot.lane.b32.xlu1 %v16272_v40, %s17251_s10 }
 0xdf3   :  { %8231 = vrot.lane.b32.xlu0 %v16280_v34, %s17251_s10  ;;  %8111 = vrot.lane.b32.xlu1 %v16272_v40, %s17252_s8 }
 0xdf7   :  { %8113 = vrot.lane.b32.xlu0 %v16280_v34, %s17252_s8  ;;  %7993 = vrot.lane.b32.xlu1 %v16272_v40, %s17233_s7 }
 0xdfb   :  { %7995 = vrot.lane.b32.xlu0 %v16280_v34, %s17233_s7  ;;  %8733 = vrot.lane.b32.xlu1 %v16272_v40, %s17457_s29 }
 0xdff   :  { %8735 = vrot.lane.b32.xlu0 %v16280_v34, %s17457_s29  ;;  %8855 = vrot.lane.b32.xlu1 %v16296_v60, %s17456_s4 }
 0xe03   :  { %8857 = vrot.lane.b32.xlu0 %v16306_v6, %s17456_s4  ;;  %8351 = vrot.lane.b32.xlu1 %v16296_v60, %s17288_s1 }
 0xe07   :  { %8353 = vrot.lane.b32.xlu0 %v16306_v6, %s17288_s1  ;;  %8233 = vrot.lane.b32.xlu1 %v16296_v60, %s17251_s10 }
 0xe0b   :  { %8235 = vrot.lane.b32.xlu0 %v16306_v6, %s17251_s10  ;;  %8115 = vrot.lane.b32.xlu1 %v16296_v60, %s17252_s8 }
 0xe0f   :  { %8117 = vrot.lane.b32.xlu0 %v16306_v6, %s17252_s8  ;;  %7997 = vrot.lane.b32.xlu1 %v16296_v60, %s17233_s7 }
 0xe13   :  { %7999 = vrot.lane.b32.xlu0 %v16306_v6, %s17233_s7  ;;  %8355 = vrot.lane.b32.xlu1 %v16298_v63, %s17288_s1 }
 0xe17   :  { %8357 = vrot.lane.b32.xlu0 %v16308_v37, %s17288_s1  ;;  %8737 = vrot.lane.b32.xlu1 %v16296_v60, %s17457_s29 }
 0xe1b   :  { %8739 = vrot.lane.b32.xlu0 %v16306_v6, %s17457_s29  ;;  %8237 = vrot.lane.b32.xlu1 %v16298_v63, %s17251_s10 }
 0xe1f   :  { %8239 = vrot.lane.b32.xlu0 %v16308_v37, %s17251_s10  ;;  %8119 = vrot.lane.b32.xlu1 %v16298_v63, %s17252_s8 }
 0xe23   :  { %8613 = vrot.lane.b32.xlu0 %v16276_v2, %s17458_s9  ;;  %8001 = vrot.lane.b32.xlu1 %v16298_v63, %s17233_s7 }
 0xe27   :  { %8121 = vrot.lane.b32.xlu0 %v16308_v37, %s17252_s8  ;;  %8611 = vrot.lane.b32.xlu1 %v16270_v43, %s17458_s9 }
 0xe2b   :  { %8617 = vrot.lane.b32.xlu0 %v16280_v34, %s17458_s9  ;;  %8615 = vrot.lane.b32.xlu1 %v16272_v40, %s17458_s9 }
 0xe2f   :  { %8003 = vrot.lane.b32.xlu0 %v16308_v37, %s17233_s7  ;;  %8619 = vrot.lane.b32.xlu1 %v16296_v60, %s17458_s9 }
 0xe33   :  { %8621 = vrot.lane.b32.xlu0 %v16306_v6, %s17458_s9  ;;  %8741 = vrot.lane.b32.xlu1 %v16298_v63, %s17457_s29 }
 0xe37   :  { %8495 = vrot.lane.b32.xlu0 %v16276_v2, %s17287_s25  ;;  %8493 = vrot.lane.b32.xlu1 %v16270_v43, %s17287_s25 }
 0xe3b   :  { %8499 = vrot.lane.b32.xlu0 %v16280_v34, %s17287_s25  ;;  %8497 = vrot.lane.b32.xlu1 %v16272_v40, %s17287_s25 }
 0xe3f   :  { %8743 = vrot.lane.b32.xlu0 %v16308_v37, %s17457_s29  ;;  %8501 = vrot.lane.b32.xlu1 %v16296_v60, %s17287_s25  ;;  %v17688_v60 = vld [vmem:[#allocation60_spill] sm:$0xff] }
 0xe41   :  { %v16416_v23 = vpop.permute.xlu1 %8343 }
 0xe43   :  { %8503 = vrot.lane.b32.xlu0 %v16306_v6, %s17287_s25  ;;  %8623 = vrot.lane.b32.xlu1 %v16298_v63, %s17458_s9  ;;  %v17691_v6 = vld [vmem:[#allocation57_spill] sm:$0xff] }
 0xe45   :  { %v16422_v41 = vpop.permute.xlu0 %8345  ;;  %v16424_v4 = vpop.permute.xlu1 %8847 }
 0xe47   :  { %8625 = vrot.lane.b32.xlu0 %v16308_v37, %s17458_s9  ;;  %8505 = vrot.lane.b32.xlu1 %v16298_v63, %s17287_s25 }
 0xe49   :  { %v16430_v17 = vpop.permute.xlu0 %8849  ;;  %v16432_v59 = vpop.permute.xlu1 %8225 }
 0xe4b   :  { %8507 = vrot.lane.b32.xlu0 %v16308_v37, %s17287_s25  ;;  %8859 = vrot.lane.b32.xlu1 %v16298_v63, %s17456_s4 }
 0xe4d   :  { %v16441_v0 = vpop.permute.xlu0 %8227  ;;  %v16443_v31 = vpop.permute.xlu1 %8107 }
 0xe4f   :  { %8861 = vrot.lane.b32.xlu0 %v16308_v37, %s17456_s4  ;;  %9044 = vperm.xlu1 %11227, %v9040_v11   ;;  %v16507_v11 = vld [vmem:[%s16924_s19 + $0x8] ss:$12 sps:$4 sm:$0xff]  }
 0xe50   :  { %17680 = vst [vmem:[#allocation98_spill] sm:$0xff] %v16507_v11 }
 0xe51   :  { %v16456_v48 = vpop.permute.xlu0 %8109  ;;  %v16458_v1 = vpop.permute.xlu1 %7989 }
 0xe53   :  { %9049 = vperm.xlu0 %11226, %v9041_v24   ;;  %9618 = vperm.xlu1 %11227, %v9615_v47   ;;  %v11381_v24 = vld [vmem:[#allocation2 + $0x208] ss:$-176 sps:$4 sm:$0xff]  }
 0xe55   :  { %v16460_v3 = vpop.permute.xlu0 %7991  ;;  %v16462_v36 = vpop.permute.xlu1 %8729 }
 0xe59   :  { %v16464_v51 = vpop.permute.xlu0 %8731  ;;  %v8348_v18 = vpop.permute.xlu1 %8347 }
 0xe5d   :  { %v8350_v15 = vpop.permute.xlu0 %8349  ;;  %v8852_v32 = vpop.permute.xlu1 %8851 }
 0xe5e   :  { %v8867_v55 = vsel %vm698_vm8, %v16424_v4, %v8852_v32 }
 0xe5f   :  { %v8892_v38 = vmul.f32 %v17678_v52, %v8867_v55  ;;  %v8364_v55 = vsel %vm358_vm4, %v16422_v41, %v8350_v15 }
 0xe61   :  { %v8854_v10 = vpop.permute.xlu0 %8853  ;;  %v16466_v14 = vpop.permute.xlu1 %8229 }
 0xe62   :  { %v8868_v5 = vsel %vm698_vm8, %v16430_v17, %v8854_v10 }
 0xe63   :  { %v8896_v22 = vmul.f32 %v17678_v52, %v8868_v5  ;;  %v8245_v52 = vsel %vm274_vm5, %v16432_v59, %v16466_v14 }
 0xe65   :  { %v16468_v62 = vpop.permute.xlu0 %8231  ;;  %v16470_v8 = vpop.permute.xlu1 %8111  ;;  %v11646_v54 = vpack.c.bf16 %v8896_v22, %v8892_v38 }
 0xe69   :  { %v16472_v9 = vpop.permute.xlu0 %8113  ;;  %v16474_v46 = vpop.permute.xlu1 %7993 }
 0xe6d   :  { %v16476_v19 = vpop.permute.xlu0 %7995  ;;  %v8734_v61 = vpop.permute.xlu1 %8733 }
 0xe71   :  { %v16481_v56 = vpop.permute.xlu0 %8735  ;;  %v16483_v33 = vpop.permute.xlu1 %8855 }
 0xe72   :  { %v8865_v28 = vsel %vm698_vm8, %v8852_v32, %v16483_v33 }
 0xe73   :  { %v8893_v42 = vmul.f32 %v17679_v57, %v8865_v28 }
 0xe75   :  { %v10907_v16 = vpack.c.bf16 %v8893_v42, %v8892_v38  ;;  %v16493_v13 = vpop.permute.xlu0 %8857  ;;  %v8352_v20 = vpop.permute.xlu1 %8351 }
 0xe76   :  { %v8866_v30 = vsel %vm698_vm8, %v8854_v10, %v16493_v13  ;;  %v8363_v10 = vsel %vm358_vm4, %v16416_v23, %v8348_v18  ;;  %v8361_v28 = vsel %vm358_vm4, %v8348_v18, %v8352_v20 }
 0xe77   :  { %8924 = vst [vmem:[#allocation2 + $0x68] sm:$0xff] %v10907_v16  ;;  %v8897_v49 = vmul.f32 %v17679_v57, %v8866_v30  ;;  %v8749_v16 = vsel %vm614_vm1, %v16462_v36, %v8734_v61 }
 0xe79   :  { %v10909_v44 = vpack.c.bf16 %v8897_v49, %v8896_v22  ;;  %v8354_v12 = vpop.permute.xlu0 %8353  ;;  %v8234_v21 = vpop.permute.xlu1 %8233  ;;  %v11647_v29 = vpack.c.bf16 %v8897_v49, %v8893_v42  ;;  %v17681_v42 = vld [vmem:[#allocation42_spill] sm:$0xff]  ;;  %v17682_v49 = vld [vmem:[#allocation43_spill] sm:$0xff] }
 0xe7a   :  { %v8389_v5 = vmul.f32 %v17681_v42, %v8363_v10  ;;  %v8393_v22 = vmul.f32 %v17681_v42, %v8364_v55  ;;  %v17685_v10 = vld [vmem:[#allocation52_spill] sm:$0xff] }
 0xe7b   :  { %8926 = vst [vmem:[#allocation2 + $0x228] sm:$0xff] %v10909_v44  ;;  %9487 = vmatprep.subr.bf16.mxu1 %v11647_v29  ;;  %v16544_v44 = vmul.f32 %v17682_v49, %v8361_v28  ;;  %v16551_v35 = vmul.f32 %v17685_v10, %v8245_v52  ;;  %v17686_v55 = vld [vmem:[#allocation28_spill] sm:$0xff]  ;;  %v8750_v52 = vsel %vm614_vm1, %v16464_v51, %v16481_v56 }
 0xe7c   :  { %9488 = vmatpush1.bf16.msra.mxu1 %v11646_v54  ;;  %v17683_v54 = vld [vmem:[#allocation46_spill] sm:$0xff]  ;;  %v16563_v28 = vmul.f32 %v17686_v55, %v8749_v16 }
 0xe7d   :  { %v16500_v25 = vpop.permute.xlu0 %8235  ;;  %v16502_v7 = vpop.permute.xlu1 %8115  ;;  %9516 = vmatprep.subr.bf16.mxu1 %v11383_v58  ;;  %v17684_v58 = vld [vmem:[#allocation47_spill] sm:$0xff] }
 0xe7f   :  { %10557 = vmatmul.mubr.msk.bf16.vlgmr.msra.gmra.mxu1 %vm5107_vm9, %v16507_v11  ;;  %v17687_v11 = vld [vmem:[#allocation29_spill] sm:$0xff] }
 0xe80   :  { %9517 = vmatpush1.bf16.msra.mxu1 %v11381_v24  ;;  %9548 = vmatprep.mubr.bf16.mxu1 %v11429_v50  ;;  %v8246_v50 = vsel %vm274_vm5, %v16441_v0, %v16468_v62 }
 0xe81   :  { %v16509_v47 = vpop.permute.xlu0 %8117  ;;  %v16511_v32 = vpop.permute.xlu1 %7997  ;;  %v16554_v39 = vmul.f32 %v17685_v10, %v8246_v50 }
 0xe85   :  { %v16531_v38 = vpop.permute.xlu0 %7999  ;;  %v8356_v57 = vpop.permute.xlu1 %8355 }
 0xe86   :  { %v8359_v18 = vsel %vm358_vm4, %v8352_v20, %v8356_v57  ;;  %v8365_v30 = vsel %vm358_vm4, %v8356_v57, %v16416_v23  ;;  %v8127_v23 = vsel %vm190_vm6, %v16443_v31, %v16470_v8  ;;  %v8362_v20 = vsel %vm358_vm4, %v8350_v15, %v8354_v12 }
 0xe87   :  { %v16547_v29 = vmul.f32 %v17683_v54, %v8365_v30  ;;  %v8391_v24 = vmul.f32 %v17684_v58, %v8359_v18  ;;  %v8243_v18 = vsel %vm274_vm5, %v16466_v14, %v8234_v21  ;;  %v8394_v10 = vmul.f32 %v17682_v49, %v8362_v20 }
 0xe88   :  { %v8244_v49 = vsel %vm274_vm5, %v16468_v62, %v16500_v25 }
 0xe89   :  { %v10871_v57 = vpack.c.bf16 %v8389_v5, %v16547_v29  ;;  %v8358_v50 = vpop.permute.xlu0 %8357  ;;  %v16570_v42 = vpop.permute.xlu1 %8737  ;;  %v11650_v63 = vpack.c.bf16 %v8394_v10, %v16544_v44  ;;  %v11387_v10 = vld [vmem:[#allocation2 + $0xd4] ss:$-112 sps:$4 sm:$0xff]  }
 0xe8a   :  { %v8360_v15 = vsel %vm358_vm4, %v8354_v12, %v8358_v50  ;;  %v8366_v16 = vsel %vm358_vm4, %v8358_v50, %v16422_v41  ;;  %v8747_v30 = vsel %vm614_vm1, %v8734_v61, %v16570_v42  ;;  %v16590_v12 = vmul.f32 %v17688_v60, %v8127_v23 }
 0xe8b   :  { %8420 = vst [vmem:[#allocation2 + $0x88] sm:$0xff] %v10871_v57  ;;  %v8392_v45 = vmul.f32 %v17683_v54, %v8366_v16  ;;  %v8395_v27 = vmul.f32 %v17684_v58, %v8360_v15  ;;  %v16587_v14 = vmul.f32 %v17687_v11, %v8747_v30  ;;  %v8009_v41 = vsel %vm106_vm7, %v16458_v1, %v16474_v46  ;;  %v17689_v54 = vld [vmem:[#allocation53_spill] sm:$0xff] }
 0xe8c   :  { %v16597_v61 = vmul.f32 %v17686_v55, %v8750_v52  ;;  %v16604_v58 = vmul.f32 %v17689_v54, %v8243_v18  ;;  %v8125_v55 = vsel %vm190_vm6, %v16470_v8, %v16502_v7  ;;  %v16624_v15 = vmul.f32 %v17689_v54, %v8244_v49  ;;  %v17690_v8 = vld [vmem:[#allocation56_spill] sm:$0xff] }
 0xe8d   :  { %v10873_v20 = vpack.c.bf16 %v8393_v22, %v8392_v45  ;;  %v10899_v23 = vpack.c.bf16 %v16587_v14, %v16563_v28  ;;  %v16608_v57 = vpop.permute.xlu0 %8739  ;;  %v8238_v50 = vpop.permute.xlu1 %8237  ;;  %v11648_v53 = vpack.c.bf16 %v8392_v45, %v16547_v29  ;;  %v11651_v37 = vpack.c.bf16 %v8395_v27, %v8391_v24  ;;  %v17694_v24 = vld [vmem:[#allocation65_spill] sm:$0xff] }
 0xe8e   :  { %v8748_v62 = vsel %vm614_vm1, %v16481_v56, %v16608_v57  ;;  %v8241_v52 = vsel %vm274_vm5, %v8234_v21, %v8238_v50  ;;  %v8247_v18 = vsel %vm274_vm5, %v8238_v50, %v16432_v59  ;;  %v11649_v21 = vpack.c.bf16 %v8393_v22, %v8389_v5  ;;  %v17692_v59 = vld [vmem:[#allocation61_spill] sm:$0xff] }
 0xe8f   :  { %8422 = vst [vmem:[#allocation2 + $0x1f0] sm:$0xff] %v10873_v20  ;;  %8806 = vst [vmem:[#allocation2 + $0x30] sm:$0xff] %v10899_v23  ;;  %v16627_v16 = vmul.f32 %v17687_v11, %v8748_v62  ;;  %v16630_v30 = vmul.f32 %v17690_v8, %v8247_v18  ;;  %v8273_v56 = vmul.f32 %v17691_v6, %v8241_v52  ;;  %9518 = vmatprep.subr.bf16.mxu1 %v11651_v37  ;;  %v17695_v18 = vld [vmem:[#allocation69_spill] sm:$0xff] }
 0xe90   :  { %v16636_v50 = vmul.f32 %v17692_v59, %v8125_v55  ;;  %9432 = vmatprep.subr.bf16.mxu0 %v11649_v21  ;;  %9519 = vmatpush1.bf16.msra.mxu1 %v11650_v63  ;;  %v11385_v21 = vld [vmem:[#allocation2 + $0xd0] ss:$-112 sps:$4 sm:$0xff]  }
 0xe91   :  { %v10901_v49 = vpack.c.bf16 %v16627_v16, %v16597_v61  ;;  %v10863_v11 = vpack.c.bf16 %v16551_v35, %v16630_v30  ;;  %v8240_v54 = vpop.permute.xlu0 %8239  ;;  %v8120_v20 = vpop.permute.xlu1 %8119  ;;  %9433 = vmatpush1.bf16.msra.mxu0 %v11648_v53 }
 0xe92   :  { %v8242_v23 = vsel %vm274_vm5, %v16500_v25, %v8240_v54  ;;  %v8248_v45 = vsel %vm274_vm5, %v8240_v54, %v16441_v0  ;;  %v8123_v27 = vsel %vm190_vm6, %v16502_v7, %v8120_v20  ;;  %v8129_v5 = vsel %vm190_vm6, %v8120_v20, %v16443_v31  ;;  %v17693_v25 = vld [vmem:[#allocation64_spill] sm:$0xff]  ;;  %9434 = vmatprep.subr.bf16.mxu0 %v11387_v10 }
 0xe93   :  { %8808 = vst [vmem:[#allocation2 + $0x128] sm:$0xff] %v10901_v49  ;;  %8302 = vst [vmem:[#allocation2 + $0x1e0] sm:$0xff] %v10863_v11  ;;  %v8274_v22 = vmul.f32 %v17690_v8, %v8248_v45  ;;  %v8277_v44 = vmul.f32 %v17691_v6, %v8242_v23  ;;  %v16657_v29 = vmul.f32 %v17693_v25, %v8129_v5  ;;  %v11390_v6 = vld [vmem:[#allocation2 + $0x154] ss:$-24 sps:$4 sm:$0xff]   ;;  %v11388_v49 = vld [vmem:[#allocation2 + $0x150] ss:$-24 sps:$4 sm:$0xff]  }
 0xe94   :  { %v16660_v0 = vmul.f32 %v17694_v24, %v8123_v27  ;;  %v8128_v31 = vsel %vm190_vm6, %v16456_v48, %v16472_v9  ;;  %v8007_v7 = vsel %vm106_vm7, %v16474_v46, %v16511_v32  ;;  %v16676_v8 = vmul.f32 %v17695_v18, %v8009_v41  ;;  %9520 = vmatprep.subr.bf16.mxu1 %v11390_v6  ;;  %v17696_v11 = vld [vmem:[#allocation70_spill] sm:$0xff]  ;;  %v17697_v41 = vld [vmem:[#allocation73_spill] sm:$0xff] }
 0xe95   :  { %v10865_v55 = vpack.c.bf16 %v16554_v39, %v8274_v22  ;;  %v10855_v62 = vpack.c.bf16 %v16590_v12, %v16657_v29  ;;  %v16673_v37 = vpop.permute.xlu0 %8613  ;;  %v8002_v52 = vpop.permute.xlu1 %8001  ;;  %v8126_v46 = vsel %vm190_vm6, %v16472_v9, %v16509_v47  ;;  %v16689_v54 = vmul.f32 %v17696_v11, %v8007_v7  ;;  %v17698_v9 = vld [vmem:[#allocation76_spill] sm:$0xff]  ;;  %9435 = vmatpush1.bf16.msra.mxu0 %v11385_v21 }
 0xe96   :  { %v8005_v53 = vsel %vm106_vm7, %v16511_v32, %v8002_v52  ;;  %v8011_v63 = vsel %vm106_vm7, %v8002_v52, %v16458_v1  ;;  %v11652_v32 = vpack.c.bf16 %v16554_v39, %v16551_v35  ;;  %9521 = vmatpush1.bf16.msra.mxu1 %v11388_v49  ;;  %v11653_v1 = vpack.c.bf16 %v8274_v22, %v16630_v30  ;;  %v11396_v22 = vld [vmem:[#allocation2 + $0x114] ss:$-88 sps:$4 sm:$0xff]  }
 0xe97   :  { %8304 = vst [vmem:[#allocation2 + $0x160] sm:$0xff] %v10865_v55  ;;  %8184 = vst [vmem:[#allocation2 + $0xd8] sm:$0xff] %v10855_v62  ;;  %v16692_v20 = vmul.f32 %v17697_v41, %v8011_v63  ;;  %v16695_v23 = vmul.f32 %v17698_v9, %v8005_v53  ;;  %v11654_v45 = vpack.c.bf16 %v16624_v15, %v16604_v58 }
 0xe98   :  { %v11655_v27 = vpack.c.bf16 %v8277_v44, %v8273_v56  ;;  %9436 = vmatprep.subr.bf16.mxu0 %v11652_v32  ;;  %v8157_v39 = vmul.f32 %v17688_v60, %v8128_v31  ;;  %v8158_v58 = vmul.f32 %v17692_v59, %v8126_v46  ;;  %v11393_v56 = vld [vmem:[#allocation2 + $0x10c] ss:$176 sps:$4 sm:$0xff]   ;;  %v8010_v60 = vsel %vm106_vm7, %v16460_v3, %v16476_v19  ;;  %v11391_v59 = vld [vmem:[#allocation2 + $0x108] ss:$176 sps:$4 sm:$0xff]  }
 0xe99   :  { %v10847_v5 = vpack.c.bf16 %v16676_v8, %v16692_v20  ;;  %v8122_v10 = vpop.permute.xlu0 %8121  ;;  %v16704_v7 = vpop.permute.xlu1 %8611  ;;  %9437 = vmatpush1.bf16.msra.mxu0 %v11653_v1  ;;  %v8039_v53 = vmul.f32 %v17695_v18, %v8010_v60  ;;  %v17699_v18 = vld [vmem:[#allocation32_spill] sm:$0xff]  ;;  %v17700_v1 = vld [vmem:[#allocation33_spill] sm:$0xff] }
 0xe9a   :  { %v8124_v6 = vsel %vm190_vm6, %v16509_v47, %v8122_v10  ;;  %v8130_v35 = vsel %vm190_vm6, %v8122_v10, %v16456_v48  ;;  %9522 = vmatprep.subr.bf16.mxu1 %v11655_v27  ;;  %9438 = vmatprep.subr.bf16.mxu0 %v11393_v56  ;;  %v8008_v48 = vsel %vm106_vm7, %v16476_v19, %v16531_v38  ;;  %v11402_v27 = vld [vmem:[#allocation2 + $0xf4] ss:$48 sps:$4 sm:$0xff]   ;;  %v17701_v56 = vld [vmem:[#allocation30_spill] sm:$0xff] }
 0xe9b   :  { %8066 = vst [vmem:[#allocation2 + $0xc8] sm:$0xff] %v10847_v5  ;;  %v8156_v15 = vmul.f32 %v17693_v25, %v8130_v35  ;;  %v8159_v30 = vmul.f32 %v17694_v24, %v8124_v6  ;;  %9523 = vmatpush1.bf16.msra.mxu1 %v11654_v45  ;;  %v11394_v25 = vld [vmem:[#allocation2 + $0x110] ss:$-88 sps:$4 sm:$0xff]   ;;  %v11656_v31 = vpack.c.bf16 %v8157_v39, %v16590_v12 }
 0xe9c   :  { %9524 = vmatprep.subr.bf16.mxu1 %v11396_v22  ;;  %v11658_v52 = vpack.c.bf16 %v8158_v58, %v16636_v50  ;;  %v8040_v19 = vmul.f32 %v17696_v11, %v8008_v48  ;;  %v11397_v58 = vld [vmem:[#allocation2 + $0xe8] ss:$-120 sps:$4 sm:$0xff]  }
 0xe9d   :  { %v10857_v44 = vpack.c.bf16 %v8157_v39, %v8156_v15  ;;  %v8618_v47 = vpop.permute.xlu0 %8617  ;;  %v8616_v55 = vpop.permute.xlu1 %8615  ;;  %9439 = vmatpush1.bf16.msra.mxu0 %v11391_v59  ;;  %v11657_v62 = vpack.c.bf16 %v8156_v15, %v16657_v29  ;;  %v11659_v46 = vpack.c.bf16 %v8159_v30, %v16660_v0  ;;  %v11400_v15 = vld [vmem:[#allocation2 + $0xf0] ss:$48 sps:$4 sm:$0xff]  }
 0xe9e   :  { %v8631_v24 = vsel %vm530_vm2, %v16704_v7, %v8616_v55  ;;  %9440 = vmatprep.subr.bf16.mxu0 %v11656_v31  ;;  %v8632_v12 = vsel %vm530_vm2, %v16673_v37, %v8618_v47  ;;  %v11408_v31 = vld [vmem:[#allocation2 + $0x11c] ss:$-248 sps:$4 sm:$0xff]  }
 0xe9f   :  { %8186 = vst [vmem:[#allocation2 + $0xb0] sm:$0xff] %v10857_v44  ;;  %9525 = vmatpush1.bf16.msra.mxu1 %v11394_v25  ;;  %v16748_v49 = vmul.f32 %v17699_v18, %v8631_v24  ;;  %v17702_v44 = vld [vmem:[#allocation31_spill] sm:$0xff] }
 0xea0   :  { %9526 = vmatprep.subr.bf16.mxu1 %v11659_v46  ;;  %v11405_v24 = vld [vmem:[#allocation2 + $0x94] ss:$176 sps:$4 sm:$0xff]  }
 0xea1   :  { %v8004_v63 = vpop.permute.xlu0 %8003  ;;  %v16733_v21 = vpop.permute.xlu1 %8619  ;;  %9441 = vmatpush1.bf16.msra.mxu0 %v11657_v62 }
 0xea2   :  { %v8006_v29 = vsel %vm106_vm7, %v16531_v38, %v8004_v63  ;;  %v8012_v50 = vsel %vm106_vm7, %v8004_v63, %v16460_v3  ;;  %v8629_v0 = vsel %vm530_vm2, %v8616_v55, %v16733_v21  ;;  %v11399_v38 = vld [vmem:[#allocation2 + $0xec] ss:$-120 sps:$4 sm:$0xff]  }
 0xea3   :  { %v8038_v11 = vmul.f32 %v17697_v41, %v8012_v50  ;;  %v8041_v32 = vmul.f32 %v17698_v9, %v8006_v29  ;;  %v16753_v45 = vmul.f32 %v17700_v1, %v8629_v0  ;;  %9527 = vmatpush1.bf16.msra.mxu1 %v11658_v52  ;;  %9442 = vmatprep.subr.bf16.mxu0 %v11399_v38  ;;  %v17703_v29 = vld [vmem:[#allocation38_spill] sm:$0xff]  ;;  %v17704_v0 = vld [vmem:[#allocation39_spill] sm:$0xff] }
 0xea4   :  { %9528 = vmatprep.subr.bf16.mxu1 %v11402_v27  ;;  %v16760_v41 = vmul.f32 %v17699_v18, %v8632_v12 }
 0xea5   :  { %v10849_v3 = vpack.c.bf16 %v8039_v53, %v8038_v11  ;;  %v10891_v5 = vpack.c.bf16 %v16753_v45, %v16748_v49  ;;  %v16757_v10 = vpop.permute.xlu0 %8621  ;;  %v8742_v6 = vpop.permute.xlu1 %8741  ;;  %v11660_v55 = vpack.c.bf16 %v8038_v11, %v16692_v20  ;;  %9443 = vmatpush1.bf16.msra.mxu0 %v11397_v58  ;;  %v11663_v60 = vpack.c.bf16 %v8041_v32, %v16695_v23  ;;  %v11411_v11 = vld [vmem:[#allocation2 + $0x54] ss:$176 sps:$4 sm:$0xff]  }
 0xea6   :  { %v8630_v9 = vsel %vm530_vm2, %v8618_v47, %v16757_v10  ;;  %v8745_v35 = vsel %vm614_vm1, %v16570_v42, %v8742_v6  ;;  %v8751_v39 = vsel %vm614_vm1, %v8742_v6, %v16462_v36  ;;  %v11661_v42 = vpack.c.bf16 %v8039_v53, %v16676_v8  ;;  %v11403_v8 = vld [vmem:[#allocation2 + $0x90] ss:$176 sps:$4 sm:$0xff]  }
 0xea7   :  { %8068 = vst [vmem:[#allocation2 + $0x40] sm:$0xff] %v10849_v3  ;;  %8688 = vst [vmem:[#allocation2 + $0x238] sm:$0xff] %v10891_v5  ;;  %v16772_v30 = vmul.f32 %v17700_v1, %v8630_v9  ;;  %v16775_v22 = vmul.f32 %v17701_v56, %v8745_v35  ;;  %v16778_v47 = vmul.f32 %v17702_v44, %v8751_v39  ;;  %9529 = vmatpush1.bf16.msra.mxu1 %v11400_v15  ;;  %v11409_v6 = vld [vmem:[#allocation2 + $0x50] ss:$176 sps:$4 sm:$0xff]   ;;  %v17705_v35 = vld [vmem:[#allocation34_spill] sm:$0xff] }
 0xea8   :  { %v11662_v36 = vpack.c.bf16 %v8040_v19, %v16689_v54  ;;  %9444 = vmatprep.subr.bf16.mxu0 %v11661_v42  ;;  %9530 = vmatprep.subr.bf16.mxu1 %v11663_v60  ;;  %v11406_v54 = vld [vmem:[#allocation2 + $0x118] ss:$-248 sps:$4 sm:$0xff]   ;;  %v11664_v23 = vpack.c.bf16 %v16627_v16, %v16587_v14  ;;  %v11665_v19 = vpack.c.bf16 %v16597_v61, %v16563_v28  ;;  %v17707_v60 = vld [vmem:[#allocation40_spill] sm:$0xff] }
 0xea9   :  { %v10893_v48 = vpack.c.bf16 %v16772_v30, %v16760_v41  ;;  %v16786_v59 = vpop.permute.xlu0 %8495  ;;  %v8494_v25 = vpop.permute.xlu1 %8493  ;;  %9445 = vmatpush1.bf16.msra.mxu0 %v11660_v55  ;;  %v11669_v55 = vpack.c.bf16 %v16760_v41, %v16748_v49 }
 0xeaa   :  { %9446 = vmatprep.subr.bf16.mxu0 %v11405_v24 }
 0xeab   :  { %8690 = vst [vmem:[#allocation2 + $0x1a0] sm:$0xff] %v10893_v48  ;;  %9531 = vmatpush1.bf16.msra.mxu1 %v11662_v36  ;;  %v11417_v36 = vld [vmem:[#allocation2 + $0x1b4] ss:$-240 sps:$4 sm:$0xff]  }
 0xeac   :  { %9532 = vmatprep.subr.bf16.mxu1 %v11408_v31  ;;  %v11414_v31 = vld [vmem:[#allocation2 + $0x4c] ss:$80 sps:$4 sm:$0xff]  }
 0xead   :  { %v8500_v20 = vpop.permute.xlu0 %8499  ;;  %v8498_v62 = vpop.permute.xlu1 %8497  ;;  %9447 = vmatpush2.bf16.msra.mxu0 %v11403_v8 }
 0xeae   :  { %v8513_v52 = vsel %vm446_vm3, %v8494_v25, %v8498_v62  ;;  %9448 = vmatprep.subr.bf16.mxu0 %v11664_v23  ;;  %v8514_v63 = vsel %vm446_vm3, %v16786_v59, %v8500_v20 }
 0xeaf   :  { %9533 = vmatpush2.bf16.msra.mxu1 %v11406_v54  ;;  %v16806_v50 = vmul.f32 %v17703_v29, %v8513_v52  ;;  %v8542_v38 = vmul.f32 %v17703_v29, %v8514_v63  ;;  %v17709_v63 = vld [vmem:[#allocation81_spill] sm:$0xff] }
 0xeb1   :  { %v8744_v46 = vpop.permute.xlu0 %8743  ;;  %v8502_v53 = vpop.permute.xlu1 %8501  ;;  %9449 = vmatpush2.bf16.msra.mxu0 %v11665_v19 }
 0xeb2   :  { %v8746_v12 = vsel %vm614_vm1, %v16608_v57, %v8744_v46  ;;  %v8752_v14 = vsel %vm614_vm1, %v8744_v46, %v16464_v51  ;;  %v8511_v16 = vsel %vm446_vm3, %v8498_v62, %v8502_v53  ;;  %9450 = vmatprep.subr.bf16.mxu0 %v11411_v11  ;;  %v11666_v51 = vpack.c.bf16 %v16772_v30, %v16753_v45  ;;  %v17706_v45 = vld [vmem:[#allocation35_spill] sm:$0xff]  ;;  %v11412_v46 = vld [vmem:[#allocation2 + $0x48] ss:$80 sps:$4 sm:$0xff]  }
 0xeb3   :  { %v8780_v28 = vmul.f32 %v17701_v56, %v8746_v12  ;;  %v8781_v61 = vmul.f32 %v17702_v44, %v8752_v14  ;;  %v8539_v18 = vmul.f32 %v17704_v0, %v8511_v16  ;;  %v11415_v62 = vld [vmem:[#allocation2 + $0x1b0] ss:$-240 sps:$4 sm:$0xff]   ;;  %v17710_v14 = vld [vmem:[#allocation82_spill] sm:$0xff] }
 0xeb5   :  { %v10883_v57 = vpack.c.bf16 %v8539_v18, %v16806_v50  ;;  %v8504_v32 = vpop.permute.xlu0 %8503  ;;  %v8624_v1 = vpop.permute.xlu1 %8623  ;;  %v11667_v15 = vpack.c.bf16 %v8780_v28, %v16775_v22  ;;  %9451 = vmatpush2.bf16.msra.mxu0 %v11409_v6  ;;  %v11668_v30 = vpack.c.bf16 %v8781_v61, %v16778_v47  ;;  %v11673_v61 = vpack.c.bf16 %v8542_v38, %v16806_v50  ;;  %v11424_v6 = vld [vmem:[#allocation2 + $0x1f8] ss:$-48 sps:$4 sm:$0xff]  }
 0xeb6   :  { %v8512_v27 = vsel %vm446_vm3, %v8500_v20, %v8504_v32  ;;  %v8627_v3 = vsel %vm530_vm2, %v16733_v21, %v8624_v1  ;;  %v8633_v5 = vsel %vm530_vm2, %v8624_v1, %v16704_v7  ;;  %9452 = vmatprep.subr.bf16.mxu0 %v11666_v51  ;;  %v11418_v1 = vld [vmem:[#allocation2 + $0x210] ss:$-304 sps:$4 sm:$0xff]   ;;  %v11426_v51 = vld [vmem:[#allocation2 + $0x1fc] ss:$-48 sps:$4 sm:$0xff]  }
 0xeb7   :  { %8570 = vst [vmem:[#allocation2 + $0x188] sm:$0xff] %v10883_v57  ;;  %v8543_v9 = vmul.f32 %v17704_v0, %v8512_v27  ;;  %v8658_v39 = vmul.f32 %v17705_v35, %v8627_v3  ;;  %v8659_v58 = vmul.f32 %v17706_v45, %v8633_v5  ;;  %9534 = vmatprep.subr.bf16.mxu1 %v11668_v30  ;;  %v11423_v0 = vld [vmem:[#allocation2 + $0x1d4] ss:$8 sps:$4 sm:$0xff]   ;;  %v11427_v3 = vld [vmem:[%s16924_s19] ss:$12 sps:$4 sm:$0xff]  }
 0xeb8   :  { %9535 = vmatpush2.bf16.msra.mxu1 %v11667_v15  ;;  %v11420_v57 = vld [vmem:[#allocation2 + $0x214] ss:$-304 sps:$4 sm:$0xff]   ;;  %v17712_v5 = vpack.c.bf16 %v16276_v2, %v16270_v43  ;;  %v17720_v2 = vld [vmem:[#allocation98_spill] sm:$0xff] }
 0xeb9   :  { %v10885_v56 = vpack.c.bf16 %v8543_v9, %v8542_v38  ;;  %v8626_v44 = vpop.permute.xlu0 %8625  ;;  %v8506_v21 = vpop.permute.xlu1 %8505  ;;  %9453 = vmatpush2.bf16.msra.mxu0 %v11669_v55  ;;  %9536 = vmatprep.subr.bf16.mxu1 %v11417_v36  ;;  %v9037_v38 = vld [vmem:[#allocation2 + $0x180] sm:$0xff] }
 0xeba   :  { %v8628_v7 = vsel %vm530_vm2, %v16757_v10, %v8626_v44  ;;  %v8634_v42 = vsel %vm530_vm2, %v8626_v44, %v16673_v37  ;;  %v8509_v22 = vsel %vm446_vm3, %v8502_v53, %v8506_v21  ;;  %v8515_v47 = vsel %vm446_vm3, %v8506_v21, %v8494_v25  ;;  %v17708_v10 = vld [vmem:[#allocation41_spill] sm:$0xff]  ;;  %9454 = vmatprep.subr.bf16.mxu0 %v11414_v31  ;;  %v17717_v15 = vld [vmem:[#allocation59_spill] sm:$0xff] }
 0xebb   :  { %8572 = vst [vmem:[#allocation2 + $0x1a8] sm:$0xff] %v10885_v56  ;;  %v8662_v49 = vmul.f32 %v17705_v35, %v8628_v7  ;;  %v8663_v41 = vmul.f32 %v17706_v45, %v8634_v42  ;;  %v8540_v48 = vmul.f32 %v17707_v60, %v8509_v22  ;;  %v8541_v24 = vmul.f32 %v17708_v10, %v8515_v47  ;;  %v17714_v35 = vld [vmem:[#allocation68_spill] sm:$0xff]  ;;  %v17718_v30 = vld [vmem:[#allocation15_spill] sm:$0xff] }
 0xebc   :  { %v11670_v25 = vpack.c.bf16 %v8543_v9, %v8539_v18  ;;  %9537 = vmatpush2.bf16.msra.mxu1 %v11415_v62  ;;  %v10556_v27 = vcombine.high %v9037_v38, %v9039_v26  ;;  %v10555_v9 = vcombine.low %v9037_v38, %v9039_v26  ;;  %v17716_v45 = vmov 0  }
 0xebd   :  { %v8508_v37 = vpop.permute.xlu0 %8507  ;;  %v8860_v20 = vpop.permute.xlu1 %8859  ;;  %9455 = vmatpush2.bf16.msra.mxu0 %v11412_v46  ;;  %v11672_v29 = vpack.c.bf16 %v8663_v41, %v8659_v58  ;;  %v17719_v43 = vpack.c.bf16 %v17717_v15, %v17718_v30 }
 0xebe   :  { %v8510_v8 = vsel %vm446_vm3, %v8504_v32, %v8508_v37  ;;  %v8516_v54 = vsel %vm446_vm3, %v8508_v37, %v16786_v59  ;;  %v8863_v23 = vsel %vm698_vm8, %v16483_v33, %v8860_v20  ;;  %v8869_v52 = vsel %vm698_vm8, %v8860_v20, %v16424_v4  ;;  %9456 = vmatprep.subr.bf16.mxu0 %v11670_v25  ;;  %v11421_v32 = vld [vmem:[#allocation2 + $0x1d0] ss:$8 sps:$4 sm:$0xff]  }
 0xebf   :  { %v8544_v53 = vmul.f32 %v17707_v60, %v8510_v8  ;;  %v8545_v19 = vmul.f32 %v17708_v10, %v8516_v54  ;;  %v8894_v12 = vmul.f32 %v17709_v63, %v8863_v23  ;;  %v8895_v16 = vmul.f32 %v17710_v14, %v8869_v52  ;;  %9538 = vmatprep.subr.bf16.mxu1 %v11672_v29 }
 0xec0   :  { %v11671_v59 = vpack.c.bf16 %v8662_v49, %v8658_v39 }
 0xec1   :  { %v8862_v28 = vpop.permute.xlu0 %8861  ;;  %9457 = vmatpush2.bf16.msra.mxu0 %v11673_v61  ;;  %v11675_v50 = vpack.c.bf16 %v8544_v53, %v8540_v48 }
 0xec2   :  { %v8864_v33 = vsel %vm698_vm8, %v16493_v13, %v8862_v28  ;;  %v8870_v4 = vsel %vm698_vm8, %v8862_v28, %v16430_v17  ;;  %9539 = vmatpush2.bf16.msra.mxu1 %v11671_v59  ;;  %9458 = vmatprep.subr.bf16.mxu0 %v11420_v57  ;;  %v11674_v13 = vpack.c.bf16 %v8545_v19, %v8541_v24  ;;  %v9610_v57 = vld [vmem:[%s16927_s21] sm:$0xf] }
 0xec3   :  { %v8898_v18 = vmul.f32 %v17709_v63, %v8864_v33  ;;  %v8899_v11 = vmul.f32 %v17710_v14, %v8870_v4  ;;  %9540 = vmatprep.subr.bf16.mxu1 %v11423_v0  ;;  %v17711_v17 = vpack.c.bf16 %v16280_v34, %v16272_v40  ;;  %v17713_v34 = vld [vmem:[#allocation66_spill] sm:$0xff] }
 0xec4   :  { %v17715_v39 = vpack.c.bf16 %v17713_v34, %v17714_v35 }
 0xec5   :  { %9459 = vmatpush2.bf16.msra.mxu0 %v11418_v1  ;;  %v11676_v40 = vpack.c.bf16 %v8899_v11, %v8895_v16  ;;  %v11677_v58 = vpack.c.bf16 %v8898_v18, %v8894_v12 }
 0xec6   :  { %9541 = vmatpush2.bf16.msra.mxu1 %v11421_v32  ;;  %9460 = vmatprep.subr.bf16.mxu0 %v17711_v17 }
 0xec7   :  { %9542 = vmatprep.subr.bf16.mxu1 %v11674_v13 }
 0xec9   :  { %9461 = vmatpush2.bf16.msra.mxu0 %v17712_v5 }
 0xeca   :  { %9543 = vmatpush2.bf16.msra.mxu1 %v11675_v50  ;;  %9571 = vmatprep.subr.bf16.mxu0 %v10556_v27  ;;  %v9045_v7 = vpop.permute.xlu1 %9044 }
 0xecb   :  { %9544 = vmatprep.subr.bf16.mxu1 %v11426_v51 }
 0xecc   :  { %9463 = vmatmul.mubr.bf16.vlgmr.msra.gmra.mxu0 %v11427_v3 }
 0xecd   :  { %9572 = vmatpush1.bf16.msra.mxu0 %v10555_v9  ;;  %9591 = vmatprep.mubr.bf16.mxu0 %v17716_v45 }
 0xece   :  { %9545 = vmatpush2.bf16.msra.mxu1 %v11424_v6  ;;  %9573 = vmatprep.subr.bf16.mxu0 %v11676_v40  ;;  %v9050_v47 = vpop.permute.xlu0 %9049  ;;  %v9619_v51 = vpop.permute.xlu1 %9618 }
 0xecf   :  { %9546 = vmatprep.subr.bf16.mxu1 %v17715_v39 }
 0xed1   :  { %9574 = vmatpush1.bf16.msra.mxu0 %v11677_v58 }
 0xed2   :  { %9547 = vmatpush2.bf16.msra.mxu1 %v17719_v43 }
 0xed4   :  { %10558 = vmatmul.mubr.msk.bf16.vlgmr.msra.gmra.mxu0 %vm5107_vm9, %v17720_v2 }
 0xed5   :  { %9549 = vmatmul.mubr.bf16.vlgmr.msra.gmra.mxu1 %v11427_v3  ;;  %9656 = vmatprep.mubr.bf16.mxu0 %v17716_v45 }
 0xf3f   :  { %v9507_v56 = vpop.f32.mrf.mxu1 }
 0xf41   :  { %v9509_v44 = vpop.f32.mrf.mxu1 }
 0xf43   :  { %v9511_v55 = vpop.f32.mrf.mxu1 }
 0xf45   :  { %v9513_v41 = vpop.f32.mrf.mxu1 }
 0xf8c   :  { %v9464_v21 = vpop.f32.mrf.mxu0 }
 0xf8d   :  { %v9465_v36 = vadd.f32 %v9464_v21, %v9045_v7 }
 0xf8e   :  { %v9466_v42 = vpop.f32.mrf.mxu0 }
 0xf8f   :  { %v9467_v22 = vadd.f32 %v9466_v42, %v9045_v7  ;;  %v9508_v20 = vadd.f32 %v9507_v56, %v9465_v36 }
 0xf90   :  { %v9468_v49 = vpop.f32.mrf.mxu0 }
 0xf91   :  { %v9469_v60 = vadd.f32 %v9468_v49, %v9050_v47  ;;  %v9510_v10 = vadd.f32 %v9509_v44, %v9467_v22  ;;  %v9602_v12 = vmax.f32 %v9508_v20, 0.0 }
 0xf92   :  { %v9470_v48 = vpop.f32.mrf.mxu0 }
 0xf93   :  { %v9512_v24 = vadd.f32 %v9511_v55, %v9469_v60  ;;  %v9471_v31 = vadd.f32 %v9470_v48, %v9050_v47  ;;  %v9603_v46 = vmax.f32 %v9510_v10, 0.0 }
 0xf94   :  { %v9593_v62 = vpop.f32.mrf.mxu0 }
 0xf95   :  { %v9550_v37 = vpop.f32.mrf.mxu1  ;;  %v9514_v25 = vadd.f32 %v9513_v41, %v9471_v31  ;;  %v9606_v54 = vmax.f32 %v9512_v24, 0.0 }
 0xf96   :  { %v9595_v52 = vpop.f32.mrf.mxu0  ;;  %v9551_v19 = vadd.f32 %v9550_v37, %v9045_v7 }
 0xf97   :  { %v9552_v8 = vpop.f32.mrf.mxu1  ;;  %v9607_v53 = vmax.f32 %v9514_v25, 0.0  ;;  %v9611_v28 = vpack.c.bf16 %v9606_v54, %v9602_v12 }
 0xf98   :  { %v9553_v23 = vadd.f32 %v9552_v8, %v9045_v7  ;;  %v9597_v16 = vpop.f32.mrf.mxu0  ;;  %v9594_v0 = vadd.f32 %v9593_v62, %v9551_v19 }
 0xf99   :  { %v9554_v63 = vpop.f32.mrf.mxu1  ;;  %v9612_v29 = vpack.c.bf16 %v9607_v53, %v9603_v46 }
 0xf9a   :  { %v9555_v14 = vadd.f32 %v9554_v63, %v9050_v47  ;;  %v9596_v33 = vadd.f32 %v9595_v52, %v9553_v23  ;;  %v9599_v18 = vpop.f32.mrf.mxu0  ;;  %v9604_v26 = vmax.f32 %v9594_v0, 0.0 }
 0xf9b   :  { %v9556_v59 = vpop.f32.mrf.mxu1  ;;  %9638 = vmatprep.subr.bf16.mxu0 %v9612_v29 }
 0xf9c   :  { %v9598_v4 = vadd.f32 %v9597_v16, %v9555_v14  ;;  %v9557_v61 = vadd.f32 %v9556_v59, %v9050_v47  ;;  %9639 = vmatpush1.bf16.msra.mxu0 %v9611_v28  ;;  %v9605_v1 = vmax.f32 %v9596_v33, 0.0 }
 0xf9e   :  { %v9600_v11 = vadd.f32 %v9599_v18, %v9557_v61  ;;  %v9608_v32 = vmax.f32 %v9598_v4, 0.0 }
 0xf9f   :  { %10559 = vmatmul.mubr.msk.bf16.vlgmr.msra.gmra.mxu0 %vm1003_vm0, %v9610_v57 }
 0xfa0   :  { %v9609_v13 = vmax.f32 %v9600_v11, 0.0  ;;  %9697 = vmatprep.mubr.bf16.mxu0 %v17716_v45  ;;  %v9613_v50 = vpack.c.bf16 %v9608_v32, %v9604_v26 }
 0xfa2   :  { %v9614_v17 = vpack.c.bf16 %v9609_v13, %v9605_v1 }
 0xfa4   :  { %9679 = vmatprep.subr.bf16.mxu0 %v9614_v17 }
 0xfa5   :  { %9680 = vmatpush1.bf16.msra.mxu0 %v9613_v50 }
 0xfa8   :  { %10560 = vmatmul.mubr.msk.bf16.vlgmr.msra.gmra.mxu0 %vm1003_vm0, %v9610_v57 }
0x105f   :  { %v9658_v38 = vpop.f32.mrf.mxu0 }
0x1060   :  { %v9659_v27 = vadd.f32 %v9658_v38, %v9619_v51 }
0x1061   :  { %v9660_v3 = vpop.f32.mrf.mxu0 }
0x1062   :  { %9706 = vst [vmem:[%s16928_s23] sm:$0x7f] %v9659_v27  ;;  %v9661_v5 = vadd.f32 %v9660_v3, %v9619_v51 }
0x1063   :  { %v9662_v6 = vpop.f32.mrf.mxu0 }
0x1064   :  { %9707 = vst [vmem:[%s16928_s23 + $0x8] sm:$0x7f] %v9661_v5 }
0x1065   :  { %v9663_v9 = vpop.f32.mrf.mxu0 }
0x1068   :  { %v9699_v40 = vpop.f32.mrf.mxu0 }
0x1069   :  { %v9700_v34 = vadd.f32 %v9699_v40, %v9619_v51 }
0x106a   :  { %v9701_v35 = vpop.f32.mrf.mxu0 }
0x106b   :  { %10561 = vst [vmem:[%s16928_s23 + $0x10] sm:$0x7f] %v9700_v34  ;;  %v9702_v39 = vadd.f32 %v9701_v35, %v9619_v51 }
0x106c   :  { %v9703_v45 = vpop.f32.mrf.mxu0 }
0x106d   :  { %10562 = vst [vmem:[%s16928_s23 + $0x18] sm:$0x7f] %v9702_v39 }
0x106e   :  { %v9704_v58 = vpop.f32.mrf.mxu0 }

</bundles_post_ra>
